<compile_context>
chip_gen: v6e
topology: v6e:2x2x1
jax: 0.10.0
libtpu: 0.0.40
codegen_flags: <defaults>
</compile_context>

<pallas_src>
import math
import functools
import numpy as np

import jax
import jax.numpy as jnp
from jax.experimental import pallas as pl
from jax.experimental.pallas import tpu as pltpu

F32 = jnp.float32
BF16 = jnp.bfloat16
_LN_EPS = 1e-5
_NEG = -1e9  # large finite negative instead of -inf (avoids NaN on masked rows)


def _parallel():
    return pltpu.CompilerParams(dimension_semantics=("parallel",))


def _const_spec(shape):
    """Full-extent block with a constant index map (weights resident in VMEM)."""
    zeros = (0,) * len(shape)
    return pl.BlockSpec(shape, lambda i, _z=zeros: _z)


def _layernorm(x, g, b):
    mu = jnp.mean(x, axis=-1, keepdims=True)
    var = jnp.mean((x - mu) ** 2, axis=-1, keepdims=True)
    return (x - mu) * jax.lax.rsqrt(var + _LN_EPS) * g + b


def _softmax(x):
    m = jnp.max(x, axis=-1, keepdims=True)
    e = jnp.exp(x - m)
    # division -> EUP reciprocal (VALU slots stay free during the epilogue)
    return e * pl.reciprocal(jnp.sum(e, axis=-1, keepdims=True), approx=True)


# ----------------------------------------------------------------------------
# Pallas kernels
# ----------------------------------------------------------------------------
def _stem_kernel(cols_ref, w_ref, b_ref, pe_ref, o_ref):
    """im2col matmul + bias + ReLU + positional-encoding add, one batch element."""
    y = jnp.dot(cols_ref[0].astype(BF16), w_ref[...],
                preferred_element_type=F32) + b_ref[...]
    o_ref[0] = (jnp.maximum(y, 0.0) + pe_ref[...]).astype(o_ref.dtype)


def pl_conv_stem(images, w_mat, b, pe):
    # TODO(synk): ResNet45 stem simplified to one 3x3 conv + ReLU; the im2col gather
    # stays as plain-JAX glue — at ResNet45 scale this should become a fused
    # shift-accumulate Pallas conv kernel to avoid the 9x HBM inflation.
    N, Cin, H, W = images.shape
    HW, E = H * W, w_mat.shape[1]
    xp = jnp.pad(images, ((0, 0), (0, 0), (1, 1), (1, 1))).transpose(0, 2, 3, 1)
    cols = jnp.concatenate(
        [xp[:, i:i + H, j:j + W, :] for i in range(3) for j in range(3)], axis=-1)
    cols = cols.reshape(N, HW, 9 * Cin)
    return pl.pallas_call(
        _stem_kernel,
        out_shape=jax.ShapeDtypeStruct((N, HW, E), F32),
        grid=(N,),
        in_specs=[pl.BlockSpec((1, HW, 9 * Cin), lambda i: (i, 0, 0)),
                  _const_spec(w_mat.shape),
                  _const_spec(b.shape),
                  _const_spec(pe.shape)],
        out_specs=pl.BlockSpec((1, HW, E), lambda i: (i, 0, 0)),
        compiler_params=_parallel(),
    )(cols, w_mat, b, pe)


_LAYER_WEIGHT_NAMES = ("wq", "bq", "wk", "bk", "wv", "bv", "wo", "bo",
                       "ln1g", "ln1b", "w1", "b1", "w2", "b2", "ln2g", "ln2b")


def _layer_kernel(*refs, nhead, scale, cross, has_mask):
    """One fused post-norm transformer layer (MHA + FFN), one batch element.

    Self-attention when cross=False (tgt == memory), cross-attention otherwise.
    Attention weights are head-major (nhead, E, dh): leading-dim indexing only.
    """
    idx = 0
    tgt = refs[idx][0].astype(F32); idx += 1                 # (T, E)
    mem = tgt
    if cross:
        mem = refs[idx][0].astype(F32); idx += 1             # (Tk, E)
    mask = None
    if has_mask:
        mask = refs[idx][0].astype(F32); idx += 1            # (T, Tk) additive
    (wq, bq, wk, bk, wv, bv, wo, bo,
     g1, be1, w1, bf1, w2, bf2, g2, be2, o_ref) = refs[idx:]

    tgt_b = tgt.astype(BF16)
    mem_b = mem.astype(BF16)
    parts = []
    for h in range(nhead):                                   # static head loop
        qh = jnp.dot(tgt_b, wq[h], preferred_element_type=F32) + bq[h]
        kh = jnp.dot(mem_b, wk[h], preferred_element_type=F32) + bk[h]
        vh = jnp.dot(mem_b, wv[h], preferred_element_type=F32) + bv[h]
        s = jax.lax.dot_general(qh.astype(BF16), kh.astype(BF16),
                                (((1,), (1,)), ((), ())),
                                preferred_element_type=F32) * scale
        if mask is not None:
            s = s + mask
        p = _softmax(s)
        parts.append(jnp.dot(p.astype(BF16), vh.astype(BF16),
                             preferred_element_type=F32))
    av = jnp.concatenate(parts, axis=-1)                     # (T, E) head-major
    attn = jnp.dot(av.astype(BF16), wo[...], preferred_element_type=F32) + bo[...]
    h1 = _layernorm(tgt + attn, g1[...], be1[...])
    ff = jnp.maximum(jnp.dot(h1.astype(BF16), w1[...],
                             preferred_element_type=F32) + bf1[...], 0.0)
    ff = jnp.dot(ff.astype(BF16), w2[...], preferred_element_type=F32) + bf2[...]
    o_ref[0] = _layernorm(h1 + ff, g2[...], be2[...]).astype(o_ref.dtype)


def pl_layer(tgt, p, nhead, *, memory=None, mask=None):
    """tgt: (N, T, E) f32 (or (1, T, E) query broadcast over batch).
    memory: optional (N, Tk, E) f32 for cross-attention.  mask: (N, T, Tk) f32."""
    cross = memory is not None
    N = memory.shape[0] if cross else tgt.shape[0]
    T, E = tgt.shape[1], tgt.shape[2]
    Tk = memory.shape[1] if cross else T
    dh = E // nhead
    tgt_bcast = tgt.shape[0] == 1

    inputs = [tgt]
    in_specs = [pl.BlockSpec((1, T, E),
                             (lambda i: (0, 0, 0)) if tgt_bcast
                             else (lambda i: (i, 0, 0)))]
    if cross:
        inputs.append(memory)
        in_specs.append(pl.BlockSpec((1, Tk, E), lambda i: (i, 0, 0)))
    if mask is not None:
        inputs.append(mask.astype(F32))
        in_specs.append(pl.BlockSpec((1, T, Tk), lambda i: (i, 0, 0)))
    for nm in _LAYER_WEIGHT_NAMES:
        inputs.append(p[nm])
        in_specs.append(_const_spec(p[nm].shape))

    return pl.pallas_call(
        functools.partial(_layer_kernel, nhead=nhead, scale=1.0 / math.sqrt(dh),
                          cross=cross, has_mask=mask is not None),
        out_shape=jax.ShapeDtypeStruct((N, T, E), F32),
        grid=(N,),
        in_specs=in_specs,
        out_specs=pl.BlockSpec((1, T, E), lambda i: (i, 0, 0)),
        compiler_params=_parallel(),
    )(*inputs)


def _pos_attn_cls_kernel(tok_ref, pe_ref, kw_ref, kb_ref, pw_ref, pb_ref,
                         cw_ref, cb_ref, feat_ref, logit_ref, prob_ref, *, scale):
    """Key-proj + query-proj + position attention + classifier + softmax, one batch."""
    v = tok_ref[0].astype(F32)                               # (HW, E)
    vb = v.astype(BF16)
    # TODO(synk): PositionAttention's mini U-Net key encoder simplified to one Linear.
    k = jnp.dot(vb, kw_ref[...], preferred_element_type=F32) + kb_ref[...]
    q = jnp.dot(pe_ref[...].astype(BF16), pw_ref[...],
                preferred_element_type=F32) + pb_ref[...]    # (T, E)
    s = jax.lax.dot_general(q.astype(BF16), k.astype(BF16),
                            (((1,), (1,)), ((), ())),
                            preferred_element_type=F32) * scale
    p = _softmax(s)                                          # (T, HW)
    attn = jnp.dot(p.astype(BF16), vb, preferred_element_type=F32)   # (T, E)
    feat_ref[0] = attn.astype(feat_ref.dtype)
    logits = jnp.dot(attn.astype(BF16), cw_ref[...],
                     preferred_element_type=F32) + cb_ref[...]       # (T, CP)
    logit_ref[0] = logits.astype(logit_ref.dtype)
    prob_ref[0] = _softmax(logits).astype(prob_ref.dtype)


def pl_pos_attn_cls(tokens, pe_attn, k_w, k_b, proj_w, proj_b, cls_w, cls_b, scale):
    N, HW, E = tokens.shape
    T = pe_attn.shape[0]
    CP = cls_w.shape[1]
    return pl.pallas_call(
        functools.partial(_pos_attn_cls_kernel, scale=scale),
        out_shape=(jax.ShapeDtypeStruct((N, T, E), F32),
                   jax.ShapeDtypeStruct((N, T, CP), F32),
                   jax.ShapeDtypeStruct((N, T, CP), F32)),
        grid=(N,),
        in_specs=[pl.BlockSpec((1, HW, E), lambda i: (i, 0, 0)),
                  _const_spec(pe_attn.shape),
                  _const_spec(k_w.shape), _const_spec(k_b.shape),
                  _const_spec(proj_w.shape), _const_spec(proj_b.shape),
                  _const_spec(cls_w.shape), _const_spec(cls_b.shape)],
        out_specs=(pl.BlockSpec((1, T, E), lambda i: (i, 0, 0)),
                   pl.BlockSpec((1, T, CP), lambda i: (i, 0, 0)),
                   pl.BlockSpec((1, T, CP), lambda i: (i, 0, 0))),
        compiler_params=_parallel(),
    )(tokens, pe_attn, k_w, k_b, proj_w, proj_b, cls_w, cls_b)


def _lang_embed_kernel(tok_ref, w_ref, pe_ref, o_ref):
    """Token projection (bias-free Linear over padded classes) + PE add."""
    e = jnp.dot(tok_ref[0].astype(BF16), w_ref[...], preferred_element_type=F32)
    o_ref[0] = (e + pe_ref[...]).astype(o_ref.dtype)


def pl_lang_embed(probs_pad, proj_w, pe):
    N, T, CP = probs_pad.shape
    E = proj_w.shape[1]
    return pl.pallas_call(
        _lang_embed_kernel,
        out_shape=jax.ShapeDtypeStruct((N, T, E), F32),
        grid=(N,),
        in_specs=[pl.BlockSpec((1, T, CP), lambda i: (i, 0, 0)),
                  _const_spec(proj_w.shape), _const_spec(pe.shape)],
        out_specs=pl.BlockSpec((1, T, E), lambda i: (i, 0, 0)),
        compiler_params=_parallel(),
    )(probs_pad, proj_w, pe)


def _align_kernel(l_ref, v_ref, wl_ref, wv_ref, ba_ref, cw_ref, cb_ref,
                  logit_ref, prob_ref):
    """BaseAlignment: w_att (split over the cat) + sigmoid gate + cls + softmax."""
    l = l_ref[0].astype(F32)
    v = v_ref[0].astype(F32)
    a = (jnp.dot(l.astype(BF16), wl_ref[...], preferred_element_type=F32)
         + jnp.dot(v.astype(BF16), wv_ref[...], preferred_element_type=F32)
         + ba_ref[...])
    gate = jax.nn.sigmoid(a)
    fused = gate * v + (1.0 - gate) * l
    logits = jnp.dot(fused.astype(BF16), cw_ref[...],
                     preferred_element_type=F32) + cb_ref[...]
    logit_ref[0] = logits.astype(logit_ref.dtype)
    prob_ref[0] = _softmax(logits).astype(prob_ref.dtype)


def pl_alignment(l_feature, v_feature, P):
    N, T, E = l_feature.shape
    CP = P["cls_w"].shape[1]
    return pl.pallas_call(
        _align_kernel,
        out_shape=(jax.ShapeDtypeStruct((N, T, CP), F32),
                   jax.ShapeDtypeStruct((N, T, CP), F32)),
        grid=(N,),
        in_specs=[pl.BlockSpec((1, T, E), lambda i: (i, 0, 0)),
                  pl.BlockSpec((1, T, E), lambda i: (i, 0, 0)),
                  _const_spec(P["w_att_l"].shape), _const_spec(P["w_att_v"].shape),
                  _const_spec(P["b_att"].shape),
                  _const_spec(P["cls_w"].shape), _const_spec(P["cls_b"].shape)],
        out_specs=(pl.BlockSpec((1, T, CP), lambda i: (i, 0, 0)),
                   pl.BlockSpec((1, T, CP), lambda i: (i, 0, 0))),
        compiler_params=_parallel(),
    )(l_feature, v_feature, P["w_att_l"], P["w_att_v"], P["b_att"],
      P["cls_w"], P["cls_b"])


# ----------------------------------------------------------------------------
# Plain-JAX glue (tiny, not hot paths)
# ----------------------------------------------------------------------------
def sinusoidal_pe(max_len, d):
    pos = np.arange(max_len, dtype=np.float32)[:, None]
    div = np.exp(np.arange(0, d, 2, dtype=np.float32) * (-np.log(10000.0) / d))
    pe = np.zeros((max_len, d), dtype=np.float32)
    pe[:, 0::2] = np.sin(pos * div)
    pe[:, 1::2] = np.cos(pos * div)
    return jnp.asarray(pe)


def get_length(logits, null_label):
    """Greedy decoder of BaseModel._get_length (plain JAX; not a hot path)."""
    N, T, _ = logits.shape
    hit = jnp.argmax(logits, axis=-1) == null_label
    abn = jnp.any(hit, axis=-1)
    idx = jnp.argmax((jnp.cumsum(hit, axis=-1) == 1) & hit, axis=-1) + 1
    return jnp.where(abn, idx, T).astype(jnp.int32)


# ----------------------------------------------------------------------------
# Sub-model forwards
# ----------------------------------------------------------------------------
def vision_forward(images, P, cfg):
    nhead, C, E = cfg["nhead"], cfg["C"], cfg["E"]
    tokens = pl_conv_stem(images, P["conv_w"], P["conv_b"], P["pe_backbone"])
    for lp in P["enc_layers"]:
        tokens = pl_layer(tokens, lp, nhead)                      # self-attention
    feature, logits_pad, probs_pad = pl_pos_attn_cls(
        tokens, P["pe_attn"], P["k_w"], P["k_b"], P["proj_w"], P["proj_b"],
        P["cls_w"], P["cls_b"], 1.0 / math.sqrt(E))
    pt_lengths = get_length(logits_pad[:, :, :C], cfg["null_label"])
    return dict(feature=feature, logits_pad=logits_pad, probs_pad=probs_pad,
                pt_lengths=pt_lengths)


def language_forward(probs_pad, lengths, P, cfg):
    """probs_pad: (N, T, C_pad) f32 probabilities; lengths: (N,) int32 -> (N, T, E)."""
    nhead, T = cfg["nhead"], cfg["max_length"]
    embed = pl_lang_embed(probs_pad, P["proj_w"], P["pe"])        # proj + PE fused
    pad = jnp.where(jnp.arange(T)[None, :] >= lengths[:, None], _NEG, 0.0)
    loc = jnp.where(jnp.eye(T, dtype=bool), _NEG, 0.0)
    mask = (loc[None] + pad[:, None, :]).astype(F32)              # (N, T, T)
    out = P["pe"][None].astype(F32)                               # query = pos_encoder(zeros)
    for lp in P["dec_layers"]:
        out = pl_layer(out, lp, nhead, memory=embed, mask=mask)   # cross-attention
    # NOTE: the language-branch cls logits / pt_lengths are never consumed by
    # ABINet.forward (only 'feature' feeds alignment), so they are not computed.
    return out


def alignment_forward(l_feature, v_feature, P, cfg):
    logits_pad, probs_pad = pl_alignment(l_feature, v_feature, P)
    pt_lengths = get_length(logits_pad[:, :, :cfg["C"]], cfg["null_label"])
    return logits_pad, probs_pad, pt_lengths


def abinet_forward(images, params, cfg):
    v_res = vision_forward(images, params["vision"], cfg)
    logits_pad, probs_pad, pt_lengths = (v_res["logits_pad"], v_res["probs_pad"],
                                         v_res["pt_lengths"])
    for _ in range(cfg["iter_size"]):
        lengths = jnp.clip(pt_lengths, 2, cfg["max_length"])
        l_feature = language_forward(probs_pad, lengths, params["language"], cfg)
        logits_pad, probs_pad, pt_lengths = alignment_forward(
            l_feature, v_res["feature"], params["alignment"], cfg)
    logits = logits_pad[:, :, :cfg["C"]]                          # un-pad classifier lanes
    return logits[:, : cfg["max_label_length"] + 1]


# ----------------------------------------------------------------------------
# Deterministic parameter construction (matches init_weights schemes; attention
# weights stored head-major, classifier weights lane-padded, matmul weights bf16,
# biases / LN params f32)
# ----------------------------------------------------------------------------
def trunc_normal(key, shape, std=0.02):
    return std * jax.random.truncated_normal(key, -2.0, 2.0, shape, F32)


def make_params(cfg, key):
    keys = iter(jax.random.split(key, 256))
    nk = lambda: next(keys)
    E, C, CP = cfg["E"], cfg["C"], cfg["C_pad"]
    dff, Cin, T = cfg["d_inner"], cfg["Cin"], cfg["max_length"]
    nhead = cfg["nhead"]
    dh = E // nhead
    HW = cfg["H"] * cfg["W"]

    def w_init(shape):
        return trunc_normal(nk(), shape).astype(BF16)

    def zeros(*shape):
        return jnp.zeros(shape, F32)

    def layer_p():
        # Attention projections head-major (nhead, E, dh): kernels index the leading
        # head dim (free) instead of slicing 8-lane / 8-sublane sub-tiles.
        return dict(
            wq=w_init((nhead, E, dh)), bq=zeros(nhead, 1, dh),
            wk=w_init((nhead, E, dh)), bk=zeros(nhead, 1, dh),
            wv=w_init((nhead, E, dh)), bv=zeros(nhead, 1, dh),
            wo=w_init((E, E)), bo=zeros(1, E),
            ln1g=jnp.ones((1, E), F32), ln1b=zeros(1, E),
            w1=w_init((E, dff)), b1=zeros(1, dff),
            w2=w_init((dff, E)), b2=zeros(1, E),
            ln2g=jnp.ones((1, E), F32), ln2b=zeros(1, E))

    def cls_padded():
        # Lane-dense classifier: pad C -> CP columns; padded bias = -1e9 so padded
        # classes get exactly-zero probability after softmax and never win argmax.
        w = jnp.zeros((E, CP), F32).at[:, :C].set(trunc_normal(nk(), (E, C)))
        b = jnp.full((1, CP), _NEG, F32).at[:, :C].set(0.0)
        return w.astype(BF16), b

    conv_std = math.sqrt(2.0 / (E * 9))                  # kaiming_normal, fan_out, relu
    conv_w = (conv_std * jax.random.normal(nk(), (9 * Cin, E), F32)).astype(BF16)

    v_cls_w, v_cls_b = cls_padded()
    vision = dict(conv_w=conv_w, conv_b=zeros(1, E),
                  pe_backbone=sinusoidal_pe(HW, E),
                  pe_attn=sinusoidal_pe(T, E),
                  enc_layers=[layer_p() for _ in range(cfg["v_num_layers"])],
                  k_w=w_init((E, E)), k_b=zeros(1, E),
                  proj_w=w_init((E, E)), proj_b=zeros(1, E),
                  cls_w=v_cls_w, cls_b=v_cls_b)

    # nn.Linear(C, E, bias=False); rows C..CP-1 are zero so the zero-probability
    # padded classes contribute nothing.
    lang_proj = jnp.zeros((CP, E), F32).at[:C, :].set(trunc_normal(nk(), (C, E)))
    language = dict(proj_w=lang_proj.astype(BF16),
                    pe=sinusoidal_pe(T, E),
                    dec_layers=[layer_p() for _ in range(cfg["l_num_layers"])])

    a_cls_w, a_cls_b = cls_padded()
    alignment = dict(w_att_l=w_init((E, E)), w_att_v=w_init((E, E)),
                     b_att=zeros(1, E), cls_w=a_cls_w, cls_b=a_cls_b)

    return dict(vision=vision, language=language, alignment=alignment)


# ----------------------------------------------------------------------------
if __name__ == "__main__":
    cfg = dict(
        N=2, Cin=3, H=8, W=16,          # small image: (2, 3, 8, 16) NCHW -> HW = 128
        E=32, nhead=4, d_inner=64,      # d_model / heads / FFN
        C=10, C_pad=128,                # num_classes / lane-padded classifier width
        max_label_length=7,             # -> max_length = 8 (T)
        null_label=0,                   # eos_id
        iter_size=2, v_num_layers=2, l_num_layers=2,
    )
    cfg["max_length"] = cfg["max_label_length"] + 1

    key = jax.random.PRNGKey(0)
    pkey, xkey = jax.random.split(key)
    params = make_params(cfg, pkey)
    images = jax.random.normal(xkey, (cfg["N"], cfg["Cin"], cfg["H"], cfg["W"]),
                               dtype=jnp.float32)

    fwd = jax.jit(functools.partial(abinet_forward, cfg=cfg))
    logits = fwd(images, params)
    jax.block_until_ready(logits)

    assert logits.shape == (cfg["N"], cfg["max_label_length"] + 1, cfg["C"])
    assert logits.dtype == jnp.float32
    assert bool(jnp.all(jnp.isfinite(logits)))
    print("KERNEL_OK")
</pallas_src>

<mosaic_0001>
module attributes {stable_mosaic.version = 11 : i64} {
  func.func @_stem_kernel(%arg0: i32, %arg1: memref<1x128x27xf32, #tpu.memory_space<vmem>>, %arg2: memref<27x32xbf16, #tpu.memory_space<vmem>>, %arg3: memref<1x32xf32, #tpu.memory_space<vmem>>, %arg4: memref<128x32xf32, #tpu.memory_space<vmem>>, %arg5: memref<1x128x32xf32, #tpu.memory_space<vmem>>) attributes {dimension_semantics = [#tpu.dimension_semantics<parallel>], iteration_bounds = array<i64: 2>, scalar_prefetch = 0 : i64, scratch_operands = 0 : i64, tpu.core_type = #tpu.core_type<tc>, window_params = [{transform_indices = @transform_0, window_bounds = array<i64: 1, 128, 27>}, {pipeline_mode = #tpu.pipeline_mode<synchronous>, transform_indices = @transform_1, window_bounds = array<i64: 27, 32>}, {pipeline_mode = #tpu.pipeline_mode<synchronous>, transform_indices = @transform_2, window_bounds = array<i64: 1, 32>}, {pipeline_mode = #tpu.pipeline_mode<synchronous>, transform_indices = @transform_3, window_bounds = array<i64: 128, 32>}, {transform_indices = @transform_4, window_bounds = array<i64: 1, 128, 32>}]} {
    %c0 = arith.constant 0 : index
    %c0_0 = arith.constant 0 : index
    %c0_1 = arith.constant 0 : index
    %0 = vector.load %arg1[%c0, %c0_0, %c0_1] : memref<1x128x27xf32, #tpu.memory_space<vmem>>, vector<1x128x27xf32>
    %1 = vector.shape_cast %0 : vector<1x128x27xf32> to vector<128x27xf32>
    %2 = arith.truncf %1 : vector<128x27xf32> to vector<128x27xbf16>
    %c0_2 = arith.constant 0 : index
    %c0_3 = arith.constant 0 : index
    %3 = vector.load %arg2[%c0_2, %c0_3] : memref<27x32xbf16, #tpu.memory_space<vmem>>, vector<27x32xbf16>
    %cst = arith.constant dense<0.000000e+00> : vector<128x32xf32>
    %4 = tpu.matmul %2, %3, %cst {dimension_numbers = #tpu.dot_dimension_numbers<[1], [0], [0], [1], [0, 0, 1, 1], [], []>} : vector<128x27xbf16>, vector<27x32xbf16>, vector<128x32xf32> -> vector<128x32xf32>
    %c0_4 = arith.constant 0 : index
    %c0_5 = arith.constant 0 : index
    %5 = vector.load %arg3[%c0_4, %c0_5] : memref<1x32xf32, #tpu.memory_space<vmem>>, vector<1x32xf32>
    %6 = vector.broadcast %5 : vector<1x32xf32> to vector<128x32xf32>
    %7 = arith.addf %4, %6 : vector<128x32xf32>
    %cst_6 = arith.constant 0.000000e+00 : f32
    %8 = vector.broadcast %cst_6 : f32 to vector<128x32xf32>
    %9 = arith.maximumf %7, %8 : vector<128x32xf32>
    %c0_7 = arith.constant 0 : index
    %c0_8 = arith.constant 0 : index
    %10 = vector.load %arg4[%c0_7, %c0_8] : memref<128x32xf32, #tpu.memory_space<vmem>>, vector<128x32xf32>
    %11 = arith.addf %9, %10 : vector<128x32xf32>
    %c0_9 = arith.constant 0 : index
    %c0_10 = arith.constant 0 : index
    %c0_11 = arith.constant 0 : index
    %12 = vector.load %arg5[%c0_9, %c0_10, %c0_11] : memref<1x128x32xf32, #tpu.memory_space<vmem>>, vector<1x128x32xf32>
    %13 = vector.shape_cast %12 : vector<1x128x32xf32> to vector<128x32xf32>
    %14 = vector.shape_cast %11 : vector<128x32xf32> to vector<1x128x32xf32>
    tpu.vector_store %arg5[%c0_9, %c0_10, %c0_11], %14 {strides = array<i32>} : memref<1x128x32xf32, #tpu.memory_space<vmem>>, vector<1x128x32xf32>,
    return
  }
  func.func @transform_0(%arg0: i32) -> (i32, i32, i32) {
    %c0_i32 = arith.constant 0 : i32
    %c0_i32_0 = arith.constant 0 : i32
    %c0_i32_1 = arith.constant 0 : i32
    return %arg0, %c0_i32, %c0_i32_0 : i32, i32, i32
  }
  func.func @transform_1(%arg0: i32) -> (i32, i32) {
    %c0_i32 = arith.constant 0 : i32
    %c0_i32_0 = arith.constant 0 : i32
    %c0_i32_1 = arith.constant 0 : i32
    return %c0_i32, %c0_i32_0 : i32, i32
  }
  func.func @transform_2(%arg0: i32) -> (i32, i32) {
    %c0_i32 = arith.constant 0 : i32
    %c0_i32_0 = arith.constant 0 : i32
    %c0_i32_1 = arith.constant 0 : i32
    return %c0_i32, %c0_i32_0 : i32, i32
  }
  func.func @transform_3(%arg0: i32) -> (i32, i32) {
    %c0_i32 = arith.constant 0 : i32
    %c0_i32_0 = arith.constant 0 : i32
    %c0_i32_1 = arith.constant 0 : i32
    return %c0_i32, %c0_i32_0 : i32, i32
  }
  func.func @transform_4(%arg0: i32) -> (i32, i32, i32) {
    %c0_i32 = arith.constant 0 : i32
    %c0_i32_0 = arith.constant 0 : i32
    %c0_i32_1 = arith.constant 0 : i32
    return %arg0, %c0_i32, %c0_i32_0 : i32, i32, i32
  }
}

module attributes {stable_mosaic.version = 11 : i64} {
  func.func @_pos_attn_cls_kernel(%arg0: i32, %arg1: memref<1x128x32xf32, #tpu.memory_space<vmem>>, %arg2: memref<8x32xf32, #tpu.memory_space<vmem>>, %arg3: memref<32x32xbf16, #tpu.memory_space<vmem>>, %arg4: memref<1x32xf32, #tpu.memory_space<vmem>>, %arg5: memref<32x32xbf16, #tpu.memory_space<vmem>>, %arg6: memref<1x32xf32, #tpu.memory_space<vmem>>, %arg7: memref<32x128xbf16, #tpu.memory_space<vmem>>, %arg8: memref<1x128xf32, #tpu.memory_space<vmem>>, %arg9: memref<1x8x32xf32, #tpu.memory_space<vmem>>, %arg10: memref<1x8x128xf32, #tpu.memory_space<vmem>>, %arg11: memref<1x8x128xf32, #tpu.memory_space<vmem>>) attributes {dimension_semantics = [#tpu.dimension_semantics<parallel>], iteration_bounds = array<i64: 2>, scalar_prefetch = 0 : i64, scratch_operands = 0 : i64, tpu.core_type = #tpu.core_type<tc>, window_params = [{transform_indices = @transform_0, window_bounds = array<i64: 1, 128, 32>}, {pipeline_mode = #tpu.pipeline_mode<synchronous>, transform_indices = @transform_1, window_bounds = array<i64: 8, 32>}, {pipeline_mode = #tpu.pipeline_mode<synchronous>, transform_indices = @transform_2, window_bounds = array<i64: 32, 32>}, {pipeline_mode = #tpu.pipeline_mode<synchronous>, transform_indices = @transform_3, window_bounds = array<i64: 1, 32>}, {pipeline_mode = #tpu.pipeline_mode<synchronous>, transform_indices = @transform_4, window_bounds = array<i64: 32, 32>}, {pipeline_mode = #tpu.pipeline_mode<synchronous>, transform_indices = @transform_5, window_bounds = array<i64: 1, 32>}, {pipeline_mode = #tpu.pipeline_mode<synchronous>, transform_indices = @transform_6, window_bounds = array<i64: 32, 128>}, {pipeline_mode = #tpu.pipeline_mode<synchronous>, transform_indices = @transform_7, window_bounds = array<i64: 1, 128>}, {transform_indices = @transform_8, window_bounds = array<i64: 1, 8, 32>}, {transform_indices = @transform_9, window_bounds = array<i64: 1, 8, 128>}, {transform_indices = @transform_10, window_bounds = array<i64: 1, 8, 128>}]} {
    %c0 = arith.constant 0 : index
    %c0_0 = arith.constant 0 : index
    %c0_1 = arith.constant 0 : index
    %0 = vector.load %arg1[%c0, %c0_0, %c0_1] : memref<1x128x32xf32, #tpu.memory_space<vmem>>, vector<1x128x32xf32>
    %1 = vector.shape_cast %0 : vector<1x128x32xf32> to vector<128x32xf32>
    %2 = arith.truncf %1 : vector<128x32xf32> to vector<128x32xbf16>
    %c0_2 = arith.constant 0 : index
    %c0_3 = arith.constant 0 : index
    %3 = vector.load %arg3[%c0_2, %c0_3] : memref<32x32xbf16, #tpu.memory_space<vmem>>, vector<32x32xbf16>
    %cst = arith.constant dense<0.000000e+00> : vector<128x32xf32>
    %4 = tpu.matmul %2, %3, %cst {dimension_numbers = #tpu.dot_dimension_numbers<[1], [0], [0], [1], [0, 0, 1, 1], [], []>} : vector<128x32xbf16>, vector<32x32xbf16>, vector<128x32xf32> -> vector<128x32xf32>
    %c0_4 = arith.constant 0 : index
    %c0_5 = arith.constant 0 : index
    %5 = vector.load %arg4[%c0_4, %c0_5] : memref<1x32xf32, #tpu.memory_space<vmem>>, vector<1x32xf32>
    %6 = vector.broadcast %5 : vector<1x32xf32> to vector<128x32xf32>
    %7 = arith.addf %4, %6 : vector<128x32xf32>
    %c0_6 = arith.constant 0 : index
    %c0_7 = arith.constant 0 : index
    %8 = vector.load %arg2[%c0_6, %c0_7] : memref<8x32xf32, #tpu.memory_space<vmem>>, vector<8x32xf32>
    %9 = arith.truncf %8 : vector<8x32xf32> to vector<8x32xbf16>
    %c0_8 = arith.constant 0 : index
    %c0_9 = arith.constant 0 : index
    %10 = vector.load %arg5[%c0_8, %c0_9] : memref<32x32xbf16, #tpu.memory_space<vmem>>, vector<32x32xbf16>
    %cst_10 = arith.constant dense<0.000000e+00> : vector<8x32xf32>
    %11 = tpu.matmul %9, %10, %cst_10 {dimension_numbers = #tpu.dot_dimension_numbers<[1], [0], [0], [1], [0, 0, 1, 1], [], []>} : vector<8x32xbf16>, vector<32x32xbf16>, vector<8x32xf32> -> vector<8x32xf32>
    %c0_11 = arith.constant 0 : index
    %c0_12 = arith.constant 0 : index
    %12 = vector.load %arg6[%c0_11, %c0_12] : memref<1x32xf32, #tpu.memory_space<vmem>>, vector<1x32xf32>
    %13 = vector.broadcast %12 : vector<1x32xf32> to vector<8x32xf32>
    %14 = arith.addf %11, %13 : vector<8x32xf32>
    %15 = arith.truncf %14 : vector<8x32xf32> to vector<8x32xbf16>
    %16 = arith.truncf %7 : vector<128x32xf32> to vector<128x32xbf16>
    %cst_13 = arith.constant dense<0.000000e+00> : vector<8x128xf32>
    %17 = tpu.matmul %15, %16, %cst_13 {dimension_numbers = #tpu.dot_dimension_numbers<[1], [1], [0], [0], [0, 0, 1, 0], [], []>} : vector<8x32xbf16>, vector<128x32xbf16>, vector<8x128xf32> -> vector<8x128xf32>
    %cst_14 = arith.constant 0.176776692 : f32
    %18 = vector.broadcast %cst_14 : f32 to vector<8x128xf32>
    %19 = arith.mulf %17, %18 : vector<8x128xf32>
    %cst_15 = arith.constant dense<0xFF800000> : vector<8xf32>
    %20 = vector.multi_reduction <maximumf>, %19, %cst_15 [1] : vector<8x128xf32> to vector<8xf32>
    %21 = vector.shape_cast %20 : vector<8xf32> to vector<8x1xf32>
    %22 = vector.broadcast %21 : vector<8x1xf32> to vector<8x128xf32>
    %23 = arith.subf %19, %22 : vector<8x128xf32>
    %24 = math.exp %23 : vector<8x128xf32>
    %cst_16 = arith.constant dense<0.000000e+00> : vector<8xf32>
    %25 = vector.multi_reduction <add>, %24, %cst_16 [1] : vector<8x128xf32> to vector<8xf32>
    %26 = vector.shape_cast %25 : vector<8xf32> to vector<8x1xf32>
    %27 = tpu.reciprocal %26 {approx = true} : vector<8x1xf32> -> vector<8x1xf32>
    %28 = vector.broadcast %27 : vector<8x1xf32> to vector<8x128xf32>
    %29 = arith.mulf %24, %28 : vector<8x128xf32>
    %30 = arith.truncf %29 : vector<8x128xf32> to vector<8x128xbf16>
    %cst_17 = arith.constant dense<0.000000e+00> : vector<8x32xf32>
    %31 = tpu.matmul %30, %2, %cst_17 {dimension_numbers = #tpu.dot_dimension_numbers<[1], [0], [0], [1], [0, 0, 1, 1], [], []>} : vector<8x128xbf16>, vector<128x32xbf16>, vector<8x32xf32> -> vector<8x32xf32>
    %c0_18 = arith.constant 0 : index
    %c0_19 = arith.constant 0 : index
    %c0_20 = arith.constant 0 : index
    %32 = vector.load %arg9[%c0_18, %c0_19, %c0_20] : memref<1x8x32xf32, #tpu.memory_space<vmem>>, vector<1x8x32xf32>
    %33 = vector.shape_cast %32 : vector<1x8x32xf32> to vector<8x32xf32>
    %34 = vector.shape_cast %31 : vector<8x32xf32> to vector<1x8x32xf32>
    tpu.vector_store %arg9[%c0_18, %c0_19, %c0_20], %34 {strides = array<i32>} : memref<1x8x32xf32, #tpu.memory_space<vmem>>, vector<1x8x32xf32>,
    %35 = arith.truncf %31 : vector<8x32xf32> to vector<8x32xbf16>
    %c0_21 = arith.constant 0 : index
    %c0_22 = arith.constant 0 : index
    %36 = vector.load %arg7[%c0_21, %c0_22] : memref<32x128xbf16, #tpu.memory_space<vmem>>, vector<32x128xbf16>
    %cst_23 = arith.constant dense<0.000000e+00> : vector<8x128xf32>
    %37 = tpu.matmul %35, %36, %cst_23 {dimension_numbers = #tpu.dot_dimension_numbers<[1], [0], [0], [1], [0, 0, 1, 1], [], []>} : vector<8x32xbf16>, vector<32x128xbf16>, vector<8x128xf32> -> vector<8x128xf32>
    %c0_24 = arith.constant 0 : index
    %c0_25 = arith.constant 0 : index
    %38 = vector.load %arg8[%c0_24, %c0_25] : memref<1x128xf32, #tpu.memory_space<vmem>>, vector<1x128xf32>
    %39 = vector.broadcast %38 : vector<1x128xf32> to vector<8x128xf32>
    %40 = arith.addf %37, %39 : vector<8x128xf32>
    %c0_26 = arith.constant 0 : index
    %c0_27 = arith.constant 0 : index
    %c0_28 = arith.constant 0 : index
    %41 = vector.load %arg10[%c0_26, %c0_27, %c0_28] : memref<1x8x128xf32, #tpu.memory_space<vmem>>, vector<1x8x128xf32>
    %42 = vector.shape_cast %41 : vector<1x8x128xf32> to vector<8x128xf32>
    %43 = vector.shape_cast %40 : vector<8x128xf32> to vector<1x8x128xf32>
    tpu.vector_store %arg10[%c0_26, %c0_27, %c0_28], %43 {strides = array<i32>} : memref<1x8x128xf32, #tpu.memory_space<vmem>>, vector<1x8x128xf32>,
    %cst_29 = arith.constant dense<0xFF800000> : vector<8xf32>
    %44 = vector.multi_reduction <maximumf>, %40, %cst_29 [1] : vector<8x128xf32> to vector<8xf32>
    %45 = vector.shape_cast %44 : vector<8xf32> to vector<8x1xf32>
    %46 = vector.broadcast %45 : vector<8x1xf32> to vector<8x128xf32>
    %47 = arith.subf %40, %46 : vector<8x128xf32>
    %48 = math.exp %47 : vector<8x128xf32>
    %cst_30 = arith.constant dense<0.000000e+00> : vector<8xf32>
    %49 = vector.multi_reduction <add>, %48, %cst_30 [1] : vector<8x128xf32> to vector<8xf32>
    %50 = vector.shape_cast %49 : vector<8xf32> to vector<8x1xf32>
    %51 = tpu.reciprocal %50 {approx = true} : vector<8x1xf32> -> vector<8x1xf32>
    %52 = vector.broadcast %51 : vector<8x1xf32> to vector<8x128xf32>
    %53 = arith.mulf %48, %52 : vector<8x128xf32>
    %c0_31 = arith.constant 0 : index
    %c0_32 = arith.constant 0 : index
    %c0_33 = arith.constant 0 : index
    %54 = vector.load %arg11[%c0_31, %c0_32, %c0_33] : memref<1x8x128xf32, #tpu.memory_space<vmem>>, vector<1x8x128xf32>
    %55 = vector.shape_cast %54 : vector<1x8x128xf32> to vector<8x128xf32>
    %56 = vector.shape_cast %53 : vector<8x128xf32> to vector<1x8x128xf32>
    tpu.vector_store %arg11[%c0_31, %c0_32, %c0_33], %56 {strides = array<i32>} : memref<1x8x128xf32, #tpu.memory_space<vmem>>, vector<1x8x128xf32>,
    return
  }
  func.func @transform_0(%arg0: i32) -> (i32, i32, i32) {
    %c0_i32 = arith.constant 0 : i32
    %c0_i32_0 = arith.constant 0 : i32
    %c0_i32_1 = arith.constant 0 : i32
    return %arg0, %c0_i32, %c0_i32_0 : i32, i32, i32
  }
  func.func @transform_1(%arg0: i32) -> (i32, i32) {
    %c0_i32 = arith.constant 0 : i32
    %c0_i32_0 = arith.constant 0 : i32
    %c0_i32_1 = arith.constant 0 : i32
    return %c0_i32, %c0_i32_0 : i32, i32
  }
  func.func @transform_2(%arg0: i32) -> (i32, i32) {
    %c0_i32 = arith.constant 0 : i32
    %c0_i32_0 = arith.constant 0 : i32
    %c0_i32_1 = arith.constant 0 : i32
    return %c0_i32, %c0_i32_0 : i32, i32
  }
  func.func @transform_3(%arg0: i32) -> (i32, i32) {
    %c0_i32 = arith.constant 0 : i32
    %c0_i32_0 = arith.constant 0 : i32
    %c0_i32_1 = arith.constant 0 : i32
    return %c0_i32, %c0_i32_0 : i32, i32
  }
  func.func @transform_4(%arg0: i32) -> (i32, i32) {
    %c0_i32 = arith.constant 0 : i32
    %c0_i32_0 = arith.constant 0 : i32
    %c0_i32_1 = arith.constant 0 : i32
    return %c0_i32, %c0_i32_0 : i32, i32
  }
  func.func @transform_5(%arg0: i32) -> (i32, i32) {
    %c0_i32 = arith.constant 0 : i32
    %c0_i32_0 = arith.constant 0 : i32
    %c0_i32_1 = arith.constant 0 : i32
    return %c0_i32, %c0_i32_0 : i32, i32
  }
  func.func @transform_6(%arg0: i32) -> (i32, i32) {
    %c0_i32 = arith.constant 0 : i32
    %c0_i32_0 = arith.constant 0 : i32
    %c0_i32_1 = arith.constant 0 : i32
    return %c0_i32, %c0_i32_0 : i32, i32
  }
  func.func @transform_7(%arg0: i32) -> (i32, i32) {
    %c0_i32 = arith.constant 0 : i32
    %c0_i32_0 = arith.constant 0 : i32
    %c0_i32_1 = arith.constant 0 : i32
    return %c0_i32, %c0_i32_0 : i32, i32
  }
  func.func @transform_8(%arg0: i32) -> (i32, i32, i32) {
    %c0_i32 = arith.constant 0 : i32
    %c0_i32_0 = arith.constant 0 : i32
    %c0_i32_1 = arith.constant 0 : i32
    return %arg0, %c0_i32, %c0_i32_0 : i32, i32, i32
  }
  func.func @transform_9(%arg0: i32) -> (i32, i32, i32) {
    %c0_i32 = arith.constant 0 : i32
    %c0_i32_0 = arith.constant 0 : i32
    %c0_i32_1 = arith.constant 0 : i32
    return %arg0, %c0_i32, %c0_i32_0 : i32, i32, i32
  }
  func.func @transform_10(%arg0: i32) -> (i32, i32, i32) {
    %c0_i32 = arith.constant 0 : i32
    %c0_i32_0 = arith.constant 0 : i32
    %c0_i32_1 = arith.constant 0 : i32
    return %arg0, %c0_i32, %c0_i32_0 : i32, i32, i32
  }
}

module attributes {stable_mosaic.version = 11 : i64} {
  func.func @_layer_kernel(%arg0: i32, %arg1: memref<1x128x32xf32, #tpu.memory_space<vmem>>, %arg2: memref<4x32x8xbf16, #tpu.memory_space<vmem>>, %arg3: memref<4x1x8xf32, #tpu.memory_space<vmem>>, %arg4: memref<4x32x8xbf16, #tpu.memory_space<vmem>>, %arg5: memref<4x1x8xf32, #tpu.memory_space<vmem>>, %arg6: memref<4x32x8xbf16, #tpu.memory_space<vmem>>, %arg7: memref<4x1x8xf32, #tpu.memory_space<vmem>>, %arg8: memref<32x32xbf16, #tpu.memory_space<vmem>>, %arg9: memref<1x32xf32, #tpu.memory_space<vmem>>, %arg10: memref<1x32xf32, #tpu.memory_space<vmem>>, %arg11: memref<1x32xf32, #tpu.memory_space<vmem>>, %arg12: memref<32x64xbf16, #tpu.memory_space<vmem>>, %arg13: memref<1x64xf32, #tpu.memory_space<vmem>>, %arg14: memref<64x32xbf16, #tpu.memory_space<vmem>>, %arg15: memref<1x32xf32, #tpu.memory_space<vmem>>, %arg16: memref<1x32xf32, #tpu.memory_space<vmem>>, %arg17: memref<1x32xf32, #tpu.memory_space<vmem>>, %arg18: memref<1x128x32xf32, #tpu.memory_space<vmem>>) attributes {dimension_semantics = [#tpu.dimension_semantics<parallel>], iteration_bounds = array<i64: 2>, scalar_prefetch = 0 : i64, scratch_operands = 0 : i64, tpu.core_type = #tpu.core_type<tc>, window_params = [{transform_indices = @transform_0, window_bounds = array<i64: 1, 128, 32>}, {pipeline_mode = #tpu.pipeline_mode<synchronous>, transform_indices = @transform_1, window_bounds = array<i64: 4, 32, 8>}, {pipeline_mode = #tpu.pipeline_mode<synchronous>, transform_indices = @transform_2, window_bounds = array<i64: 4, 1, 8>}, {pipeline_mode = #tpu.pipeline_mode<synchronous>, transform_indices = @transform_3, window_bounds = array<i64: 4, 32, 8>}, {pipeline_mode = #tpu.pipeline_mode<synchronous>, transform_indices = @transform_4, window_bounds = array<i64: 4, 1, 8>}, {pipeline_mode = #tpu.pipeline_mode<synchronous>, transform_indices = @transform_5, window_bounds = array<i64: 4, 32, 8>}, {pipeline_mode = #tpu.pipeline_mode<synchronous>, transform_indices = @transform_6, window_bounds = array<i64: 4, 1, 8>}, {pipeline_mode = #tpu.pipeline_mode<synchronous>, transform_indices = @transform_7, window_bounds = array<i64: 32, 32>}, {pipeline_mode = #tpu.pipeline_mode<synchronous>, transform_indices = @transform_8, window_bounds = array<i64: 1, 32>}, {pipeline_mode = #tpu.pipeline_mode<synchronous>, transform_indices = @transform_9, window_bounds = array<i64: 1, 32>}, {pipeline_mode = #tpu.pipeline_mode<synchronous>, transform_indices = @transform_10, window_bounds = array<i64: 1, 32>}, {pipeline_mode = #tpu.pipeline_mode<synchronous>, transform_indices = @transform_11, window_bounds = array<i64: 32, 64>}, {pipeline_mode = #tpu.pipeline_mode<synchronous>, transform_indices = @transform_12, window_bounds = array<i64: 1, 64>}, {pipeline_mode = #tpu.pipeline_mode<synchronous>, transform_indices = @transform_13, window_bounds = array<i64: 64, 32>}, {pipeline_mode = #tpu.pipeline_mode<synchronous>, transform_indices = @transform_14, window_bounds = array<i64: 1, 32>}, {pipeline_mode = #tpu.pipeline_mode<synchronous>, transform_indices = @transform_15, window_bounds = array<i64: 1, 32>}, {pipeline_mode = #tpu.pipeline_mode<synchronous>, transform_indices = @transform_16, window_bounds = array<i64: 1, 32>}, {transform_indices = @transform_17, window_bounds = array<i64: 1, 128, 32>}]} {
    %c0 = arith.constant 0 : index
    %c0_0 = arith.constant 0 : index
    %c0_1 = arith.constant 0 : index
    %0 = vector.load %arg1[%c0, %c0_0, %c0_1] : memref<1x128x32xf32, #tpu.memory_space<vmem>>, vector<1x128x32xf32>
    %1 = vector.shape_cast %0 : vector<1x128x32xf32> to vector<128x32xf32>
    %2 = arith.truncf %1 : vector<128x32xf32> to vector<128x32xbf16>
    %3 = arith.truncf %1 : vector<128x32xf32> to vector<128x32xbf16>
    %c0_2 = arith.constant 0 : index
    %c0_3 = arith.constant 0 : index
    %c0_4 = arith.constant 0 : index
    %4 = vector.load %arg2[%c0_2, %c0_3, %c0_4] : memref<4x32x8xbf16, #tpu.memory_space<vmem>>, vector<1x32x8xbf16>
    %5 = vector.shape_cast %4 : vector<1x32x8xbf16> to vector<32x8xbf16>
    %cst = arith.constant dense<0.000000e+00> : vector<128x8xf32>
    %6 = tpu.matmul %2, %5, %cst {dimension_numbers = #tpu.dot_dimension_numbers<[1], [0], [0], [1], [0, 0, 1, 1], [], []>} : vector<128x32xbf16>, vector<32x8xbf16>, vector<128x8xf32> -> vector<128x8xf32>
    %c0_5 = arith.constant 0 : index
    %c0_6 = arith.constant 0 : index
    %c0_7 = arith.constant 0 : index
    %7 = vector.load %arg3[%c0_5, %c0_6, %c0_7] : memref<4x1x8xf32, #tpu.memory_space<vmem>>, vector<1x1x8xf32>
    %8 = vector.shape_cast %7 : vector<1x1x8xf32> to vector<1x8xf32>
    %9 = vector.broadcast %8 : vector<1x8xf32> to vector<128x8xf32>
    %10 = arith.addf %6, %9 : vector<128x8xf32>
    %c0_8 = arith.constant 0 : index
    %c0_9 = arith.constant 0 : index
    %c0_10 = arith.constant 0 : index
    %11 = vector.load %arg4[%c0_8, %c0_9, %c0_10] : memref<4x32x8xbf16, #tpu.memory_space<vmem>>, vector<1x32x8xbf16>
    %12 = vector.shape_cast %11 : vector<1x32x8xbf16> to vector<32x8xbf16>
    %cst_11 = arith.constant dense<0.000000e+00> : vector<128x8xf32>
    %13 = tpu.matmul %3, %12, %cst_11 {dimension_numbers = #tpu.dot_dimension_numbers<[1], [0], [0], [1], [0, 0, 1, 1], [], []>} : vector<128x32xbf16>, vector<32x8xbf16>, vector<128x8xf32> -> vector<128x8xf32>
    %c0_12 = arith.constant 0 : index
    %c0_13 = arith.constant 0 : index
    %c0_14 = arith.constant 0 : index
    %14 = vector.load %arg5[%c0_12, %c0_13, %c0_14] : memref<4x1x8xf32, #tpu.memory_space<vmem>>, vector<1x1x8xf32>
    %15 = vector.shape_cast %14 : vector<1x1x8xf32> to vector<1x8xf32>
    %16 = vector.broadcast %15 : vector<1x8xf32> to vector<128x8xf32>
    %17 = arith.addf %13, %16 : vector<128x8xf32>
    %c0_15 = arith.constant 0 : index
    %c0_16 = arith.constant 0 : index
    %c0_17 = arith.constant 0 : index
    %18 = vector.load %arg6[%c0_15, %c0_16, %c0_17] : memref<4x32x8xbf16, #tpu.memory_space<vmem>>, vector<1x32x8xbf16>
    %19 = vector.shape_cast %18 : vector<1x32x8xbf16> to vector<32x8xbf16>
    %cst_18 = arith.constant dense<0.000000e+00> : vector<128x8xf32>
    %20 = tpu.matmul %3, %19, %cst_18 {dimension_numbers = #tpu.dot_dimension_numbers<[1], [0], [0], [1], [0, 0, 1, 1], [], []>} : vector<128x32xbf16>, vector<32x8xbf16>, vector<128x8xf32> -> vector<128x8xf32>
    %c0_19 = arith.constant 0 : index
    %c0_20 = arith.constant 0 : index
    %c0_21 = arith.constant 0 : index
    %21 = vector.load %arg7[%c0_19, %c0_20, %c0_21] : memref<4x1x8xf32, #tpu.memory_space<vmem>>, vector<1x1x8xf32>
    %22 = vector.shape_cast %21 : vector<1x1x8xf32> to vector<1x8xf32>
    %23 = vector.broadcast %22 : vector<1x8xf32> to vector<128x8xf32>
    %24 = arith.addf %20, %23 : vector<128x8xf32>
    %25 = arith.truncf %10 : vector<128x8xf32> to vector<128x8xbf16>
    %26 = arith.truncf %17 : vector<128x8xf32> to vector<128x8xbf16>
    %cst_22 = arith.constant dense<0.000000e+00> : vector<128x128xf32>
    %27 = tpu.matmul %25, %26, %cst_22 {dimension_numbers = #tpu.dot_dimension_numbers<[1], [1], [0], [0], [0, 0, 1, 0], [], []>} : vector<128x8xbf16>, vector<128x8xbf16>, vector<128x128xf32> -> vector<128x128xf32>
    %cst_23 = arith.constant 0.353553385 : f32
    %28 = vector.broadcast %cst_23 : f32 to vector<128x128xf32>
    %29 = arith.mulf %27, %28 : vector<128x128xf32>
    %cst_24 = arith.constant dense<0xFF800000> : vector<128xf32>
    %30 = vector.multi_reduction <maximumf>, %29, %cst_24 [1] : vector<128x128xf32> to vector<128xf32>
    %31 = vector.shape_cast %30 : vector<128xf32> to vector<128x1xf32>
    %32 = vector.broadcast %31 : vector<128x1xf32> to vector<128x128xf32>
    %33 = arith.subf %29, %32 : vector<128x128xf32>
    %34 = math.exp %33 : vector<128x128xf32>
    %cst_25 = arith.constant dense<0.000000e+00> : vector<128xf32>
    %35 = vector.multi_reduction <add>, %34, %cst_25 [1] : vector<128x128xf32> to vector<128xf32>
    %36 = vector.shape_cast %35 : vector<128xf32> to vector<128x1xf32>
    %37 = tpu.reciprocal %36 {approx = true} : vector<128x1xf32> -> vector<128x1xf32>
    %38 = vector.broadcast %37 : vector<128x1xf32> to vector<128x128xf32>
    %39 = arith.mulf %34, %38 : vector<128x128xf32>
    %40 = arith.truncf %39 : vector<128x128xf32> to vector<128x128xbf16>
    %41 = arith.truncf %24 : vector<128x8xf32> to vector<128x8xbf16>
    %cst_26 = arith.constant dense<0.000000e+00> : vector<128x8xf32>
    %42 = tpu.matmul %40, %41, %cst_26 {dimension_numbers = #tpu.dot_dimension_numbers<[1], [0], [0], [1], [0, 0, 1, 1], [], []>} : vector<128x128xbf16>, vector<128x8xbf16>, vector<128x8xf32> -> vector<128x8xf32>
    %c1 = arith.constant 1 : index
    %c0_27 = arith.constant 0 : index
    %c0_28 = arith.constant 0 : index
    %43 = vector.load %arg2[%c1, %c0_27, %c0_28] : memref<4x32x8xbf16, #tpu.memory_space<vmem>>, vector<1x32x8xbf16>
    %44 = vector.shape_cast %43 : vector<1x32x8xbf16> to vector<32x8xbf16>
    %cst_29 = arith.constant dense<0.000000e+00> : vector<128x8xf32>
    %45 = tpu.matmul %2, %44, %cst_29 {dimension_numbers = #tpu.dot_dimension_numbers<[1], [0], [0], [1], [0, 0, 1, 1], [], []>} : vector<128x32xbf16>, vector<32x8xbf16>, vector<128x8xf32> -> vector<128x8xf32>
    %c1_30 = arith.constant 1 : index
    %c0_31 = arith.constant 0 : index
    %c0_32 = arith.constant 0 : index
    %46 = vector.load %arg3[%c1_30, %c0_31, %c0_32] : memref<4x1x8xf32, #tpu.memory_space<vmem>>, vector<1x1x8xf32>
    %47 = vector.shape_cast %46 : vector<1x1x8xf32> to vector<1x8xf32>
    %48 = vector.broadcast %47 : vector<1x8xf32> to vector<128x8xf32>
    %49 = arith.addf %45, %48 : vector<128x8xf32>
    %c1_33 = arith.constant 1 : index
    %c0_34 = arith.constant 0 : index
    %c0_35 = arith.constant 0 : index
    %50 = vector.load %arg4[%c1_33, %c0_34, %c0_35] : memref<4x32x8xbf16, #tpu.memory_space<vmem>>, vector<1x32x8xbf16>
    %51 = vector.shape_cast %50 : vector<1x32x8xbf16> to vector<32x8xbf16>
    %cst_36 = arith.constant dense<0.000000e+00> : vector<128x8xf32>
    %52 = tpu.matmul %3, %51, %cst_36 {dimension_numbers = #tpu.dot_dimension_numbers<[1], [0], [0], [1], [0, 0, 1, 1], [], []>} : vector<128x32xbf16>, vector<32x8xbf16>, vector<128x8xf32> -> vector<128x8xf32>
    %c1_37 = arith.constant 1 : index
    %c0_38 = arith.constant 0 : index
    %c0_39 = arith.constant 0 : index
    %53 = vector.load %arg5[%c1_37, %c0_38, %c0_39] : memref<4x1x8xf32, #tpu.memory_space<vmem>>, vector<1x1x8xf32>
    %54 = vector.shape_cast %53 : vector<1x1x8xf32> to vector<1x8xf32>
    %55 = vector.broadcast %54 : vector<1x8xf32> to vector<128x8xf32>
    %56 = arith.addf %52, %55 : vector<128x8xf32>
    %c1_40 = arith.constant 1 : index
    %c0_41 = arith.constant 0 : index
    %c0_42 = arith.constant 0 : index
    %57 = vector.load %arg6[%c1_40, %c0_41, %c0_42] : memref<4x32x8xbf16, #tpu.memory_space<vmem>>, vector<1x32x8xbf16>
    %58 = vector.shape_cast %57 : vector<1x32x8xbf16> to vector<32x8xbf16>
    %cst_43 = arith.constant dense<0.000000e+00> : vector<128x8xf32>
    %59 = tpu.matmul %3, %58, %cst_43 {dimension_numbers = #tpu.dot_dimension_numbers<[1], [0], [0], [1], [0, 0, 1, 1], [], []>} : vector<128x32xbf16>, vector<32x8xbf16>, vector<128x8xf32> -> vector<128x8xf32>
    %c1_44 = arith.constant 1 : index
    %c0_45 = arith.constant 0 : index
    %c0_46 = arith.constant 0 : index
    %60 = vector.load %arg7[%c1_44, %c0_45, %c0_46] : memref<4x1x8xf32, #tpu.memory_space<vmem>>, vector<1x1x8xf32>
    %61 = vector.shape_cast %60 : vector<1x1x8xf32> to vector<1x8xf32>
    %62 = vector.broadcast %61 : vector<1x8xf32> to vector<128x8xf32>
    %63 = arith.addf %59, %62 : vector<128x8xf32>
    %64 = arith.truncf %49 : vector<128x8xf32> to vector<128x8xbf16>
    %65 = arith.truncf %56 : vector<128x8xf32> to vector<128x8xbf16>
    %cst_47 = arith.constant dense<0.000000e+00> : vector<128x128xf32>
    %66 = tpu.matmul %64, %65, %cst_47 {dimension_numbers = #tpu.dot_dimension_numbers<[1], [1], [0], [0], [0, 0, 1, 0], [], []>} : vector<128x8xbf16>, vector<128x8xbf16>, vector<128x128xf32> -> vector<128x128xf32>
    %cst_48 = arith.constant 0.353553385 : f32
    %67 = vector.broadcast %cst_48 : f32 to vector<128x128xf32>
    %68 = arith.mulf %66, %67 : vector<128x128xf32>
    %cst_49 = arith.constant dense<0xFF800000> : vector<128xf32>
    %69 = vector.multi_reduction <maximumf>, %68, %cst_49 [1] : vector<128x128xf32> to vector<128xf32>
    %70 = vector.shape_cast %69 : vector<128xf32> to vector<128x1xf32>
    %71 = vector.broadcast %70 : vector<128x1xf32> to vector<128x128xf32>
    %72 = arith.subf %68, %71 : vector<128x128xf32>
    %73 = math.exp %72 : vector<128x128xf32>
    %cst_50 = arith.constant dense<0.000000e+00> : vector<128xf32>
    %74 = vector.multi_reduction <add>, %73, %cst_50 [1] : vector<128x128xf32> to vector<128xf32>
    %75 = vector.shape_cast %74 : vector<128xf32> to vector<128x1xf32>
    %76 = tpu.reciprocal %75 {approx = true} : vector<128x1xf32> -> vector<128x1xf32>
    %77 = vector.broadcast %76 : vector<128x1xf32> to vector<128x128xf32>
    %78 = arith.mulf %73, %77 : vector<128x128xf32>
    %79 = arith.truncf %78 : vector<128x128xf32> to vector<128x128xbf16>
    %80 = arith.truncf %63 : vector<128x8xf32> to vector<128x8xbf16>
    %cst_51 = arith.constant dense<0.000000e+00> : vector<128x8xf32>
    %81 = tpu.matmul %79, %80, %cst_51 {dimension_numbers = #tpu.dot_dimension_numbers<[1], [0], [0], [1], [0, 0, 1, 1], [], []>} : vector<128x128xbf16>, vector<128x8xbf16>, vector<128x8xf32> -> vector<128x8xf32>
    %c2 = arith.constant 2 : index
    %c0_52 = arith.constant 0 : index
    %c0_53 = arith.constant 0 : index
    %82 = vector.load %arg2[%c2, %c0_52, %c0_53] : memref<4x32x8xbf16, #tpu.memory_space<vmem>>, vector<1x32x8xbf16>
    %83 = vector.shape_cast %82 : vector<1x32x8xbf16> to vector<32x8xbf16>
    %cst_54 = arith.constant dense<0.000000e+00> : vector<128x8xf32>
    %84 = tpu.matmul %2, %83, %cst_54 {dimension_numbers = #tpu.dot_dimension_numbers<[1], [0], [0], [1], [0, 0, 1, 1], [], []>} : vector<128x32xbf16>, vector<32x8xbf16>, vector<128x8xf32> -> vector<128x8xf32>
    %c2_55 = arith.constant 2 : index
    %c0_56 = arith.constant 0 : index
    %c0_57 = arith.constant 0 : index
    %85 = vector.load %arg3[%c2_55, %c0_56, %c0_57] : memref<4x1x8xf32, #tpu.memory_space<vmem>>, vector<1x1x8xf32>
    %86 = vector.shape_cast %85 : vector<1x1x8xf32> to vector<1x8xf32>
    %87 = vector.broadcast %86 : vector<1x8xf32> to vector<128x8xf32>
    %88 = arith.addf %84, %87 : vector<128x8xf32>
    %c2_58 = arith.constant 2 : index
    %c0_59 = arith.constant 0 : index
    %c0_60 = arith.constant 0 : index
    %89 = vector.load %arg4[%c2_58, %c0_59, %c0_60] : memref<4x32x8xbf16, #tpu.memory_space<vmem>>, vector<1x32x8xbf16>
    %90 = vector.shape_cast %89 : vector<1x32x8xbf16> to vector<32x8xbf16>
    %cst_61 = arith.constant dense<0.000000e+00> : vector<128x8xf32>
    %91 = tpu.matmul %3, %90, %cst_61 {dimension_numbers = #tpu.dot_dimension_numbers<[1], [0], [0], [1], [0, 0, 1, 1], [], []>} : vector<128x32xbf16>, vector<32x8xbf16>, vector<128x8xf32> -> vector<128x8xf32>
    %c2_62 = arith.constant 2 : index
    %c0_63 = arith.constant 0 : index
    %c0_64 = arith.constant 0 : index
    %92 = vector.load %arg5[%c2_62, %c0_63, %c0_64] : memref<4x1x8xf32, #tpu.memory_space<vmem>>, vector<1x1x8xf32>
    %93 = vector.shape_cast %92 : vector<1x1x8xf32> to vector<1x8xf32>
    %94 = vector.broadcast %93 : vector<1x8xf32> to vector<128x8xf32>
    %95 = arith.addf %91, %94 : vector<128x8xf32>
    %c2_65 = arith.constant 2 : index
    %c0_66 = arith.constant 0 : index
    %c0_67 = arith.constant 0 : index
    %96 = vector.load %arg6[%c2_65, %c0_66, %c0_67] : memref<4x32x8xbf16, #tpu.memory_space<vmem>>, vector<1x32x8xbf16>
    %97 = vector.shape_cast %96 : vector<1x32x8xbf16> to vector<32x8xbf16>
    %cst_68 = arith.constant dense<0.000000e+00> : vector<128x8xf32>
    %98 = tpu.matmul %3, %97, %cst_68 {dimension_numbers = #tpu.dot_dimension_numbers<[1], [0], [0], [1], [0, 0, 1, 1], [], []>} : vector<128x32xbf16>, vector<32x8xbf16>, vector<128x8xf32> -> vector<128x8xf32>
    %c2_69 = arith.constant 2 : index
    %c0_70 = arith.constant 0 : index
    %c0_71 = arith.constant 0 : index
    %99 = vector.load %arg7[%c2_69, %c0_70, %c0_71] : memref<4x1x8xf32, #tpu.memory_space<vmem>>, vector<1x1x8xf32>
    %100 = vector.shape_cast %99 : vector<1x1x8xf32> to vector<1x8xf32>
    %101 = vector.broadcast %100 : vector<1x8xf32> to vector<128x8xf32>
    %102 = arith.addf %98, %101 : vector<128x8xf32>
    %103 = arith.truncf %88 : vector<128x8xf32> to vector<128x8xbf16>
    %104 = arith.truncf %95 : vector<128x8xf32> to vector<128x8xbf16>
    %cst_72 = arith.constant dense<0.000000e+00> : vector<128x128xf32>
    %105 = tpu.matmul %103, %104, %cst_72 {dimension_numbers = #tpu.dot_dimension_numbers<[1], [1], [0], [0], [0, 0, 1, 0], [], []>} : vector<128x8xbf16>, vector<128x8xbf16>, vector<128x128xf32> -> vector<128x128xf32>
    %cst_73 = arith.constant 0.353553385 : f32
    %106 = vector.broadcast %cst_73 : f32 to vector<128x128xf32>
    %107 = arith.mulf %105, %106 : vector<128x128xf32>
    %cst_74 = arith.constant dense<0xFF800000> : vector<128xf32>
    %108 = vector.multi_reduction <maximumf>, %107, %cst_74 [1] : vector<128x128xf32> to vector<128xf32>
    %109 = vector.shape_cast %108 : vector<128xf32> to vector<128x1xf32>
    %110 = vector.broadcast %109 : vector<128x1xf32> to vector<128x128xf32>
    %111 = arith.subf %107, %110 : vector<128x128xf32>
    %112 = math.exp %111 : vector<128x128xf32>
    %cst_75 = arith.constant dense<0.000000e+00> : vector<128xf32>
    %113 = vector.multi_reduction <add>, %112, %cst_75 [1] : vector<128x128xf32> to vector<128xf32>
    %114 = vector.shape_cast %113 : vector<128xf32> to vector<128x1xf32>
    %115 = tpu.reciprocal %114 {approx = true} : vector<128x1xf32> -> vector<128x1xf32>
    %116 = vector.broadcast %115 : vector<128x1xf32> to vector<128x128xf32>
    %117 = arith.mulf %112, %116 : vector<128x128xf32>
    %118 = arith.truncf %117 : vector<128x128xf32> to vector<128x128xbf16>
    %119 = arith.truncf %102 : vector<128x8xf32> to vector<128x8xbf16>
    %cst_76 = arith.constant dense<0.000000e+00> : vector<128x8xf32>
    %120 = tpu.matmul %118, %119, %cst_76 {dimension_numbers = #tpu.dot_dimension_numbers<[1], [0], [0], [1], [0, 0, 1, 1], [], []>} : vector<128x128xbf16>, vector<128x8xbf16>, vector<128x8xf32> -> vector<128x8xf32>
    %c3 = arith.constant 3 : index
    %c0_77 = arith.constant 0 : index
    %c0_78 = arith.constant 0 : index
    %121 = vector.load %arg2[%c3, %c0_77, %c0_78] : memref<4x32x8xbf16, #tpu.memory_space<vmem>>, vector<1x32x8xbf16>
    %122 = vector.shape_cast %121 : vector<1x32x8xbf16> to vector<32x8xbf16>
    %cst_79 = arith.constant dense<0.000000e+00> : vector<128x8xf32>
    %123 = tpu.matmul %2, %122, %cst_79 {dimension_numbers = #tpu.dot_dimension_numbers<[1], [0], [0], [1], [0, 0, 1, 1], [], []>} : vector<128x32xbf16>, vector<32x8xbf16>, vector<128x8xf32> -> vector<128x8xf32>
    %c3_80 = arith.constant 3 : index
    %c0_81 = arith.constant 0 : index
    %c0_82 = arith.constant 0 : index
    %124 = vector.load %arg3[%c3_80, %c0_81, %c0_82] : memref<4x1x8xf32, #tpu.memory_space<vmem>>, vector<1x1x8xf32>
    %125 = vector.shape_cast %124 : vector<1x1x8xf32> to vector<1x8xf32>
    %126 = vector.broadcast %125 : vector<1x8xf32> to vector<128x8xf32>
    %127 = arith.addf %123, %126 : vector<128x8xf32>
    %c3_83 = arith.constant 3 : index
    %c0_84 = arith.constant 0 : index
    %c0_85 = arith.constant 0 : index
    %128 = vector.load %arg4[%c3_83, %c0_84, %c0_85] : memref<4x32x8xbf16, #tpu.memory_space<vmem>>, vector<1x32x8xbf16>
    %129 = vector.shape_cast %128 : vector<1x32x8xbf16> to vector<32x8xbf16>
    %cst_86 = arith.constant dense<0.000000e+00> : vector<128x8xf32>
    %130 = tpu.matmul %3, %129, %cst_86 {dimension_numbers = #tpu.dot_dimension_numbers<[1], [0], [0], [1], [0, 0, 1, 1], [], []>} : vector<128x32xbf16>, vector<32x8xbf16>, vector<128x8xf32> -> vector<128x8xf32>
    %c3_87 = arith.constant 3 : index
    %c0_88 = arith.constant 0 : index
    %c0_89 = arith.constant 0 : index
    %131 = vector.load %arg5[%c3_87, %c0_88, %c0_89] : memref<4x1x8xf32, #tpu.memory_space<vmem>>, vector<1x1x8xf32>
    %132 = vector.shape_cast %131 : vector<1x1x8xf32> to vector<1x8xf32>
    %133 = vector.broadcast %132 : vector<1x8xf32> to vector<128x8xf32>
    %134 = arith.addf %130, %133 : vector<128x8xf32>
    %c3_90 = arith.constant 3 : index
    %c0_91 = arith.constant 0 : index
    %c0_92 = arith.constant 0 : index
    %135 = vector.load %arg6[%c3_90, %c0_91, %c0_92] : memref<4x32x8xbf16, #tpu.memory_space<vmem>>, vector<1x32x8xbf16>
    %136 = vector.shape_cast %135 : vector<1x32x8xbf16> to vector<32x8xbf16>
    %cst_93 = arith.constant dense<0.000000e+00> : vector<128x8xf32>
    %137 = tpu.matmul %3, %136, %cst_93 {dimension_numbers = #tpu.dot_dimension_numbers<[1], [0], [0], [1], [0, 0, 1, 1], [], []>} : vector<128x32xbf16>, vector<32x8xbf16>, vector<128x8xf32> -> vector<128x8xf32>
    %c3_94 = arith.constant 3 : index
    %c0_95 = arith.constant 0 : index
    %c0_96 = arith.constant 0 : index
    %138 = vector.load %arg7[%c3_94, %c0_95, %c0_96] : memref<4x1x8xf32, #tpu.memory_space<vmem>>, vector<1x1x8xf32>
    %139 = vector.shape_cast %138 : vector<1x1x8xf32> to vector<1x8xf32>
    %140 = vector.broadcast %139 : vector<1x8xf32> to vector<128x8xf32>
    %141 = arith.addf %137, %140 : vector<128x8xf32>
    %142 = arith.truncf %127 : vector<128x8xf32> to vector<128x8xbf16>
    %143 = arith.truncf %134 : vector<128x8xf32> to vector<128x8xbf16>
    %cst_97 = arith.constant dense<0.000000e+00> : vector<128x128xf32>
    %144 = tpu.matmul %142, %143, %cst_97 {dimension_numbers = #tpu.dot_dimension_numbers<[1], [1], [0], [0], [0, 0, 1, 0], [], []>} : vector<128x8xbf16>, vector<128x8xbf16>, vector<128x128xf32> -> vector<128x128xf32>
    %cst_98 = arith.constant 0.353553385 : f32
    %145 = vector.broadcast %cst_98 : f32 to vector<128x128xf32>
    %146 = arith.mulf %144, %145 : vector<128x128xf32>
    %cst_99 = arith.constant dense<0xFF800000> : vector<128xf32>
    %147 = vector.multi_reduction <maximumf>, %146, %cst_99 [1] : vector<128x128xf32> to vector<128xf32>
    %148 = vector.shape_cast %147 : vector<128xf32> to vector<128x1xf32>
    %149 = vector.broadcast %148 : vector<128x1xf32> to vector<128x128xf32>
    %150 = arith.subf %146, %149 : vector<128x128xf32>
    %151 = math.exp %150 : vector<128x128xf32>
    %cst_100 = arith.constant dense<0.000000e+00> : vector<128xf32>
    %152 = vector.multi_reduction <add>, %151, %cst_100 [1] : vector<128x128xf32> to vector<128xf32>
    %153 = vector.shape_cast %152 : vector<128xf32> to vector<128x1xf32>
    %154 = tpu.reciprocal %153 {approx = true} : vector<128x1xf32> -> vector<128x1xf32>
    %155 = vector.broadcast %154 : vector<128x1xf32> to vector<128x128xf32>
    %156 = arith.mulf %151, %155 : vector<128x128xf32>
    %157 = arith.truncf %156 : vector<128x128xf32> to vector<128x128xbf16>
    %158 = arith.truncf %141 : vector<128x8xf32> to vector<128x8xbf16>
    %cst_101 = arith.constant dense<0.000000e+00> : vector<128x8xf32>
    %159 = tpu.matmul %157, %158, %cst_101 {dimension_numbers = #tpu.dot_dimension_numbers<[1], [0], [0], [1], [0, 0, 1, 1], [], []>} : vector<128x128xbf16>, vector<128x8xbf16>, vector<128x8xf32> -> vector<128x8xf32>
    %160 = tpu.concatenate %42, %81, %120, %159 in 1 : vector<128x8xf32>, vector<128x8xf32>, vector<128x8xf32>, vector<128x8xf32> -> vector<128x32xf32>
    %161 = arith.truncf %160 : vector<128x32xf32> to vector<128x32xbf16>
    %c0_102 = arith.constant 0 : index
    %c0_103 = arith.constant 0 : index
    %162 = vector.load %arg8[%c0_102, %c0_103] : memref<32x32xbf16, #tpu.memory_space<vmem>>, vector<32x32xbf16>
    %cst_104 = arith.constant dense<0.000000e+00> : vector<128x32xf32>
    %163 = tpu.matmul %161, %162, %cst_104 {dimension_numbers = #tpu.dot_dimension_numbers<[1], [0], [0], [1], [0, 0, 1, 1], [], []>} : vector<128x32xbf16>, vector<32x32xbf16>, vector<128x32xf32> -> vector<128x32xf32>
    %c0_105 = arith.constant 0 : index
    %c0_106 = arith.constant 0 : index
    %164 = vector.load %arg9[%c0_105, %c0_106] : memref<1x32xf32, #tpu.memory_space<vmem>>, vector<1x32xf32>
    %165 = vector.broadcast %164 : vector<1x32xf32> to vector<128x32xf32>
    %166 = arith.addf %163, %165 : vector<128x32xf32>
    %167 = arith.addf %1, %166 : vector<128x32xf32>
    %c0_107 = arith.constant 0 : index
    %c0_108 = arith.constant 0 : index
    %168 = vector.load %arg10[%c0_107, %c0_108] : memref<1x32xf32, #tpu.memory_space<vmem>>, vector<1x32xf32>
    %c0_109 = arith.constant 0 : index
    %c0_110 = arith.constant 0 : index
    %169 = vector.load %arg11[%c0_109, %c0_110] : memref<1x32xf32, #tpu.memory_space<vmem>>, vector<1x32xf32>
    %cst_111 = arith.constant dense<0.000000e+00> : vector<128xf32>
    %170 = vector.multi_reduction <add>, %167, %cst_111 [1] : vector<128x32xf32> to vector<128xf32>
    %171 = vector.shape_cast %170 : vector<128xf32> to vector<128x1xf32>
    %cst_112 = arith.constant 3.200000e+01 : f32
    %172 = vector.broadcast %cst_112 : f32 to vector<128x1xf32>
    %173 = arith.divf %171, %172 : vector<128x1xf32>
    %174 = vector.broadcast %173 : vector<128x1xf32> to vector<128x32xf32>
    %175 = arith.subf %167, %174 : vector<128x32xf32>
    %176 = arith.mulf %175, %175 : vector<128x32xf32>
    %cst_113 = arith.constant dense<0.000000e+00> : vector<128xf32>
    %177 = vector.multi_reduction <add>, %176, %cst_113 [1] : vector<128x32xf32> to vector<128xf32>
    %178 = vector.shape_cast %177 : vector<128xf32> to vector<128x1xf32>
    %cst_114 = arith.constant 3.200000e+01 : f32
    %179 = vector.broadcast %cst_114 : f32 to vector<128x1xf32>
    %180 = arith.divf %178, %179 : vector<128x1xf32>
    %181 = vector.broadcast %173 : vector<128x1xf32> to vector<128x32xf32>
    %182 = arith.subf %167, %181 : vector<128x32xf32>
    %cst_115 = arith.constant 9.99999974E-6 : f32
    %183 = vector.broadcast %cst_115 : f32 to vector<128x1xf32>
    %184 = arith.addf %180, %183 : vector<128x1xf32>
    %185 = math.rsqrt %184 : vector<128x1xf32>
    %186 = vector.broadcast %185 : vector<128x1xf32> to vector<128x32xf32>
    %187 = arith.mulf %182, %186 : vector<128x32xf32>
    %188 = vector.broadcast %168 : vector<1x32xf32> to vector<128x32xf32>
    %189 = arith.mulf %187, %188 : vector<128x32xf32>
    %190 = vector.broadcast %169 : vector<1x32xf32> to vector<128x32xf32>
    %191 = arith.addf %189, %190 : vector<128x32xf32>
    %192 = arith.truncf %191 : vector<128x32xf32> to vector<128x32xbf16>
    %c0_116 = arith.constant 0 : index
    %c0_117 = arith.constant 0 : index
    %193 = vector.load %arg12[%c0_116, %c0_117] : memref<32x64xbf16, #tpu.memory_space<vmem>>, vector<32x64xbf16>
    %cst_118 = arith.constant dense<0.000000e+00> : vector<128x64xf32>
    %194 = tpu.matmul %192, %193, %cst_118 {dimension_numbers = #tpu.dot_dimension_numbers<[1], [0], [0], [1], [0, 0, 1, 1], [], []>} : vector<128x32xbf16>, vector<32x64xbf16>, vector<128x64xf32> -> vector<128x64xf32>
    %c0_119 = arith.constant 0 : index
    %c0_120 = arith.constant 0 : index
    %195 = vector.load %arg13[%c0_119, %c0_120] : memref<1x64xf32, #tpu.memory_space<vmem>>, vector<1x64xf32>
    %196 = vector.broadcast %195 : vector<1x64xf32> to vector<128x64xf32>
    %197 = arith.addf %194, %196 : vector<128x64xf32>
    %cst_121 = arith.constant 0.000000e+00 : f32
    %198 = vector.broadcast %cst_121 : f32 to vector<128x64xf32>
    %199 = arith.maximumf %197, %198 : vector<128x64xf32>
    %200 = arith.truncf %199 : vector<128x64xf32> to vector<128x64xbf16>
    %c0_122 = arith.constant 0 : index
    %c0_123 = arith.constant 0 : index
    %201 = vector.load %arg14[%c0_122, %c0_123] : memref<64x32xbf16, #tpu.memory_space<vmem>>, vector<64x32xbf16>
    %cst_124 = arith.constant dense<0.000000e+00> : vector<128x32xf32>
    %202 = tpu.matmul %200, %201, %cst_124 {dimension_numbers = #tpu.dot_dimension_numbers<[1], [0], [0], [1], [0, 0, 1, 1], [], []>} : vector<128x64xbf16>, vector<64x32xbf16>, vector<128x32xf32> -> vector<128x32xf32>
    %c0_125 = arith.constant 0 : index
    %c0_126 = arith.constant 0 : index
    %203 = vector.load %arg15[%c0_125, %c0_126] : memref<1x32xf32, #tpu.memory_space<vmem>>, vector<1x32xf32>
    %204 = vector.broadcast %203 : vector<1x32xf32> to vector<128x32xf32>
    %205 = arith.addf %202, %204 : vector<128x32xf32>
    %206 = arith.addf %191, %205 : vector<128x32xf32>
    %c0_127 = arith.constant 0 : index
    %c0_128 = arith.constant 0 : index
    %207 = vector.load %arg16[%c0_127, %c0_128] : memref<1x32xf32, #tpu.memory_space<vmem>>, vector<1x32xf32>
    %c0_129 = arith.constant 0 : index
    %c0_130 = arith.constant 0 : index
    %208 = vector.load %arg17[%c0_129, %c0_130] : memref<1x32xf32, #tpu.memory_space<vmem>>, vector<1x32xf32>
    %cst_131 = arith.constant dense<0.000000e+00> : vector<128xf32>
    %209 = vector.multi_reduction <add>, %206, %cst_131 [1] : vector<128x32xf32> to vector<128xf32>
    %210 = vector.shape_cast %209 : vector<128xf32> to vector<128x1xf32>
    %cst_132 = arith.constant 3.200000e+01 : f32
    %211 = vector.broadcast %cst_132 : f32 to vector<128x1xf32>
    %212 = arith.divf %210, %211 : vector<128x1xf32>
    %213 = vector.broadcast %212 : vector<128x1xf32> to vector<128x32xf32>
    %214 = arith.subf %206, %213 : vector<128x32xf32>
    %215 = arith.mulf %214, %214 : vector<128x32xf32>
    %cst_133 = arith.constant dense<0.000000e+00> : vector<128xf32>
    %216 = vector.multi_reduction <add>, %215, %cst_133 [1] : vector<128x32xf32> to vector<128xf32>
    %217 = vector.shape_cast %216 : vector<128xf32> to vector<128x1xf32>
    %cst_134 = arith.constant 3.200000e+01 : f32
    %218 = vector.broadcast %cst_134 : f32 to vector<128x1xf32>
    %219 = arith.divf %217, %218 : vector<128x1xf32>
    %220 = vector.broadcast %212 : vector<128x1xf32> to vector<128x32xf32>
    %221 = arith.subf %206, %220 : vector<128x32xf32>
    %cst_135 = arith.constant 9.99999974E-6 : f32
    %222 = vector.broadcast %cst_135 : f32 to vector<128x1xf32>
    %223 = arith.addf %219, %222 : vector<128x1xf32>
    %224 = math.rsqrt %223 : vector<128x1xf32>
    %225 = vector.broadcast %224 : vector<128x1xf32> to vector<128x32xf32>
    %226 = arith.mulf %221, %225 : vector<128x32xf32>
    %227 = vector.broadcast %207 : vector<1x32xf32> to vector<128x32xf32>
    %228 = arith.mulf %226, %227 : vector<128x32xf32>
    %229 = vector.broadcast %208 : vector<1x32xf32> to vector<128x32xf32>
    %230 = arith.addf %228, %229 : vector<128x32xf32>
    %c0_136 = arith.constant 0 : index
    %c0_137 = arith.constant 0 : index
    %c0_138 = arith.constant 0 : index
    %231 = vector.load %arg18[%c0_136, %c0_137, %c0_138] : memref<1x128x32xf32, #tpu.memory_space<vmem>>, vector<1x128x32xf32>
    %232 = vector.shape_cast %231 : vector<1x128x32xf32> to vector<128x32xf32>
    %233 = vector.shape_cast %230 : vector<128x32xf32> to vector<1x128x32xf32>
    tpu.vector_store %arg18[%c0_136, %c0_137, %c0_138], %233 {strides = array<i32>} : memref<1x128x32xf32, #tpu.memory_space<vmem>>, vector<1x128x32xf32>,
    return
  }
  func.func @transform_0(%arg0: i32) -> (i32, i32, i32) {
    %c0_i32 = arith.constant 0 : i32
    %c0_i32_0 = arith.constant 0 : i32
    %c0_i32_1 = arith.constant 0 : i32
    return %arg0, %c0_i32, %c0_i32_0 : i32, i32, i32
  }
  func.func @transform_1(%arg0: i32) -> (i32, i32, i32) {
    %c0_i32 = arith.constant 0 : i32
    %c0_i32_0 = arith.constant 0 : i32
    %c0_i32_1 = arith.constant 0 : i32
    %c0_i32_2 = arith.constant 0 : i32
    return %c0_i32, %c0_i32_0, %c0_i32_1 : i32, i32, i32
  }
  func.func @transform_2(%arg0: i32) -> (i32, i32, i32) {
    %c0_i32 = arith.constant 0 : i32
    %c0_i32_0 = arith.constant 0 : i32
    %c0_i32_1 = arith.constant 0 : i32
    %c0_i32_2 = arith.constant 0 : i32
    return %c0_i32, %c0_i32_0, %c0_i32_1 : i32, i32, i32
  }
  func.func @transform_3(%arg0: i32) -> (i32, i32, i32) {
    %c0_i32 = arith.constant 0 : i32
    %c0_i32_0 = arith.constant 0 : i32
    %c0_i32_1 = arith.constant 0 : i32
    %c0_i32_2 = arith.constant 0 : i32
    return %c0_i32, %c0_i32_0, %c0_i32_1 : i32, i32, i32
  }
  func.func @transform_4(%arg0: i32) -> (i32, i32, i32) {
    %c0_i32 = arith.constant 0 : i32
    %c0_i32_0 = arith.constant 0 : i32
    %c0_i32_1 = arith.constant 0 : i32
    %c0_i32_2 = arith.constant 0 : i32
    return %c0_i32, %c0_i32_0, %c0_i32_1 : i32, i32, i32
  }
  func.func @transform_5(%arg0: i32) -> (i32, i32, i32) {
    %c0_i32 = arith.constant 0 : i32
    %c0_i32_0 = arith.constant 0 : i32
    %c0_i32_1 = arith.constant 0 : i32
    %c0_i32_2 = arith.constant 0 : i32
    return %c0_i32, %c0_i32_0, %c0_i32_1 : i32, i32, i32
  }
  func.func @transform_6(%arg0: i32) -> (i32, i32, i32) {
    %c0_i32 = arith.constant 0 : i32
    %c0_i32_0 = arith.constant 0 : i32
    %c0_i32_1 = arith.constant 0 : i32
    %c0_i32_2 = arith.constant 0 : i32
    return %c0_i32, %c0_i32_0, %c0_i32_1 : i32, i32, i32
  }
  func.func @transform_7(%arg0: i32) -> (i32, i32) {
    %c0_i32 = arith.constant 0 : i32
    %c0_i32_0 = arith.constant 0 : i32
    %c0_i32_1 = arith.constant 0 : i32
    return %c0_i32, %c0_i32_0 : i32, i32
  }
  func.func @transform_8(%arg0: i32) -> (i32, i32) {
    %c0_i32 = arith.constant 0 : i32
    %c0_i32_0 = arith.constant 0 : i32
    %c0_i32_1 = arith.constant 0 : i32
    return %c0_i32, %c0_i32_0 : i32, i32
  }
  func.func @transform_9(%arg0: i32) -> (i32, i32) {
    %c0_i32 = arith.constant 0 : i32
    %c0_i32_0 = arith.constant 0 : i32
    %c0_i32_1 = arith.constant 0 : i32
    return %c0_i32, %c0_i32_0 : i32, i32
  }
  func.func @transform_10(%arg0: i32) -> (i32, i32) {
    %c0_i32 = arith.constant 0 : i32
    %c0_i32_0 = arith.constant 0 : i32
    %c0_i32_1 = arith.constant 0 : i32
    return %c0_i32, %c0_i32_0 : i32, i32
  }
  func.func @transform_11(%arg0: i32) -> (i32, i32) {
    %c0_i32 = arith.constant 0 : i32
    %c0_i32_0 = arith.constant 0 : i32
    %c0_i32_1 = arith.constant 0 : i32
    return %c0_i32, %c0_i32_0 : i32, i32
  }
  func.func @transform_12(%arg0: i32) -> (i32, i32) {
    %c0_i32 = arith.constant 0 : i32
    %c0_i32_0 = arith.constant 0 : i32
    %c0_i32_1 = arith.constant 0 : i32
    return %c0_i32, %c0_i32_0 : i32, i32
  }
  func.func @transform_13(%arg0: i32) -> (i32, i32) {
    %c0_i32 = arith.constant 0 : i32
    %c0_i32_0 = arith.constant 0 : i32
    %c0_i32_1 = arith.constant 0 : i32
    return %c0_i32, %c0_i32_0 : i32, i32
  }
  func.func @transform_14(%arg0: i32) -> (i32, i32) {
    %c0_i32 = arith.constant 0 : i32
    %c0_i32_0 = arith.constant 0 : i32
    %c0_i32_1 = arith.constant 0 : i32
    return %c0_i32, %c0_i32_0 : i32, i32
  }
  func.func @transform_15(%arg0: i32) -> (i32, i32) {
    %c0_i32 = arith.constant 0 : i32
    %c0_i32_0 = arith.constant 0 : i32
    %c0_i32_1 = arith.constant 0 : i32
    return %c0_i32, %c0_i32_0 : i32, i32
  }
  func.func @transform_16(%arg0: i32) -> (i32, i32) {
    %c0_i32 = arith.constant 0 : i32
    %c0_i32_0 = arith.constant 0 : i32
    %c0_i32_1 = arith.constant 0 : i32
    return %c0_i32, %c0_i32_0 : i32, i32
  }
  func.func @transform_17(%arg0: i32) -> (i32, i32, i32) {
    %c0_i32 = arith.constant 0 : i32
    %c0_i32_0 = arith.constant 0 : i32
    %c0_i32_1 = arith.constant 0 : i32
    return %arg0, %c0_i32, %c0_i32_0 : i32, i32, i32
  }
}

module attributes {stable_mosaic.version = 11 : i64} {
  func.func @_lang_embed_kernel(%arg0: i32, %arg1: memref<1x8x128xf32, #tpu.memory_space<vmem>>, %arg2: memref<128x32xbf16, #tpu.memory_space<vmem>>, %arg3: memref<8x32xf32, #tpu.memory_space<vmem>>, %arg4: memref<1x8x32xf32, #tpu.memory_space<vmem>>) attributes {dimension_semantics = [#tpu.dimension_semantics<parallel>], iteration_bounds = array<i64: 2>, scalar_prefetch = 0 : i64, scratch_operands = 0 : i64, tpu.core_type = #tpu.core_type<tc>, window_params = [{transform_indices = @transform_0, window_bounds = array<i64: 1, 8, 128>}, {pipeline_mode = #tpu.pipeline_mode<synchronous>, transform_indices = @transform_1, window_bounds = array<i64: 128, 32>}, {pipeline_mode = #tpu.pipeline_mode<synchronous>, transform_indices = @transform_2, window_bounds = array<i64: 8, 32>}, {transform_indices = @transform_3, window_bounds = array<i64: 1, 8, 32>}]} {
    %c0 = arith.constant 0 : index
    %c0_0 = arith.constant 0 : index
    %c0_1 = arith.constant 0 : index
    %0 = vector.load %arg1[%c0, %c0_0, %c0_1] : memref<1x8x128xf32, #tpu.memory_space<vmem>>, vector<1x8x128xf32>
    %1 = vector.shape_cast %0 : vector<1x8x128xf32> to vector<8x128xf32>
    %2 = arith.truncf %1 : vector<8x128xf32> to vector<8x128xbf16>
    %c0_2 = arith.constant 0 : index
    %c0_3 = arith.constant 0 : index
    %3 = vector.load %arg2[%c0_2, %c0_3] : memref<128x32xbf16, #tpu.memory_space<vmem>>, vector<128x32xbf16>
    %cst = arith.constant dense<0.000000e+00> : vector<8x32xf32>
    %4 = tpu.matmul %2, %3, %cst {dimension_numbers = #tpu.dot_dimension_numbers<[1], [0], [0], [1], [0, 0, 1, 1], [], []>} : vector<8x128xbf16>, vector<128x32xbf16>, vector<8x32xf32> -> vector<8x32xf32>
    %c0_4 = arith.constant 0 : index
    %c0_5 = arith.constant 0 : index
    %5 = vector.load %arg3[%c0_4, %c0_5] : memref<8x32xf32, #tpu.memory_space<vmem>>, vector<8x32xf32>
    %6 = arith.addf %4, %5 : vector<8x32xf32>
    %c0_6 = arith.constant 0 : index
    %c0_7 = arith.constant 0 : index
    %c0_8 = arith.constant 0 : index
    %7 = vector.load %arg4[%c0_6, %c0_7, %c0_8] : memref<1x8x32xf32, #tpu.memory_space<vmem>>, vector<1x8x32xf32>
    %8 = vector.shape_cast %7 : vector<1x8x32xf32> to vector<8x32xf32>
    %9 = vector.shape_cast %6 : vector<8x32xf32> to vector<1x8x32xf32>
    tpu.vector_store %arg4[%c0_6, %c0_7, %c0_8], %9 {strides = array<i32>} : memref<1x8x32xf32, #tpu.memory_space<vmem>>, vector<1x8x32xf32>,
    return
  }
  func.func @transform_0(%arg0: i32) -> (i32, i32, i32) {
    %c0_i32 = arith.constant 0 : i32
    %c0_i32_0 = arith.constant 0 : i32
    %c0_i32_1 = arith.constant 0 : i32
    return %arg0, %c0_i32, %c0_i32_0 : i32, i32, i32
  }
  func.func @transform_1(%arg0: i32) -> (i32, i32) {
    %c0_i32 = arith.constant 0 : i32
    %c0_i32_0 = arith.constant 0 : i32
    %c0_i32_1 = arith.constant 0 : i32
    return %c0_i32, %c0_i32_0 : i32, i32
  }
  func.func @transform_2(%arg0: i32) -> (i32, i32) {
    %c0_i32 = arith.constant 0 : i32
    %c0_i32_0 = arith.constant 0 : i32
    %c0_i32_1 = arith.constant 0 : i32
    return %c0_i32, %c0_i32_0 : i32, i32
  }
  func.func @transform_3(%arg0: i32) -> (i32, i32, i32) {
    %c0_i32 = arith.constant 0 : i32
    %c0_i32_0 = arith.constant 0 : i32
    %c0_i32_1 = arith.constant 0 : i32
    return %arg0, %c0_i32, %c0_i32_0 : i32, i32, i32
  }
}

module attributes {stable_mosaic.version = 11 : i64} {
  func.func @_layer_kernel(%arg0: i32, %arg1: memref<1x8x32xf32, #tpu.memory_space<vmem>>, %arg2: memref<1x8x32xf32, #tpu.memory_space<vmem>>, %arg3: memref<1x8x8xf32, #tpu.memory_space<vmem>>, %arg4: memref<4x32x8xbf16, #tpu.memory_space<vmem>>, %arg5: memref<4x1x8xf32, #tpu.memory_space<vmem>>, %arg6: memref<4x32x8xbf16, #tpu.memory_space<vmem>>, %arg7: memref<4x1x8xf32, #tpu.memory_space<vmem>>, %arg8: memref<4x32x8xbf16, #tpu.memory_space<vmem>>, %arg9: memref<4x1x8xf32, #tpu.memory_space<vmem>>, %arg10: memref<32x32xbf16, #tpu.memory_space<vmem>>, %arg11: memref<1x32xf32, #tpu.memory_space<vmem>>, %arg12: memref<1x32xf32, #tpu.memory_space<vmem>>, %arg13: memref<1x32xf32, #tpu.memory_space<vmem>>, %arg14: memref<32x64xbf16, #tpu.memory_space<vmem>>, %arg15: memref<1x64xf32, #tpu.memory_space<vmem>>, %arg16: memref<64x32xbf16, #tpu.memory_space<vmem>>, %arg17: memref<1x32xf32, #tpu.memory_space<vmem>>, %arg18: memref<1x32xf32, #tpu.memory_space<vmem>>, %arg19: memref<1x32xf32, #tpu.memory_space<vmem>>, %arg20: memref<1x8x32xf32, #tpu.memory_space<vmem>>) attributes {dimension_semantics = [#tpu.dimension_semantics<parallel>], iteration_bounds = array<i64: 2>, scalar_prefetch = 0 : i64, scratch_operands = 0 : i64, tpu.core_type = #tpu.core_type<tc>, window_params = [{pipeline_mode = #tpu.pipeline_mode<synchronous>, transform_indices = @transform_0, window_bounds = array<i64: 1, 8, 32>}, {transform_indices = @transform_1, window_bounds = array<i64: 1, 8, 32>}, {transform_indices = @transform_2, window_bounds = array<i64: 1, 8, 8>}, {pipeline_mode = #tpu.pipeline_mode<synchronous>, transform_indices = @transform_3, window_bounds = array<i64: 4, 32, 8>}, {pipeline_mode = #tpu.pipeline_mode<synchronous>, transform_indices = @transform_4, window_bounds = array<i64: 4, 1, 8>}, {pipeline_mode = #tpu.pipeline_mode<synchronous>, transform_indices = @transform_5, window_bounds = array<i64: 4, 32, 8>}, {pipeline_mode = #tpu.pipeline_mode<synchronous>, transform_indices = @transform_6, window_bounds = array<i64: 4, 1, 8>}, {pipeline_mode = #tpu.pipeline_mode<synchronous>, transform_indices = @transform_7, window_bounds = array<i64: 4, 32, 8>}, {pipeline_mode = #tpu.pipeline_mode<synchronous>, transform_indices = @transform_8, window_bounds = array<i64: 4, 1, 8>}, {pipeline_mode = #tpu.pipeline_mode<synchronous>, transform_indices = @transform_9, window_bounds = array<i64: 32, 32>}, {pipeline_mode = #tpu.pipeline_mode<synchronous>, transform_indices = @transform_10, window_bounds = array<i64: 1, 32>}, {pipeline_mode = #tpu.pipeline_mode<synchronous>, transform_indices = @transform_11, window_bounds = array<i64: 1, 32>}, {pipeline_mode = #tpu.pipeline_mode<synchronous>, transform_indices = @transform_12, window_bounds = array<i64: 1, 32>}, {pipeline_mode = #tpu.pipeline_mode<synchronous>, transform_indices = @transform_13, window_bounds = array<i64: 32, 64>}, {pipeline_mode = #tpu.pipeline_mode<synchronous>, transform_indices = @transform_14, window_bounds = array<i64: 1, 64>}, {pipeline_mode = #tpu.pipeline_mode<synchronous>, transform_indices = @transform_15, window_bounds = array<i64: 64, 32>}, {pipeline_mode = #tpu.pipeline_mode<synchronous>, transform_indices = @transform_16, window_bounds = array<i64: 1, 32>}, {pipeline_mode = #tpu.pipeline_mode<synchronous>, transform_indices = @transform_17, window_bounds = array<i64: 1, 32>}, {pipeline_mode = #tpu.pipeline_mode<synchronous>, transform_indices = @transform_18, window_bounds = array<i64: 1, 32>}, {transform_indices = @transform_19, window_bounds = array<i64: 1, 8, 32>}]} {
    %c0 = arith.constant 0 : index
    %c0_0 = arith.constant 0 : index
    %c0_1 = arith.constant 0 : index
    %0 = vector.load %arg1[%c0, %c0_0, %c0_1] : memref<1x8x32xf32, #tpu.memory_space<vmem>>, vector<1x8x32xf32>
    %1 = vector.shape_cast %0 : vector<1x8x32xf32> to vector<8x32xf32>
    %c0_2 = arith.constant 0 : index
    %c0_3 = arith.constant 0 : index
    %c0_4 = arith.constant 0 : index
    %2 = vector.load %arg2[%c0_2, %c0_3, %c0_4] : memref<1x8x32xf32, #tpu.memory_space<vmem>>, vector<1x8x32xf32>
    %3 = vector.shape_cast %2 : vector<1x8x32xf32> to vector<8x32xf32>
    %c0_5 = arith.constant 0 : index
    %c0_6 = arith.constant 0 : index
    %c0_7 = arith.constant 0 : index
    %4 = vector.load %arg3[%c0_5, %c0_6, %c0_7] : memref<1x8x8xf32, #tpu.memory_space<vmem>>, vector<1x8x8xf32>
    %5 = vector.shape_cast %4 : vector<1x8x8xf32> to vector<8x8xf32>
    %6 = arith.truncf %1 : vector<8x32xf32> to vector<8x32xbf16>
    %7 = arith.truncf %3 : vector<8x32xf32> to vector<8x32xbf16>
    %c0_8 = arith.constant 0 : index
    %c0_9 = arith.constant 0 : index
    %c0_10 = arith.constant 0 : index
    %8 = vector.load %arg4[%c0_8, %c0_9, %c0_10] : memref<4x32x8xbf16, #tpu.memory_space<vmem>>, vector<1x32x8xbf16>
    %9 = vector.shape_cast %8 : vector<1x32x8xbf16> to vector<32x8xbf16>
    %cst = arith.constant dense<0.000000e+00> : vector<8x8xf32>
    %10 = tpu.matmul %6, %9, %cst {dimension_numbers = #tpu.dot_dimension_numbers<[1], [0], [0], [1], [0, 0, 1, 1], [], []>} : vector<8x32xbf16>, vector<32x8xbf16>, vector<8x8xf32> -> vector<8x8xf32>
    %c0_11 = arith.constant 0 : index
    %c0_12 = arith.constant 0 : index
    %c0_13 = arith.constant 0 : index
    %11 = vector.load %arg5[%c0_11, %c0_12, %c0_13] : memref<4x1x8xf32, #tpu.memory_space<vmem>>, vector<1x1x8xf32>
    %12 = vector.shape_cast %11 : vector<1x1x8xf32> to vector<1x8xf32>
    %13 = vector.broadcast %12 : vector<1x8xf32> to vector<8x8xf32>
    %14 = arith.addf %10, %13 : vector<8x8xf32>
    %c0_14 = arith.constant 0 : index
    %c0_15 = arith.constant 0 : index
    %c0_16 = arith.constant 0 : index
    %15 = vector.load %arg6[%c0_14, %c0_15, %c0_16] : memref<4x32x8xbf16, #tpu.memory_space<vmem>>, vector<1x32x8xbf16>
    %16 = vector.shape_cast %15 : vector<1x32x8xbf16> to vector<32x8xbf16>
    %cst_17 = arith.constant dense<0.000000e+00> : vector<8x8xf32>
    %17 = tpu.matmul %7, %16, %cst_17 {dimension_numbers = #tpu.dot_dimension_numbers<[1], [0], [0], [1], [0, 0, 1, 1], [], []>} : vector<8x32xbf16>, vector<32x8xbf16>, vector<8x8xf32> -> vector<8x8xf32>
    %c0_18 = arith.constant 0 : index
    %c0_19 = arith.constant 0 : index
    %c0_20 = arith.constant 0 : index
    %18 = vector.load %arg7[%c0_18, %c0_19, %c0_20] : memref<4x1x8xf32, #tpu.memory_space<vmem>>, vector<1x1x8xf32>
    %19 = vector.shape_cast %18 : vector<1x1x8xf32> to vector<1x8xf32>
    %20 = vector.broadcast %19 : vector<1x8xf32> to vector<8x8xf32>
    %21 = arith.addf %17, %20 : vector<8x8xf32>
    %c0_21 = arith.constant 0 : index
    %c0_22 = arith.constant 0 : index
    %c0_23 = arith.constant 0 : index
    %22 = vector.load %arg8[%c0_21, %c0_22, %c0_23] : memref<4x32x8xbf16, #tpu.memory_space<vmem>>, vector<1x32x8xbf16>
    %23 = vector.shape_cast %22 : vector<1x32x8xbf16> to vector<32x8xbf16>
    %cst_24 = arith.constant dense<0.000000e+00> : vector<8x8xf32>
    %24 = tpu.matmul %7, %23, %cst_24 {dimension_numbers = #tpu.dot_dimension_numbers<[1], [0], [0], [1], [0, 0, 1, 1], [], []>} : vector<8x32xbf16>, vector<32x8xbf16>, vector<8x8xf32> -> vector<8x8xf32>
    %c0_25 = arith.constant 0 : index
    %c0_26 = arith.constant 0 : index
    %c0_27 = arith.constant 0 : index
    %25 = vector.load %arg9[%c0_25, %c0_26, %c0_27] : memref<4x1x8xf32, #tpu.memory_space<vmem>>, vector<1x1x8xf32>
    %26 = vector.shape_cast %25 : vector<1x1x8xf32> to vector<1x8xf32>
    %27 = vector.broadcast %26 : vector<1x8xf32> to vector<8x8xf32>
    %28 = arith.addf %24, %27 : vector<8x8xf32>
    %29 = arith.truncf %14 : vector<8x8xf32> to vector<8x8xbf16>
    %30 = arith.truncf %21 : vector<8x8xf32> to vector<8x8xbf16>
    %cst_28 = arith.constant dense<0.000000e+00> : vector<8x8xf32>
    %31 = tpu.matmul %29, %30, %cst_28 {dimension_numbers = #tpu.dot_dimension_numbers<[1], [1], [0], [0], [0, 0, 1, 0], [], []>} : vector<8x8xbf16>, vector<8x8xbf16>, vector<8x8xf32> -> vector<8x8xf32>
    %cst_29 = arith.constant 0.353553385 : f32
    %32 = vector.broadcast %cst_29 : f32 to vector<8x8xf32>
    %33 = arith.mulf %31, %32 : vector<8x8xf32>
    %34 = arith.addf %33, %5 : vector<8x8xf32>
    %cst_30 = arith.constant dense<0xFF800000> : vector<8xf32>
    %35 = vector.multi_reduction <maximumf>, %34, %cst_30 [1] : vector<8x8xf32> to vector<8xf32>
    %36 = vector.shape_cast %35 : vector<8xf32> to vector<8x1xf32>
    %37 = vector.broadcast %36 : vector<8x1xf32> to vector<8x8xf32>
    %38 = arith.subf %34, %37 : vector<8x8xf32>
    %39 = math.exp %38 : vector<8x8xf32>
    %cst_31 = arith.constant dense<0.000000e+00> : vector<8xf32>
    %40 = vector.multi_reduction <add>, %39, %cst_31 [1] : vector<8x8xf32> to vector<8xf32>
    %41 = vector.shape_cast %40 : vector<8xf32> to vector<8x1xf32>
    %42 = tpu.reciprocal %41 {approx = true} : vector<8x1xf32> -> vector<8x1xf32>
    %43 = vector.broadcast %42 : vector<8x1xf32> to vector<8x8xf32>
    %44 = arith.mulf %39, %43 : vector<8x8xf32>
    %45 = arith.truncf %44 : vector<8x8xf32> to vector<8x8xbf16>
    %46 = arith.truncf %28 : vector<8x8xf32> to vector<8x8xbf16>
    %cst_32 = arith.constant dense<0.000000e+00> : vector<8x8xf32>
    %47 = tpu.matmul %45, %46, %cst_32 {dimension_numbers = #tpu.dot_dimension_numbers<[1], [0], [0], [1], [0, 0, 1, 1], [], []>} : vector<8x8xbf16>, vector<8x8xbf16>, vector<8x8xf32> -> vector<8x8xf32>
    %c1 = arith.constant 1 : index
    %c0_33 = arith.constant 0 : index
    %c0_34 = arith.constant 0 : index
    %48 = vector.load %arg4[%c1, %c0_33, %c0_34] : memref<4x32x8xbf16, #tpu.memory_space<vmem>>, vector<1x32x8xbf16>
    %49 = vector.shape_cast %48 : vector<1x32x8xbf16> to vector<32x8xbf16>
    %cst_35 = arith.constant dense<0.000000e+00> : vector<8x8xf32>
    %50 = tpu.matmul %6, %49, %cst_35 {dimension_numbers = #tpu.dot_dimension_numbers<[1], [0], [0], [1], [0, 0, 1, 1], [], []>} : vector<8x32xbf16>, vector<32x8xbf16>, vector<8x8xf32> -> vector<8x8xf32>
    %c1_36 = arith.constant 1 : index
    %c0_37 = arith.constant 0 : index
    %c0_38 = arith.constant 0 : index
    %51 = vector.load %arg5[%c1_36, %c0_37, %c0_38] : memref<4x1x8xf32, #tpu.memory_space<vmem>>, vector<1x1x8xf32>
    %52 = vector.shape_cast %51 : vector<1x1x8xf32> to vector<1x8xf32>
    %53 = vector.broadcast %52 : vector<1x8xf32> to vector<8x8xf32>
    %54 = arith.addf %50, %53 : vector<8x8xf32>
    %c1_39 = arith.constant 1 : index
    %c0_40 = arith.constant 0 : index
    %c0_41 = arith.constant 0 : index
    %55 = vector.load %arg6[%c1_39, %c0_40, %c0_41] : memref<4x32x8xbf16, #tpu.memory_space<vmem>>, vector<1x32x8xbf16>
    %56 = vector.shape_cast %55 : vector<1x32x8xbf16> to vector<32x8xbf16>
    %cst_42 = arith.constant dense<0.000000e+00> : vector<8x8xf32>
    %57 = tpu.matmul %7, %56, %cst_42 {dimension_numbers = #tpu.dot_dimension_numbers<[1], [0], [0], [1], [0, 0, 1, 1], [], []>} : vector<8x32xbf16>, vector<32x8xbf16>, vector<8x8xf32> -> vector<8x8xf32>
    %c1_43 = arith.constant 1 : index
    %c0_44 = arith.constant 0 : index
    %c0_45 = arith.constant 0 : index
    %58 = vector.load %arg7[%c1_43, %c0_44, %c0_45] : memref<4x1x8xf32, #tpu.memory_space<vmem>>, vector<1x1x8xf32>
    %59 = vector.shape_cast %58 : vector<1x1x8xf32> to vector<1x8xf32>
    %60 = vector.broadcast %59 : vector<1x8xf32> to vector<8x8xf32>
    %61 = arith.addf %57, %60 : vector<8x8xf32>
    %c1_46 = arith.constant 1 : index
    %c0_47 = arith.constant 0 : index
    %c0_48 = arith.constant 0 : index
    %62 = vector.load %arg8[%c1_46, %c0_47, %c0_48] : memref<4x32x8xbf16, #tpu.memory_space<vmem>>, vector<1x32x8xbf16>
    %63 = vector.shape_cast %62 : vector<1x32x8xbf16> to vector<32x8xbf16>
    %cst_49 = arith.constant dense<0.000000e+00> : vector<8x8xf32>
    %64 = tpu.matmul %7, %63, %cst_49 {dimension_numbers = #tpu.dot_dimension_numbers<[1], [0], [0], [1], [0, 0, 1, 1], [], []>} : vector<8x32xbf16>, vector<32x8xbf16>, vector<8x8xf32> -> vector<8x8xf32>
    %c1_50 = arith.constant 1 : index
    %c0_51 = arith.constant 0 : index
    %c0_52 = arith.constant 0 : index
    %65 = vector.load %arg9[%c1_50, %c0_51, %c0_52] : memref<4x1x8xf32, #tpu.memory_space<vmem>>, vector<1x1x8xf32>
    %66 = vector.shape_cast %65 : vector<1x1x8xf32> to vector<1x8xf32>
    %67 = vector.broadcast %66 : vector<1x8xf32> to vector<8x8xf32>
    %68 = arith.addf %64, %67 : vector<8x8xf32>
    %69 = arith.truncf %54 : vector<8x8xf32> to vector<8x8xbf16>
    %70 = arith.truncf %61 : vector<8x8xf32> to vector<8x8xbf16>
    %cst_53 = arith.constant dense<0.000000e+00> : vector<8x8xf32>
    %71 = tpu.matmul %69, %70, %cst_53 {dimension_numbers = #tpu.dot_dimension_numbers<[1], [1], [0], [0], [0, 0, 1, 0], [], []>} : vector<8x8xbf16>, vector<8x8xbf16>, vector<8x8xf32> -> vector<8x8xf32>
    %cst_54 = arith.constant 0.353553385 : f32
    %72 = vector.broadcast %cst_54 : f32 to vector<8x8xf32>
    %73 = arith.mulf %71, %72 : vector<8x8xf32>
    %74 = arith.addf %73, %5 : vector<8x8xf32>
    %cst_55 = arith.constant dense<0xFF800000> : vector<8xf32>
    %75 = vector.multi_reduction <maximumf>, %74, %cst_55 [1] : vector<8x8xf32> to vector<8xf32>
    %76 = vector.shape_cast %75 : vector<8xf32> to vector<8x1xf32>
    %77 = vector.broadcast %76 : vector<8x1xf32> to vector<8x8xf32>
    %78 = arith.subf %74, %77 : vector<8x8xf32>
    %79 = math.exp %78 : vector<8x8xf32>
    %cst_56 = arith.constant dense<0.000000e+00> : vector<8xf32>
    %80 = vector.multi_reduction <add>, %79, %cst_56 [1] : vector<8x8xf32> to vector<8xf32>
    %81 = vector.shape_cast %80 : vector<8xf32> to vector<8x1xf32>
    %82 = tpu.reciprocal %81 {approx = true} : vector<8x1xf32> -> vector<8x1xf32>
    %83 = vector.broadcast %82 : vector<8x1xf32> to vector<8x8xf32>
    %84 = arith.mulf %79, %83 : vector<8x8xf32>
    %85 = arith.truncf %84 : vector<8x8xf32> to vector<8x8xbf16>
    %86 = arith.truncf %68 : vector<8x8xf32> to vector<8x8xbf16>
    %cst_57 = arith.constant dense<0.000000e+00> : vector<8x8xf32>
    %87 = tpu.matmul %85, %86, %cst_57 {dimension_numbers = #tpu.dot_dimension_numbers<[1], [0], [0], [1], [0, 0, 1, 1], [], []>} : vector<8x8xbf16>, vector<8x8xbf16>, vector<8x8xf32> -> vector<8x8xf32>
    %c2 = arith.constant 2 : index
    %c0_58 = arith.constant 0 : index
    %c0_59 = arith.constant 0 : index
    %88 = vector.load %arg4[%c2, %c0_58, %c0_59] : memref<4x32x8xbf16, #tpu.memory_space<vmem>>, vector<1x32x8xbf16>
    %89 = vector.shape_cast %88 : vector<1x32x8xbf16> to vector<32x8xbf16>
    %cst_60 = arith.constant dense<0.000000e+00> : vector<8x8xf32>
    %90 = tpu.matmul %6, %89, %cst_60 {dimension_numbers = #tpu.dot_dimension_numbers<[1], [0], [0], [1], [0, 0, 1, 1], [], []>} : vector<8x32xbf16>, vector<32x8xbf16>, vector<8x8xf32> -> vector<8x8xf32>
    %c2_61 = arith.constant 2 : index
    %c0_62 = arith.constant 0 : index
    %c0_63 = arith.constant 0 : index
    %91 = vector.load %arg5[%c2_61, %c0_62, %c0_63] : memref<4x1x8xf32, #tpu.memory_space<vmem>>, vector<1x1x8xf32>
    %92 = vector.shape_cast %91 : vector<1x1x8xf32> to vector<1x8xf32>
    %93 = vector.broadcast %92 : vector<1x8xf32> to vector<8x8xf32>
    %94 = arith.addf %90, %93 : vector<8x8xf32>
    %c2_64 = arith.constant 2 : index
    %c0_65 = arith.constant 0 : index
    %c0_66 = arith.constant 0 : index
    %95 = vector.load %arg6[%c2_64, %c0_65, %c0_66] : memref<4x32x8xbf16, #tpu.memory_space<vmem>>, vector<1x32x8xbf16>
    %96 = vector.shape_cast %95 : vector<1x32x8xbf16> to vector<32x8xbf16>
    %cst_67 = arith.constant dense<0.000000e+00> : vector<8x8xf32>
    %97 = tpu.matmul %7, %96, %cst_67 {dimension_numbers = #tpu.dot_dimension_numbers<[1], [0], [0], [1], [0, 0, 1, 1], [], []>} : vector<8x32xbf16>, vector<32x8xbf16>, vector<8x8xf32> -> vector<8x8xf32>
    %c2_68 = arith.constant 2 : index
    %c0_69 = arith.constant 0 : index
    %c0_70 = arith.constant 0 : index
    %98 = vector.load %arg7[%c2_68, %c0_69, %c0_70] : memref<4x1x8xf32, #tpu.memory_space<vmem>>, vector<1x1x8xf32>
    %99 = vector.shape_cast %98 : vector<1x1x8xf32> to vector<1x8xf32>
    %100 = vector.broadcast %99 : vector<1x8xf32> to vector<8x8xf32>
    %101 = arith.addf %97, %100 : vector<8x8xf32>
    %c2_71 = arith.constant 2 : index
    %c0_72 = arith.constant 0 : index
    %c0_73 = arith.constant 0 : index
    %102 = vector.load %arg8[%c2_71, %c0_72, %c0_73] : memref<4x32x8xbf16, #tpu.memory_space<vmem>>, vector<1x32x8xbf16>
    %103 = vector.shape_cast %102 : vector<1x32x8xbf16> to vector<32x8xbf16>
    %cst_74 = arith.constant dense<0.000000e+00> : vector<8x8xf32>
    %104 = tpu.matmul %7, %103, %cst_74 {dimension_numbers = #tpu.dot_dimension_numbers<[1], [0], [0], [1], [0, 0, 1, 1], [], []>} : vector<8x32xbf16>, vector<32x8xbf16>, vector<8x8xf32> -> vector<8x8xf32>
    %c2_75 = arith.constant 2 : index
    %c0_76 = arith.constant 0 : index
    %c0_77 = arith.constant 0 : index
    %105 = vector.load %arg9[%c2_75, %c0_76, %c0_77] : memref<4x1x8xf32, #tpu.memory_space<vmem>>, vector<1x1x8xf32>
    %106 = vector.shape_cast %105 : vector<1x1x8xf32> to vector<1x8xf32>
    %107 = vector.broadcast %106 : vector<1x8xf32> to vector<8x8xf32>
    %108 = arith.addf %104, %107 : vector<8x8xf32>
    %109 = arith.truncf %94 : vector<8x8xf32> to vector<8x8xbf16>
    %110 = arith.truncf %101 : vector<8x8xf32> to vector<8x8xbf16>
    %cst_78 = arith.constant dense<0.000000e+00> : vector<8x8xf32>
    %111 = tpu.matmul %109, %110, %cst_78 {dimension_numbers = #tpu.dot_dimension_numbers<[1], [1], [0], [0], [0, 0, 1, 0], [], []>} : vector<8x8xbf16>, vector<8x8xbf16>, vector<8x8xf32> -> vector<8x8xf32>
    %cst_79 = arith.constant 0.353553385 : f32
    %112 = vector.broadcast %cst_79 : f32 to vector<8x8xf32>
    %113 = arith.mulf %111, %112 : vector<8x8xf32>
    %114 = arith.addf %113, %5 : vector<8x8xf32>
    %cst_80 = arith.constant dense<0xFF800000> : vector<8xf32>
    %115 = vector.multi_reduction <maximumf>, %114, %cst_80 [1] : vector<8x8xf32> to vector<8xf32>
    %116 = vector.shape_cast %115 : vector<8xf32> to vector<8x1xf32>
    %117 = vector.broadcast %116 : vector<8x1xf32> to vector<8x8xf32>
    %118 = arith.subf %114, %117 : vector<8x8xf32>
    %119 = math.exp %118 : vector<8x8xf32>
    %cst_81 = arith.constant dense<0.000000e+00> : vector<8xf32>
    %120 = vector.multi_reduction <add>, %119, %cst_81 [1] : vector<8x8xf32> to vector<8xf32>
    %121 = vector.shape_cast %120 : vector<8xf32> to vector<8x1xf32>
    %122 = tpu.reciprocal %121 {approx = true} : vector<8x1xf32> -> vector<8x1xf32>
    %123 = vector.broadcast %122 : vector<8x1xf32> to vector<8x8xf32>
    %124 = arith.mulf %119, %123 : vector<8x8xf32>
    %125 = arith.truncf %124 : vector<8x8xf32> to vector<8x8xbf16>
    %126 = arith.truncf %108 : vector<8x8xf32> to vector<8x8xbf16>
    %cst_82 = arith.constant dense<0.000000e+00> : vector<8x8xf32>
    %127 = tpu.matmul %125, %126, %cst_82 {dimension_numbers = #tpu.dot_dimension_numbers<[1], [0], [0], [1], [0, 0, 1, 1], [], []>} : vector<8x8xbf16>, vector<8x8xbf16>, vector<8x8xf32> -> vector<8x8xf32>
    %c3 = arith.constant 3 : index
    %c0_83 = arith.constant 0 : index
    %c0_84 = arith.constant 0 : index
    %128 = vector.load %arg4[%c3, %c0_83, %c0_84] : memref<4x32x8xbf16, #tpu.memory_space<vmem>>, vector<1x32x8xbf16>
    %129 = vector.shape_cast %128 : vector<1x32x8xbf16> to vector<32x8xbf16>
    %cst_85 = arith.constant dense<0.000000e+00> : vector<8x8xf32>
    %130 = tpu.matmul %6, %129, %cst_85 {dimension_numbers = #tpu.dot_dimension_numbers<[1], [0], [0], [1], [0, 0, 1, 1], [], []>} : vector<8x32xbf16>, vector<32x8xbf16>, vector<8x8xf32> -> vector<8x8xf32>
    %c3_86 = arith.constant 3 : index
    %c0_87 = arith.constant 0 : index
    %c0_88 = arith.constant 0 : index
    %131 = vector.load %arg5[%c3_86, %c0_87, %c0_88] : memref<4x1x8xf32, #tpu.memory_space<vmem>>, vector<1x1x8xf32>
    %132 = vector.shape_cast %131 : vector<1x1x8xf32> to vector<1x8xf32>
    %133 = vector.broadcast %132 : vector<1x8xf32> to vector<8x8xf32>
    %134 = arith.addf %130, %133 : vector<8x8xf32>
    %c3_89 = arith.constant 3 : index
    %c0_90 = arith.constant 0 : index
    %c0_91 = arith.constant 0 : index
    %135 = vector.load %arg6[%c3_89, %c0_90, %c0_91] : memref<4x32x8xbf16, #tpu.memory_space<vmem>>, vector<1x32x8xbf16>
    %136 = vector.shape_cast %135 : vector<1x32x8xbf16> to vector<32x8xbf16>
    %cst_92 = arith.constant dense<0.000000e+00> : vector<8x8xf32>
    %137 = tpu.matmul %7, %136, %cst_92 {dimension_numbers = #tpu.dot_dimension_numbers<[1], [0], [0], [1], [0, 0, 1, 1], [], []>} : vector<8x32xbf16>, vector<32x8xbf16>, vector<8x8xf32> -> vector<8x8xf32>
    %c3_93 = arith.constant 3 : index
    %c0_94 = arith.constant 0 : index
    %c0_95 = arith.constant 0 : index
    %138 = vector.load %arg7[%c3_93, %c0_94, %c0_95] : memref<4x1x8xf32, #tpu.memory_space<vmem>>, vector<1x1x8xf32>
    %139 = vector.shape_cast %138 : vector<1x1x8xf32> to vector<1x8xf32>
    %140 = vector.broadcast %139 : vector<1x8xf32> to vector<8x8xf32>
    %141 = arith.addf %137, %140 : vector<8x8xf32>
    %c3_96 = arith.constant 3 : index
    %c0_97 = arith.constant 0 : index
    %c0_98 = arith.constant 0 : index
    %142 = vector.load %arg8[%c3_96, %c0_97, %c0_98] : memref<4x32x8xbf16, #tpu.memory_space<vmem>>, vector<1x32x8xbf16>
    %143 = vector.shape_cast %142 : vector<1x32x8xbf16> to vector<32x8xbf16>
    %cst_99 = arith.constant dense<0.000000e+00> : vector<8x8xf32>
    %144 = tpu.matmul %7, %143, %cst_99 {dimension_numbers = #tpu.dot_dimension_numbers<[1], [0], [0], [1], [0, 0, 1, 1], [], []>} : vector<8x32xbf16>, vector<32x8xbf16>, vector<8x8xf32> -> vector<8x8xf32>
    %c3_100 = arith.constant 3 : index
    %c0_101 = arith.constant 0 : index
    %c0_102 = arith.constant 0 : index
    %145 = vector.load %arg9[%c3_100, %c0_101, %c0_102] : memref<4x1x8xf32, #tpu.memory_space<vmem>>, vector<1x1x8xf32>
    %146 = vector.shape_cast %145 : vector<1x1x8xf32> to vector<1x8xf32>
    %147 = vector.broadcast %146 : vector<1x8xf32> to vector<8x8xf32>
    %148 = arith.addf %144, %147 : vector<8x8xf32>
    %149 = arith.truncf %134 : vector<8x8xf32> to vector<8x8xbf16>
    %150 = arith.truncf %141 : vector<8x8xf32> to vector<8x8xbf16>
    %cst_103 = arith.constant dense<0.000000e+00> : vector<8x8xf32>
    %151 = tpu.matmul %149, %150, %cst_103 {dimension_numbers = #tpu.dot_dimension_numbers<[1], [1], [0], [0], [0, 0, 1, 0], [], []>} : vector<8x8xbf16>, vector<8x8xbf16>, vector<8x8xf32> -> vector<8x8xf32>
    %cst_104 = arith.constant 0.353553385 : f32
    %152 = vector.broadcast %cst_104 : f32 to vector<8x8xf32>
    %153 = arith.mulf %151, %152 : vector<8x8xf32>
    %154 = arith.addf %153, %5 : vector<8x8xf32>
    %cst_105 = arith.constant dense<0xFF800000> : vector<8xf32>
    %155 = vector.multi_reduction <maximumf>, %154, %cst_105 [1] : vector<8x8xf32> to vector<8xf32>
    %156 = vector.shape_cast %155 : vector<8xf32> to vector<8x1xf32>
    %157 = vector.broadcast %156 : vector<8x1xf32> to vector<8x8xf32>
    %158 = arith.subf %154, %157 : vector<8x8xf32>
    %159 = math.exp %158 : vector<8x8xf32>
    %cst_106 = arith.constant dense<0.000000e+00> : vector<8xf32>
    %160 = vector.multi_reduction <add>, %159, %cst_106 [1] : vector<8x8xf32> to vector<8xf32>
    %161 = vector.shape_cast %160 : vector<8xf32> to vector<8x1xf32>
    %162 = tpu.reciprocal %161 {approx = true} : vector<8x1xf32> -> vector<8x1xf32>
    %163 = vector.broadcast %162 : vector<8x1xf32> to vector<8x8xf32>
    %164 = arith.mulf %159, %163 : vector<8x8xf32>
    %165 = arith.truncf %164 : vector<8x8xf32> to vector<8x8xbf16>
    %166 = arith.truncf %148 : vector<8x8xf32> to vector<8x8xbf16>
    %cst_107 = arith.constant dense<0.000000e+00> : vector<8x8xf32>
    %167 = tpu.matmul %165, %166, %cst_107 {dimension_numbers = #tpu.dot_dimension_numbers<[1], [0], [0], [1], [0, 0, 1, 1], [], []>} : vector<8x8xbf16>, vector<8x8xbf16>, vector<8x8xf32> -> vector<8x8xf32>
    %168 = tpu.concatenate %47, %87, %127, %167 in 1 : vector<8x8xf32>, vector<8x8xf32>, vector<8x8xf32>, vector<8x8xf32> -> vector<8x32xf32>
    %169 = arith.truncf %168 : vector<8x32xf32> to vector<8x32xbf16>
    %c0_108 = arith.constant 0 : index
    %c0_109 = arith.constant 0 : index
    %170 = vector.load %arg10[%c0_108, %c0_109] : memref<32x32xbf16, #tpu.memory_space<vmem>>, vector<32x32xbf16>
    %cst_110 = arith.constant dense<0.000000e+00> : vector<8x32xf32>
    %171 = tpu.matmul %169, %170, %cst_110 {dimension_numbers = #tpu.dot_dimension_numbers<[1], [0], [0], [1], [0, 0, 1, 1], [], []>} : vector<8x32xbf16>, vector<32x32xbf16>, vector<8x32xf32> -> vector<8x32xf32>
    %c0_111 = arith.constant 0 : index
    %c0_112 = arith.constant 0 : index
    %172 = vector.load %arg11[%c0_111, %c0_112] : memref<1x32xf32, #tpu.memory_space<vmem>>, vector<1x32xf32>
    %173 = vector.broadcast %172 : vector<1x32xf32> to vector<8x32xf32>
    %174 = arith.addf %171, %173 : vector<8x32xf32>
    %175 = arith.addf %1, %174 : vector<8x32xf32>
    %c0_113 = arith.constant 0 : index
    %c0_114 = arith.constant 0 : index
    %176 = vector.load %arg12[%c0_113, %c0_114] : memref<1x32xf32, #tpu.memory_space<vmem>>, vector<1x32xf32>
    %c0_115 = arith.constant 0 : index
    %c0_116 = arith.constant 0 : index
    %177 = vector.load %arg13[%c0_115, %c0_116] : memref<1x32xf32, #tpu.memory_space<vmem>>, vector<1x32xf32>
    %cst_117 = arith.constant dense<0.000000e+00> : vector<8xf32>
    %178 = vector.multi_reduction <add>, %175, %cst_117 [1] : vector<8x32xf32> to vector<8xf32>
    %179 = vector.shape_cast %178 : vector<8xf32> to vector<8x1xf32>
    %cst_118 = arith.constant 3.200000e+01 : f32
    %180 = vector.broadcast %cst_118 : f32 to vector<8x1xf32>
    %181 = arith.divf %179, %180 : vector<8x1xf32>
    %182 = vector.broadcast %181 : vector<8x1xf32> to vector<8x32xf32>
    %183 = arith.subf %175, %182 : vector<8x32xf32>
    %184 = arith.mulf %183, %183 : vector<8x32xf32>
    %cst_119 = arith.constant dense<0.000000e+00> : vector<8xf32>
    %185 = vector.multi_reduction <add>, %184, %cst_119 [1] : vector<8x32xf32> to vector<8xf32>
    %186 = vector.shape_cast %185 : vector<8xf32> to vector<8x1xf32>
    %cst_120 = arith.constant 3.200000e+01 : f32
    %187 = vector.broadcast %cst_120 : f32 to vector<8x1xf32>
    %188 = arith.divf %186, %187 : vector<8x1xf32>
    %189 = vector.broadcast %181 : vector<8x1xf32> to vector<8x32xf32>
    %190 = arith.subf %175, %189 : vector<8x32xf32>
    %cst_121 = arith.constant 9.99999974E-6 : f32
    %191 = vector.broadcast %cst_121 : f32 to vector<8x1xf32>
    %192 = arith.addf %188, %191 : vector<8x1xf32>
    %193 = math.rsqrt %192 : vector<8x1xf32>
    %194 = vector.broadcast %193 : vector<8x1xf32> to vector<8x32xf32>
    %195 = arith.mulf %190, %194 : vector<8x32xf32>
    %196 = vector.broadcast %176 : vector<1x32xf32> to vector<8x32xf32>
    %197 = arith.mulf %195, %196 : vector<8x32xf32>
    %198 = vector.broadcast %177 : vector<1x32xf32> to vector<8x32xf32>
    %199 = arith.addf %197, %198 : vector<8x32xf32>
    %200 = arith.truncf %199 : vector<8x32xf32> to vector<8x32xbf16>
    %c0_122 = arith.constant 0 : index
    %c0_123 = arith.constant 0 : index
    %201 = vector.load %arg14[%c0_122, %c0_123] : memref<32x64xbf16, #tpu.memory_space<vmem>>, vector<32x64xbf16>
    %cst_124 = arith.constant dense<0.000000e+00> : vector<8x64xf32>
    %202 = tpu.matmul %200, %201, %cst_124 {dimension_numbers = #tpu.dot_dimension_numbers<[1], [0], [0], [1], [0, 0, 1, 1], [], []>} : vector<8x32xbf16>, vector<32x64xbf16>, vector<8x64xf32> -> vector<8x64xf32>
    %c0_125 = arith.constant 0 : index
    %c0_126 = arith.constant 0 : index
    %203 = vector.load %arg15[%c0_125, %c0_126] : memref<1x64xf32, #tpu.memory_space<vmem>>, vector<1x64xf32>
    %204 = vector.broadcast %203 : vector<1x64xf32> to vector<8x64xf32>
    %205 = arith.addf %202, %204 : vector<8x64xf32>
    %cst_127 = arith.constant 0.000000e+00 : f32
    %206 = vector.broadcast %cst_127 : f32 to vector<8x64xf32>
    %207 = arith.maximumf %205, %206 : vector<8x64xf32>
    %208 = arith.truncf %207 : vector<8x64xf32> to vector<8x64xbf16>
    %c0_128 = arith.constant 0 : index
    %c0_129 = arith.constant 0 : index
    %209 = vector.load %arg16[%c0_128, %c0_129] : memref<64x32xbf16, #tpu.memory_space<vmem>>, vector<64x32xbf16>
    %cst_130 = arith.constant dense<0.000000e+00> : vector<8x32xf32>
    %210 = tpu.matmul %208, %209, %cst_130 {dimension_numbers = #tpu.dot_dimension_numbers<[1], [0], [0], [1], [0, 0, 1, 1], [], []>} : vector<8x64xbf16>, vector<64x32xbf16>, vector<8x32xf32> -> vector<8x32xf32>
    %c0_131 = arith.constant 0 : index
    %c0_132 = arith.constant 0 : index
    %211 = vector.load %arg17[%c0_131, %c0_132] : memref<1x32xf32, #tpu.memory_space<vmem>>, vector<1x32xf32>
    %212 = vector.broadcast %211 : vector<1x32xf32> to vector<8x32xf32>
    %213 = arith.addf %210, %212 : vector<8x32xf32>
    %214 = arith.addf %199, %213 : vector<8x32xf32>
    %c0_133 = arith.constant 0 : index
    %c0_134 = arith.constant 0 : index
    %215 = vector.load %arg18[%c0_133, %c0_134] : memref<1x32xf32, #tpu.memory_space<vmem>>, vector<1x32xf32>
    %c0_135 = arith.constant 0 : index
    %c0_136 = arith.constant 0 : index
    %216 = vector.load %arg19[%c0_135, %c0_136] : memref<1x32xf32, #tpu.memory_space<vmem>>, vector<1x32xf32>
    %cst_137 = arith.constant dense<0.000000e+00> : vector<8xf32>
    %217 = vector.multi_reduction <add>, %214, %cst_137 [1] : vector<8x32xf32> to vector<8xf32>
    %218 = vector.shape_cast %217 : vector<8xf32> to vector<8x1xf32>
    %cst_138 = arith.constant 3.200000e+01 : f32
    %219 = vector.broadcast %cst_138 : f32 to vector<8x1xf32>
    %220 = arith.divf %218, %219 : vector<8x1xf32>
    %221 = vector.broadcast %220 : vector<8x1xf32> to vector<8x32xf32>
    %222 = arith.subf %214, %221 : vector<8x32xf32>
    %223 = arith.mulf %222, %222 : vector<8x32xf32>
    %cst_139 = arith.constant dense<0.000000e+00> : vector<8xf32>
    %224 = vector.multi_reduction <add>, %223, %cst_139 [1] : vector<8x32xf32> to vector<8xf32>
    %225 = vector.shape_cast %224 : vector<8xf32> to vector<8x1xf32>
    %cst_140 = arith.constant 3.200000e+01 : f32
    %226 = vector.broadcast %cst_140 : f32 to vector<8x1xf32>
    %227 = arith.divf %225, %226 : vector<8x1xf32>
    %228 = vector.broadcast %220 : vector<8x1xf32> to vector<8x32xf32>
    %229 = arith.subf %214, %228 : vector<8x32xf32>
    %cst_141 = arith.constant 9.99999974E-6 : f32
    %230 = vector.broadcast %cst_141 : f32 to vector<8x1xf32>
    %231 = arith.addf %227, %230 : vector<8x1xf32>
    %232 = math.rsqrt %231 : vector<8x1xf32>
    %233 = vector.broadcast %232 : vector<8x1xf32> to vector<8x32xf32>
    %234 = arith.mulf %229, %233 : vector<8x32xf32>
    %235 = vector.broadcast %215 : vector<1x32xf32> to vector<8x32xf32>
    %236 = arith.mulf %234, %235 : vector<8x32xf32>
    %237 = vector.broadcast %216 : vector<1x32xf32> to vector<8x32xf32>
    %238 = arith.addf %236, %237 : vector<8x32xf32>
    %c0_142 = arith.constant 0 : index
    %c0_143 = arith.constant 0 : index
    %c0_144 = arith.constant 0 : index
    %239 = vector.load %arg20[%c0_142, %c0_143, %c0_144] : memref<1x8x32xf32, #tpu.memory_space<vmem>>, vector<1x8x32xf32>
    %240 = vector.shape_cast %239 : vector<1x8x32xf32> to vector<8x32xf32>
    %241 = vector.shape_cast %238 : vector<8x32xf32> to vector<1x8x32xf32>
    tpu.vector_store %arg20[%c0_142, %c0_143, %c0_144], %241 {strides = array<i32>} : memref<1x8x32xf32, #tpu.memory_space<vmem>>, vector<1x8x32xf32>,
    return
  }
  func.func @transform_0(%arg0: i32) -> (i32, i32, i32) {
    %c0_i32 = arith.constant 0 : i32
    %c0_i32_0 = arith.constant 0 : i32
    %c0_i32_1 = arith.constant 0 : i32
    %c0_i32_2 = arith.constant 0 : i32
    return %c0_i32, %c0_i32_0, %c0_i32_1 : i32, i32, i32
  }
  func.func @transform_1(%arg0: i32) -> (i32, i32, i32) {
    %c0_i32 = arith.constant 0 : i32
    %c0_i32_0 = arith.constant 0 : i32
    %c0_i32_1 = arith.constant 0 : i32
    return %arg0, %c0_i32, %c0_i32_0 : i32, i32, i32
  }
  func.func @transform_2(%arg0: i32) -> (i32, i32, i32) {
    %c0_i32 = arith.constant 0 : i32
    %c0_i32_0 = arith.constant 0 : i32
    %c0_i32_1 = arith.constant 0 : i32
    return %arg0, %c0_i32, %c0_i32_0 : i32, i32, i32
  }
  func.func @transform_3(%arg0: i32) -> (i32, i32, i32) {
    %c0_i32 = arith.constant 0 : i32
    %c0_i32_0 = arith.constant 0 : i32
    %c0_i32_1 = arith.constant 0 : i32
    %c0_i32_2 = arith.constant 0 : i32
    return %c0_i32, %c0_i32_0, %c0_i32_1 : i32, i32, i32
  }
  func.func @transform_4(%arg0: i32) -> (i32, i32, i32) {
    %c0_i32 = arith.constant 0 : i32
    %c0_i32_0 = arith.constant 0 : i32
    %c0_i32_1 = arith.constant 0 : i32
    %c0_i32_2 = arith.constant 0 : i32
    return %c0_i32, %c0_i32_0, %c0_i32_1 : i32, i32, i32
  }
  func.func @transform_5(%arg0: i32) -> (i32, i32, i32) {
    %c0_i32 = arith.constant 0 : i32
    %c0_i32_0 = arith.constant 0 : i32
    %c0_i32_1 = arith.constant 0 : i32
    %c0_i32_2 = arith.constant 0 : i32
    return %c0_i32, %c0_i32_0, %c0_i32_1 : i32, i32, i32
  }
  func.func @transform_6(%arg0: i32) -> (i32, i32, i32) {
    %c0_i32 = arith.constant 0 : i32
    %c0_i32_0 = arith.constant 0 : i32
    %c0_i32_1 = arith.constant 0 : i32
    %c0_i32_2 = arith.constant 0 : i32
    return %c0_i32, %c0_i32_0, %c0_i32_1 : i32, i32, i32
  }
  func.func @transform_7(%arg0: i32) -> (i32, i32, i32) {
    %c0_i32 = arith.constant 0 : i32
    %c0_i32_0 = arith.constant 0 : i32
    %c0_i32_1 = arith.constant 0 : i32
    %c0_i32_2 = arith.constant 0 : i32
    return %c0_i32, %c0_i32_0, %c0_i32_1 : i32, i32, i32
  }
  func.func @transform_8(%arg0: i32) -> (i32, i32, i32) {
    %c0_i32 = arith.constant 0 : i32
    %c0_i32_0 = arith.constant 0 : i32
    %c0_i32_1 = arith.constant 0 : i32
    %c0_i32_2 = arith.constant 0 : i32
    return %c0_i32, %c0_i32_0, %c0_i32_1 : i32, i32, i32
  }
  func.func @transform_9(%arg0: i32) -> (i32, i32) {
    %c0_i32 = arith.constant 0 : i32
    %c0_i32_0 = arith.constant 0 : i32
    %c0_i32_1 = arith.constant 0 : i32
    return %c0_i32, %c0_i32_0 : i32, i32
  }
  func.func @transform_10(%arg0: i32) -> (i32, i32) {
    %c0_i32 = arith.constant 0 : i32
    %c0_i32_0 = arith.constant 0 : i32
    %c0_i32_1 = arith.constant 0 : i32
    return %c0_i32, %c0_i32_0 : i32, i32
  }
  func.func @transform_11(%arg0: i32) -> (i32, i32) {
    %c0_i32 = arith.constant 0 : i32
    %c0_i32_0 = arith.constant 0 : i32
    %c0_i32_1 = arith.constant 0 : i32
    return %c0_i32, %c0_i32_0 : i32, i32
  }
  func.func @transform_12(%arg0: i32) -> (i32, i32) {
    %c0_i32 = arith.constant 0 : i32
    %c0_i32_0 = arith.constant 0 : i32
    %c0_i32_1 = arith.constant 0 : i32
    return %c0_i32, %c0_i32_0 : i32, i32
  }
  func.func @transform_13(%arg0: i32) -> (i32, i32) {
    %c0_i32 = arith.constant 0 : i32
    %c0_i32_0 = arith.constant 0 : i32
    %c0_i32_1 = arith.constant 0 : i32
    return %c0_i32, %c0_i32_0 : i32, i32
  }
  func.func @transform_14(%arg0: i32) -> (i32, i32) {
    %c0_i32 = arith.constant 0 : i32
    %c0_i32_0 = arith.constant 0 : i32
    %c0_i32_1 = arith.constant 0 : i32
    return %c0_i32, %c0_i32_0 : i32, i32
  }
  func.func @transform_15(%arg0: i32) -> (i32, i32) {
    %c0_i32 = arith.constant 0 : i32
    %c0_i32_0 = arith.constant 0 : i32
    %c0_i32_1 = arith.constant 0 : i32
    return %c0_i32, %c0_i32_0 : i32, i32
  }
  func.func @transform_16(%arg0: i32) -> (i32, i32) {
    %c0_i32 = arith.constant 0 : i32
    %c0_i32_0 = arith.constant 0 : i32
    %c0_i32_1 = arith.constant 0 : i32
    return %c0_i32, %c0_i32_0 : i32, i32
  }
  func.func @transform_17(%arg0: i32) -> (i32, i32) {
    %c0_i32 = arith.constant 0 : i32
    %c0_i32_0 = arith.constant 0 : i32
    %c0_i32_1 = arith.constant 0 : i32
    return %c0_i32, %c0_i32_0 : i32, i32
  }
  func.func @transform_18(%arg0: i32) -> (i32, i32) {
    %c0_i32 = arith.constant 0 : i32
    %c0_i32_0 = arith.constant 0 : i32
    %c0_i32_1 = arith.constant 0 : i32
    return %c0_i32, %c0_i32_0 : i32, i32
  }
  func.func @transform_19(%arg0: i32) -> (i32, i32, i32) {
    %c0_i32 = arith.constant 0 : i32
    %c0_i32_0 = arith.constant 0 : i32
    %c0_i32_1 = arith.constant 0 : i32
    return %arg0, %c0_i32, %c0_i32_0 : i32, i32, i32
  }
}

module attributes {stable_mosaic.version = 11 : i64} {
  func.func @_layer_kernel(%arg0: i32, %arg1: memref<1x8x32xf32, #tpu.memory_space<vmem>>, %arg2: memref<1x8x32xf32, #tpu.memory_space<vmem>>, %arg3: memref<1x8x8xf32, #tpu.memory_space<vmem>>, %arg4: memref<4x32x8xbf16, #tpu.memory_space<vmem>>, %arg5: memref<4x1x8xf32, #tpu.memory_space<vmem>>, %arg6: memref<4x32x8xbf16, #tpu.memory_space<vmem>>, %arg7: memref<4x1x8xf32, #tpu.memory_space<vmem>>, %arg8: memref<4x32x8xbf16, #tpu.memory_space<vmem>>, %arg9: memref<4x1x8xf32, #tpu.memory_space<vmem>>, %arg10: memref<32x32xbf16, #tpu.memory_space<vmem>>, %arg11: memref<1x32xf32, #tpu.memory_space<vmem>>, %arg12: memref<1x32xf32, #tpu.memory_space<vmem>>, %arg13: memref<1x32xf32, #tpu.memory_space<vmem>>, %arg14: memref<32x64xbf16, #tpu.memory_space<vmem>>, %arg15: memref<1x64xf32, #tpu.memory_space<vmem>>, %arg16: memref<64x32xbf16, #tpu.memory_space<vmem>>, %arg17: memref<1x32xf32, #tpu.memory_space<vmem>>, %arg18: memref<1x32xf32, #tpu.memory_space<vmem>>, %arg19: memref<1x32xf32, #tpu.memory_space<vmem>>, %arg20: memref<1x8x32xf32, #tpu.memory_space<vmem>>) attributes {dimension_semantics = [#tpu.dimension_semantics<parallel>], iteration_bounds = array<i64: 2>, scalar_prefetch = 0 : i64, scratch_operands = 0 : i64, tpu.core_type = #tpu.core_type<tc>, window_params = [{transform_indices = @transform_0, window_bounds = array<i64: 1, 8, 32>}, {transform_indices = @transform_1, window_bounds = array<i64: 1, 8, 32>}, {transform_indices = @transform_2, window_bounds = array<i64: 1, 8, 8>}, {pipeline_mode = #tpu.pipeline_mode<synchronous>, transform_indices = @transform_3, window_bounds = array<i64: 4, 32, 8>}, {pipeline_mode = #tpu.pipeline_mode<synchronous>, transform_indices = @transform_4, window_bounds = array<i64: 4, 1, 8>}, {pipeline_mode = #tpu.pipeline_mode<synchronous>, transform_indices = @transform_5, window_bounds = array<i64: 4, 32, 8>}, {pipeline_mode = #tpu.pipeline_mode<synchronous>, transform_indices = @transform_6, window_bounds = array<i64: 4, 1, 8>}, {pipeline_mode = #tpu.pipeline_mode<synchronous>, transform_indices = @transform_7, window_bounds = array<i64: 4, 32, 8>}, {pipeline_mode = #tpu.pipeline_mode<synchronous>, transform_indices = @transform_8, window_bounds = array<i64: 4, 1, 8>}, {pipeline_mode = #tpu.pipeline_mode<synchronous>, transform_indices = @transform_9, window_bounds = array<i64: 32, 32>}, {pipeline_mode = #tpu.pipeline_mode<synchronous>, transform_indices = @transform_10, window_bounds = array<i64: 1, 32>}, {pipeline_mode = #tpu.pipeline_mode<synchronous>, transform_indices = @transform_11, window_bounds = array<i64: 1, 32>}, {pipeline_mode = #tpu.pipeline_mode<synchronous>, transform_indices = @transform_12, window_bounds = array<i64: 1, 32>}, {pipeline_mode = #tpu.pipeline_mode<synchronous>, transform_indices = @transform_13, window_bounds = array<i64: 32, 64>}, {pipeline_mode = #tpu.pipeline_mode<synchronous>, transform_indices = @transform_14, window_bounds = array<i64: 1, 64>}, {pipeline_mode = #tpu.pipeline_mode<synchronous>, transform_indices = @transform_15, window_bounds = array<i64: 64, 32>}, {pipeline_mode = #tpu.pipeline_mode<synchronous>, transform_indices = @transform_16, window_bounds = array<i64: 1, 32>}, {pipeline_mode = #tpu.pipeline_mode<synchronous>, transform_indices = @transform_17, window_bounds = array<i64: 1, 32>}, {pipeline_mode = #tpu.pipeline_mode<synchronous>, transform_indices = @transform_18, window_bounds = array<i64: 1, 32>}, {transform_indices = @transform_19, window_bounds = array<i64: 1, 8, 32>}]} {
    %c0 = arith.constant 0 : index
    %c0_0 = arith.constant 0 : index
    %c0_1 = arith.constant 0 : index
    %0 = vector.load %arg1[%c0, %c0_0, %c0_1] : memref<1x8x32xf32, #tpu.memory_space<vmem>>, vector<1x8x32xf32>
    %1 = vector.shape_cast %0 : vector<1x8x32xf32> to vector<8x32xf32>
    %c0_2 = arith.constant 0 : index
    %c0_3 = arith.constant 0 : index
    %c0_4 = arith.constant 0 : index
    %2 = vector.load %arg2[%c0_2, %c0_3, %c0_4] : memref<1x8x32xf32, #tpu.memory_space<vmem>>, vector<1x8x32xf32>
    %3 = vector.shape_cast %2 : vector<1x8x32xf32> to vector<8x32xf32>
    %c0_5 = arith.constant 0 : index
    %c0_6 = arith.constant 0 : index
    %c0_7 = arith.constant 0 : index
    %4 = vector.load %arg3[%c0_5, %c0_6, %c0_7] : memref<1x8x8xf32, #tpu.memory_space<vmem>>, vector<1x8x8xf32>
    %5 = vector.shape_cast %4 : vector<1x8x8xf32> to vector<8x8xf32>
    %6 = arith.truncf %1 : vector<8x32xf32> to vector<8x32xbf16>
    %7 = arith.truncf %3 : vector<8x32xf32> to vector<8x32xbf16>
    %c0_8 = arith.constant 0 : index
    %c0_9 = arith.constant 0 : index
    %c0_10 = arith.constant 0 : index
    %8 = vector.load %arg4[%c0_8, %c0_9, %c0_10] : memref<4x32x8xbf16, #tpu.memory_space<vmem>>, vector<1x32x8xbf16>
    %9 = vector.shape_cast %8 : vector<1x32x8xbf16> to vector<32x8xbf16>
    %cst = arith.constant dense<0.000000e+00> : vector<8x8xf32>
    %10 = tpu.matmul %6, %9, %cst {dimension_numbers = #tpu.dot_dimension_numbers<[1], [0], [0], [1], [0, 0, 1, 1], [], []>} : vector<8x32xbf16>, vector<32x8xbf16>, vector<8x8xf32> -> vector<8x8xf32>
    %c0_11 = arith.constant 0 : index
    %c0_12 = arith.constant 0 : index
    %c0_13 = arith.constant 0 : index
    %11 = vector.load %arg5[%c0_11, %c0_12, %c0_13] : memref<4x1x8xf32, #tpu.memory_space<vmem>>, vector<1x1x8xf32>
    %12 = vector.shape_cast %11 : vector<1x1x8xf32> to vector<1x8xf32>
    %13 = vector.broadcast %12 : vector<1x8xf32> to vector<8x8xf32>
    %14 = arith.addf %10, %13 : vector<8x8xf32>
    %c0_14 = arith.constant 0 : index
    %c0_15 = arith.constant 0 : index
    %c0_16 = arith.constant 0 : index
    %15 = vector.load %arg6[%c0_14, %c0_15, %c0_16] : memref<4x32x8xbf16, #tpu.memory_space<vmem>>, vector<1x32x8xbf16>
    %16 = vector.shape_cast %15 : vector<1x32x8xbf16> to vector<32x8xbf16>
    %cst_17 = arith.constant dense<0.000000e+00> : vector<8x8xf32>
    %17 = tpu.matmul %7, %16, %cst_17 {dimension_numbers = #tpu.dot_dimension_numbers<[1], [0], [0], [1], [0, 0, 1, 1], [], []>} : vector<8x32xbf16>, vector<32x8xbf16>, vector<8x8xf32> -> vector<8x8xf32>
    %c0_18 = arith.constant 0 : index
    %c0_19 = arith.constant 0 : index
    %c0_20 = arith.constant 0 : index
    %18 = vector.load %arg7[%c0_18, %c0_19, %c0_20] : memref<4x1x8xf32, #tpu.memory_space<vmem>>, vector<1x1x8xf32>
    %19 = vector.shape_cast %18 : vector<1x1x8xf32> to vector<1x8xf32>
    %20 = vector.broadcast %19 : vector<1x8xf32> to vector<8x8xf32>
    %21 = arith.addf %17, %20 : vector<8x8xf32>
    %c0_21 = arith.constant 0 : index
    %c0_22 = arith.constant 0 : index
    %c0_23 = arith.constant 0 : index
    %22 = vector.load %arg8[%c0_21, %c0_22, %c0_23] : memref<4x32x8xbf16, #tpu.memory_space<vmem>>, vector<1x32x8xbf16>
    %23 = vector.shape_cast %22 : vector<1x32x8xbf16> to vector<32x8xbf16>
    %cst_24 = arith.constant dense<0.000000e+00> : vector<8x8xf32>
    %24 = tpu.matmul %7, %23, %cst_24 {dimension_numbers = #tpu.dot_dimension_numbers<[1], [0], [0], [1], [0, 0, 1, 1], [], []>} : vector<8x32xbf16>, vector<32x8xbf16>, vector<8x8xf32> -> vector<8x8xf32>
    %c0_25 = arith.constant 0 : index
    %c0_26 = arith.constant 0 : index
    %c0_27 = arith.constant 0 : index
    %25 = vector.load %arg9[%c0_25, %c0_26, %c0_27] : memref<4x1x8xf32, #tpu.memory_space<vmem>>, vector<1x1x8xf32>
    %26 = vector.shape_cast %25 : vector<1x1x8xf32> to vector<1x8xf32>
    %27 = vector.broadcast %26 : vector<1x8xf32> to vector<8x8xf32>
    %28 = arith.addf %24, %27 : vector<8x8xf32>
    %29 = arith.truncf %14 : vector<8x8xf32> to vector<8x8xbf16>
    %30 = arith.truncf %21 : vector<8x8xf32> to vector<8x8xbf16>
    %cst_28 = arith.constant dense<0.000000e+00> : vector<8x8xf32>
    %31 = tpu.matmul %29, %30, %cst_28 {dimension_numbers = #tpu.dot_dimension_numbers<[1], [1], [0], [0], [0, 0, 1, 0], [], []>} : vector<8x8xbf16>, vector<8x8xbf16>, vector<8x8xf32> -> vector<8x8xf32>
    %cst_29 = arith.constant 0.353553385 : f32
    %32 = vector.broadcast %cst_29 : f32 to vector<8x8xf32>
    %33 = arith.mulf %31, %32 : vector<8x8xf32>
    %34 = arith.addf %33, %5 : vector<8x8xf32>
    %cst_30 = arith.constant dense<0xFF800000> : vector<8xf32>
    %35 = vector.multi_reduction <maximumf>, %34, %cst_30 [1] : vector<8x8xf32> to vector<8xf32>
    %36 = vector.shape_cast %35 : vector<8xf32> to vector<8x1xf32>
    %37 = vector.broadcast %36 : vector<8x1xf32> to vector<8x8xf32>
    %38 = arith.subf %34, %37 : vector<8x8xf32>
    %39 = math.exp %38 : vector<8x8xf32>
    %cst_31 = arith.constant dense<0.000000e+00> : vector<8xf32>
    %40 = vector.multi_reduction <add>, %39, %cst_31 [1] : vector<8x8xf32> to vector<8xf32>
    %41 = vector.shape_cast %40 : vector<8xf32> to vector<8x1xf32>
    %42 = tpu.reciprocal %41 {approx = true} : vector<8x1xf32> -> vector<8x1xf32>
    %43 = vector.broadcast %42 : vector<8x1xf32> to vector<8x8xf32>
    %44 = arith.mulf %39, %43 : vector<8x8xf32>
    %45 = arith.truncf %44 : vector<8x8xf32> to vector<8x8xbf16>
    %46 = arith.truncf %28 : vector<8x8xf32> to vector<8x8xbf16>
    %cst_32 = arith.constant dense<0.000000e+00> : vector<8x8xf32>
    %47 = tpu.matmul %45, %46, %cst_32 {dimension_numbers = #tpu.dot_dimension_numbers<[1], [0], [0], [1], [0, 0, 1, 1], [], []>} : vector<8x8xbf16>, vector<8x8xbf16>, vector<8x8xf32> -> vector<8x8xf32>
    %c1 = arith.constant 1 : index
    %c0_33 = arith.constant 0 : index
    %c0_34 = arith.constant 0 : index
    %48 = vector.load %arg4[%c1, %c0_33, %c0_34] : memref<4x32x8xbf16, #tpu.memory_space<vmem>>, vector<1x32x8xbf16>
    %49 = vector.shape_cast %48 : vector<1x32x8xbf16> to vector<32x8xbf16>
    %cst_35 = arith.constant dense<0.000000e+00> : vector<8x8xf32>
    %50 = tpu.matmul %6, %49, %cst_35 {dimension_numbers = #tpu.dot_dimension_numbers<[1], [0], [0], [1], [0, 0, 1, 1], [], []>} : vector<8x32xbf16>, vector<32x8xbf16>, vector<8x8xf32> -> vector<8x8xf32>
    %c1_36 = arith.constant 1 : index
    %c0_37 = arith.constant 0 : index
    %c0_38 = arith.constant 0 : index
    %51 = vector.load %arg5[%c1_36, %c0_37, %c0_38] : memref<4x1x8xf32, #tpu.memory_space<vmem>>, vector<1x1x8xf32>
    %52 = vector.shape_cast %51 : vector<1x1x8xf32> to vector<1x8xf32>
    %53 = vector.broadcast %52 : vector<1x8xf32> to vector<8x8xf32>
    %54 = arith.addf %50, %53 : vector<8x8xf32>
    %c1_39 = arith.constant 1 : index
    %c0_40 = arith.constant 0 : index
    %c0_41 = arith.constant 0 : index
    %55 = vector.load %arg6[%c1_39, %c0_40, %c0_41] : memref<4x32x8xbf16, #tpu.memory_space<vmem>>, vector<1x32x8xbf16>
    %56 = vector.shape_cast %55 : vector<1x32x8xbf16> to vector<32x8xbf16>
    %cst_42 = arith.constant dense<0.000000e+00> : vector<8x8xf32>
    %57 = tpu.matmul %7, %56, %cst_42 {dimension_numbers = #tpu.dot_dimension_numbers<[1], [0], [0], [1], [0, 0, 1, 1], [], []>} : vector<8x32xbf16>, vector<32x8xbf16>, vector<8x8xf32> -> vector<8x8xf32>
    %c1_43 = arith.constant 1 : index
    %c0_44 = arith.constant 0 : index
    %c0_45 = arith.constant 0 : index
    %58 = vector.load %arg7[%c1_43, %c0_44, %c0_45] : memref<4x1x8xf32, #tpu.memory_space<vmem>>, vector<1x1x8xf32>
    %59 = vector.shape_cast %58 : vector<1x1x8xf32> to vector<1x8xf32>
    %60 = vector.broadcast %59 : vector<1x8xf32> to vector<8x8xf32>
    %61 = arith.addf %57, %60 : vector<8x8xf32>
    %c1_46 = arith.constant 1 : index
    %c0_47 = arith.constant 0 : index
    %c0_48 = arith.constant 0 : index
    %62 = vector.load %arg8[%c1_46, %c0_47, %c0_48] : memref<4x32x8xbf16, #tpu.memory_space<vmem>>, vector<1x32x8xbf16>
    %63 = vector.shape_cast %62 : vector<1x32x8xbf16> to vector<32x8xbf16>
    %cst_49 = arith.constant dense<0.000000e+00> : vector<8x8xf32>
    %64 = tpu.matmul %7, %63, %cst_49 {dimension_numbers = #tpu.dot_dimension_numbers<[1], [0], [0], [1], [0, 0, 1, 1], [], []>} : vector<8x32xbf16>, vector<32x8xbf16>, vector<8x8xf32> -> vector<8x8xf32>
    %c1_50 = arith.constant 1 : index
    %c0_51 = arith.constant 0 : index
    %c0_52 = arith.constant 0 : index
    %65 = vector.load %arg9[%c1_50, %c0_51, %c0_52] : memref<4x1x8xf32, #tpu.memory_space<vmem>>, vector<1x1x8xf32>
    %66 = vector.shape_cast %65 : vector<1x1x8xf32> to vector<1x8xf32>
    %67 = vector.broadcast %66 : vector<1x8xf32> to vector<8x8xf32>
    %68 = arith.addf %64, %67 : vector<8x8xf32>
    %69 = arith.truncf %54 : vector<8x8xf32> to vector<8x8xbf16>
    %70 = arith.truncf %61 : vector<8x8xf32> to vector<8x8xbf16>
    %cst_53 = arith.constant dense<0.000000e+00> : vector<8x8xf32>
    %71 = tpu.matmul %69, %70, %cst_53 {dimension_numbers = #tpu.dot_dimension_numbers<[1], [1], [0], [0], [0, 0, 1, 0], [], []>} : vector<8x8xbf16>, vector<8x8xbf16>, vector<8x8xf32> -> vector<8x8xf32>
    %cst_54 = arith.constant 0.353553385 : f32
    %72 = vector.broadcast %cst_54 : f32 to vector<8x8xf32>
    %73 = arith.mulf %71, %72 : vector<8x8xf32>
    %74 = arith.addf %73, %5 : vector<8x8xf32>
    %cst_55 = arith.constant dense<0xFF800000> : vector<8xf32>
    %75 = vector.multi_reduction <maximumf>, %74, %cst_55 [1] : vector<8x8xf32> to vector<8xf32>
    %76 = vector.shape_cast %75 : vector<8xf32> to vector<8x1xf32>
    %77 = vector.broadcast %76 : vector<8x1xf32> to vector<8x8xf32>
    %78 = arith.subf %74, %77 : vector<8x8xf32>
    %79 = math.exp %78 : vector<8x8xf32>
    %cst_56 = arith.constant dense<0.000000e+00> : vector<8xf32>
    %80 = vector.multi_reduction <add>, %79, %cst_56 [1] : vector<8x8xf32> to vector<8xf32>
    %81 = vector.shape_cast %80 : vector<8xf32> to vector<8x1xf32>
    %82 = tpu.reciprocal %81 {approx = true} : vector<8x1xf32> -> vector<8x1xf32>
    %83 = vector.broadcast %82 : vector<8x1xf32> to vector<8x8xf32>
    %84 = arith.mulf %79, %83 : vector<8x8xf32>
    %85 = arith.truncf %84 : vector<8x8xf32> to vector<8x8xbf16>
    %86 = arith.truncf %68 : vector<8x8xf32> to vector<8x8xbf16>
    %cst_57 = arith.constant dense<0.000000e+00> : vector<8x8xf32>
    %87 = tpu.matmul %85, %86, %cst_57 {dimension_numbers = #tpu.dot_dimension_numbers<[1], [0], [0], [1], [0, 0, 1, 1], [], []>} : vector<8x8xbf16>, vector<8x8xbf16>, vector<8x8xf32> -> vector<8x8xf32>
    %c2 = arith.constant 2 : index
    %c0_58 = arith.constant 0 : index
    %c0_59 = arith.constant 0 : index
    %88 = vector.load %arg4[%c2, %c0_58, %c0_59] : memref<4x32x8xbf16, #tpu.memory_space<vmem>>, vector<1x32x8xbf16>
    %89 = vector.shape_cast %88 : vector<1x32x8xbf16> to vector<32x8xbf16>
    %cst_60 = arith.constant dense<0.000000e+00> : vector<8x8xf32>
    %90 = tpu.matmul %6, %89, %cst_60 {dimension_numbers = #tpu.dot_dimension_numbers<[1], [0], [0], [1], [0, 0, 1, 1], [], []>} : vector<8x32xbf16>, vector<32x8xbf16>, vector<8x8xf32> -> vector<8x8xf32>
    %c2_61 = arith.constant 2 : index
    %c0_62 = arith.constant 0 : index
    %c0_63 = arith.constant 0 : index
    %91 = vector.load %arg5[%c2_61, %c0_62, %c0_63] : memref<4x1x8xf32, #tpu.memory_space<vmem>>, vector<1x1x8xf32>
    %92 = vector.shape_cast %91 : vector<1x1x8xf32> to vector<1x8xf32>
    %93 = vector.broadcast %92 : vector<1x8xf32> to vector<8x8xf32>
    %94 = arith.addf %90, %93 : vector<8x8xf32>
    %c2_64 = arith.constant 2 : index
    %c0_65 = arith.constant 0 : index
    %c0_66 = arith.constant 0 : index
    %95 = vector.load %arg6[%c2_64, %c0_65, %c0_66] : memref<4x32x8xbf16, #tpu.memory_space<vmem>>, vector<1x32x8xbf16>
    %96 = vector.shape_cast %95 : vector<1x32x8xbf16> to vector<32x8xbf16>
    %cst_67 = arith.constant dense<0.000000e+00> : vector<8x8xf32>
    %97 = tpu.matmul %7, %96, %cst_67 {dimension_numbers = #tpu.dot_dimension_numbers<[1], [0], [0], [1], [0, 0, 1, 1], [], []>} : vector<8x32xbf16>, vector<32x8xbf16>, vector<8x8xf32> -> vector<8x8xf32>
    %c2_68 = arith.constant 2 : index
    %c0_69 = arith.constant 0 : index
    %c0_70 = arith.constant 0 : index
    %98 = vector.load %arg7[%c2_68, %c0_69, %c0_70] : memref<4x1x8xf32, #tpu.memory_space<vmem>>, vector<1x1x8xf32>
    %99 = vector.shape_cast %98 : vector<1x1x8xf32> to vector<1x8xf32>
    %100 = vector.broadcast %99 : vector<1x8xf32> to vector<8x8xf32>
    %101 = arith.addf %97, %100 : vector<8x8xf32>
    %c2_71 = arith.constant 2 : index
    %c0_72 = arith.constant 0 : index
    %c0_73 = arith.constant 0 : index
    %102 = vector.load %arg8[%c2_71, %c0_72, %c0_73] : memref<4x32x8xbf16, #tpu.memory_space<vmem>>, vector<1x32x8xbf16>
    %103 = vector.shape_cast %102 : vector<1x32x8xbf16> to vector<32x8xbf16>
    %cst_74 = arith.constant dense<0.000000e+00> : vector<8x8xf32>
    %104 = tpu.matmul %7, %103, %cst_74 {dimension_numbers = #tpu.dot_dimension_numbers<[1], [0], [0], [1], [0, 0, 1, 1], [], []>} : vector<8x32xbf16>, vector<32x8xbf16>, vector<8x8xf32> -> vector<8x8xf32>
    %c2_75 = arith.constant 2 : index
    %c0_76 = arith.constant 0 : index
    %c0_77 = arith.constant 0 : index
    %105 = vector.load %arg9[%c2_75, %c0_76, %c0_77] : memref<4x1x8xf32, #tpu.memory_space<vmem>>, vector<1x1x8xf32>
    %106 = vector.shape_cast %105 : vector<1x1x8xf32> to vector<1x8xf32>
    %107 = vector.broadcast %106 : vector<1x8xf32> to vector<8x8xf32>
    %108 = arith.addf %104, %107 : vector<8x8xf32>
    %109 = arith.truncf %94 : vector<8x8xf32> to vector<8x8xbf16>
    %110 = arith.truncf %101 : vector<8x8xf32> to vector<8x8xbf16>
    %cst_78 = arith.constant dense<0.000000e+00> : vector<8x8xf32>
    %111 = tpu.matmul %109, %110, %cst_78 {dimension_numbers = #tpu.dot_dimension_numbers<[1], [1], [0], [0], [0, 0, 1, 0], [], []>} : vector<8x8xbf16>, vector<8x8xbf16>, vector<8x8xf32> -> vector<8x8xf32>
    %cst_79 = arith.constant 0.353553385 : f32
    %112 = vector.broadcast %cst_79 : f32 to vector<8x8xf32>
    %113 = arith.mulf %111, %112 : vector<8x8xf32>
    %114 = arith.addf %113, %5 : vector<8x8xf32>
    %cst_80 = arith.constant dense<0xFF800000> : vector<8xf32>
    %115 = vector.multi_reduction <maximumf>, %114, %cst_80 [1] : vector<8x8xf32> to vector<8xf32>
    %116 = vector.shape_cast %115 : vector<8xf32> to vector<8x1xf32>
    %117 = vector.broadcast %116 : vector<8x1xf32> to vector<8x8xf32>
    %118 = arith.subf %114, %117 : vector<8x8xf32>
    %119 = math.exp %118 : vector<8x8xf32>
    %cst_81 = arith.constant dense<0.000000e+00> : vector<8xf32>
    %120 = vector.multi_reduction <add>, %119, %cst_81 [1] : vector<8x8xf32> to vector<8xf32>
    %121 = vector.shape_cast %120 : vector<8xf32> to vector<8x1xf32>
    %122 = tpu.reciprocal %121 {approx = true} : vector<8x1xf32> -> vector<8x1xf32>
    %123 = vector.broadcast %122 : vector<8x1xf32> to vector<8x8xf32>
    %124 = arith.mulf %119, %123 : vector<8x8xf32>
    %125 = arith.truncf %124 : vector<8x8xf32> to vector<8x8xbf16>
    %126 = arith.truncf %108 : vector<8x8xf32> to vector<8x8xbf16>
    %cst_82 = arith.constant dense<0.000000e+00> : vector<8x8xf32>
    %127 = tpu.matmul %125, %126, %cst_82 {dimension_numbers = #tpu.dot_dimension_numbers<[1], [0], [0], [1], [0, 0, 1, 1], [], []>} : vector<8x8xbf16>, vector<8x8xbf16>, vector<8x8xf32> -> vector<8x8xf32>
    %c3 = arith.constant 3 : index
    %c0_83 = arith.constant 0 : index
    %c0_84 = arith.constant 0 : index
    %128 = vector.load %arg4[%c3, %c0_83, %c0_84] : memref<4x32x8xbf16, #tpu.memory_space<vmem>>, vector<1x32x8xbf16>
    %129 = vector.shape_cast %128 : vector<1x32x8xbf16> to vector<32x8xbf16>
    %cst_85 = arith.constant dense<0.000000e+00> : vector<8x8xf32>
    %130 = tpu.matmul %6, %129, %cst_85 {dimension_numbers = #tpu.dot_dimension_numbers<[1], [0], [0], [1], [0, 0, 1, 1], [], []>} : vector<8x32xbf16>, vector<32x8xbf16>, vector<8x8xf32> -> vector<8x8xf32>
    %c3_86 = arith.constant 3 : index
    %c0_87 = arith.constant 0 : index
    %c0_88 = arith.constant 0 : index
    %131 = vector.load %arg5[%c3_86, %c0_87, %c0_88] : memref<4x1x8xf32, #tpu.memory_space<vmem>>, vector<1x1x8xf32>
    %132 = vector.shape_cast %131 : vector<1x1x8xf32> to vector<1x8xf32>
    %133 = vector.broadcast %132 : vector<1x8xf32> to vector<8x8xf32>
    %134 = arith.addf %130, %133 : vector<8x8xf32>
    %c3_89 = arith.constant 3 : index
    %c0_90 = arith.constant 0 : index
    %c0_91 = arith.constant 0 : index
    %135 = vector.load %arg6[%c3_89, %c0_90, %c0_91] : memref<4x32x8xbf16, #tpu.memory_space<vmem>>, vector<1x32x8xbf16>
    %136 = vector.shape_cast %135 : vector<1x32x8xbf16> to vector<32x8xbf16>
    %cst_92 = arith.constant dense<0.000000e+00> : vector<8x8xf32>
    %137 = tpu.matmul %7, %136, %cst_92 {dimension_numbers = #tpu.dot_dimension_numbers<[1], [0], [0], [1], [0, 0, 1, 1], [], []>} : vector<8x32xbf16>, vector<32x8xbf16>, vector<8x8xf32> -> vector<8x8xf32>
    %c3_93 = arith.constant 3 : index
    %c0_94 = arith.constant 0 : index
    %c0_95 = arith.constant 0 : index
    %138 = vector.load %arg7[%c3_93, %c0_94, %c0_95] : memref<4x1x8xf32, #tpu.memory_space<vmem>>, vector<1x1x8xf32>
    %139 = vector.shape_cast %138 : vector<1x1x8xf32> to vector<1x8xf32>
    %140 = vector.broadcast %139 : vector<1x8xf32> to vector<8x8xf32>
    %141 = arith.addf %137, %140 : vector<8x8xf32>
    %c3_96 = arith.constant 3 : index
    %c0_97 = arith.constant 0 : index
    %c0_98 = arith.constant 0 : index
    %142 = vector.load %arg8[%c3_96, %c0_97, %c0_98] : memref<4x32x8xbf16, #tpu.memory_space<vmem>>, vector<1x32x8xbf16>
    %143 = vector.shape_cast %142 : vector<1x32x8xbf16> to vector<32x8xbf16>
    %cst_99 = arith.constant dense<0.000000e+00> : vector<8x8xf32>
    %144 = tpu.matmul %7, %143, %cst_99 {dimension_numbers = #tpu.dot_dimension_numbers<[1], [0], [0], [1], [0, 0, 1, 1], [], []>} : vector<8x32xbf16>, vector<32x8xbf16>, vector<8x8xf32> -> vector<8x8xf32>
    %c3_100 = arith.constant 3 : index
    %c0_101 = arith.constant 0 : index
    %c0_102 = arith.constant 0 : index
    %145 = vector.load %arg9[%c3_100, %c0_101, %c0_102] : memref<4x1x8xf32, #tpu.memory_space<vmem>>, vector<1x1x8xf32>
    %146 = vector.shape_cast %145 : vector<1x1x8xf32> to vector<1x8xf32>
    %147 = vector.broadcast %146 : vector<1x8xf32> to vector<8x8xf32>
    %148 = arith.addf %144, %147 : vector<8x8xf32>
    %149 = arith.truncf %134 : vector<8x8xf32> to vector<8x8xbf16>
    %150 = arith.truncf %141 : vector<8x8xf32> to vector<8x8xbf16>
    %cst_103 = arith.constant dense<0.000000e+00> : vector<8x8xf32>
    %151 = tpu.matmul %149, %150, %cst_103 {dimension_numbers = #tpu.dot_dimension_numbers<[1], [1], [0], [0], [0, 0, 1, 0], [], []>} : vector<8x8xbf16>, vector<8x8xbf16>, vector<8x8xf32> -> vector<8x8xf32>
    %cst_104 = arith.constant 0.353553385 : f32
    %152 = vector.broadcast %cst_104 : f32 to vector<8x8xf32>
    %153 = arith.mulf %151, %152 : vector<8x8xf32>
    %154 = arith.addf %153, %5 : vector<8x8xf32>
    %cst_105 = arith.constant dense<0xFF800000> : vector<8xf32>
    %155 = vector.multi_reduction <maximumf>, %154, %cst_105 [1] : vector<8x8xf32> to vector<8xf32>
    %156 = vector.shape_cast %155 : vector<8xf32> to vector<8x1xf32>
    %157 = vector.broadcast %156 : vector<8x1xf32> to vector<8x8xf32>
    %158 = arith.subf %154, %157 : vector<8x8xf32>
    %159 = math.exp %158 : vector<8x8xf32>
    %cst_106 = arith.constant dense<0.000000e+00> : vector<8xf32>
    %160 = vector.multi_reduction <add>, %159, %cst_106 [1] : vector<8x8xf32> to vector<8xf32>
    %161 = vector.shape_cast %160 : vector<8xf32> to vector<8x1xf32>
    %162 = tpu.reciprocal %161 {approx = true} : vector<8x1xf32> -> vector<8x1xf32>
    %163 = vector.broadcast %162 : vector<8x1xf32> to vector<8x8xf32>
    %164 = arith.mulf %159, %163 : vector<8x8xf32>
    %165 = arith.truncf %164 : vector<8x8xf32> to vector<8x8xbf16>
    %166 = arith.truncf %148 : vector<8x8xf32> to vector<8x8xbf16>
    %cst_107 = arith.constant dense<0.000000e+00> : vector<8x8xf32>
    %167 = tpu.matmul %165, %166, %cst_107 {dimension_numbers = #tpu.dot_dimension_numbers<[1], [0], [0], [1], [0, 0, 1, 1], [], []>} : vector<8x8xbf16>, vector<8x8xbf16>, vector<8x8xf32> -> vector<8x8xf32>
    %168 = tpu.concatenate %47, %87, %127, %167 in 1 : vector<8x8xf32>, vector<8x8xf32>, vector<8x8xf32>, vector<8x8xf32> -> vector<8x32xf32>
    %169 = arith.truncf %168 : vector<8x32xf32> to vector<8x32xbf16>
    %c0_108 = arith.constant 0 : index
    %c0_109 = arith.constant 0 : index
    %170 = vector.load %arg10[%c0_108, %c0_109] : memref<32x32xbf16, #tpu.memory_space<vmem>>, vector<32x32xbf16>
    %cst_110 = arith.constant dense<0.000000e+00> : vector<8x32xf32>
    %171 = tpu.matmul %169, %170, %cst_110 {dimension_numbers = #tpu.dot_dimension_numbers<[1], [0], [0], [1], [0, 0, 1, 1], [], []>} : vector<8x32xbf16>, vector<32x32xbf16>, vector<8x32xf32> -> vector<8x32xf32>
    %c0_111 = arith.constant 0 : index
    %c0_112 = arith.constant 0 : index
    %172 = vector.load %arg11[%c0_111, %c0_112] : memref<1x32xf32, #tpu.memory_space<vmem>>, vector<1x32xf32>
    %173 = vector.broadcast %172 : vector<1x32xf32> to vector<8x32xf32>
    %174 = arith.addf %171, %173 : vector<8x32xf32>
    %175 = arith.addf %1, %174 : vector<8x32xf32>
    %c0_113 = arith.constant 0 : index
    %c0_114 = arith.constant 0 : index
    %176 = vector.load %arg12[%c0_113, %c0_114] : memref<1x32xf32, #tpu.memory_space<vmem>>, vector<1x32xf32>
    %c0_115 = arith.constant 0 : index
    %c0_116 = arith.constant 0 : index
    %177 = vector.load %arg13[%c0_115, %c0_116] : memref<1x32xf32, #tpu.memory_space<vmem>>, vector<1x32xf32>
    %cst_117 = arith.constant dense<0.000000e+00> : vector<8xf32>
    %178 = vector.multi_reduction <add>, %175, %cst_117 [1] : vector<8x32xf32> to vector<8xf32>
    %179 = vector.shape_cast %178 : vector<8xf32> to vector<8x1xf32>
    %cst_118 = arith.constant 3.200000e+01 : f32
    %180 = vector.broadcast %cst_118 : f32 to vector<8x1xf32>
    %181 = arith.divf %179, %180 : vector<8x1xf32>
    %182 = vector.broadcast %181 : vector<8x1xf32> to vector<8x32xf32>
    %183 = arith.subf %175, %182 : vector<8x32xf32>
    %184 = arith.mulf %183, %183 : vector<8x32xf32>
    %cst_119 = arith.constant dense<0.000000e+00> : vector<8xf32>
    %185 = vector.multi_reduction <add>, %184, %cst_119 [1] : vector<8x32xf32> to vector<8xf32>
    %186 = vector.shape_cast %185 : vector<8xf32> to vector<8x1xf32>
    %cst_120 = arith.constant 3.200000e+01 : f32
    %187 = vector.broadcast %cst_120 : f32 to vector<8x1xf32>
    %188 = arith.divf %186, %187 : vector<8x1xf32>
    %189 = vector.broadcast %181 : vector<8x1xf32> to vector<8x32xf32>
    %190 = arith.subf %175, %189 : vector<8x32xf32>
    %cst_121 = arith.constant 9.99999974E-6 : f32
    %191 = vector.broadcast %cst_121 : f32 to vector<8x1xf32>
    %192 = arith.addf %188, %191 : vector<8x1xf32>
    %193 = math.rsqrt %192 : vector<8x1xf32>
    %194 = vector.broadcast %193 : vector<8x1xf32> to vector<8x32xf32>
    %195 = arith.mulf %190, %194 : vector<8x32xf32>
    %196 = vector.broadcast %176 : vector<1x32xf32> to vector<8x32xf32>
    %197 = arith.mulf %195, %196 : vector<8x32xf32>
    %198 = vector.broadcast %177 : vector<1x32xf32> to vector<8x32xf32>
    %199 = arith.addf %197, %198 : vector<8x32xf32>
    %200 = arith.truncf %199 : vector<8x32xf32> to vector<8x32xbf16>
    %c0_122 = arith.constant 0 : index
    %c0_123 = arith.constant 0 : index
    %201 = vector.load %arg14[%c0_122, %c0_123] : memref<32x64xbf16, #tpu.memory_space<vmem>>, vector<32x64xbf16>
    %cst_124 = arith.constant dense<0.000000e+00> : vector<8x64xf32>
    %202 = tpu.matmul %200, %201, %cst_124 {dimension_numbers = #tpu.dot_dimension_numbers<[1], [0], [0], [1], [0, 0, 1, 1], [], []>} : vector<8x32xbf16>, vector<32x64xbf16>, vector<8x64xf32> -> vector<8x64xf32>
    %c0_125 = arith.constant 0 : index
    %c0_126 = arith.constant 0 : index
    %203 = vector.load %arg15[%c0_125, %c0_126] : memref<1x64xf32, #tpu.memory_space<vmem>>, vector<1x64xf32>
    %204 = vector.broadcast %203 : vector<1x64xf32> to vector<8x64xf32>
    %205 = arith.addf %202, %204 : vector<8x64xf32>
    %cst_127 = arith.constant 0.000000e+00 : f32
    %206 = vector.broadcast %cst_127 : f32 to vector<8x64xf32>
    %207 = arith.maximumf %205, %206 : vector<8x64xf32>
    %208 = arith.truncf %207 : vector<8x64xf32> to vector<8x64xbf16>
    %c0_128 = arith.constant 0 : index
    %c0_129 = arith.constant 0 : index
    %209 = vector.load %arg16[%c0_128, %c0_129] : memref<64x32xbf16, #tpu.memory_space<vmem>>, vector<64x32xbf16>
    %cst_130 = arith.constant dense<0.000000e+00> : vector<8x32xf32>
    %210 = tpu.matmul %208, %209, %cst_130 {dimension_numbers = #tpu.dot_dimension_numbers<[1], [0], [0], [1], [0, 0, 1, 1], [], []>} : vector<8x64xbf16>, vector<64x32xbf16>, vector<8x32xf32> -> vector<8x32xf32>
    %c0_131 = arith.constant 0 : index
    %c0_132 = arith.constant 0 : index
    %211 = vector.load %arg17[%c0_131, %c0_132] : memref<1x32xf32, #tpu.memory_space<vmem>>, vector<1x32xf32>
    %212 = vector.broadcast %211 : vector<1x32xf32> to vector<8x32xf32>
    %213 = arith.addf %210, %212 : vector<8x32xf32>
    %214 = arith.addf %199, %213 : vector<8x32xf32>
    %c0_133 = arith.constant 0 : index
    %c0_134 = arith.constant 0 : index
    %215 = vector.load %arg18[%c0_133, %c0_134] : memref<1x32xf32, #tpu.memory_space<vmem>>, vector<1x32xf32>
    %c0_135 = arith.constant 0 : index
    %c0_136 = arith.constant 0 : index
    %216 = vector.load %arg19[%c0_135, %c0_136] : memref<1x32xf32, #tpu.memory_space<vmem>>, vector<1x32xf32>
    %cst_137 = arith.constant dense<0.000000e+00> : vector<8xf32>
    %217 = vector.multi_reduction <add>, %214, %cst_137 [1] : vector<8x32xf32> to vector<8xf32>
    %218 = vector.shape_cast %217 : vector<8xf32> to vector<8x1xf32>
    %cst_138 = arith.constant 3.200000e+01 : f32
    %219 = vector.broadcast %cst_138 : f32 to vector<8x1xf32>
    %220 = arith.divf %218, %219 : vector<8x1xf32>
    %221 = vector.broadcast %220 : vector<8x1xf32> to vector<8x32xf32>
    %222 = arith.subf %214, %221 : vector<8x32xf32>
    %223 = arith.mulf %222, %222 : vector<8x32xf32>
    %cst_139 = arith.constant dense<0.000000e+00> : vector<8xf32>
    %224 = vector.multi_reduction <add>, %223, %cst_139 [1] : vector<8x32xf32> to vector<8xf32>
    %225 = vector.shape_cast %224 : vector<8xf32> to vector<8x1xf32>
    %cst_140 = arith.constant 3.200000e+01 : f32
    %226 = vector.broadcast %cst_140 : f32 to vector<8x1xf32>
    %227 = arith.divf %225, %226 : vector<8x1xf32>
    %228 = vector.broadcast %220 : vector<8x1xf32> to vector<8x32xf32>
    %229 = arith.subf %214, %228 : vector<8x32xf32>
    %cst_141 = arith.constant 9.99999974E-6 : f32
    %230 = vector.broadcast %cst_141 : f32 to vector<8x1xf32>
    %231 = arith.addf %227, %230 : vector<8x1xf32>
    %232 = math.rsqrt %231 : vector<8x1xf32>
    %233 = vector.broadcast %232 : vector<8x1xf32> to vector<8x32xf32>
    %234 = arith.mulf %229, %233 : vector<8x32xf32>
    %235 = vector.broadcast %215 : vector<1x32xf32> to vector<8x32xf32>
    %236 = arith.mulf %234, %235 : vector<8x32xf32>
    %237 = vector.broadcast %216 : vector<1x32xf32> to vector<8x32xf32>
    %238 = arith.addf %236, %237 : vector<8x32xf32>
    %c0_142 = arith.constant 0 : index
    %c0_143 = arith.constant 0 : index
    %c0_144 = arith.constant 0 : index
    %239 = vector.load %arg20[%c0_142, %c0_143, %c0_144] : memref<1x8x32xf32, #tpu.memory_space<vmem>>, vector<1x8x32xf32>
    %240 = vector.shape_cast %239 : vector<1x8x32xf32> to vector<8x32xf32>
    %241 = vector.shape_cast %238 : vector<8x32xf32> to vector<1x8x32xf32>
    tpu.vector_store %arg20[%c0_142, %c0_143, %c0_144], %241 {strides = array<i32>} : memref<1x8x32xf32, #tpu.memory_space<vmem>>, vector<1x8x32xf32>,
    return
  }
  func.func @transform_0(%arg0: i32) -> (i32, i32, i32) {
    %c0_i32 = arith.constant 0 : i32
    %c0_i32_0 = arith.constant 0 : i32
    %c0_i32_1 = arith.constant 0 : i32
    return %arg0, %c0_i32, %c0_i32_0 : i32, i32, i32
  }
  func.func @transform_1(%arg0: i32) -> (i32, i32, i32) {
    %c0_i32 = arith.constant 0 : i32
    %c0_i32_0 = arith.constant 0 : i32
    %c0_i32_1 = arith.constant 0 : i32
    return %arg0, %c0_i32, %c0_i32_0 : i32, i32, i32
  }
  func.func @transform_2(%arg0: i32) -> (i32, i32, i32) {
    %c0_i32 = arith.constant 0 : i32
    %c0_i32_0 = arith.constant 0 : i32
    %c0_i32_1 = arith.constant 0 : i32
    return %arg0, %c0_i32, %c0_i32_0 : i32, i32, i32
  }
  func.func @transform_3(%arg0: i32) -> (i32, i32, i32) {
    %c0_i32 = arith.constant 0 : i32
    %c0_i32_0 = arith.constant 0 : i32
    %c0_i32_1 = arith.constant 0 : i32
    %c0_i32_2 = arith.constant 0 : i32
    return %c0_i32, %c0_i32_0, %c0_i32_1 : i32, i32, i32
  }
  func.func @transform_4(%arg0: i32) -> (i32, i32, i32) {
    %c0_i32 = arith.constant 0 : i32
    %c0_i32_0 = arith.constant 0 : i32
    %c0_i32_1 = arith.constant 0 : i32
    %c0_i32_2 = arith.constant 0 : i32
    return %c0_i32, %c0_i32_0, %c0_i32_1 : i32, i32, i32
  }
  func.func @transform_5(%arg0: i32) -> (i32, i32, i32) {
    %c0_i32 = arith.constant 0 : i32
    %c0_i32_0 = arith.constant 0 : i32
    %c0_i32_1 = arith.constant 0 : i32
    %c0_i32_2 = arith.constant 0 : i32
    return %c0_i32, %c0_i32_0, %c0_i32_1 : i32, i32, i32
  }
  func.func @transform_6(%arg0: i32) -> (i32, i32, i32) {
    %c0_i32 = arith.constant 0 : i32
    %c0_i32_0 = arith.constant 0 : i32
    %c0_i32_1 = arith.constant 0 : i32
    %c0_i32_2 = arith.constant 0 : i32
    return %c0_i32, %c0_i32_0, %c0_i32_1 : i32, i32, i32
  }
  func.func @transform_7(%arg0: i32) -> (i32, i32, i32) {
    %c0_i32 = arith.constant 0 : i32
    %c0_i32_0 = arith.constant 0 : i32
    %c0_i32_1 = arith.constant 0 : i32
    %c0_i32_2 = arith.constant 0 : i32
    return %c0_i32, %c0_i32_0, %c0_i32_1 : i32, i32, i32
  }
  func.func @transform_8(%arg0: i32) -> (i32, i32, i32) {
    %c0_i32 = arith.constant 0 : i32
    %c0_i32_0 = arith.constant 0 : i32
    %c0_i32_1 = arith.constant 0 : i32
    %c0_i32_2 = arith.constant 0 : i32
    return %c0_i32, %c0_i32_0, %c0_i32_1 : i32, i32, i32
  }
  func.func @transform_9(%arg0: i32) -> (i32, i32) {
    %c0_i32 = arith.constant 0 : i32
    %c0_i32_0 = arith.constant 0 : i32
    %c0_i32_1 = arith.constant 0 : i32
    return %c0_i32, %c0_i32_0 : i32, i32
  }
  func.func @transform_10(%arg0: i32) -> (i32, i32) {
    %c0_i32 = arith.constant 0 : i32
    %c0_i32_0 = arith.constant 0 : i32
    %c0_i32_1 = arith.constant 0 : i32
    return %c0_i32, %c0_i32_0 : i32, i32
  }
  func.func @transform_11(%arg0: i32) -> (i32, i32) {
    %c0_i32 = arith.constant 0 : i32
    %c0_i32_0 = arith.constant 0 : i32
    %c0_i32_1 = arith.constant 0 : i32
    return %c0_i32, %c0_i32_0 : i32, i32
  }
  func.func @transform_12(%arg0: i32) -> (i32, i32) {
    %c0_i32 = arith.constant 0 : i32
    %c0_i32_0 = arith.constant 0 : i32
    %c0_i32_1 = arith.constant 0 : i32
    return %c0_i32, %c0_i32_0 : i32, i32
  }
  func.func @transform_13(%arg0: i32) -> (i32, i32) {
    %c0_i32 = arith.constant 0 : i32
    %c0_i32_0 = arith.constant 0 : i32
    %c0_i32_1 = arith.constant 0 : i32
    return %c0_i32, %c0_i32_0 : i32, i32
  }
  func.func @transform_14(%arg0: i32) -> (i32, i32) {
    %c0_i32 = arith.constant 0 : i32
    %c0_i32_0 = arith.constant 0 : i32
    %c0_i32_1 = arith.constant 0 : i32
    return %c0_i32, %c0_i32_0 : i32, i32
  }
  func.func @transform_15(%arg0: i32) -> (i32, i32) {
    %c0_i32 = arith.constant 0 : i32
    %c0_i32_0 = arith.constant 0 : i32
    %c0_i32_1 = arith.constant 0 : i32
    return %c0_i32, %c0_i32_0 : i32, i32
  }
  func.func @transform_16(%arg0: i32) -> (i32, i32) {
    %c0_i32 = arith.constant 0 : i32
    %c0_i32_0 = arith.constant 0 : i32
    %c0_i32_1 = arith.constant 0 : i32
    return %c0_i32, %c0_i32_0 : i32, i32
  }
  func.func @transform_17(%arg0: i32) -> (i32, i32) {
    %c0_i32 = arith.constant 0 : i32
    %c0_i32_0 = arith.constant 0 : i32
    %c0_i32_1 = arith.constant 0 : i32
    return %c0_i32, %c0_i32_0 : i32, i32
  }
  func.func @transform_18(%arg0: i32) -> (i32, i32) {
    %c0_i32 = arith.constant 0 : i32
    %c0_i32_0 = arith.constant 0 : i32
    %c0_i32_1 = arith.constant 0 : i32
    return %c0_i32, %c0_i32_0 : i32, i32
  }
  func.func @transform_19(%arg0: i32) -> (i32, i32, i32) {
    %c0_i32 = arith.constant 0 : i32
    %c0_i32_0 = arith.constant 0 : i32
    %c0_i32_1 = arith.constant 0 : i32
    return %arg0, %c0_i32, %c0_i32_0 : i32, i32, i32
  }
}

module attributes {stable_mosaic.version = 11 : i64} {
  func.func @_align_kernel(%arg0: i32, %arg1: memref<1x8x32xf32, #tpu.memory_space<vmem>>, %arg2: memref<1x8x32xf32, #tpu.memory_space<vmem>>, %arg3: memref<32x32xbf16, #tpu.memory_space<vmem>>, %arg4: memref<32x32xbf16, #tpu.memory_space<vmem>>, %arg5: memref<1x32xf32, #tpu.memory_space<vmem>>, %arg6: memref<32x128xbf16, #tpu.memory_space<vmem>>, %arg7: memref<1x128xf32, #tpu.memory_space<vmem>>, %arg8: memref<1x8x128xf32, #tpu.memory_space<vmem>>, %arg9: memref<1x8x128xf32, #tpu.memory_space<vmem>>) attributes {dimension_semantics = [#tpu.dimension_semantics<parallel>], iteration_bounds = array<i64: 2>, scalar_prefetch = 0 : i64, scratch_operands = 0 : i64, tpu.core_type = #tpu.core_type<tc>, window_params = [{transform_indices = @transform_0, window_bounds = array<i64: 1, 8, 32>}, {transform_indices = @transform_1, window_bounds = array<i64: 1, 8, 32>}, {pipeline_mode = #tpu.pipeline_mode<synchronous>, transform_indices = @transform_2, window_bounds = array<i64: 32, 32>}, {pipeline_mode = #tpu.pipeline_mode<synchronous>, transform_indices = @transform_3, window_bounds = array<i64: 32, 32>}, {pipeline_mode = #tpu.pipeline_mode<synchronous>, transform_indices = @transform_4, window_bounds = array<i64: 1, 32>}, {pipeline_mode = #tpu.pipeline_mode<synchronous>, transform_indices = @transform_5, window_bounds = array<i64: 32, 128>}, {pipeline_mode = #tpu.pipeline_mode<synchronous>, transform_indices = @transform_6, window_bounds = array<i64: 1, 128>}, {transform_indices = @transform_7, window_bounds = array<i64: 1, 8, 128>}, {transform_indices = @transform_8, window_bounds = array<i64: 1, 8, 128>}]} {
    %c0 = arith.constant 0 : index
    %c0_0 = arith.constant 0 : index
    %c0_1 = arith.constant 0 : index
    %0 = vector.load %arg1[%c0, %c0_0, %c0_1] : memref<1x8x32xf32, #tpu.memory_space<vmem>>, vector<1x8x32xf32>
    %1 = vector.shape_cast %0 : vector<1x8x32xf32> to vector<8x32xf32>
    %c0_2 = arith.constant 0 : index
    %c0_3 = arith.constant 0 : index
    %c0_4 = arith.constant 0 : index
    %2 = vector.load %arg2[%c0_2, %c0_3, %c0_4] : memref<1x8x32xf32, #tpu.memory_space<vmem>>, vector<1x8x32xf32>
    %3 = vector.shape_cast %2 : vector<1x8x32xf32> to vector<8x32xf32>
    %4 = arith.truncf %1 : vector<8x32xf32> to vector<8x32xbf16>
    %c0_5 = arith.constant 0 : index
    %c0_6 = arith.constant 0 : index
    %5 = vector.load %arg3[%c0_5, %c0_6] : memref<32x32xbf16, #tpu.memory_space<vmem>>, vector<32x32xbf16>
    %cst = arith.constant dense<0.000000e+00> : vector<8x32xf32>
    %6 = tpu.matmul %4, %5, %cst {dimension_numbers = #tpu.dot_dimension_numbers<[1], [0], [0], [1], [0, 0, 1, 1], [], []>} : vector<8x32xbf16>, vector<32x32xbf16>, vector<8x32xf32> -> vector<8x32xf32>
    %7 = arith.truncf %3 : vector<8x32xf32> to vector<8x32xbf16>
    %c0_7 = arith.constant 0 : index
    %c0_8 = arith.constant 0 : index
    %8 = vector.load %arg4[%c0_7, %c0_8] : memref<32x32xbf16, #tpu.memory_space<vmem>>, vector<32x32xbf16>
    %cst_9 = arith.constant dense<0.000000e+00> : vector<8x32xf32>
    %9 = tpu.matmul %7, %8, %cst_9 {dimension_numbers = #tpu.dot_dimension_numbers<[1], [0], [0], [1], [0, 0, 1, 1], [], []>} : vector<8x32xbf16>, vector<32x32xbf16>, vector<8x32xf32> -> vector<8x32xf32>
    %10 = arith.addf %6, %9 : vector<8x32xf32>
    %c0_10 = arith.constant 0 : index
    %c0_11 = arith.constant 0 : index
    %11 = vector.load %arg5[%c0_10, %c0_11] : memref<1x32xf32, #tpu.memory_space<vmem>>, vector<1x32xf32>
    %12 = vector.broadcast %11 : vector<1x32xf32> to vector<8x32xf32>
    %13 = arith.addf %10, %12 : vector<8x32xf32>
    %14 = arith.negf %13 : vector<8x32xf32>
    %15 = math.exp %14 : vector<8x32xf32>
    %cst_12 = arith.constant 1.000000e+00 : f32
    %16 = vector.broadcast %cst_12 : f32 to vector<8x32xf32>
    %17 = arith.addf %16, %15 : vector<8x32xf32>
    %18 = arith.divf %16, %17 : vector<8x32xf32>
    %19 = arith.mulf %18, %3 : vector<8x32xf32>
    %cst_13 = arith.constant 1.000000e+00 : f32
    %20 = vector.broadcast %cst_13 : f32 to vector<8x32xf32>
    %21 = arith.subf %20, %18 : vector<8x32xf32>
    %22 = arith.mulf %21, %1 : vector<8x32xf32>
    %23 = arith.addf %19, %22 : vector<8x32xf32>
    %24 = arith.truncf %23 : vector<8x32xf32> to vector<8x32xbf16>
    %c0_14 = arith.constant 0 : index
    %c0_15 = arith.constant 0 : index
    %25 = vector.load %arg6[%c0_14, %c0_15] : memref<32x128xbf16, #tpu.memory_space<vmem>>, vector<32x128xbf16>
    %cst_16 = arith.constant dense<0.000000e+00> : vector<8x128xf32>
    %26 = tpu.matmul %24, %25, %cst_16 {dimension_numbers = #tpu.dot_dimension_numbers<[1], [0], [0], [1], [0, 0, 1, 1], [], []>} : vector<8x32xbf16>, vector<32x128xbf16>, vector<8x128xf32> -> vector<8x128xf32>
    %c0_17 = arith.constant 0 : index
    %c0_18 = arith.constant 0 : index
    %27 = vector.load %arg7[%c0_17, %c0_18] : memref<1x128xf32, #tpu.memory_space<vmem>>, vector<1x128xf32>
    %28 = vector.broadcast %27 : vector<1x128xf32> to vector<8x128xf32>
    %29 = arith.addf %26, %28 : vector<8x128xf32>
    %c0_19 = arith.constant 0 : index
    %c0_20 = arith.constant 0 : index
    %c0_21 = arith.constant 0 : index
    %30 = vector.load %arg8[%c0_19, %c0_20, %c0_21] : memref<1x8x128xf32, #tpu.memory_space<vmem>>, vector<1x8x128xf32>
    %31 = vector.shape_cast %30 : vector<1x8x128xf32> to vector<8x128xf32>
    %32 = vector.shape_cast %29 : vector<8x128xf32> to vector<1x8x128xf32>
    tpu.vector_store %arg8[%c0_19, %c0_20, %c0_21], %32 {strides = array<i32>} : memref<1x8x128xf32, #tpu.memory_space<vmem>>, vector<1x8x128xf32>,
    %cst_22 = arith.constant dense<0xFF800000> : vector<8xf32>
    %33 = vector.multi_reduction <maximumf>, %29, %cst_22 [1] : vector<8x128xf32> to vector<8xf32>
    %34 = vector.shape_cast %33 : vector<8xf32> to vector<8x1xf32>
    %35 = vector.broadcast %34 : vector<8x1xf32> to vector<8x128xf32>
    %36 = arith.subf %29, %35 : vector<8x128xf32>
    %37 = math.exp %36 : vector<8x128xf32>
    %cst_23 = arith.constant dense<0.000000e+00> : vector<8xf32>
    %38 = vector.multi_reduction <add>, %37, %cst_23 [1] : vector<8x128xf32> to vector<8xf32>
    %39 = vector.shape_cast %38 : vector<8xf32> to vector<8x1xf32>
    %40 = tpu.reciprocal %39 {approx = true} : vector<8x1xf32> -> vector<8x1xf32>
    %41 = vector.broadcast %40 : vector<8x1xf32> to vector<8x128xf32>
    %42 = arith.mulf %37, %41 : vector<8x128xf32>
    %c0_24 = arith.constant 0 : index
    %c0_25 = arith.constant 0 : index
    %c0_26 = arith.constant 0 : index
    %43 = vector.load %arg9[%c0_24, %c0_25, %c0_26] : memref<1x8x128xf32, #tpu.memory_space<vmem>>, vector<1x8x128xf32>
    %44 = vector.shape_cast %43 : vector<1x8x128xf32> to vector<8x128xf32>
    %45 = vector.shape_cast %42 : vector<8x128xf32> to vector<1x8x128xf32>
    tpu.vector_store %arg9[%c0_24, %c0_25, %c0_26], %45 {strides = array<i32>} : memref<1x8x128xf32, #tpu.memory_space<vmem>>, vector<1x8x128xf32>,
    return
  }
  func.func @transform_0(%arg0: i32) -> (i32, i32, i32) {
    %c0_i32 = arith.constant 0 : i32
    %c0_i32_0 = arith.constant 0 : i32
    %c0_i32_1 = arith.constant 0 : i32
    return %arg0, %c0_i32, %c0_i32_0 : i32, i32, i32
  }
  func.func @transform_1(%arg0: i32) -> (i32, i32, i32) {
    %c0_i32 = arith.constant 0 : i32
    %c0_i32_0 = arith.constant 0 : i32
    %c0_i32_1 = arith.constant 0 : i32
    return %arg0, %c0_i32, %c0_i32_0 : i32, i32, i32
  }
  func.func @transform_2(%arg0: i32) -> (i32, i32) {
    %c0_i32 = arith.constant 0 : i32
    %c0_i32_0 = arith.constant 0 : i32
    %c0_i32_1 = arith.constant 0 : i32
    return %c0_i32, %c0_i32_0 : i32, i32
  }
  func.func @transform_3(%arg0: i32) -> (i32, i32) {
    %c0_i32 = arith.constant 0 : i32
    %c0_i32_0 = arith.constant 0 : i32
    %c0_i32_1 = arith.constant 0 : i32
    return %c0_i32, %c0_i32_0 : i32, i32
  }
  func.func @transform_4(%arg0: i32) -> (i32, i32) {
    %c0_i32 = arith.constant 0 : i32
    %c0_i32_0 = arith.constant 0 : i32
    %c0_i32_1 = arith.constant 0 : i32
    return %c0_i32, %c0_i32_0 : i32, i32
  }
  func.func @transform_5(%arg0: i32) -> (i32, i32) {
    %c0_i32 = arith.constant 0 : i32
    %c0_i32_0 = arith.constant 0 : i32
    %c0_i32_1 = arith.constant 0 : i32
    return %c0_i32, %c0_i32_0 : i32, i32
  }
  func.func @transform_6(%arg0: i32) -> (i32, i32) {
    %c0_i32 = arith.constant 0 : i32
    %c0_i32_0 = arith.constant 0 : i32
    %c0_i32_1 = arith.constant 0 : i32
    return %c0_i32, %c0_i32_0 : i32, i32
  }
  func.func @transform_7(%arg0: i32) -> (i32, i32, i32) {
    %c0_i32 = arith.constant 0 : i32
    %c0_i32_0 = arith.constant 0 : i32
    %c0_i32_1 = arith.constant 0 : i32
    return %arg0, %c0_i32, %c0_i32_0 : i32, i32, i32
  }
  func.func @transform_8(%arg0: i32) -> (i32, i32, i32) {
    %c0_i32 = arith.constant 0 : i32
    %c0_i32_0 = arith.constant 0 : i32
    %c0_i32_1 = arith.constant 0 : i32
    return %arg0, %c0_i32, %c0_i32_0 : i32, i32, i32
  }
}

module attributes {stable_mosaic.version = 11 : i64} {
  func.func @_align_kernel(%arg0: i32, %arg1: memref<1x8x32xf32, #tpu.memory_space<vmem>>, %arg2: memref<1x8x32xf32, #tpu.memory_space<vmem>>, %arg3: memref<32x32xbf16, #tpu.memory_space<vmem>>, %arg4: memref<32x32xbf16, #tpu.memory_space<vmem>>, %arg5: memref<1x32xf32, #tpu.memory_space<vmem>>, %arg6: memref<32x128xbf16, #tpu.memory_space<vmem>>, %arg7: memref<1x128xf32, #tpu.memory_space<vmem>>, %arg8: memref<1x8x128xf32, #tpu.memory_space<vmem>>, %arg9: memref<1x8x128xf32, #tpu.memory_space<vmem>>) attributes {dimension_semantics = [#tpu.dimension_semantics<parallel>], iteration_bounds = array<i64: 2>, scalar_prefetch = 0 : i64, scratch_operands = 0 : i64, tpu.core_type = #tpu.core_type<tc>, window_params = [{transform_indices = @transform_0, window_bounds = array<i64: 1, 8, 32>}, {transform_indices = @transform_1, window_bounds = array<i64: 1, 8, 32>}, {pipeline_mode = #tpu.pipeline_mode<synchronous>, transform_indices = @transform_2, window_bounds = array<i64: 32, 32>}, {pipeline_mode = #tpu.pipeline_mode<synchronous>, transform_indices = @transform_3, window_bounds = array<i64: 32, 32>}, {pipeline_mode = #tpu.pipeline_mode<synchronous>, transform_indices = @transform_4, window_bounds = array<i64: 1, 32>}, {pipeline_mode = #tpu.pipeline_mode<synchronous>, transform_indices = @transform_5, window_bounds = array<i64: 32, 128>}, {pipeline_mode = #tpu.pipeline_mode<synchronous>, transform_indices = @transform_6, window_bounds = array<i64: 1, 128>}, {transform_indices = @transform_7, window_bounds = array<i64: 1, 8, 128>}, {transform_indices = @transform_8, window_bounds = array<i64: 1, 8, 128>}]} {
    %c0 = arith.constant 0 : index
    %c0_0 = arith.constant 0 : index
    %c0_1 = arith.constant 0 : index
    %0 = vector.load %arg1[%c0, %c0_0, %c0_1] : memref<1x8x32xf32, #tpu.memory_space<vmem>>, vector<1x8x32xf32>
    %1 = vector.shape_cast %0 : vector<1x8x32xf32> to vector<8x32xf32>
    %c0_2 = arith.constant 0 : index
    %c0_3 = arith.constant 0 : index
    %c0_4 = arith.constant 0 : index
    %2 = vector.load %arg2[%c0_2, %c0_3, %c0_4] : memref<1x8x32xf32, #tpu.memory_space<vmem>>, vector<1x8x32xf32>
    %3 = vector.shape_cast %2 : vector<1x8x32xf32> to vector<8x32xf32>
    %4 = arith.truncf %1 : vector<8x32xf32> to vector<8x32xbf16>
    %c0_5 = arith.constant 0 : index
    %c0_6 = arith.constant 0 : index
    %5 = vector.load %arg3[%c0_5, %c0_6] : memref<32x32xbf16, #tpu.memory_space<vmem>>, vector<32x32xbf16>
    %cst = arith.constant dense<0.000000e+00> : vector<8x32xf32>
    %6 = tpu.matmul %4, %5, %cst {dimension_numbers = #tpu.dot_dimension_numbers<[1], [0], [0], [1], [0, 0, 1, 1], [], []>} : vector<8x32xbf16>, vector<32x32xbf16>, vector<8x32xf32> -> vector<8x32xf32>
    %7 = arith.truncf %3 : vector<8x32xf32> to vector<8x32xbf16>
    %c0_7 = arith.constant 0 : index
    %c0_8 = arith.constant 0 : index
    %8 = vector.load %arg4[%c0_7, %c0_8] : memref<32x32xbf16, #tpu.memory_space<vmem>>, vector<32x32xbf16>
    %cst_9 = arith.constant dense<0.000000e+00> : vector<8x32xf32>
    %9 = tpu.matmul %7, %8, %cst_9 {dimension_numbers = #tpu.dot_dimension_numbers<[1], [0], [0], [1], [0, 0, 1, 1], [], []>} : vector<8x32xbf16>, vector<32x32xbf16>, vector<8x32xf32> -> vector<8x32xf32>
    %10 = arith.addf %6, %9 : vector<8x32xf32>
    %c0_10 = arith.constant 0 : index
    %c0_11 = arith.constant 0 : index
    %11 = vector.load %arg5[%c0_10, %c0_11] : memref<1x32xf32, #tpu.memory_space<vmem>>, vector<1x32xf32>
    %12 = vector.broadcast %11 : vector<1x32xf32> to vector<8x32xf32>
    %13 = arith.addf %10, %12 : vector<8x32xf32>
    %14 = arith.negf %13 : vector<8x32xf32>
    %15 = math.exp %14 : vector<8x32xf32>
    %cst_12 = arith.constant 1.000000e+00 : f32
    %16 = vector.broadcast %cst_12 : f32 to vector<8x32xf32>
    %17 = arith.addf %16, %15 : vector<8x32xf32>
    %18 = arith.divf %16, %17 : vector<8x32xf32>
    %19 = arith.mulf %18, %3 : vector<8x32xf32>
    %cst_13 = arith.constant 1.000000e+00 : f32
    %20 = vector.broadcast %cst_13 : f32 to vector<8x32xf32>
    %21 = arith.subf %20, %18 : vector<8x32xf32>
    %22 = arith.mulf %21, %1 : vector<8x32xf32>
    %23 = arith.addf %19, %22 : vector<8x32xf32>
    %24 = arith.truncf %23 : vector<8x32xf32> to vector<8x32xbf16>
    %c0_14 = arith.constant 0 : index
    %c0_15 = arith.constant 0 : index
    %25 = vector.load %arg6[%c0_14, %c0_15] : memref<32x128xbf16, #tpu.memory_space<vmem>>, vector<32x128xbf16>
    %cst_16 = arith.constant dense<0.000000e+00> : vector<8x128xf32>
    %26 = tpu.matmul %24, %25, %cst_16 {dimension_numbers = #tpu.dot_dimension_numbers<[1], [0], [0], [1], [0, 0, 1, 1], [], []>} : vector<8x32xbf16>, vector<32x128xbf16>, vector<8x128xf32> -> vector<8x128xf32>
    %c0_17 = arith.constant 0 : index
    %c0_18 = arith.constant 0 : index
    %27 = vector.load %arg7[%c0_17, %c0_18] : memref<1x128xf32, #tpu.memory_space<vmem>>, vector<1x128xf32>
    %28 = vector.broadcast %27 : vector<1x128xf32> to vector<8x128xf32>
    %29 = arith.addf %26, %28 : vector<8x128xf32>
    %c0_19 = arith.constant 0 : index
    %c0_20 = arith.constant 0 : index
    %c0_21 = arith.constant 0 : index
    %30 = vector.load %arg8[%c0_19, %c0_20, %c0_21] : memref<1x8x128xf32, #tpu.memory_space<vmem>>, vector<1x8x128xf32>
    %31 = vector.shape_cast %30 : vector<1x8x128xf32> to vector<8x128xf32>
    %32 = vector.shape_cast %29 : vector<8x128xf32> to vector<1x8x128xf32>
    tpu.vector_store %arg8[%c0_19, %c0_20, %c0_21], %32 {strides = array<i32>} : memref<1x8x128xf32, #tpu.memory_space<vmem>>, vector<1x8x128xf32>,
    %cst_22 = arith.constant dense<0xFF800000> : vector<8xf32>
    %33 = vector.multi_reduction <maximumf>, %29, %cst_22 [1] : vector<8x128xf32> to vector<8xf32>
    %34 = vector.shape_cast %33 : vector<8xf32> to vector<8x1xf32>
    %35 = vector.broadcast %34 : vector<8x1xf32> to vector<8x128xf32>
    %36 = arith.subf %29, %35 : vector<8x128xf32>
    %37 = math.exp %36 : vector<8x128xf32>
    %cst_23 = arith.constant dense<0.000000e+00> : vector<8xf32>
    %38 = vector.multi_reduction <add>, %37, %cst_23 [1] : vector<8x128xf32> to vector<8xf32>
    %39 = vector.shape_cast %38 : vector<8xf32> to vector<8x1xf32>
    %40 = tpu.reciprocal %39 {approx = true} : vector<8x1xf32> -> vector<8x1xf32>
    %41 = vector.broadcast %40 : vector<8x1xf32> to vector<8x128xf32>
    %42 = arith.mulf %37, %41 : vector<8x128xf32>
    %c0_24 = arith.constant 0 : index
    %c0_25 = arith.constant 0 : index
    %c0_26 = arith.constant 0 : index
    %43 = vector.load %arg9[%c0_24, %c0_25, %c0_26] : memref<1x8x128xf32, #tpu.memory_space<vmem>>, vector<1x8x128xf32>
    %44 = vector.shape_cast %43 : vector<1x8x128xf32> to vector<8x128xf32>
    %45 = vector.shape_cast %42 : vector<8x128xf32> to vector<1x8x128xf32>
    tpu.vector_store %arg9[%c0_24, %c0_25, %c0_26], %45 {strides = array<i32>} : memref<1x8x128xf32, #tpu.memory_space<vmem>>, vector<1x8x128xf32>,
    return
  }
  func.func @transform_0(%arg0: i32) -> (i32, i32, i32) {
    %c0_i32 = arith.constant 0 : i32
    %c0_i32_0 = arith.constant 0 : i32
    %c0_i32_1 = arith.constant 0 : i32
    return %arg0, %c0_i32, %c0_i32_0 : i32, i32, i32
  }
  func.func @transform_1(%arg0: i32) -> (i32, i32, i32) {
    %c0_i32 = arith.constant 0 : i32
    %c0_i32_0 = arith.constant 0 : i32
    %c0_i32_1 = arith.constant 0 : i32
    return %arg0, %c0_i32, %c0_i32_0 : i32, i32, i32
  }
  func.func @transform_2(%arg0: i32) -> (i32, i32) {
    %c0_i32 = arith.constant 0 : i32
    %c0_i32_0 = arith.constant 0 : i32
    %c0_i32_1 = arith.constant 0 : i32
    return %c0_i32, %c0_i32_0 : i32, i32
  }
  func.func @transform_3(%arg0: i32) -> (i32, i32) {
    %c0_i32 = arith.constant 0 : i32
    %c0_i32_0 = arith.constant 0 : i32
    %c0_i32_1 = arith.constant 0 : i32
    return %c0_i32, %c0_i32_0 : i32, i32
  }
  func.func @transform_4(%arg0: i32) -> (i32, i32) {
    %c0_i32 = arith.constant 0 : i32
    %c0_i32_0 = arith.constant 0 : i32
    %c0_i32_1 = arith.constant 0 : i32
    return %c0_i32, %c0_i32_0 : i32, i32
  }
  func.func @transform_5(%arg0: i32) -> (i32, i32) {
    %c0_i32 = arith.constant 0 : i32
    %c0_i32_0 = arith.constant 0 : i32
    %c0_i32_1 = arith.constant 0 : i32
    return %c0_i32, %c0_i32_0 : i32, i32
  }
  func.func @transform_6(%arg0: i32) -> (i32, i32) {
    %c0_i32 = arith.constant 0 : i32
    %c0_i32_0 = arith.constant 0 : i32
    %c0_i32_1 = arith.constant 0 : i32
    return %c0_i32, %c0_i32_0 : i32, i32
  }
  func.func @transform_7(%arg0: i32) -> (i32, i32, i32) {
    %c0_i32 = arith.constant 0 : i32
    %c0_i32_0 = arith.constant 0 : i32
    %c0_i32_1 = arith.constant 0 : i32
    return %arg0, %c0_i32, %c0_i32_0 : i32, i32, i32
  }
  func.func @transform_8(%arg0: i32) -> (i32, i32, i32) {
    %c0_i32 = arith.constant 0 : i32
    %c0_i32_0 = arith.constant 0 : i32
    %c0_i32_1 = arith.constant 0 : i32
    return %arg0, %c0_i32, %c0_i32_0 : i32, i32, i32
  }
}

</mosaic_0001>

<bundles_post_ra>
// kernel: abinet_forward.12
= control target key start
LH: loop header
LB: loop body
LE: loop exit
PB: predicated region body
PF: predicated region fallthrough
CT: control target
= control target key end

     0   :  { %s597_s15 = smov 0   ;;  %s756_s0 = inlined_call_operand.vmem [shape: f32[2,128,27], index: 0, kind: input, shape index: {}]   ;;  %s757_s1 = inlined_call_operand.vmem [shape: bf16[27,32], index: 1, kind: input, shape index: {}]   ;;  %s758_s2 = inlined_call_operand.vmem [shape: f32[1,32], index: 2, kind: input, shape index: {}]   ;;  %s759_s3 = inlined_call_operand.vmem [shape: f32[128,32], index: 3, kind: input, shape index: {}]   ;;  %s760_s4 = inlined_call_operand.vmem [shape: f32[2,128,32], index: 4, kind: output, shape index: {}]  }
   0x1 LB: > { %s494_s16 = sadd.s32 4294967295, %s569_s15   ;;  %p498_p0 = scmp.ge.s32.totalorder %s569_s15, 1  ;;  %s569_s15 = sphi %s597_s15, %s14_s15  }
   0x2   : > { %p162_p1 = scmp.lt.s32.totalorder %s569_s15, 3 }
   0x4   : > { %p163_p2 = pnand %p498_p0, %p162_p1 }
   0x5   : > { %p188_p3 = scmp.lt.s32.totalorder (!%p163_p2), %s494_s16, 1 }
   0x6   : > { %166 = sbr.rel (%p163_p2) target bundleno = 238 (0xee), region = 36 }
   0xb   : > { %v561_v0 = vld [vmem:[%s757_s1 + $0x8] sm:$0x3f]   ;;  %vm270_vm0 = vcmask 1044480   ;;  %vm271_vm1 = vcmask 1045504   ;;  %v571_v1 = vmov 65535   ;;  %v562_v5 = vld [vmem:[%s757_s1] sm:$0xff]  }
   0xc   : > { %v272_v2 = vsel %vm270_vm0, 4294967295, %v571_v1  ;;  %s762_s16 = smov (!%p188_p3, %s494_s16), 1  ;;  %vm245_vm2 = vcmask 220160   ;;  %v648_v30 = vld [vmem:[%s758_s2] ss:$0 sm:$0xff]  ;;  %v392_v35 = vld [vmem:[%s759_s3 + $0x10] sm:$0xff] }
   0xd   : > { %v273_v3 = vsel %vm271_vm1, %v272_v2, 0  ;;  %s516_s21 = sshll.u32 %s762_s16, 7  ;;  %v400_v36 = vld [vmem:[%s759_s3 + $0x50] sm:$0xff]  ;;  %vm422_vm3 = vcmask 261120   ;;  %v390_v43 = vld [vmem:[%s759_s3] sm:$0xff]  ;;  %v393_v57 = vld [vmem:[%s759_s3 + $0x18] sm:$0xff] }
   0xe   : > { %v275_v4 = vand.u32 %v561_v0, %v273_v3  ;;  %s619_s24 = scalar_lea.vmem %s756_s0, %s516_s21  ;;  %s665_s7 = scalar_lea.vmem %s760_s4, %s516_s21  ;;  %v398_v44 = vld [vmem:[%s759_s3 + $0x40] sm:$0xff]  ;;  %v401_v58 = vld [vmem:[%s759_s3 + $0x58] sm:$0xff]  ;;  %v391_v63 = vld [vmem:[%s759_s3 + $0x8] sm:$0xff] }
   0xf   : > { %v199_v6 = vld [vmem:[%s619_s24] sm:$0xff]  ;;  %v200_v7 = vld [vmem:[%s619_s24 + $0x8] sm:$0xff]  ;;  %v201_v11 = vld [vmem:[%s619_s24 + $0x10] sm:$0xff] }
  0x10   : > { %528 = vmatprep.subr.bf16.mxu0 %v275_v4  ;;  %548 = vmatprep.subr.bf16.mxu1 %v275_v4  ;;  %v207_v8 = vld [vmem:[%s619_s24 + $0x40] sm:$0xff]  ;;  %v215_v9 = vpack.c.bf16 %v200_v7, %v199_v6  ;;  %v208_v10 = vld [vmem:[%s619_s24 + $0x48] sm:$0xff]  ;;  %v202_v12 = vld [vmem:[%s619_s24 + $0x18] sm:$0xff] }
  0x11   : > { %529 = vmatpush3.bf16.msra.mxu0 %v275_v4  ;;  %550 = vmatpush3.bf16.msra.mxu1 %v275_v4  ;;  %v219_v13 = vpack.c.bf16 %v208_v10, %v207_v8  ;;  %v216_v14 = vpack.c.bf16 %v202_v12, %v201_v11  ;;  %v209_v15 = vld [vmem:[%s619_s24 + $0x50] sm:$0xff]  ;;  %v210_v16 = vld [vmem:[%s619_s24 + $0x58] sm:$0xff]  ;;  %v203_v17 = vld [vmem:[%s619_s24 + $0x20] sm:$0xff] }
  0x12   : > { %530 = vmatprep.subr.bf16.mxu0 %v562_v5  ;;  %549 = vmatprep.subr.bf16.mxu1 %v562_v5  ;;  %v220_v18 = vpack.c.bf16 %v210_v16, %v209_v15  ;;  %v204_v19 = vld [vmem:[%s619_s24 + $0x28] sm:$0xff]  ;;  %v211_v20 = vld [vmem:[%s619_s24 + $0x60] sm:$0xff]  ;;  %v205_v24 = vld [vmem:[%s619_s24 + $0x30] sm:$0xff] }
  0x13   : > { %v212_v21 = vld [vmem:[%s619_s24 + $0x68] sm:$0xff]  ;;  %532 = vmatprep.mubr.msk.bf16.mxu0 %vm245_vm2, %v215_v9  ;;  %540 = vmatprep.mubr.msk.bf16.mxu1 %vm245_vm2, %v219_v13  ;;  %v217_v22 = vpack.c.bf16 %v204_v19, %v203_v17  ;;  %v206_v25 = vld [vmem:[%s619_s24 + $0x38] sm:$0xff]  ;;  %v213_v26 = vld [vmem:[%s619_s24 + $0x70] sm:$0xff] }
  0x14   : > { %v221_v23 = vpack.c.bf16 %v212_v21, %v211_v20  ;;  %v214_v27 = vld [vmem:[%s619_s24 + $0x78] sm:$0xff]  ;;  %v218_v28 = vpack.c.bf16 %v206_v25, %v205_v24  ;;  %v399_v0 = vld [vmem:[%s759_s3 + $0x48] sm:$0xff]  ;;  %v396_v9 = vld [vmem:[%s759_s3 + $0x30] sm:$0xff] }
  0x15   : > { %531 = vmatpush3.bf16.msra.mxu0 %v562_v5  ;;  %551 = vmatpush3.bf16.msra.mxu1 %v562_v5  ;;  %v222_v29 = vpack.c.bf16 %v214_v27, %v213_v26  ;;  %v404_v10 = vld [vmem:[%s759_s3 + $0x70] sm:$0xff]  ;;  %v402_v24 = vld [vmem:[%s759_s3 + $0x60] sm:$0xff] }
  0x18   : > { %533 = vmatmul.mubr.msk.bf16.vlgmr.msra.gmra.mxu0 %vm245_vm2, %v216_v14  ;;  %541 = vmatmul.mubr.msk.bf16.vlgmr.msra.gmra.mxu1 %vm245_vm2, %v220_v18 }
  0x19   : > { %536 = vmatprep.mubr.msk.bf16.mxu0 %vm245_vm2, %v217_v22  ;;  %544 = vmatprep.mubr.msk.bf16.mxu1 %vm245_vm2, %v221_v23  ;;  %v394_v23 = vld [vmem:[%s759_s3 + $0x20] sm:$0xff] }
  0x20   : > { %537 = vmatmul.mubr.msk.bf16.gmra.mxu0 %vm245_vm2, %v218_v28  ;;  %545 = vmatmul.mubr.msk.bf16.gmra.mxu1 %vm245_vm2, %v222_v29  ;;  %v397_v29 = vld [vmem:[%s759_s3 + $0x38] sm:$0xff] }
  0xd8   : > { %v534_v31 = vpop.f32.mrf.mxu0  ;;  %v542_v32 = vpop.f32.mrf.mxu1 }
  0xd9   : > { %v320_v33 = vadd.f32 %v534_v31, %v648_v30  ;;  %v352_v34 = vadd.f32 %v542_v32, %v648_v30  ;;  %v405_v31 = vld [vmem:[%s759_s3 + $0x78] sm:$0xff] }
  0xda   : > { %v311_v37 = vpop.f32.mrf.mxu0  ;;  %v343_v38 = vpop.f32.mrf.mxu1 }
  0xdb   : > { %v376_v39 = vmax.f32 %v320_v33, 0.0  ;;  %v384_v40 = vmax.f32 %v352_v34, 0.0  ;;  %v312_v41 = vadd.f32 %v648_v30, %v311_v37  ;;  %v344_v42 = vadd.f32 %v648_v30, %v343_v38 }
  0xdc   : > { %v535_v45 = vpop.f32.mrf.mxu0  ;;  %v543_v46 = vpop.f32.mrf.mxu1 }
  0xdd   : > { %v408_v47 = vadd.f32 %v392_v35, %v376_v39  ;;  %v416_v48 = vadd.f32 %v400_v36, %v384_v40  ;;  %v374_v49 = vmax.f32 %v312_v41, 0.0  ;;  %v382_v50 = vmax.f32 %v344_v42, 0.0  ;;  %v395_v40 = vld [vmem:[%s759_s3 + $0x28] sm:$0xff] }
  0xde   : > { %v323_v51 = vadd.f32 %v535_v45, %v648_v30  ;;  %v355_v52 = vadd.f32 %v543_v46, %v648_v30  ;;  %v314_v53 = vpop.f32.mrf.mxu0  ;;  %v346_v54 = vpop.f32.mrf.mxu1  ;;  %v403_v41 = vld [vmem:[%s759_s3 + $0x68] sm:$0xff] }
  0xdf   : > { %425 = vst.msk [vmem:[%s665_s7 + $0x10] sm:$0xff] %vm422_vm3, %v408_v47  ;;  %433 = vst.msk [vmem:[%s665_s7 + $0x50] sm:$0xff] %vm422_vm3, %v416_v48  ;;  %v406_v55 = vadd.f32 %v390_v43, %v374_v49  ;;  %v414_v56 = vadd.f32 %v398_v44, %v382_v50  ;;  %v315_v59 = vadd.f32 %v648_v30, %v314_v53 }
  0xe0   : > { %v347_v60 = vadd.f32 %v648_v30, %v346_v54  ;;  %v377_v61 = vmax.f32 %v323_v51, 0.0  ;;  %v385_v62 = vmax.f32 %v355_v52, 0.0  ;;  %v538_v1 = vpop.f32.mrf.mxu0  ;;  %v546_v2 = vpop.f32.mrf.mxu1 }
  0xe1   : > { %423 = vst.msk [vmem:[%s665_s7] sm:$0xff] %vm422_vm3, %v406_v55  ;;  %431 = vst.msk [vmem:[%s665_s7 + $0x40] sm:$0xff] %vm422_vm3, %v414_v56  ;;  %v375_v3 = vmax.f32 %v315_v59, 0.0  ;;  %v336_v5 = vadd.f32 %v538_v1, %v648_v30  ;;  %v368_v6 = vadd.f32 %v546_v2, %v648_v30 }
  0xe2   : > { %v383_v4 = vmax.f32 %v347_v60, 0.0  ;;  %v409_v7 = vadd.f32 %v393_v57, %v377_v61  ;;  %v417_v8 = vadd.f32 %v401_v58, %v385_v62  ;;  %v327_v11 = vpop.f32.mrf.mxu0  ;;  %v359_v12 = vpop.f32.mrf.mxu1 }
  0xe3   : > { %v407_v13 = vadd.f32 %v391_v63, %v375_v3  ;;  %v380_v15 = vmax.f32 %v336_v5, 0.0  ;;  %v388_v16 = vmax.f32 %v368_v6, 0.0  ;;  %v328_v17 = vadd.f32 %v648_v30, %v327_v11 }
  0xe4   : > { %v415_v14 = vadd.f32 %v399_v0, %v383_v4  ;;  %426 = vst.msk [vmem:[%s665_s7 + $0x18] sm:$0xff] %vm422_vm3, %v409_v7  ;;  %434 = vst.msk [vmem:[%s665_s7 + $0x58] sm:$0xff] %vm422_vm3, %v417_v8  ;;  %v360_v18 = vadd.f32 %v648_v30, %v359_v12  ;;  %v539_v19 = vpop.f32.mrf.mxu0  ;;  %v547_v20 = vpop.f32.mrf.mxu1 }
  0xe5   : > { %424 = vst.msk [vmem:[%s665_s7 + $0x8] sm:$0xff] %vm422_vm3, %v407_v13  ;;  %v412_v21 = vadd.f32 %v396_v9, %v380_v15  ;;  %v420_v22 = vadd.f32 %v404_v10, %v388_v16  ;;  %v339_v25 = vadd.f32 %v539_v19, %v648_v30  ;;  %v371_v26 = vadd.f32 %v547_v20, %v648_v30 }
  0xe6   : > { %432 = vst.msk [vmem:[%s665_s7 + $0x48] sm:$0xff] %vm422_vm3, %v415_v14  ;;  %v378_v27 = vmax.f32 %v328_v17, 0.0  ;;  %v386_v28 = vmax.f32 %v360_v18, 0.0  ;;  %v330_v32 = vpop.f32.mrf.mxu0  ;;  %v362_v33 = vpop.f32.mrf.mxu1 }
  0xe7   : > { %429 = vst.msk [vmem:[%s665_s7 + $0x30] sm:$0xff] %vm422_vm3, %v412_v21  ;;  %437 = vst.msk [vmem:[%s665_s7 + $0x70] sm:$0xff] %vm422_vm3, %v420_v22  ;;  %v381_v34 = vmax.f32 %v339_v25, 0.0  ;;  %v389_v35 = vmax.f32 %v371_v26, 0.0  ;;  %v331_v36 = vadd.f32 %v648_v30, %v330_v32  ;;  %v363_v37 = vadd.f32 %v648_v30, %v362_v33 }
  0xe8   : > { %v410_v38 = vadd.f32 %v394_v23, %v378_v27  ;;  %v418_v39 = vadd.f32 %v402_v24, %v386_v28 }
  0xe9   : > { %v413_v42 = vadd.f32 %v397_v29, %v381_v34  ;;  %v421_v43 = vadd.f32 %v405_v31, %v389_v35  ;;  %v379_v44 = vmax.f32 %v331_v36, 0.0  ;;  %v387_v45 = vmax.f32 %v363_v37, 0.0 }
  0xea   : > { %427 = vst.msk [vmem:[%s665_s7 + $0x20] sm:$0xff] %vm422_vm3, %v410_v38  ;;  %435 = vst.msk [vmem:[%s665_s7 + $0x60] sm:$0xff] %vm422_vm3, %v418_v39 }
  0xeb   : > { %430 = vst.msk [vmem:[%s665_s7 + $0x38] sm:$0xff] %vm422_vm3, %v413_v42  ;;  %438 = vst.msk [vmem:[%s665_s7 + $0x78] sm:$0xff] %vm422_vm3, %v421_v43  ;;  %v411_v30 = vadd.f32 %v395_v40, %v379_v44  ;;  %v419_v46 = vadd.f32 %v403_v41, %v387_v45 }
  0xed   : > { %428 = vst.msk [vmem:[%s665_s7 + $0x28] sm:$0xff] %vm422_vm3, %v411_v30  ;;  %436 = vst.msk [vmem:[%s665_s7 + $0x68] sm:$0xff] %vm422_vm3, %v419_v46 }
  0xee PF: > { %s14_s15 = sadd.s32 1, %s569_s15  }
  0xef   : > { %p11_p4 = scmp.ge.s32.totalorder %s14_s15, 4  }
  0xf1   :  { %13 = sbr.rel (!%p11_p4) target bundleno = 1 (0x1), region = 66 }

// kernel: abinet_forward.15
= control target key start
LH: loop header
LB: loop body
LE: loop exit
PB: predicated region body
PF: predicated region fallthrough
CT: control target
= control target key end

     0   :  { %s1170_s13 = smov 0   ;;  %s1301_s0 = inlined_call_operand.vmem [shape: f32[2,128,32], index: 0, kind: input, shape index: {}]   ;;  %s1302_s1 = inlined_call_operand.vmem [shape: f32[8,32], index: 1, kind: input, shape index: {}]   ;;  %s1303_s2 = inlined_call_operand.vmem [shape: bf16[32,32], index: 2, kind: input, shape index: {}]   ;;  %s1304_s3 = inlined_call_operand.vmem [shape: f32[1,32], index: 3, kind: input, shape index: {}]   ;;  %s1305_s4 = inlined_call_operand.vmem [shape: bf16[32,32], index: 4, kind: input, shape index: {}]   ;;  %s1306_s5 = inlined_call_operand.vmem [shape: f32[1,32], index: 5, kind: input, shape index: {}]   ;;  %s1307_s6 = inlined_call_operand.vmem [shape: bf16[32,128], index: 6, kind: input, shape index: {}]   ;;  %s1308_s7 = inlined_call_operand.vmem [shape: f32[1,128], index: 7, kind: input, shape index: {}]   ;;  %s1309_s8 = inlined_call_operand.vmem [shape: f32[2,8,32], index: 8, kind: output, shape index: {0}]   ;;  %s1310_s9 = inlined_call_operand.vmem [shape: f32[2,8,128], index: 9, kind: output, shape index: {1}]   ;;  %s1311_s10 = inlined_call_operand.vmem [shape: f32[2,8,128], index: 10, kind: output, shape index: {2}]  }
   0x1 LB: > { %s938_s14 = sadd.s32 4294967295, %s1111_s13   ;;  %p942_p0 = scmp.ge.s32.totalorder %s1111_s13, 1  ;;  %s1111_s13 = sphi %s1170_s13, %s21_s13  }
   0x2   : > { %p317_p1 = scmp.lt.s32.totalorder %s1111_s13, 3 }
   0x4   : > { %p318_p2 = pnand %p942_p0, %p317_p1 }
   0x5   : > { %p362_p3 = scmp.lt.s32.totalorder (!%p318_p2), %s938_s14, 1 }
   0x6   : > { %321 = sbr.rel (%p318_p2) target bundleno = 1517 (0x5ed), region = 52 }
   0xb   : > { %v1091_v0 = vld [vmem:[%s1303_s2 + $0x8] sm:$0xff]   ;;  %v1092_v1 = vld [vmem:[%s1303_s2] sm:$0xff]   ;;  %s1313_s14 = smov (!%p362_p3, %s938_s14), 1  ;;  %v1113_v2 = vmov 0.0   ;;  %vm1114_vm0 = vmmov 0   ;;  %vm427_vm1 = vcmask 261120  }
   0xc   : > { %1005 = vmatprep.subr.bf16.mxu0 %v1091_v0  ;;  %1025 = vmatprep.subr.bf16.mxu1 %v1113_v2  ;;  %v1093_v3 = vld [vmem:[%s1305_s4 + $0x8] sm:$0xff]   ;;  %s970_s21 = sshll.u32 %s1313_s14, 7  ;;  %v1094_v4 = vld [vmem:[%s1305_s4] sm:$0xff]   ;;  %s1279_s19 = sshll.u32 %s1313_s14, 3 }
   0xd   : > { %1006 = vmatpush3.bf16.msra.mxu0 %v1091_v0  ;;  %1029 = vmatprep.mubr.msk.bf16.mxu1 %vm1114_vm0, %v1113_v2  ;;  %v549_v5 = vld [vmem:[%s1302_s1] sm:$0xff]  ;;  %s1202_s28 = scalar_lea.vmem %s1301_s0, %s970_s21  ;;  %s370_s22 = scalar_lea.vmem %s1309_s8, %s1279_s19 }
   0xe   : > { %1007 = vmatprep.subr.bf16.mxu0 %v1092_v1  ;;  %1026 = vmatpush3.bf16.msra.mxu1 %v1093_v3  ;;  %v380_v6 = vld [vmem:[%s1202_s28] sm:$0xff]  ;;  %v381_v7 = vld [vmem:[%s1202_s28 + $0x8] sm:$0xff]  ;;  %v382_v8 = vld [vmem:[%s1202_s28 + $0x10] sm:$0xff]  ;;  %v550_v15 = vpack.c.bf16 %v549_v5, %v549_v5  ;;  %s374_s26 = scalar_lea.vmem %s1310_s9, %s1279_s19  ;;  %s378_s29 = scalar_lea.vmem %s1311_s10, %s1279_s19 }
   0xf   : > { %1027 = vmatprep.subr.bf16.mxu1 %v1113_v2  ;;  %v396_v9 = vpack.c.bf16 %v381_v7, %v380_v6  ;;  %v383_v10 = vld [vmem:[%s1202_s28 + $0x18] sm:$0xff]  ;;  %v384_v11 = vld [vmem:[%s1202_s28 + $0x20] sm:$0xff]  ;;  %v385_v12 = vld [vmem:[%s1202_s28 + $0x28] sm:$0xff] }
  0x10   : > { %v397_v13 = vpack.c.bf16 %v383_v10, %v382_v8  ;;  %v398_v14 = vpack.c.bf16 %v385_v12, %v384_v11  ;;  %v394_v16 = vld [vmem:[%s1202_s28 + $0x70] sm:$0xff]  ;;  %v387_v18 = vld [vmem:[%s1202_s28 + $0x38] sm:$0xff]  ;;  %v388_v20 = vld [vmem:[%s1202_s28 + $0x40] sm:$0xff] }
  0x11   : > { %1008 = vmatpush3.bf16.msra.mxu0 %v1092_v1  ;;  %1009 = vmatprep.mubr.msk.bf16.mxu0 %vm427_vm1, %v396_v9  ;;  %v386_v17 = vld [vmem:[%s1202_s28 + $0x30] sm:$0xff]  ;;  %v395_v19 = vld [vmem:[%s1202_s28 + $0x78] sm:$0xff]  ;;  %v389_v21 = vld [vmem:[%s1202_s28 + $0x48] sm:$0xff] }
  0x12   : > { %1033 = vmatprep.subr.bf16.mxu0 %v1113_v2  ;;  %1028 = vmatpush3.bf16.msra.mxu1 %v1094_v4  ;;  %v403_v22 = vpack.c.bf16 %v395_v19, %v394_v16  ;;  %v392_v23 = vld [vmem:[%s1202_s28 + $0x60] sm:$0xff]  ;;  %v393_v24 = vld [vmem:[%s1202_s28 + $0x68] sm:$0xff]  ;;  %v399_v25 = vpack.c.bf16 %v387_v18, %v386_v17  ;;  %v400_v26 = vpack.c.bf16 %v389_v21, %v388_v20  ;;  %v390_v28 = vld [vmem:[%s1202_s28 + $0x50] sm:$0xff] }
  0x13   : > { %1053 = vmatprep.subr.bf16.mxu1 %v1113_v2  ;;  %v402_v27 = vpack.c.bf16 %v393_v24, %v392_v23  ;;  %v391_v29 = vld [vmem:[%s1202_s28 + $0x58] sm:$0xff]  ;;  %v948_v32 = vld [vmem:[%s1304_s3] ss:$0 sm:$0xff] }
  0x14   : > { %1010 = vmatmul.mubr.msk.bf16.vlgmr.msra.gmra.mxu0 %vm427_vm1, %v397_v13  ;;  %v401_v30 = vpack.c.bf16 %v391_v29, %v390_v28  ;;  %v959_v20 = vld [vmem:[%s1306_s5] ss:$0 sm:$0xff] }
  0x15   : > { %1013 = vmatprep.mubr.msk.bf16.mxu0 %vm427_vm1, %v398_v14  ;;  %1030 = vmatmul.mubr.msk.bf16.vlgmr.msra.gmra.mxu1 %vm427_vm1, %v550_v15 }
  0x16   : > { %1069 = vmatprep.mubr.msk.bf16.mxu1 %vm1114_vm0, %v1113_v2  ;;  %1054 = vmatpush3.bf16.msra.mxu1 %v403_v22 }
  0x17   : > { %1055 = vmatprep.subr.bf16.mxu1 %v1113_v2 }
  0x1a   : > { %1056 = vmatpush3.bf16.msra.mxu1 %v402_v27 }
  0x1b   : > { %1057 = vmatprep.subr.bf16.mxu1 %v1113_v2 }
  0x1c   : > { %1014 = vmatmul.mubr.msk.bf16.gmra.mxu0 %vm427_vm1, %v399_v25 }
  0x1d   : > { %1017 = vmatprep.mubr.msk.bf16.mxu0 %vm427_vm1, %v400_v26 }
  0x1e   : > { %1058 = vmatpush3.bf16.msra.mxu1 %v401_v30 }
  0x1f   : > { %1059 = vmatprep.subr.bf16.mxu1 %v1113_v2 }
  0x22   : > { %1060 = vmatpush3.bf16.msra.mxu1 %v400_v26 }
  0x23   : > { %1061 = vmatprep.subr.bf16.mxu1 %v1113_v2 }
  0x24   : > { %1018 = vmatmul.mubr.msk.bf16.gmra.mxu0 %vm427_vm1, %v401_v30 }
  0x25   : > { %1021 = vmatprep.mubr.msk.bf16.mxu0 %vm427_vm1, %v402_v27 }
  0x26   : > { %1062 = vmatpush3.bf16.msra.mxu1 %v399_v25 }
  0x27   : > { %1063 = vmatprep.subr.bf16.mxu1 %v1113_v2 }
  0x2a   : > { %1064 = vmatpush3.bf16.msra.mxu1 %v398_v14 }
  0x2b   : > { %1065 = vmatprep.subr.bf16.mxu1 %v1113_v2 }
  0x2c   : > { %1022 = vmatmul.mubr.msk.bf16.gmra.mxu0 %vm427_vm1, %v403_v22 }
  0x2d   : > { %1049 = vmatprep.mubr.msk.bf16.mxu0 %vm1114_vm0, %v1113_v2 }
  0x2e   : > { %1066 = vmatpush3.bf16.msra.mxu1 %v397_v13 }
  0x2f   : > { %1067 = vmatprep.subr.bf16.mxu1 %v1113_v2 }
  0x32   : > { %1068 = vmatpush3.bf16.msra.mxu1 %v396_v9 }
  0x33   : > { %1073 = vmatprep.subr.bf16.mxu1 %v1113_v2 }
  0xd4   : > { %v1011_v31 = vpop.f32.mrf.mxu0 }
  0xd5   : > { %v1247_v34 = vpop.f32.mrf.mxu1  ;;  %v495_v37 = vadd.f32 %v1011_v31, %v948_v32 }
  0xd6   : > { %v486_v33 = vpop.f32.mrf.mxu0  ;;  %v612_v21 = vadd.f32 %v959_v20, %v1247_v34 }
  0xd7   : > { %v1031_v36 = vpop.f32.mrf.mxu1  ;;  %v487_v41 = vadd.f32 %v948_v32, %v486_v33 }
  0xd8   : > { %v1012_v35 = vpop.f32.mrf.mxu0  ;;  %v617_v23 = vpack.c.bf16 %v612_v21, %v612_v21  ;;  %v1095_v36 = vld [vmem:[%s1307_s6 + $0x8] sm:$0xff]  }
  0xd9   : > { %v498_v38 = vadd.f32 %v1012_v35, %v948_v32  ;;  %v614_v40 = vpop.f32.mrf.mxu1 }
  0xda   : > { %v489_v39 = vpop.f32.mrf.mxu0 }
  0xdb   : > { %v619_v42 = vpack.c.bf16 %v498_v38, %v495_v37  ;;  %v490_v43 = vadd.f32 %v948_v32, %v489_v39  ;;  %v1032_v45 = vpop.f32.mrf.mxu1  ;;  %v1096_v38 = vld [vmem:[%s1307_s6] sm:$0xff]  }
  0xdc   : > { %v1015_v44 = vpop.f32.mrf.mxu0 }
  0xdd   : > { %v618_v46 = vpack.c.bf16 %v490_v43, %v487_v41  ;;  %v511_v12 = vadd.f32 %v1015_v44, %v948_v32  ;;  %v633_v19 = vsel %vm427_vm1, %v619_v42, 0 }
  0xde   : > { %v502_v47 = vpop.f32.mrf.mxu0 }
  0xdf   : > { %v503_v16 = vadd.f32 %v948_v32, %v502_v47  ;;  %v630_v22 = vsel %vm427_vm1, %v618_v46, 0 }
  0xe0   : > { %v1016_v48 = vpop.f32.mrf.mxu0 }
  0xe1   : > { %v514_v10 = vadd.f32 %v1016_v48, %v948_v32 }
  0xe2   : > { %v505_v49 = vpop.f32.mrf.mxu0 }
  0xe3   : > { %v621_v13 = vpack.c.bf16 %v514_v10, %v511_v12  ;;  %v506_v14 = vadd.f32 %v948_v32, %v505_v49 }
  0xe4   : > { %v1019_v50 = vpop.f32.mrf.mxu0 }
  0xe5   : > { %v527_v4 = vadd.f32 %v1019_v50, %v948_v32  ;;  %v639_v15 = vsel %vm427_vm1, %v621_v13, 0  ;;  %v620_v17 = vpack.c.bf16 %v506_v14, %v503_v16 }
  0xe6   : > { %v518_v51 = vpop.f32.mrf.mxu0 }
  0xe7   : > { %v519_v8 = vadd.f32 %v948_v32, %v518_v51  ;;  %v636_v18 = vsel %vm427_vm1, %v620_v17, 0 }
  0xe8   : > { %v1020_v52 = vpop.f32.mrf.mxu0 }
  0xe9   : > { %v530_v1 = vadd.f32 %v1020_v52, %v948_v32 }
  0xea   : > { %v521_v53 = vpop.f32.mrf.mxu0 }
  0xeb   : > { %v623_v5 = vpack.c.bf16 %v530_v1, %v527_v4  ;;  %v522_v6 = vadd.f32 %v948_v32, %v521_v53 }
  0xec   : > { %v1023_v54 = vpop.f32.mrf.mxu0 }
  0xed   : > { %v543_v57 = vadd.f32 %v1023_v54, %v948_v32  ;;  %v645_v7 = vsel %vm427_vm1, %v623_v5, 0  ;;  %v622_v9 = vpack.c.bf16 %v522_v6, %v519_v8 }
  0xee   : > { %v534_v55 = vpop.f32.mrf.mxu0 }
  0xef   : > { %v535_v63 = vadd.f32 %v948_v32, %v534_v55  ;;  %v642_v11 = vsel %vm427_vm1, %v622_v9, 0 }
  0xf0   : > { %v1024_v56 = vpop.f32.mrf.mxu0 }
  0xf1   : > { %v546_v58 = vadd.f32 %v1024_v56, %v948_v32 }
  0xf2   : > { %v537_v59 = vpop.f32.mrf.mxu0 }
  0xf3   : > { %v625_v60 = vpack.c.bf16 %v546_v58, %v543_v57  ;;  %v538_v61 = vadd.f32 %v948_v32, %v537_v59 }
  0xf5   : > { %v651_v62 = vsel %vm427_vm1, %v625_v60, 0  ;;  %v624_v0 = vpack.c.bf16 %v538_v61, %v535_v63 }
  0xf6   : > { %1034 = vmatpush3.bf16.xpose.msra.mxu0 %v651_v62 }
  0xf7   : > { %1035 = vmatprep.subr.bf16.mxu0 %v1113_v2  ;;  %v648_v3 = vsel %vm427_vm1, %v624_v0, 0 }
  0xfe   : > { %1036 = vmatpush3.bf16.xpose.msra.mxu0 %v648_v3 }
  0xff   : > { %1037 = vmatprep.subr.bf16.mxu0 %v1113_v2 }
 0x106   : > { %1038 = vmatpush3.bf16.xpose.msra.mxu0 %v645_v7 }
 0x107   : > { %1039 = vmatprep.subr.bf16.mxu0 %v1113_v2 }
 0x10e   : > { %1040 = vmatpush3.bf16.xpose.msra.mxu0 %v642_v11 }
 0x10f   : > { %1041 = vmatprep.subr.bf16.mxu0 %v1113_v2 }
 0x116   : > { %1042 = vmatpush3.bf16.xpose.msra.mxu0 %v639_v15 }
 0x117   : > { %1043 = vmatprep.subr.bf16.mxu0 %v1113_v2 }
 0x11e   : > { %1044 = vmatpush3.bf16.xpose.msra.mxu0 %v636_v18 }
 0x11f   : > { %1045 = vmatprep.subr.bf16.mxu0 %v1113_v2 }
 0x126   : > { %1046 = vmatpush3.bf16.xpose.msra.mxu0 %v633_v19 }
 0x127   : > { %1047 = vmatprep.subr.bf16.mxu0 %v1113_v2 }
 0x12e   : > { %1048 = vmatpush3.bf16.xpose.msra.mxu0 %v630_v22 }
 0x135   : > { %1050 = vmatmul.mubr.msk.bf16.vlgmr.msra.gmra.mxu0 %vm427_vm1, %v617_v23 }
 0x1f5   : > { %v687_v24 = vpop.f32.mrf.mxu0 }
 0x1f6   : > { %v693_v25 = vmul.f32 0.17677669, %v687_v24 }
 0x1f7   : > { %v1051_v26 = vpop.f32.mrf.mxu0 }
 0x1f8   : > { %694 = vmax.xlane.f32.xlu0 %v693_v25 }
 0x1f9   : > { %v690_v27 = vpop.f32.mrf.mxu0 }
 0x1fb   : > { %v1052_v28 = vpop.f32.mrf.mxu0 }
 0x281   : > { %v695_v29 = vpop.xlane.xlu0 %694 }
 0x282   : > { %v696_v30 = vsub.f32 %v693_v25, %v695_v29 }
 0x284   : > { %v697_v31 = vmul.f32 1.442695, %v696_v30 }
 0x286   : > { %1097 = vpow2.f32 %v697_v31 }
 0x293   : > { %v1098_v32 = vpop.eup %1097 }
 0x294   : > { %699 = vadd.xlane.f32.xlu0 %v1098_v32 }
 0x31d   : > { %v700_v33 = vpop.xlane.xlu0 %699 }
 0x31e   : > { %1099 = vrcp.f32 %v700_v33 }
 0x32b   : > { %v1100_v34 = vpop.eup %1099 }
 0x32c   : > { %v702_v35 = vmul.f32 %v1100_v34, %v1098_v32 }
 0x32e   : > { %v703_v37 = vpack.c.bf16 %v702_v35, %v702_v35 }
 0x330   : > { %1070 = vmatmul.mubr.bf16.vlgmr.msra.gmra.mxu1 %v703_v37 }
 0x331   : > { %1074 = vmatpush3.bf16.msra.mxu1 %v1095_v36  ;;  %1077 = vmatprep.mubr.msk.bf16.mxu1 %vm1114_vm0, %v1113_v2 }
 0x332   : > { %1075 = vmatprep.subr.bf16.mxu1 %v1113_v2  ;;  %v964_v2 = vld [vmem:[%s1308_s7] ss:$0 sm:$0xff] }
 0x335   : > { %1076 = vmatpush3.bf16.msra.mxu1 %v1096_v38 }
 0x3f0   : > { %v738_v39 = vpop.f32.mrf.mxu1 }
 0x3f1   : > { %744 = vst.msk [vmem:[%s370_s22] sm:$0xff] %vm427_vm1, %v738_v39  ;;  %v745_v40 = vpack.c.bf16 %v738_v39, %v738_v39 }
 0x3f2   : > { %v1071_v41 = vpop.f32.mrf.mxu1 }
 0x3f3   : > { %1078 = vmatmul.mubr.msk.bf16.vlgmr.msra.gmra.mxu1 %vm427_vm1, %v745_v40 }
 0x3f4   : > { %v741_v42 = vpop.f32.mrf.mxu1 }
 0x3f6   : > { %v1072_v43 = vpop.f32.mrf.mxu1 }
 0x4b3   : > { %v806_v44 = vpop.f32.mrf.mxu1 }
 0x4b4   : > { %v807_v45 = vadd.f32 %v964_v2, %v806_v44 }
 0x4b5   : > { %v1079_v46 = vpop.f32.mrf.mxu1 }
 0x4b6   : > { %812 = vst [vmem:[%s374_s26] sm:$0xff] %v807_v45  ;;  %813 = vmax.xlane.f32.xlu1 %v807_v45 }
 0x4b7   : > { %v809_v47 = vpop.f32.mrf.mxu1 }
 0x4b9   : > { %v1080_v48 = vpop.f32.mrf.mxu1 }
 0x53f   : > { %v814_v49 = vpop.xlane.xlu1 %813 }
 0x540   : > { %v815_v50 = vsub.f32 %v807_v45, %v814_v49 }
 0x542   : > { %v816_v51 = vmul.f32 1.442695, %v815_v50 }
 0x544   : > { %1101 = vpow2.f32 %v816_v51 }
 0x551   : > { %v1102_v52 = vpop.eup %1101 }
 0x552   : > { %818 = vadd.xlane.f32.xlu1 %v1102_v52 }
 0x5db   : > { %v819_v53 = vpop.xlane.xlu1 %818 }
 0x5dc   : > { %1103 = vrcp.f32 %v819_v53 }
 0x5e9   : > { %v1104_v54 = vpop.eup %1103 }
 0x5ea   : > { %v821_v55 = vmul.f32 %v1104_v54, %v1102_v52 }
 0x5ec   : > { %822 = vst [vmem:[%s378_s29] sm:$0xff] %v821_v55 }
 0x5ed PF: > { %s21_s13 = sadd.s32 1, %s1111_s13  }
 0x5ee   : > { %p18_p4 = scmp.ge.s32.totalorder %s21_s13, 4  }
 0x5f0   :  { %20 = sbr.rel (!%p18_p4) target bundleno = 1 (0x1), region = 106 }

// kernel: abinet_forward.16
= control target key start
LH: loop header
LB: loop body
LE: loop exit
PB: predicated region body
PF: predicated region fallthrough
CT: control target
= control target key end

     0   :  { %s423_s12 = smov 0   ;;  %s467_s0 = inlined_call_operand.vmem [shape: f32[2,8,128], index: 0, kind: input, shape index: {}]   ;;  %s468_s1 = inlined_call_operand.vmem [shape: bf16[128,32], index: 1, kind: input, shape index: {}]   ;;  %s469_s2 = inlined_call_operand.vmem [shape: f32[8,32], index: 2, kind: input, shape index: {}]   ;;  %s470_s3 = inlined_call_operand.vmem [shape: f32[2,8,32], index: 3, kind: output, shape index: {}]  }
   0x1 LB: > { %s329_s13 = sadd.s32 4294967295, %s399_s12   ;;  %p333_p0 = scmp.ge.s32.totalorder %s399_s12, 1  ;;  %s399_s12 = sphi %s423_s12, %s13_s12  }
   0x2   : > { %p136_p1 = scmp.lt.s32.totalorder %s399_s12, 3 }
   0x4   : > { %p137_p2 = pnand %p333_p0, %p136_p1 }
   0x5   : > { %p158_p3 = scmp.lt.s32.totalorder (!%p137_p2), %s329_s13, 1 }
   0x6   : > { %140 = sbr.rel (%p137_p2) target bundleno = 243 (0xf3), region = 32 }
   0xb   : > { %v385_v0 = vld [vmem:[%s468_s1 + $0x38] sm:$0xff]   ;;  %v401_v1 = vmov 0.0   ;;  %v386_v2 = vld [vmem:[%s468_s1 + $0x30] sm:$0xff]   ;;  %vm402_vm0 = vmmov 0   ;;  %v387_v3 = vld [vmem:[%s468_s1 + $0x28] sm:$0xff]   ;;  %s472_s13 = smov (!%p158_p3, %s329_s13), 1 }
   0xc   : > { %355 = vmatprep.subr.bf16.mxu0 %v401_v1  ;;  %371 = vmatprep.mubr.msk.bf16.mxu0 %vm402_vm0, %v401_v1  ;;  %v388_v4 = vld [vmem:[%s468_s1 + $0x20] sm:$0xff]   ;;  %v389_v5 = vld [vmem:[%s468_s1 + $0x18] sm:$0xff]   ;;  %v390_v6 = vld [vmem:[%s468_s1 + $0x10] sm:$0xff]   ;;  %s334_s26 = sshll.u32 %s472_s13, 3  ;;  %vm274_vm1 = vcmask 261120  }
   0xd   : > { %356 = vmatpush3.bf16.msra.mxu0 %v385_v0  ;;  %v391_v7 = vld [vmem:[%s468_s1 + $0x8] sm:$0xff]   ;;  %s161_s4 = scalar_lea.vmem %s467_s0, %s334_s26  ;;  %v392_v8 = vld [vmem:[%s468_s1] sm:$0xff]   ;;  %s165_s11 = scalar_lea.vmem %s470_s3, %s334_s26 }
   0xe   : > { %357 = vmatprep.subr.bf16.mxu0 %v401_v1  ;;  %v167_v9 = vld [vmem:[%s161_s4] sm:$0xff] }
   0xf   : > { %v168_v10 = vpack.c.bf16 %v167_v9, %v167_v9  ;;  %v185_v11 = vld [vmem:[%s469_s2] sm:$0xff] }
  0x11   : > { %358 = vmatpush3.bf16.msra.mxu0 %v386_v2 }
  0x12   : > { %359 = vmatprep.subr.bf16.mxu0 %v401_v1 }
  0x15   : > { %360 = vmatpush3.bf16.msra.mxu0 %v387_v3 }
  0x16   : > { %361 = vmatprep.subr.bf16.mxu0 %v401_v1 }
  0x19   : > { %362 = vmatpush3.bf16.msra.mxu0 %v388_v4 }
  0x1a   : > { %363 = vmatprep.subr.bf16.mxu0 %v401_v1 }
  0x1d   : > { %364 = vmatpush3.bf16.msra.mxu0 %v389_v5 }
  0x1e   : > { %365 = vmatprep.subr.bf16.mxu0 %v401_v1 }
  0x21   : > { %366 = vmatpush3.bf16.msra.mxu0 %v390_v6 }
  0x22   : > { %367 = vmatprep.subr.bf16.mxu0 %v401_v1 }
  0x25   : > { %368 = vmatpush3.bf16.msra.mxu0 %v391_v7 }
  0x26   : > { %369 = vmatprep.subr.bf16.mxu0 %v401_v1 }
  0x29   : > { %370 = vmatpush3.bf16.msra.mxu0 %v392_v8 }
  0x2c   : > { %372 = vmatmul.mubr.bf16.vlgmr.msra.gmra.mxu0 %v168_v10 }
  0xec   : > { %v268_v12 = vpop.f32.mrf.mxu0 }
  0xed   : > { %v269_v13 = vadd.f32 %v268_v12, %v185_v11 }
  0xee   : > { %v373_v14 = vpop.f32.mrf.mxu0 }
  0xef   : > { %275 = vst.msk [vmem:[%s165_s11] sm:$0xff] %vm274_vm1, %v269_v13 }
  0xf0   : > { %v271_v15 = vpop.f32.mrf.mxu0 }
  0xf2   : > { %v374_v16 = vpop.f32.mrf.mxu0 }
  0xf3 PF: > { %s13_s12 = sadd.s32 1, %s399_s12  }
  0xf4   : > { %p10_p4 = scmp.ge.s32.totalorder %s13_s12, 4  }
  0xf6   :  { %12 = sbr.rel (!%p10_p4) target bundleno = 1 (0x1), region = 62 }

// kernel: abinet_forward.19
= control target key start
LH: loop header
LB: loop body
LE: loop exit
PB: predicated region body
PF: predicated region fallthrough
CT: control target
= control target key end

     0   :  { %s780_s27 = smov 0   ;;  %s839_s0 = inlined_call_operand.vmem [shape: f32[2,8,32], index: 0, kind: input, shape index: {}]   ;;  %s840_s1 = inlined_call_operand.vmem [shape: f32[2,8,32], index: 1, kind: input, shape index: {}]   ;;  %s841_s2 = inlined_call_operand.vmem [shape: bf16[32,32], index: 2, kind: input, shape index: {}]   ;;  %s842_s3 = inlined_call_operand.vmem [shape: bf16[32,32], index: 3, kind: input, shape index: {}]   ;;  %s843_s4 = inlined_call_operand.vmem [shape: f32[1,32], index: 4, kind: input, shape index: {}]   ;;  %s844_s5 = inlined_call_operand.vmem [shape: bf16[32,128], index: 5, kind: input, shape index: {}]   ;;  %s845_s6 = inlined_call_operand.vmem [shape: f32[1,128], index: 6, kind: input, shape index: {}]   ;;  %s846_s7 = inlined_call_operand.vmem [shape: f32[2,8,128], index: 7, kind: output, shape index: {0}]   ;;  %s847_s8 = inlined_call_operand.vmem [shape: f32[2,8,128], index: 8, kind: output, shape index: {1}]  }
   0x1 LB: > { %s645_s28 = sadd.s32 4294967295, %s731_s27   ;;  %p649_p0 = scmp.ge.s32.totalorder %s731_s27, 1  ;;  %s731_s27 = sphi %s780_s27, %s19_s27  }
   0x2   : > { %p273_p1 = scmp.lt.s32.totalorder %s731_s27, 3 }
   0x4   : > { %p274_p2 = pnand %p649_p0, %p273_p1 }
   0x5   : > { %p313_p3 = scmp.lt.s32.totalorder (!%p274_p2), %s645_s28, 1 }
   0x6   : > { %277 = sbr.rel (%p274_p2) target bundleno = 764 (0x2fc), region = 48 }
   0xb   : > { %v711_v0 = vld [vmem:[%s842_s3 + $0x8] sm:$0xff]   ;;  %v733_v1 = vmov 0.0   ;;  %v713_v3 = vld [vmem:[%s842_s3] sm:$0xff]   ;;  %vm734_vm0 = vmmov 0   ;;  %s849_s28 = smov (!%p313_p3, %s645_s28), 1  ;;  %vm354_vm1 = vcmask 261120  }
   0xc   : > { %677 = vmatprep.subr.bf16.mxu0 %v733_v1  ;;  %685 = vmatprep.subr.bf16.mxu1 %v733_v1  ;;  %v712_v2 = vld [vmem:[%s841_s2 + $0x8] sm:$0xff]   ;;  %v714_v4 = vld [vmem:[%s841_s2] sm:$0xff]   ;;  %s802_s15 = sshll.u32 %s849_s28, 3 }
   0xd   : > { %678 = vmatpush3.bf16.msra.mxu0 %v711_v0  ;;  %681 = vmatprep.mubr.msk.bf16.mxu0 %vm734_vm0, %v733_v1  ;;  %s320_s18 = scalar_lea.vmem %s840_s1, %s802_s15  ;;  %s316_s21 = scalar_lea.vmem %s839_s0, %s802_s15  ;;  %v715_v9 = vld [vmem:[%s844_s5 + $0x8] sm:$0xff]   ;;  %v716_v10 = vld [vmem:[%s844_s5] sm:$0xff]  }
   0xe   : > { %686 = vmatpush3.bf16.msra.mxu1 %v712_v2  ;;  %679 = vmatprep.subr.bf16.mxu0 %v733_v1  ;;  %v331_v5 = vld [vmem:[%s320_s18] sm:$0xff]  ;;  %s324_s11 = scalar_lea.vmem %s846_s7, %s802_s15  ;;  %s328_s14 = scalar_lea.vmem %s847_s8, %s802_s15 }
   0xf   : > { %687 = vmatprep.subr.bf16.mxu1 %v733_v1  ;;  %689 = vmatprep.mubr.msk.bf16.mxu1 %vm734_vm0, %v733_v1  ;;  %v330_v6 = vld [vmem:[%s316_s21] sm:$0xff]  ;;  %v337_v7 = vpack.c.bf16 %v331_v5, %v331_v5 }
  0x10   : > { %v332_v8 = vpack.c.bf16 %v330_v6, %v330_v6  ;;  %v660_v13 = vld [vmem:[%s843_s4] ss:$0 sm:$0xff] }
  0x11   : > { %680 = vmatpush3.bf16.msra.mxu0 %v713_v3  ;;  %v662_v31 = vld [vmem:[%s845_s6] ss:$0 sm:$0xff] }
  0x12   : > { %688 = vmatpush3.bf16.msra.mxu1 %v714_v4  ;;  %693 = vmatprep.subr.bf16.mxu0 %v733_v1 }
  0x14   : > { %682 = vmatmul.mubr.msk.bf16.vlgmr.msra.gmra.mxu0 %vm354_vm1, %v337_v7 }
  0x15   : > { %690 = vmatmul.mubr.msk.bf16.vlgmr.msra.gmra.mxu1 %vm354_vm1, %v332_v8  ;;  %697 = vmatprep.mubr.msk.bf16.mxu0 %vm734_vm0, %v733_v1 }
  0x16   : > { %694 = vmatpush3.bf16.msra.mxu0 %v715_v9 }
  0x17   : > { %695 = vmatprep.subr.bf16.mxu0 %v733_v1 }
  0x1a   : > { %696 = vmatpush3.bf16.msra.mxu0 %v716_v10 }
  0xd4   : > { %v392_v11 = vpop.f32.mrf.mxu0 }
  0xd5   : > { %v447_v12 = vpop.f32.mrf.mxu1 }
  0xd6   : > { %v448_v14 = vadd.f32 %v447_v12, %v392_v11  ;;  %v683_v15 = vpop.f32.mrf.mxu0 }
  0xd7   : > { %v691_v16 = vpop.f32.mrf.mxu1 }
  0xd8   : > { %v460_v17 = vadd.f32 %v660_v13, %v448_v14  ;;  %v395_v18 = vpop.f32.mrf.mxu0 }
  0xd9   : > { %v450_v19 = vpop.f32.mrf.mxu1 }
  0xda   : > { %v661_v20 = vmul.f32 -1.442695, %v460_v17  ;;  %v684_v21 = vpop.f32.mrf.mxu0 }
  0xdb   : > { %v692_v22 = vpop.f32.mrf.mxu1 }
  0xdc   : > { %717 = vpow2.f32 %v661_v20 }
  0xe9   : > { %v718_v23 = vpop.eup %717 }
  0xea   : > { %v464_v24 = vadd.f32 1.0, %v718_v23 }
  0xec   : > { %719 = vrcp.f32 %v464_v24 }
  0xf9   : > { %v720_v25 = vpop.eup %719 }
  0xfa   : > { %v468_v26 = vsub.f32 1.0, %v720_v25  ;;  %v467_v27 = vmul.f32 %v720_v25, %v331_v5 }
  0xfc   : > { %v469_v28 = vmul.f32 %v468_v26, %v330_v6 }
  0xfe   : > { %v470_v29 = vadd.f32 %v469_v28, %v467_v27 }
 0x100   : > { %v471_v30 = vpack.c.bf16 %v470_v29, %v470_v29 }
 0x102   : > { %698 = vmatmul.mubr.msk.bf16.vlgmr.msra.gmra.mxu0 %vm354_vm1, %v471_v30 }
 0x1c2   : > { %v532_v32 = vpop.f32.mrf.mxu0 }
 0x1c3   : > { %v533_v33 = vadd.f32 %v662_v31, %v532_v32 }
 0x1c4   : > { %v699_v34 = vpop.f32.mrf.mxu0 }
 0x1c5   : > { %538 = vst [vmem:[%s324_s11] sm:$0xff] %v533_v33  ;;  %539 = vmax.xlane.f32.xlu0 %v533_v33 }
 0x1c6   : > { %v535_v35 = vpop.f32.mrf.mxu0 }
 0x1c8   : > { %v700_v36 = vpop.f32.mrf.mxu0 }
 0x24e   : > { %v540_v37 = vpop.xlane.xlu0 %539 }
 0x24f   : > { %v541_v38 = vsub.f32 %v533_v33, %v540_v37 }
 0x251   : > { %v542_v39 = vmul.f32 1.442695, %v541_v38 }
 0x253   : > { %721 = vpow2.f32 %v542_v39 }
 0x260   : > { %v722_v40 = vpop.eup %721 }
 0x261   : > { %544 = vadd.xlane.f32.xlu0 %v722_v40 }
 0x2ea   : > { %v545_v41 = vpop.xlane.xlu0 %544 }
 0x2eb   : > { %723 = vrcp.f32 %v545_v41 }
 0x2f8   : > { %v724_v42 = vpop.eup %723 }
 0x2f9   : > { %v547_v43 = vmul.f32 %v724_v42, %v722_v40 }
 0x2fb   : > { %548 = vst [vmem:[%s328_s14] sm:$0xff] %v547_v43 }
 0x2fc PF: > { %s19_s27 = sadd.s32 1, %s731_s27  }
 0x2fd   : > { %p16_p4 = scmp.ge.s32.totalorder %s19_s27, 4  }
 0x2ff   :  { %18 = sbr.rel (!%p16_p4) target bundleno = 1 (0x1), region = 93 }

// kernel: abinet_forward.13
= control target key start
LH: loop header
LB: loop body
LE: loop exit
PB: predicated region body
PF: predicated region fallthrough
CT: control target
= control target key end

     0   :  { %s6874_s24 = smov 0   ;;  %s8896_s0 = inlined_call_operand.vmem [shape: f32[2,128,32], index: 0, kind: input, shape index: {}]   ;;  %s8897_s1 = inlined_call_operand.vmem [shape: bf16[4,32,8], index: 1, kind: input, shape index: {}]   ;;  %s8898_s2 = inlined_call_operand.vmem [shape: f32[4,1,8], index: 2, kind: input, shape index: {}]   ;;  %s8899_s3 = inlined_call_operand.vmem [shape: bf16[4,32,8], index: 3, kind: input, shape index: {}]   ;;  %s8900_s4 = inlined_call_operand.vmem [shape: f32[4,1,8], index: 4, kind: input, shape index: {}]   ;;  %s8901_s5 = inlined_call_operand.vmem [shape: bf16[4,32,8], index: 5, kind: input, shape index: {}]   ;;  %s8902_s6 = inlined_call_operand.vmem [shape: f32[4,1,8], index: 6, kind: input, shape index: {}]   ;;  %s8903_s7 = inlined_call_operand.vmem [shape: bf16[32,32], index: 7, kind: input, shape index: {}]   ;;  %s8904_s8 = inlined_call_operand.vmem [shape: f32[1,32], index: 8, kind: input, shape index: {}]   ;;  %s8905_s9 = inlined_call_operand.vmem [shape: f32[1,32], index: 9, kind: input, shape index: {}]   ;;  %s8906_s10 = inlined_call_operand.vmem [shape: f32[1,32], index: 10, kind: input, shape index: {}]   ;;  %s8907_s11 = inlined_call_operand.vmem [shape: bf16[32,64], index: 11, kind: input, shape index: {}]   ;;  %s8908_s12 = inlined_call_operand.vmem [shape: f32[1,64], index: 12, kind: input, shape index: {}]   ;;  %s8909_s13 = inlined_call_operand.vmem [shape: bf16[64,32], index: 13, kind: input, shape index: {}]   ;;  %s8910_s14 = inlined_call_operand.vmem [shape: f32[1,32], index: 14, kind: input, shape index: {}]   ;;  %s8911_s15 = inlined_call_operand.vmem [shape: f32[1,32], index: 15, kind: input, shape index: {}]   ;;  %s8912_s16 = inlined_call_operand.vmem [shape: f32[1,32], index: 16, kind: input, shape index: {}]   ;;  %s8913_s17 = inlined_call_operand.vmem [shape: f32[2,128,32], index: 17, kind: output, shape index: {}]  }
   0x1   :  { %8928 = sst [smem:[#allocation33_spill]] %s8896_s0 }
   0x2   :  { %8929 = sst [smem:[#allocation34_spill]] %s8897_s1 }
   0x3 LB: > { %s5137_s25 = sadd.s32 4294967295, %s6779_s24   ;;  %p5141_p0 = scmp.ge.s32.totalorder %s6779_s24, 1  ;;  %s6779_s24 = sphi %s6874_s24, %s27_s24  }
   0x4   : > { %p487_p1 = scmp.lt.s32.totalorder %s6779_s24, 3 }
   0x6   : > { %p488_p2 = pnand %p5141_p0, %p487_p1 }
   0x8   : > { %491 = sbr.rel (%p488_p2) target bundleno = 4699 (0x125b), region = 88 }
   0xd   : > { %s8930_s28 = sld [smem:[#allocation34_spill]]  ;;  %p539_p3 = scmp.lt.s32.totalorder %s5137_s25, 1  ;;  %v6407_v2 = vld [vmem:[%s8899_s3 + $0x8] sm:$0xff]   ;;  %vm597_vm0 = vcmask 261120   ;;  %v6408_v12 = vld [vmem:[%s8899_s3] sm:$0xff]   ;;  %vm975_vm1 = vcmask 64512  }
   0xe   : > { %s8931_s21 = sld [smem:[#allocation33_spill]]  ;;  %v6973_v28 = vld [vmem:[%s8898_s2] ss:$0 sm:$0xff]  ;;  %s6781_s19 = smov 8   ;;  %vm4002_vm2 = vcmask 130048   ;;  %vm4019_vm3 = vcmask 195584  }
   0xf   : > { %s9007_s25 = smov (!%p539_p3, %s5137_s25), 1  ;;  %v5157_v60 = vld [vmem:[%s8900_s4] ss:$0 sm:$0xff]  ;;  %s6782_s1 = smov 16   ;;  %vm4674_vm4 = vcmask 523264  }
  0x10   : > { %s5396_s30 = sshll.u32 %s9007_s25, 7  ;;  %s6783_s27 = smov 24  }
  0x11   : > { %s8813_s20 = scalar_lea.vmem %s8913_s17, %s5396_s30 }
  0x13   : > { %v6405_v0 = vld [vmem:[%s8930_s28 + $0x8] sm:$0xff]   ;;  %v6406_v1 = vld [vmem:[%s8930_s28] sm:$0xff]  }
  0x14   : > { %6238 = vmatprep.subr.bf16.mxu1 %v6405_v0  ;;  %5678 = vmatprep.subr.bf16.mxu0 %v6405_v0  ;;  %s6899_s22 = scalar_lea.vmem %s8931_s21, %s5396_s30 }
  0x15   : > { %6240 = vmatpush3.bf16.msra.mxu1 %v6405_v0  ;;  %5679 = vmatpush3.bf16.msra.mxu0 %v6405_v0  ;;  %v558_v3 = vld [vmem:[%s6899_s22 + $0x40] sm:$0xff]  ;;  %v559_v4 = vld [vmem:[%s6899_s22 + $0x48] sm:$0xff]  ;;  %v560_v5 = vld [vmem:[%s6899_s22 + $0x50] sm:$0xff] }
  0x16   : > { %6239 = vmatprep.subr.bf16.mxu1 %v6406_v1  ;;  %5680 = vmatprep.subr.bf16.mxu0 %v6406_v1  ;;  %v6904_v6 = vpack.c.bf16 %v559_v4, %v558_v3  ;;  %v561_v7 = vld [vmem:[%s6899_s22 + $0x58] sm:$0xff]  ;;  %v562_v8 = vld [vmem:[%s6899_s22 + $0x60] sm:$0xff]  ;;  %v563_v9 = vld [vmem:[%s6899_s22 + $0x68] sm:$0xff] }
  0x17   : > { %v6909_v10 = vpack.c.bf16 %v561_v7, %v560_v5  ;;  %v6911_v11 = vpack.c.bf16 %v563_v9, %v562_v8  ;;  %v550_v13 = vld [vmem:[%s6899_s22] sm:$0xff]  ;;  %v551_v14 = vld [vmem:[%s6899_s22 + $0x8] sm:$0xff]  ;;  %v552_v15 = vld [vmem:[%s6899_s22 + $0x10] sm:$0xff] }
  0x18   : > { %5690 = vmatprep.mubr.msk.bf16.mxu1 %vm597_vm0, %v6904_v6  ;;  %v553_v16 = vld [vmem:[%s6899_s22 + $0x18] sm:$0xff]  ;;  %v564_v17 = vld [vmem:[%s6899_s22 + $0x70] sm:$0xff]  ;;  %v6925_v18 = vpack.c.bf16 %v551_v14, %v550_v13  ;;  %v554_v19 = vld [vmem:[%s6899_s22 + $0x20] sm:$0xff] }
  0x19   : > { %6241 = vmatpush3.bf16.msra.mxu1 %v6406_v1  ;;  %5681 = vmatpush3.bf16.msra.mxu0 %v6406_v1  ;;  %v555_v20 = vld [vmem:[%s6899_s22 + $0x28] sm:$0xff]  ;;  %v565_v21 = vld [vmem:[%s6899_s22 + $0x78] sm:$0xff]  ;;  %v6932_v22 = vpack.c.bf16 %v553_v16, %v552_v15  ;;  %v556_v25 = vld [vmem:[%s6899_s22 + $0x30] sm:$0xff] }
  0x1a   : > { %5698 = vmatprep.subr.bf16.mxu1 %v6407_v2  ;;  %v6934_v23 = vpack.c.bf16 %v555_v20, %v554_v19  ;;  %5682 = vmatprep.mubr.msk.bf16.mxu0 %vm597_vm0, %v6925_v18  ;;  %v6940_v24 = vpack.c.bf16 %v565_v21, %v564_v17  ;;  %v557_v26 = vld [vmem:[%s6899_s22 + $0x38] sm:$0xff] }
  0x1b   : > { %v6950_v27 = vpack.c.bf16 %v557_v26, %v556_v25 }
  0x1c   : > { %5691 = vmatmul.mubr.msk.bf16.vlgmr.msra.gmra.mxu1 %vm597_vm0, %v6909_v10  ;;  %5683 = vmatmul.mubr.msk.bf16.vlgmr.msra.gmra.mxu0 %vm597_vm0, %v6932_v22 }
  0x1d   : > { %5699 = vmatpush3.bf16.msra.mxu1 %v6407_v2  ;;  %5694 = vmatprep.mubr.msk.bf16.mxu1 %vm597_vm0, %v6911_v11 }
  0x1e   : > { %5700 = vmatprep.subr.bf16.mxu1 %v6408_v12  ;;  %5686 = vmatprep.mubr.msk.bf16.mxu0 %vm597_vm0, %v6934_v23 }
  0x21   : > { %5701 = vmatpush3.bf16.msra.mxu1 %v6408_v12 }
  0x24   : > { %5695 = vmatmul.mubr.msk.bf16.gmra.mxu1 %vm597_vm0, %v6940_v24  ;;  %5687 = vmatmul.mubr.msk.bf16.gmra.mxu0 %vm597_vm0, %v6950_v27 }
  0x25   : > { %5702 = vmatprep.mubr.msk.bf16.mxu1 %vm597_vm0, %v6925_v18  ;;  %5722 = vmatprep.mubr.msk.bf16.mxu0 %vm597_vm0, %v6925_v18 }
  0x2c   : > { %5703 = vmatmul.mubr.msk.bf16.vlgmr.msra.gmra.mxu1 %vm597_vm0, %v6932_v22 }
  0x2d   : > { %5706 = vmatprep.mubr.msk.bf16.mxu1 %vm597_vm0, %v6934_v23 }
  0x34   : > { %5707 = vmatmul.mubr.msk.bf16.gmra.mxu1 %vm597_vm0, %v6950_v27 }
  0x35   : > { %5710 = vmatprep.mubr.msk.bf16.mxu1 %vm597_vm0, %v6904_v6 }
  0x3c   : > { %5711 = vmatmul.mubr.msk.bf16.gmra.mxu1 %vm597_vm0, %v6909_v10 }
  0x3d   : > { %5714 = vmatprep.mubr.msk.bf16.mxu1 %vm597_vm0, %v6911_v11 }
  0x44   : > { %5715 = vmatmul.mubr.msk.bf16.gmra.mxu1 %vm597_vm0, %v6940_v24 }
  0xdc   : > { %v5692_v29 = vpop.f32.mrf.mxu1  ;;  %v5684_v33 = vpop.f32.mrf.mxu0 }
  0xdd   : > { %v6976_v30 = vadd.f32 %v5692_v29, %v6973_v28  ;;  %v6982_v35 = vadd.f32 %v5684_v33, %v6973_v28 }
  0xde   : > { %v688_v31 = vpop.f32.mrf.mxu1  ;;  %v656_v37 = vpop.f32.mrf.mxu0 }
  0xdf   : > { %v6979_v32 = vadd.f32 %v6973_v28, %v688_v31  ;;  %v657_v43 = vadd.f32 %v6973_v28, %v656_v37 }
  0xe0   : > { %v5693_v34 = vpop.f32.mrf.mxu1  ;;  %v5685_v41 = vpop.f32.mrf.mxu0 }
  0xe1   : > { %v6985_v36 = vadd.f32 %v5693_v34, %v6973_v28  ;;  %v6994_v44 = vadd.f32 %v5685_v41, %v6973_v28 }
  0xe2   : > { %v691_v38 = vpop.f32.mrf.mxu1  ;;  %v659_v47 = vpop.f32.mrf.mxu0 }
  0xe3   : > { %v964_v39 = vpack.c.bf16 %v6985_v36, %v6976_v30  ;;  %v6990_v40 = vadd.f32 %v6973_v28, %v691_v38  ;;  %v960_v49 = vpack.c.bf16 %v6994_v44, %v6982_v35  ;;  %v660_v50 = vadd.f32 %v6973_v28, %v659_v47  ;;  %v6410_v30 = vld [vmem:[%s8901_s5] sm:$0xff]  }
  0xe4   : > { %v5696_v42 = vpop.f32.mrf.mxu1 }
  0xe5   : > { %v963_v45 = vpack.c.bf16 %v6990_v40, %v6979_v32  ;;  %v6999_v46 = vadd.f32 %v5696_v42, %v6973_v28  ;;  %v959_v53 = vpack.c.bf16 %v660_v50, %v657_v43 }
  0xe6   : > { %v704_v48 = vpop.f32.mrf.mxu1 }
  0xe7   : > { %v7005_v51 = vadd.f32 %v6973_v28, %v704_v48  ;;  %5754 = vmatprep.mubr.msk.bf16.mxu1 %vm975_vm1, %v959_v53 }
  0xe8   : > { %v5697_v52 = vpop.f32.mrf.mxu1 }
  0xe9   : > { %v7008_v54 = vadd.f32 %v5697_v52, %v6973_v28 }
  0xea   : > { %v707_v55 = vpop.f32.mrf.mxu1 }
  0xeb   : > { %v966_v56 = vpack.c.bf16 %v7008_v54, %v6999_v46  ;;  %v7014_v57 = vadd.f32 %v6973_v28, %v707_v55 }
  0xec   : > { %v5704_v58 = vpop.f32.mrf.mxu1 }
  0xed   : > { %v965_v59 = vpack.c.bf16 %v7014_v57, %v7005_v51  ;;  %v785_v63 = vadd.f32 %v5704_v58, %v5157_v60 }
  0xee   : > { %v776_v61 = vpop.f32.mrf.mxu1 }
  0xf0   : > { %v5705_v62 = vpop.f32.mrf.mxu1 }
  0xf1   : > { %v788_v0 = vadd.f32 %v5705_v62, %v5157_v60 }
  0xf2   : > { %v779_v1 = vpop.f32.mrf.mxu1 }
  0xf3   : > { %v968_v2 = vpack.c.bf16 %v788_v0, %v785_v63 }
  0xf4   : > { %v5708_v3 = vpop.f32.mrf.mxu1 }
  0xf5   : > { %v801_v50 = vadd.f32 %v5708_v3, %v5157_v60  ;;  %v5688_v3 = vpop.f32.mrf.mxu0 }
  0xf6   : > { %v792_v4 = vpop.f32.mrf.mxu1 }
  0xf7   : > { %v793_v58 = vadd.f32 %v5157_v60, %v792_v4 }
  0xf8   : > { %v5709_v5 = vpop.f32.mrf.mxu1 }
  0xf9   : > { %v804_v48 = vadd.f32 %v5709_v5, %v5157_v60  ;;  %v780_v5 = vadd.f32 %v5157_v60, %v779_v1 }
  0xfa   : > { %v795_v7 = vpop.f32.mrf.mxu1 }
  0xfb   : > { %v970_v52 = vpack.c.bf16 %v804_v48, %v801_v50  ;;  %v796_v55 = vadd.f32 %v5157_v60, %v795_v7 }
  0xfc   : > { %v5712_v8 = vpop.f32.mrf.mxu1 }
  0xfd   : > { %v817_v34 = vadd.f32 %v5712_v8, %v5157_v60  ;;  %v969_v62 = vpack.c.bf16 %v796_v55, %v793_v58  ;;  %v1010_v63 = vsel %vm975_vm1, %v970_v52, 0  ;;  %v777_v8 = vadd.f32 %v5157_v60, %v776_v61 }
  0xfe   : > { %v808_v9 = vpop.f32.mrf.mxu1 }
  0xff   : > { %v809_v42 = vadd.f32 %v5157_v60, %v808_v9  ;;  %v1007_v0 = vsel %vm975_vm1, %v969_v62, 0  ;;  %v672_v9 = vpop.f32.mrf.mxu0 }
 0x100   : > { %v5713_v12 = vpop.f32.mrf.mxu1 }
 0x101   : > { %v820_v33 = vadd.f32 %v5713_v12, %v5157_v60  ;;  %v967_v12 = vpack.c.bf16 %v780_v5, %v777_v8  ;;  %v5689_v4 = vpop.f32.mrf.mxu0 }
 0x102   : > { %v811_v13 = vpop.f32.mrf.mxu1  ;;  %v684_v61 = vadd.f32 %v5689_v4, %v6973_v28 }
 0x103   : > { %v972_v37 = vpack.c.bf16 %v820_v33, %v817_v34  ;;  %v812_v41 = vadd.f32 %v5157_v60, %v811_v13  ;;  %v1004_v13 = vsel %vm975_vm1, %v968_v2, 0  ;;  %v675_v7 = vpop.f32.mrf.mxu0 }
 0x104   : > { %v5716_v14 = vpop.f32.mrf.mxu1 }
 0x105   : > { %v833_v17 = vadd.f32 %v5716_v14, %v5157_v60  ;;  %v971_v43 = vpack.c.bf16 %v812_v41, %v809_v42  ;;  %v1016_v47 = vsel %vm975_vm1, %v972_v37, 0  ;;  %v1001_v14 = vsel %vm975_vm1, %v967_v12, 0 }
 0x106   : > { %v824_v15 = vpop.f32.mrf.mxu1 }
 0x107   : > { %v825_v21 = vadd.f32 %v5157_v60, %v824_v15  ;;  %v1013_v53 = vsel %vm975_vm1, %v971_v43, 0  ;;  %v673_v15 = vadd.f32 %v6973_v28, %v672_v9 }
 0x108   : > { %v5717_v16 = vpop.f32.mrf.mxu1 }
 0x109   : > { %v836_v19 = vadd.f32 %v5717_v16, %v5157_v60  ;;  %v676_v16 = vadd.f32 %v6973_v28, %v675_v7  ;;  %v5168_v7 = vld [vmem:[%s8902_s6] ss:$0 sm:$0xff] }
 0x10a   : > { %v827_v20 = vpop.f32.mrf.mxu1 }
 0x10b   : > { %v974_v25 = vpack.c.bf16 %v836_v19, %v833_v17  ;;  %v828_v26 = vadd.f32 %v5157_v60, %v827_v20  ;;  %v961_v17 = vpack.c.bf16 %v676_v16, %v673_v15  ;;  %v681_v60 = vadd.f32 %v5688_v3, %v6973_v28  ;;  %v6409_v28 = vld [vmem:[%s8901_s5 + $0x8] sm:$0xff]  }
 0x10c   : > { %5718 = vmatprep.subr.bf16.mxu0 %v6409_v28 }
 0x10d   : > { %v973_v29 = vpack.c.bf16 %v828_v26, %v825_v21  ;;  %6242 = vmatprep.subr.msk.bf16.mxu1 %vm975_vm1, %v974_v25  ;;  %v1022_v31 = vsel %vm975_vm1, %v974_v25, 0  ;;  %v962_v1 = vpack.c.bf16 %v684_v61, %v681_v60  ;;  %5719 = vmatpush3.bf16.msra.mxu0 %v6409_v28 }
 0x10e   : > { %5739 = vmatpush3.bf16.xpose.msra.mxu1 %v1022_v31  ;;  %5720 = vmatprep.subr.bf16.mxu0 %v6410_v30 }
 0x10f   : > { %6243 = vmatprep.subr.msk.bf16.mxu1 %vm975_vm1, %v973_v29  ;;  %v1019_v38 = vsel %vm975_vm1, %v973_v29, 0 }
 0x111   : > { %5721 = vmatpush3.bf16.msra.mxu0 %v6410_v30 }
 0x114   : > { %5723 = vmatmul.mubr.msk.bf16.vlgmr.msra.gmra.mxu0 %vm597_vm0, %v6932_v22 }
 0x115   : > { %5726 = vmatprep.mubr.msk.bf16.mxu0 %vm597_vm0, %v6934_v23 }
 0x116   : > { %5741 = vmatpush3.bf16.xpose.msra.mxu1 %v1019_v38 }
 0x117   : > { %6244 = vmatprep.subr.msk.bf16.mxu1 %vm975_vm1, %v972_v37 }
 0x11c   : > { %5727 = vmatmul.mubr.msk.bf16.gmra.mxu0 %vm597_vm0, %v6950_v27 }
 0x11d   : > { %5730 = vmatprep.mubr.msk.bf16.mxu0 %vm597_vm0, %v6904_v6 }
 0x11e   : > { %5743 = vmatpush3.bf16.xpose.msra.mxu1 %v1016_v47 }
 0x11f   : > { %6245 = vmatprep.subr.msk.bf16.mxu1 %vm975_vm1, %v971_v43 }
 0x124   : > { %5731 = vmatmul.mubr.msk.bf16.gmra.mxu0 %vm597_vm0, %v6909_v10 }
 0x125   : > { %5734 = vmatprep.mubr.msk.bf16.mxu0 %vm597_vm0, %v6911_v11 }
 0x126   : > { %5745 = vmatpush3.bf16.xpose.msra.mxu1 %v1013_v53  ;;  %v6412_v53 = vld [vmem:[%s8899_s3 + $0x10] sm:$0xff]  }
 0x127   : > { %6246 = vmatprep.subr.msk.bf16.mxu1 %vm975_vm1, %v970_v52  ;;  %v6411_v52 = vld [vmem:[%s8899_s3 + $0x18] sm:$0xff]  }
 0x12c   : > { %5735 = vmatmul.mubr.msk.bf16.gmra.mxu0 %vm597_vm0, %v6940_v24 }
 0x12e   : > { %5747 = vmatpush3.bf16.xpose.msra.mxu1 %v1010_v63 }
 0x12f   : > { %6247 = vmatprep.subr.msk.bf16.mxu1 %vm975_vm1, %v969_v62 }
 0x136   : > { %5749 = vmatpush3.bf16.xpose.msra.mxu1 %v1007_v0 }
 0x137   : > { %6248 = vmatprep.subr.msk.bf16.mxu1 %vm975_vm1, %v968_v2 }
 0x13e   : > { %5751 = vmatpush3.bf16.xpose.msra.mxu1 %v1004_v13 }
 0x13f   : > { %6249 = vmatprep.subr.msk.bf16.mxu1 %vm975_vm1, %v967_v12 }
 0x146   : > { %5753 = vmatpush3.bf16.xpose.msra.mxu1 %v1001_v14 }
 0x147   : > { %5822 = vmatprep.subr.bf16.mxu1 %v6411_v52 }
 0x14d   : > { %5755 = vmatmul.mubr.msk.bf16.vlgmr.msra.gmra.mxu1 %vm975_vm1, %v960_v49 }
 0x14e   : > { %5758 = vmatprep.mubr.msk.bf16.mxu1 %vm975_vm1, %v961_v17  ;;  %5823 = vmatpush3.bf16.msra.mxu1 %v6411_v52 }
 0x14f   : > { %5824 = vmatprep.subr.bf16.mxu1 %v6412_v53 }
 0x152   : > { %5825 = vmatpush3.bf16.msra.mxu1 %v6412_v53 }
 0x155   : > { %5759 = vmatmul.mubr.msk.bf16.gmra.mxu1 %vm975_vm1, %v962_v1 }
 0x156   : > { %5762 = vmatprep.mubr.msk.bf16.mxu1 %vm975_vm1, %v963_v45 }
 0x15d   : > { %5763 = vmatmul.mubr.msk.bf16.gmra.mxu1 %vm975_vm1, %v964_v39 }
 0x15e   : > { %5766 = vmatprep.mubr.msk.bf16.mxu1 %vm975_vm1, %v965_v59 }
 0x165   : > { %5767 = vmatmul.mubr.msk.bf16.gmra.mxu1 %vm975_vm1, %v966_v56 }
 0x166   : > { %5826 = vmatprep.mubr.msk.bf16.mxu1 %vm597_vm0, %v6925_v18 }
 0x16d   : > { %5827 = vmatmul.mubr.msk.bf16.vlgmr.msra.gmra.mxu1 %vm597_vm0, %v6932_v22 }
 0x16e   : > { %5830 = vmatprep.mubr.msk.bf16.mxu1 %vm597_vm0, %v6934_v23 }
 0x175   : > { %5831 = vmatmul.mubr.msk.bf16.gmra.mxu1 %vm597_vm0, %v6950_v27 }
 0x176   : > { %5834 = vmatprep.mubr.msk.bf16.mxu1 %vm597_vm0, %v6904_v6 }
 0x17d   : > { %5835 = vmatmul.mubr.msk.bf16.gmra.mxu1 %vm597_vm0, %v6909_v10 }
 0x17e   : > { %5838 = vmatprep.mubr.msk.bf16.mxu1 %vm597_vm0, %v6911_v11 }
 0x185   : > { %5839 = vmatmul.mubr.msk.bf16.gmra.mxu1 %vm597_vm0, %v6940_v24 }
 0x1d4   : > { %v5724_v55 = vpop.f32.mrf.mxu0 }
 0x1d6   : > { %v896_v58 = vpop.f32.mrf.mxu0 }
 0x1d8   : > { %v5725_v62 = vpop.f32.mrf.mxu0 }
 0x1da   : > { %v899_v63 = vpop.f32.mrf.mxu0 }
 0x1db   : > { %v900_v53 = vadd.f32 %v5168_v7, %v899_v63 }
 0x1dc   : > { %v5728_v0 = vpop.f32.mrf.mxu0 }
 0x1de   : > { %v912_v3 = vpop.f32.mrf.mxu0 }
 0x1e0   : > { %v5729_v5 = vpop.f32.mrf.mxu0 }
 0x1e2   : > { %v915_v8 = vpop.f32.mrf.mxu0 }
 0x1e4   : > { %v5732_v9 = vpop.f32.mrf.mxu0 }
 0x1e5   : > { %v937_v28 = vadd.f32 %v5732_v9, %v5168_v7 }
 0x1e6   : > { %v928_v12 = vpop.f32.mrf.mxu0 }
 0x1e8   : > { %v5733_v13 = vpop.f32.mrf.mxu0 }
 0x1e9   : > { %v940_v30 = vadd.f32 %v5733_v13, %v5168_v7 }
 0x1ea   : > { %v931_v4 = vpop.f32.mrf.mxu0 }
 0x1ec   : > { %v5736_v14 = vpop.f32.mrf.mxu0 }
 0x1ed   : > { %v953_v16 = vadd.f32 %v5736_v14, %v5168_v7 }
 0x1ee   : > { %v944_v15 = vpop.f32.mrf.mxu0 }
 0x1ef   : > { %v945_v60 = vadd.f32 %v5168_v7, %v944_v15 }
 0x1f0   : > { %v5737_v17 = vpop.f32.mrf.mxu0 }
 0x1f1   : > { %v956_v61 = vadd.f32 %v5737_v17, %v5168_v7 }
 0x1f2   : > { %v947_v1 = vpop.f32.mrf.mxu0 }
 0x20d   : > { %v5756_v32 = vpop.f32.mrf.mxu1 }
 0x20e   : > { %v7085_v35 = vmul.f32 0.35355338, %v5756_v32  ;;  %v1296_v32 = vpack.c.bf16 %v956_v61, %v953_v16 }
 0x20f   : > { %v1058_v36 = vpop.f32.mrf.mxu1 }
 0x210   : > { %v7087_v39 = vmul.f32 0.35355338, %v1058_v36  ;;  %1141 = vmax.xlane.f32.xlu1 %v7085_v35  ;;  %v948_v36 = vadd.f32 %v5168_v7, %v947_v1  ;;  %5770 = vmatprep.subr.bf16.mxu0 %v1296_v32 }
 0x211   : > { %v5757_v40 = vpop.f32.mrf.mxu1  ;;  %5771 = vmatpush3.bf16.msra.mxu0 %v1296_v32 }
 0x212   : > { %v7090_v44 = vmul.f32 0.35355338, %v5757_v40  ;;  %1137 = vmax.xlane.f32.xlu0 %v7087_v39  ;;  %v1295_v40 = vpack.c.bf16 %v948_v36, %v945_v60 }
 0x213   : > { %v1061_v45 = vpop.f32.mrf.mxu1 }
 0x214   : > { %1143 = vmax.xlane.f32.xlu1 %v7090_v44  ;;  %v7094_v46 = vmul.f32 0.35355338, %v1061_v45  ;;  %v929_v45 = vadd.f32 %v5168_v7, %v928_v12  ;;  %5772 = vmatprep.subr.bf16.mxu0 %v1295_v40 }
 0x215   : > { %v5760_v49 = vpop.f32.mrf.mxu1  ;;  %5773 = vmatpush3.bf16.msra.mxu0 %v1295_v40 }
 0x216   : > { %1139 = vmax.xlane.f32.xlu0 %v7094_v46  ;;  %v7100_v59 = vmul.f32 0.35355338, %v5760_v49  ;;  %v1294_v49 = vpack.c.bf16 %v940_v30, %v937_v28 }
 0x217   : > { %v1074_v51 = vpop.f32.mrf.mxu1 }
 0x218   : > { %v7097_v54 = vmul.f32 0.35355338, %v1074_v51  ;;  %v932_v51 = vadd.f32 %v5168_v7, %v931_v4  ;;  %5774 = vmatprep.subr.bf16.mxu0 %v1294_v49 }
 0x219   : > { %v5761_v56 = vpop.f32.mrf.mxu1  ;;  %5775 = vmatpush3.bf16.msra.mxu0 %v1294_v49 }
 0x21a   : > { %1145 = vmax.xlane.f32.xlu0 %v7097_v54  ;;  %v7106_v21 = vmul.f32 0.35355338, %v5761_v56  ;;  %v921_v56 = vadd.f32 %v5728_v0, %v5168_v7 }
 0x21b   : > { %v1077_v57 = vpop.f32.mrf.mxu1 }
 0x21c   : > { %v7102_v2 = vmul.f32 0.35355338, %v1077_v57  ;;  %v924_v57 = vadd.f32 %v5729_v5, %v5168_v7 }
 0x21d   : > { %v5764_v19 = vpop.f32.mrf.mxu1 }
 0x21e   : > { %1149 = vmax.xlane.f32.xlu0 %v7100_v59  ;;  %1147 = vmax.xlane.f32.xlu1 %v7102_v2  ;;  %v7112_v31 = vmul.f32 0.35355338, %v5764_v19  ;;  %v1293_v19 = vpack.c.bf16 %v932_v51, %v929_v45 }
 0x21f   : > { %v1090_v20 = vpop.f32.mrf.mxu1 }
 0x220   : > { %v7108_v25 = vmul.f32 0.35355338, %v1090_v20  ;;  %v913_v20 = vadd.f32 %v5168_v7, %v912_v3  ;;  %5776 = vmatprep.subr.bf16.mxu0 %v1293_v19 }
 0x221   : > { %v5765_v26 = vpop.f32.mrf.mxu1  ;;  %5777 = vmatpush3.bf16.msra.mxu0 %v1293_v19 }
 0x222   : > { %1151 = vmax.xlane.f32.xlu1 %v7106_v21  ;;  %1153 = vmax.xlane.f32.xlu0 %v7108_v25  ;;  %v7118_v38 = vmul.f32 0.35355338, %v5765_v26  ;;  %v1292_v26 = vpack.c.bf16 %v924_v57, %v921_v56 }
 0x223   : > { %v1093_v29 = vpop.f32.mrf.mxu1 }
 0x224   : > { %v7114_v33 = vmul.f32 0.35355338, %v1093_v29  ;;  %v916_v29 = vadd.f32 %v5168_v7, %v915_v8  ;;  %5778 = vmatprep.subr.bf16.mxu0 %v1292_v26 }
 0x225   : > { %v5768_v34 = vpop.f32.mrf.mxu1  ;;  %5779 = vmatpush3.bf16.msra.mxu0 %v1292_v26 }
 0x226   : > { %1157 = vmax.xlane.f32.xlu0 %v7112_v31  ;;  %1155 = vmax.xlane.f32.xlu1 %v7114_v33  ;;  %v7124_v47 = vmul.f32 0.35355338, %v5768_v34  ;;  %v905_v34 = vadd.f32 %v5724_v55, %v5168_v7 }
 0x227   : > { %v1106_v37 = vpop.f32.mrf.mxu1 }
 0x228   : > { %v7120_v41 = vmul.f32 0.35355338, %v1106_v37  ;;  %v908_v37 = vadd.f32 %v5725_v62, %v5168_v7 }
 0x229   : > { %v5769_v42 = vpop.f32.mrf.mxu1 }
 0x22a   : > { %1159 = vmax.xlane.f32.xlu1 %v7118_v38  ;;  %1161 = vmax.xlane.f32.xlu0 %v7120_v41  ;;  %v7130_v50 = vmul.f32 0.35355338, %v5769_v42  ;;  %v1291_v42 = vpack.c.bf16 %v916_v29, %v913_v20  ;;  %v1290_v52 = vpack.c.bf16 %v908_v37, %v905_v34 }
 0x22b   : > { %v1109_v43 = vpop.f32.mrf.mxu1 }
 0x22c   : > { %v7126_v48 = vmul.f32 0.35355338, %v1109_v43  ;;  %v897_v43 = vadd.f32 %v5168_v7, %v896_v58  ;;  %5780 = vmatprep.subr.bf16.mxu0 %v1291_v42 }
 0x22d   : > { %5781 = vmatpush3.bf16.msra.mxu0 %v1291_v42 }
 0x22e   : > { %1165 = vmax.xlane.f32.xlu0 %v7124_v47  ;;  %1163 = vmax.xlane.f32.xlu1 %v7126_v48  ;;  %v1289_v0 = vpack.c.bf16 %v900_v53, %v897_v43 }
 0x22f   : > { %5782 = vmatprep.subr.bf16.mxu0 %v1290_v52 }
 0x231   : > { %5783 = vmatpush3.bf16.msra.mxu0 %v1290_v52 }
 0x232   : > { %1167 = vmax.xlane.f32.xlu1 %v7130_v50  ;;  %5784 = vmatprep.subr.bf16.mxu0 %v1289_v0 }
 0x235   : > { %5785 = vmatpush3.bf16.msra.mxu0 %v1289_v0 }
 0x299   : > { %v1142_v3 = vpop.xlane.xlu1 %1141 }
 0x29a   : > { %v1171_v5 = vsub.f32 %v7085_v35, %v1142_v3 }
 0x29b   : > { %v1138_v8 = vpop.xlane.xlu0 %1137 }
 0x29c   : > { %v1169_v55 = vsub.f32 %v7087_v39, %v1138_v8  ;;  %v1189_v12 = vmul.f32 1.442695, %v1171_v5 }
 0x29d   : > { %v1144_v62 = vpop.xlane.xlu1 %1143 }
 0x29e   : > { %v1185_v9 = vmul.f32 1.442695, %v1169_v55  ;;  %v1172_v58 = vsub.f32 %v7090_v44, %v1144_v62 }
 0x29f   : > { %v1140_v13 = vpop.xlane.xlu0 %1139 }
 0x2a0   : > { %6437 = vpow2.f32 %v1185_v9  ;;  %v1170_v63 = vsub.f32 %v7094_v46, %v1140_v13  ;;  %v1191_v7 = vmul.f32 1.442695, %v1172_v58  ;;  %v7223_v13 = vld [vmem:[%s8930_s28 + $0x18] sm:$0xff]  }
 0x2a1   : > { %6439 = vpow2.f32 %v1189_v12  ;;  %5802 = vmatprep.subr.bf16.mxu0 %v7223_v13 }
 0x2a2   : > { %v1187_v4 = vmul.f32 1.442695, %v1170_v63  ;;  %v5828_v63 = vpop.f32.mrf.mxu1 }
 0x2a3   : > { %v1146_v14 = vpop.xlane.xlu0 %1145 }
 0x2a4   : > { %6441 = vpow2.f32 %v1187_v4  ;;  %v1173_v15 = vsub.f32 %v7097_v54, %v1146_v14  ;;  %v7229_v4 = vld [vmem:[%s8900_s4 + $0x1] ss:$0 sm:$0xff] }
 0x2a5   : > { %6443 = vpow2.f32 %v1191_v7  ;;  %v1575_v7 = vpop.f32.mrf.mxu1  ;;  %v1584_v14 = vadd.f32 %v5828_v63, %v7229_v4 }
 0x2a6   : > { %v1193_v35 = vmul.f32 1.442695, %v1173_v15 }
 0x2a7   : > { %v1150_v16 = vpop.xlane.xlu0 %1149  ;;  %v1148_v39 = vpop.xlane.xlu1 %1147 }
 0x2a8   : > { %6445 = vpow2.f32 %v1193_v35  ;;  %v1175_v17 = vsub.f32 %v7100_v59, %v1150_v16  ;;  %v1174_v44 = vsub.f32 %v7102_v2, %v1148_v39  ;;  %v5829_v15 = vpop.f32.mrf.mxu1  ;;  %v1576_v35 = vadd.f32 %v7229_v4, %v1575_v7 }
 0x2a9   : > { %v1587_v16 = vadd.f32 %v5829_v15, %v7229_v4 }
 0x2aa   : > { %v1197_v60 = vmul.f32 1.442695, %v1175_v17  ;;  %v1195_v61 = vmul.f32 1.442695, %v1174_v44  ;;  %v1578_v39 = vpop.f32.mrf.mxu1 }
 0x2ab   : > { %v1152_v1 = vpop.xlane.xlu1 %1151  ;;  %v1154_v46 = vpop.xlane.xlu0 %1153  ;;  %v7234_v17 = vpack.c.bf16 %v1587_v16, %v1584_v14  ;;  %v1579_v44 = vadd.f32 %v7229_v4, %v1578_v39 }
 0x2ac   : > { %6447 = vpow2.f32 %v1197_v60  ;;  %v1176_v28 = vsub.f32 %v7106_v21, %v1152_v1  ;;  %v1177_v30 = vsub.f32 %v7108_v25, %v1154_v46  ;;  %v5832_v60 = vpop.f32.mrf.mxu1 }
 0x2ad   : > { %v7165_v32 = vpop.eup %6437  ;;  %6449 = vpow2.f32 %v1195_v61  ;;  %v7237_v61 = vpack.c.bf16 %v1579_v44, %v1576_v35  ;;  %v1600_v14 = vadd.f32 %v5832_v60, %v7229_v4 }
 0x2ae   : > { %v1199_v54 = vmul.f32 1.442695, %v1176_v28  ;;  %v1201_v36 = vmul.f32 1.442695, %v1177_v30  ;;  %1217 = vadd.xlane.f32.xlu0 %v7165_v32  ;;  %v7168_v45 = vpop.eup %6439  ;;  %v1591_v1 = vpop.f32.mrf.mxu1 }
 0x2af   : > { %v1158_v40 = vpop.xlane.xlu0 %1157  ;;  %v1156_v59 = vpop.xlane.xlu1 %1155 }
 0x2b0   : > { %6451 = vpow2.f32 %v1199_v54  ;;  %v1179_v2 = vsub.f32 %v7112_v31, %v1158_v40  ;;  %v1178_v49 = vsub.f32 %v7114_v33, %v1156_v59  ;;  %v5833_v46 = vpop.f32.mrf.mxu1 }
 0x2b1   : > { %v7172_v51 = vpop.eup %6441  ;;  %6453 = vpow2.f32 %v1201_v36  ;;  %v1603_v15 = vadd.f32 %v5833_v46, %v7229_v4 }
 0x2b2   : > { %v1205_v21 = vmul.f32 1.442695, %v1179_v2  ;;  %v1203_v25 = vmul.f32 1.442695, %v1178_v49  ;;  %1221 = vadd.xlane.f32.xlu0 %v7168_v45  ;;  %1219 = vadd.xlane.f32.xlu1 %v7172_v51  ;;  %v7176_v19 = vpop.eup %6443  ;;  %v1594_v28 = vpop.f32.mrf.mxu1 }
 0x2b3   : > { %v1160_v56 = vpop.xlane.xlu1 %1159  ;;  %v1162_v57 = vpop.xlane.xlu0 %1161  ;;  %v1771_v39 = vpack.c.bf16 %v1603_v15, %v1600_v14  ;;  %v1595_v60 = vadd.f32 %v7229_v4, %v1594_v28  ;;  %v1804_v14 = vsel %vm975_vm1, %v7234_v17, 0 }
 0x2b4   : > { %6455 = vpow2.f32 %v1205_v21  ;;  %v1180_v20 = vsub.f32 %v7118_v38, %v1160_v56  ;;  %v1181_v31 = vsub.f32 %v7120_v41, %v1162_v57  ;;  %v5836_v30 = vpop.f32.mrf.mxu1 }
 0x2b5   : > { %v7180_v26 = vpop.eup %6445  ;;  %6457 = vpow2.f32 %v1203_v25 }
 0x2b6   : > { %v1207_v33 = vmul.f32 1.442695, %v1180_v20  ;;  %v1209_v29 = vmul.f32 1.442695, %v1181_v31  ;;  %1225 = vadd.xlane.f32.xlu0 %v7180_v26  ;;  %1223 = vadd.xlane.f32.xlu1 %v7176_v19  ;;  %v1607_v54 = vpop.f32.mrf.mxu1 }
 0x2b7   : > { %v1166_v34 = vpop.xlane.xlu0 %1165  ;;  %v1164_v37 = vpop.xlane.xlu1 %1163 }
 0x2b8   : > { %6459 = vpow2.f32 %v1207_v33  ;;  %v1183_v42 = vsub.f32 %v7124_v47, %v1166_v34  ;;  %v1182_v43 = vsub.f32 %v7126_v48, %v1164_v37  ;;  %v5837_v36 = vpop.f32.mrf.mxu1  ;;  %v1616_v34 = vadd.f32 %v5836_v30, %v7229_v4 }
 0x2b9   : > { %v7186_v52 = vpop.eup %6447  ;;  %6461 = vpow2.f32 %v1209_v29  ;;  %v1619_v37 = vadd.f32 %v5837_v36, %v7229_v4  ;;  %v1592_v36 = vadd.f32 %v7229_v4, %v1591_v1 }
 0x2ba   : > { %v7188_v38 = vpop.eup %6449  ;;  %v1213_v41 = vmul.f32 1.442695, %v1183_v42  ;;  %v1211_v53 = vmul.f32 1.442695, %v1182_v43  ;;  %1229 = vadd.xlane.f32.xlu0 %v7186_v52  ;;  %v1610_v40 = vpop.f32.mrf.mxu1 }
 0x2bb   : > { %1227 = vadd.xlane.f32.xlu1 %v7188_v38  ;;  %v1168_v0 = vpop.xlane.xlu1 %1167  ;;  %v1773_v42 = vpack.c.bf16 %v1619_v37, %v1616_v34  ;;  %v6414_v37 = vld [vmem:[%s8930_s28 + $0x10] sm:$0xff]  }
 0x2bc   : > { %6463 = vpow2.f32 %v1213_v41  ;;  %v1184_v3 = vsub.f32 %v7130_v50, %v1168_v0  ;;  %v5840_v59 = vpop.f32.mrf.mxu1  ;;  %v1608_v41 = vadd.f32 %v7229_v4, %v1607_v54 }
 0x2bd   : > { %v7193_v5 = vpop.eup %6451  ;;  %6465 = vpow2.f32 %v1211_v53  ;;  %v1632_v49 = vadd.f32 %v5840_v59, %v7229_v4  ;;  %v1611_v53 = vadd.f32 %v7229_v4, %v1610_v40 }
 0x2be   : > { %v7195_v47 = vpop.eup %6453  ;;  %v1215_v48 = vmul.f32 1.442695, %v1184_v3  ;;  %v1623_v2 = vpop.f32.mrf.mxu1 }
 0x2bf   : > { %1233 = vadd.xlane.f32.xlu0 %v7195_v47  ;;  %1231 = vadd.xlane.f32.xlu1 %v7193_v5  ;;  %v1624_v25 = vadd.f32 %v7229_v4, %v1623_v2  ;;  %v1772_v3 = vpack.c.bf16 %v1611_v53, %v1608_v41 }
 0x2c0   : > { %6467 = vpow2.f32 %v1215_v48  ;;  %v5841_v21 = vpop.f32.mrf.mxu1  ;;  %v1816_v48 = vsel %vm975_vm1, %v1773_v42, 0 }
 0x2c1   : > { %v7199_v8 = vpop.eup %6455  ;;  %v1635_v56 = vadd.f32 %v5841_v21, %v7229_v4  ;;  %v1813_v44 = vsel %vm975_vm1, %v1772_v3, 0  ;;  %v1810_v21 = vsel %vm975_vm1, %v1771_v39, 0 }
 0x2c2   : > { %v7201_v55 = vpop.eup %6457  ;;  %v1626_v57 = vpop.f32.mrf.mxu1 }
 0x2c3   : > { %1237 = vadd.xlane.f32.xlu0 %v7199_v8  ;;  %1235 = vadd.xlane.f32.xlu1 %v7201_v55  ;;  %v1775_v20 = vpack.c.bf16 %v1635_v56, %v1632_v49  ;;  %v1627_v31 = vadd.f32 %v7229_v4, %v1626_v57  ;;  %v1770_v49 = vpack.c.bf16 %v1595_v60, %v1592_v36  ;;  %v1801_v36 = vsel %vm975_vm1, %v7237_v61, 0 }
 0x2c5   : > { %v7205_v50 = vpop.eup %6459  ;;  %6250 = vmatprep.subr.msk.bf16.mxu1 %vm975_vm1, %v1775_v20  ;;  %v1822_v33 = vsel %vm975_vm1, %v1775_v20, 0  ;;  %v1774_v29 = vpack.c.bf16 %v1627_v31, %v1624_v25 }
 0x2c6   : > { %v7207_v62 = vpop.eup %6461  ;;  %5863 = vmatpush3.bf16.xpose.msra.mxu1 %v1822_v33 }
 0x2c7   : > { %1241 = vadd.xlane.f32.xlu0 %v7207_v62  ;;  %1239 = vadd.xlane.f32.xlu1 %v7205_v50  ;;  %v1819_v43 = vsel %vm975_vm1, %v1774_v29, 0 }
 0x2c8   : > { %6251 = vmatprep.subr.msk.bf16.mxu1 %vm975_vm1, %v1774_v29 }
 0x2c9   : > { %v7211_v9 = vpop.eup %6463 }
 0x2ca   : > { %v7213_v12 = vpop.eup %6465 }
 0x2cb   : > { %1245 = vadd.xlane.f32.xlu0 %v7211_v9  ;;  %1243 = vadd.xlane.f32.xlu1 %v7213_v12 }
 0x2cd   : > { %v7217_v58 = vpop.eup %6467 }
 0x2ce   : > { %5865 = vmatpush3.bf16.xpose.msra.mxu1 %v1819_v43  ;;  %v1807_v43 = vsel %vm975_vm1, %v1770_v49, 0 }
 0x2cf   : > { %1247 = vadd.xlane.f32.xlu1 %v7217_v58  ;;  %6252 = vmatprep.subr.msk.bf16.mxu1 %vm975_vm1, %v1773_v42 }
 0x2d6   : > { %5867 = vmatpush3.bf16.xpose.msra.mxu1 %v1816_v48 }
 0x2d7   : > { %6253 = vmatprep.subr.msk.bf16.mxu1 %vm975_vm1, %v1772_v3 }
 0x2de   : > { %5869 = vmatpush3.bf16.xpose.msra.mxu1 %v1813_v44 }
 0x2df   : > { %6254 = vmatprep.subr.msk.bf16.mxu1 %vm975_vm1, %v1771_v39 }
 0x2e6   : > { %5871 = vmatpush3.bf16.xpose.msra.mxu1 %v1810_v21 }
 0x2e7   : > { %6255 = vmatprep.subr.msk.bf16.mxu1 %vm975_vm1, %v1770_v49 }
 0x2ee   : > { %5873 = vmatpush3.bf16.xpose.msra.mxu1 %v1807_v43 }
 0x2ef   : > { %6256 = vmatprep.subr.msk.bf16.mxu1 %vm975_vm1, %v7234_v17 }
 0x2f6   : > { %5875 = vmatpush3.bf16.xpose.msra.mxu1 %v1804_v14 }
 0x2f7   : > { %6257 = vmatprep.subr.msk.bf16.mxu1 %vm975_vm1, %v7237_v61 }
 0x2fe   : > { %5877 = vmatpush3.bf16.xpose.msra.mxu1 %v1801_v36 }
 0x337   : > { %v1218_v0 = vpop.xlane.xlu0 %1217 }
 0x338   : > { %6469 = vrcp.f32 %v1218_v0 }
 0x33b   : > { %v1222_v63 = vpop.xlane.xlu0 %1221  ;;  %v1220_v7 = vpop.xlane.xlu1 %1219 }
 0x33c   : > { %6471 = vrcp.f32 %v1220_v7 }
 0x33d   : > { %6473 = vrcp.f32 %v1222_v63 }
 0x33f   : > { %v1226_v35 = vpop.xlane.xlu0 %1225  ;;  %v1224_v16 = vpop.xlane.xlu1 %1223 }
 0x340   : > { %6475 = vrcp.f32 %v1224_v16 }
 0x341   : > { %6477 = vrcp.f32 %v1226_v35 }
 0x343   : > { %v1230_v30 = vpop.xlane.xlu0 %1229 }
 0x344   : > { %v1228_v54 = vpop.xlane.xlu1 %1227 }
 0x345   : > { %6479 = vrcp.f32 %v1228_v54  ;;  %v6470_v46 = vpop.eup %6469 }
 0x346   : > { %6481 = vrcp.f32 %v1230_v30  ;;  %v1265_v25 = vmul.f32 %v6470_v46, %v7165_v32 }
 0x348   : > { %v1234_v40 = vpop.xlane.xlu0 %1233  ;;  %v1232_v59 = vpop.xlane.xlu1 %1231 }
 0x349   : > { %v6472_v2 = vpop.eup %6471  ;;  %6483 = vrcp.f32 %v1232_v59 }
 0x34a   : > { %v1266_v56 = vmul.f32 %v6472_v2, %v7172_v51  ;;  %v6474_v57 = vpop.eup %6473  ;;  %6485 = vrcp.f32 %v1234_v40 }
 0x34b   : > { %v1267_v31 = vmul.f32 %v6474_v57, %v7168_v45 }
 0x34c   : > { %v1238_v1 = vpop.xlane.xlu0 %1237  ;;  %v1236_v20 = vpop.xlane.xlu1 %1235  ;;  %v1281_v4 = vpack.c.bf16 %v1266_v56, %v1265_v25 }
 0x34d   : > { %v6476_v28 = vpop.eup %6475  ;;  %6487 = vrcp.f32 %v1236_v20 }
 0x34e   : > { %5786 = vmatprep.mubr.bf16.mxu0 %v1281_v4  ;;  %v1268_v33 = vmul.f32 %v6476_v28, %v7176_v19  ;;  %v6478_v29 = vpop.eup %6477  ;;  %6489 = vrcp.f32 %v1238_v1 }
 0x34f   : > { %v1269_v41 = vmul.f32 %v6478_v29, %v7180_v26 }
 0x350   : > { %v1242_v32 = vpop.xlane.xlu0 %1241  ;;  %v1240_v34 = vpop.xlane.xlu1 %1239  ;;  %v1282_v51 = vpack.c.bf16 %v1268_v33, %v1267_v31 }
 0x351   : > { %6491 = vrcp.f32 %v1240_v34 }
 0x352   : > { %v6480_v42 = vpop.eup %6479  ;;  %5787 = vmatmul.mubr.bf16.vlgmr.msra.gmra.mxu0 %v1282_v51  ;;  %6493 = vrcp.f32 %v1242_v32  ;;  %v5192_v51 = vld [vmem:[%s8898_s2 + $0x1] ss:$0 sm:$0xff] }
 0x353   : > { %v1270_v45 = vmul.f32 %v6480_v42, %v7188_v38  ;;  %5803 = vmatpush3.bf16.msra.mxu0 %v7223_v13  ;;  %v6482_v0 = vpop.eup %6481 }
 0x354   : > { %v1246_v19 = vpop.xlane.xlu0 %1245  ;;  %v1244_v53 = vpop.xlane.xlu1 %1243  ;;  %5804 = vmatprep.subr.bf16.mxu0 %v6414_v37  ;;  %v1271_v26 = vmul.f32 %v6482_v0, %v7186_v52 }
 0x355   : > { %v1283_v3 = vpack.c.bf16 %v1270_v45, %v1269_v41  ;;  %6495 = vrcp.f32 %v1244_v53 }
 0x356   : > { %v6484_v48 = vpop.eup %6483  ;;  %6497 = vrcp.f32 %v1246_v19 }
 0x357   : > { %5790 = vmatprep.mubr.bf16.mxu0 %v1283_v3  ;;  %v1272_v38 = vmul.f32 %v6484_v48, %v7193_v5  ;;  %5805 = vmatpush3.bf16.msra.mxu0 %v6414_v37  ;;  %v6486_v7 = vpop.eup %6485 }
 0x358   : > { %v1248_v63 = vpop.xlane.xlu1 %1247  ;;  %v1273_v35 = vmul.f32 %v6486_v7, %v7195_v47 }
 0x359   : > { %6499 = vrcp.f32 %v1248_v63  ;;  %v1284_v13 = vpack.c.bf16 %v1272_v38, %v1271_v26 }
 0x35a   : > { %v6488_v15 = vpop.eup %6487 }
 0x35b   : > { %5791 = vmatmul.mubr.bf16.gmra.mxu0 %v1284_v13  ;;  %v1274_v16 = vmul.f32 %v6488_v15, %v7201_v55  ;;  %v6490_v39 = vpop.eup %6489 }
 0x35c   : > { %v1275_v5 = vmul.f32 %v6490_v39, %v7199_v8 }
 0x35d   : > { %v1285_v44 = vpack.c.bf16 %v1274_v16, %v1273_v35 }
 0x35e   : > { %v6492_v52 = vpop.eup %6491 }
 0x35f   : > { %5794 = vmatprep.mubr.bf16.mxu0 %v1285_v44  ;;  %v1276_v30 = vmul.f32 %v6492_v52, %v7205_v50  ;;  %v6494_v54 = vpop.eup %6493 }
 0x360   : > { %v1277_v55 = vmul.f32 %v6494_v54, %v7207_v62 }
 0x361   : > { %v1286_v17 = vpack.c.bf16 %v1276_v30, %v1275_v5 }
 0x362   : > { %v6496_v47 = vpop.eup %6495 }
 0x363   : > { %v6498_v60 = vpop.eup %6497  ;;  %5795 = vmatmul.mubr.bf16.gmra.mxu0 %v1286_v17  ;;  %v1278_v46 = vmul.f32 %v6496_v47, %v7213_v12 }
 0x364   : > { %v1279_v2 = vmul.f32 %v6498_v60, %v7211_v9 }
 0x365   : > { %v1287_v59 = vpack.c.bf16 %v1278_v46, %v1277_v55 }
 0x366   : > { %v6500_v40 = vpop.eup %6499 }
 0x367   : > { %v1280_v8 = vmul.f32 %v6500_v40, %v7217_v58  ;;  %5798 = vmatprep.mubr.bf16.mxu0 %v1287_v59 }
 0x369   : > { %v1288_v50 = vpack.c.bf16 %v1280_v8, %v1279_v2 }
 0x36b   : > { %5799 = vmatmul.mubr.bf16.gmra.mxu0 %v1288_v50 }
 0x36c   : > { %5806 = vmatprep.mubr.msk.bf16.mxu0 %vm597_vm0, %v6925_v18 }
 0x373   : > { %5807 = vmatmul.mubr.msk.bf16.vlgmr.msra.gmra.mxu0 %vm597_vm0, %v6932_v22 }
 0x374   : > { %5810 = vmatprep.mubr.msk.bf16.mxu0 %vm597_vm0, %v6934_v23 }
 0x37b   : > { %5811 = vmatmul.mubr.msk.bf16.gmra.mxu0 %vm597_vm0, %v6950_v27 }
 0x37c   : > { %5814 = vmatprep.mubr.msk.bf16.mxu0 %vm597_vm0, %v6904_v6 }
 0x383   : > { %5815 = vmatmul.mubr.msk.bf16.gmra.mxu0 %vm597_vm0, %v6909_v10 }
 0x384   : > { %5818 = vmatprep.mubr.msk.bf16.mxu0 %vm597_vm0, %v6911_v11 }
 0x38b   : > { %5819 = vmatmul.mubr.msk.bf16.gmra.mxu0 %vm597_vm0, %v6940_v24 }
 0x38c   : > { %5846 = vmatprep.mubr.msk.bf16.mxu0 %vm597_vm0, %v6925_v18 }
 0x412   : > { %v7309_v62 = vpop.f32.mrf.mxu0 }
 0x413   : > { %8932 = vst [vmem:[#allocation2_spill] sm:$0xff] %v7309_v62 }
 0x414   : > { %v7311_v9 = vpop.f32.mrf.mxu0 }
 0x415   : > { %8933 = vst [vmem:[#allocation3_spill] sm:$0xff] %v7311_v9 }
 0x416   : > { %v7313_v12 = vpop.f32.mrf.mxu0 }
 0x417   : > { %8934 = vst [vmem:[#allocation4_spill] sm:$0xff] %v7313_v12 }
 0x418   : > { %v7315_v58 = vpop.f32.mrf.mxu0 }
 0x419   : > { %8935 = vst [vmem:[#allocation5_spill] sm:$0xff] %v7315_v58 }
 0x41b   : > { %v7317_v61 = vpop.f32.mrf.mxu0 }
 0x41c   : > { %8936 = vst [vmem:[#allocation6_spill] sm:$0xff] %v7317_v61 }
 0x41d   : > { %v7319_v49 = vpop.f32.mrf.mxu0 }
 0x41e   : > { %8937 = vst [vmem:[#allocation7_spill] sm:$0xff] %v7319_v49 }
 0x41f   : > { %v7321_v21 = vpop.f32.mrf.mxu0 }
 0x420   : > { %8938 = vst [vmem:[#allocation8_spill] sm:$0xff] %v7321_v21 }
 0x421   : > { %v7323_v25 = vpop.f32.mrf.mxu0 }
 0x422   : > { %8939 = vst [vmem:[#allocation9_spill] sm:$0xff] %v7323_v25 }
 0x423   : > { %v7325_v56 = vpop.f32.mrf.mxu0 }
 0x424   : > { %8940 = vst [vmem:[#allocation10_spill] sm:$0xff] %v7325_v56 }
 0x425   : > { %v7327_v57 = vpop.f32.mrf.mxu0 }
 0x426   : > { %8941 = vst [vmem:[#allocation11_spill] sm:$0xff] %v7327_v57 }
 0x427   : > { %v7329_v1 = vpop.f32.mrf.mxu0 }
 0x428   : > { %8942 = vst [vmem:[#allocation12_spill] sm:$0xff] %v7329_v1 }
 0x429   : > { %v7331_v20 = vpop.f32.mrf.mxu0 }
 0x42a   : > { %8943 = vst [vmem:[#allocation13_spill] sm:$0xff] %v7331_v20 }
 0x42b   : > { %v7333_v4 = vpop.f32.mrf.mxu0 }
 0x42c   : > { %8944 = vst [vmem:[#allocation14_spill] sm:$0xff] %v7333_v4 }
 0x42d   : > { %v7335_v28 = vpop.f32.mrf.mxu0 }
 0x42e   : > { %8945 = vst [vmem:[#allocation15_spill] sm:$0xff] %v7335_v28 }
 0x42f   : > { %v7337_v31 = vpop.f32.mrf.mxu0 }
 0x430   : > { %8946 = vst [vmem:[#allocation16_spill] sm:$0xff] %v7337_v31 }
 0x431   : > { %v7339_v33 = vpop.f32.mrf.mxu0 }
 0x432   : > { %8947 = vst [vmem:[#allocation17_spill] sm:$0xff] %v7339_v33 }
 0x433   : > { %v5808_v29 = vpop.f32.mrf.mxu0 }
 0x434   : > { %v1462_v45 = vadd.f32 %v5808_v29, %v5192_v51 }
 0x435   : > { %v1453_v32 = vpop.f32.mrf.mxu0 }
 0x436   : > { %v1454_v43 = vadd.f32 %v5192_v51, %v1453_v32  ;;  %v6415_v32 = vld [vmem:[%s8901_s5 + $0x18] sm:$0xff]  }
 0x437   : > { %v5809_v34 = vpop.f32.mrf.mxu0  ;;  %5842 = vmatprep.subr.bf16.mxu0 %v6415_v32 }
 0x438   : > { %v1465_v37 = vadd.f32 %v5809_v34, %v5192_v51  ;;  %5843 = vmatpush3.bf16.msra.mxu0 %v6415_v32  ;;  %v6416_v34 = vld [vmem:[%s8901_s5 + $0x10] sm:$0xff]  }
 0x439   : > { %v1456_v42 = vpop.f32.mrf.mxu0  ;;  %5844 = vmatprep.subr.bf16.mxu0 %v6416_v34 }
 0x43a   : > { %v1457_v41 = vadd.f32 %v5192_v51, %v1456_v42  ;;  %v1761_v0 = vpack.c.bf16 %v1465_v37, %v1462_v45 }
 0x43b   : > { %v5812_v19 = vpop.f32.mrf.mxu0 }
 0x43c   : > { %v1760_v53 = vpack.c.bf16 %v1457_v41, %v1454_v43  ;;  %v1478_v13 = vadd.f32 %v5812_v19, %v5192_v51  ;;  %5845 = vmatpush3.bf16.msra.mxu0 %v6416_v34 }
 0x43d   : > { %v1469_v3 = vpop.f32.mrf.mxu0 }
 0x43e   : > { %5878 = vmatprep.mubr.msk.bf16.mxu1 %vm975_vm1, %v1760_v53  ;;  %v1470_v38 = vadd.f32 %v5192_v51, %v1469_v3 }
 0x43f   : > { %v5813_v48 = vpop.f32.mrf.mxu0  ;;  %5879 = vmatmul.mubr.msk.bf16.vlgmr.msra.gmra.mxu1 %vm975_vm1, %v1761_v0  ;;  %5847 = vmatmul.mubr.msk.bf16.vlgmr.msra.gmra.mxu0 %vm597_vm0, %v6932_v22 }
 0x440   : > { %v1481_v63 = vadd.f32 %v5813_v48, %v5192_v51  ;;  %5850 = vmatprep.mubr.msk.bf16.mxu0 %vm597_vm0, %v6934_v23 }
 0x441   : > { %v1472_v26 = vpop.f32.mrf.mxu0 }
 0x442   : > { %v1473_v7 = vadd.f32 %v5192_v51, %v1472_v26  ;;  %v1763_v35 = vpack.c.bf16 %v1481_v63, %v1478_v13 }
 0x443   : > { %v5816_v14 = vpop.f32.mrf.mxu0 }
 0x444   : > { %v1762_v15 = vpack.c.bf16 %v1473_v7, %v1470_v38  ;;  %v1494_v54 = vadd.f32 %v5816_v14, %v5192_v51 }
 0x445   : > { %v1485_v16 = vpop.f32.mrf.mxu0 }
 0x446   : > { %5882 = vmatprep.mubr.msk.bf16.mxu1 %vm975_vm1, %v1762_v15  ;;  %v1486_v5 = vadd.f32 %v5192_v51, %v1485_v16 }
 0x447   : > { %v5817_v39 = vpop.f32.mrf.mxu0  ;;  %5883 = vmatmul.mubr.msk.bf16.gmra.mxu1 %vm975_vm1, %v1763_v35  ;;  %5851 = vmatmul.mubr.msk.bf16.gmra.mxu0 %vm597_vm0, %v6950_v27 }
 0x448   : > { %v1497_v44 = vadd.f32 %v5817_v39, %v5192_v51  ;;  %5854 = vmatprep.mubr.msk.bf16.mxu0 %vm597_vm0, %v6904_v6 }
 0x449   : > { %v1488_v52 = vpop.f32.mrf.mxu0 }
 0x44a   : > { %v1489_v30 = vadd.f32 %v5192_v51, %v1488_v52  ;;  %v1765_v47 = vpack.c.bf16 %v1497_v44, %v1494_v54 }
 0x44b   : > { %v5820_v17 = vpop.f32.mrf.mxu0 }
 0x44c   : > { %v1764_v36 = vpack.c.bf16 %v1489_v30, %v1486_v5  ;;  %v1510_v8 = vadd.f32 %v5820_v17, %v5192_v51 }
 0x44d   : > { %v1501_v60 = vpop.f32.mrf.mxu0 }
 0x44e   : > { %5886 = vmatprep.mubr.msk.bf16.mxu1 %vm975_vm1, %v1764_v36  ;;  %v1502_v59 = vadd.f32 %v5192_v51, %v1501_v60 }
 0x44f   : > { %v5821_v55 = vpop.f32.mrf.mxu0  ;;  %5887 = vmatmul.mubr.msk.bf16.gmra.mxu1 %vm975_vm1, %v1765_v47  ;;  %5855 = vmatmul.mubr.msk.bf16.gmra.mxu0 %vm597_vm0, %v6909_v10 }
 0x450   : > { %v1513_v46 = vadd.f32 %v5821_v55, %v5192_v51  ;;  %5858 = vmatprep.mubr.msk.bf16.mxu0 %vm597_vm0, %v6911_v11 }
 0x451   : > { %v1504_v40 = vpop.f32.mrf.mxu0 }
 0x452   : > { %v1505_v2 = vadd.f32 %v5192_v51, %v1504_v40  ;;  %v1767_v29 = vpack.c.bf16 %v1513_v46, %v1510_v8  ;;  %v6417_v40 = vld [vmem:[%s8899_s3 + $0x28] sm:$0xff]  }
 0x453   : > { %5946 = vmatprep.subr.bf16.mxu1 %v6417_v40 }
 0x454   : > { %v1766_v50 = vpack.c.bf16 %v1505_v2, %v1502_v59  ;;  %5947 = vmatpush3.bf16.msra.mxu1 %v6417_v40  ;;  %v6418_v59 = vld [vmem:[%s8899_s3 + $0x20] sm:$0xff]  }
 0x455   : > { %5948 = vmatprep.subr.bf16.mxu1 %v6418_v59 }
 0x456   : > { %5890 = vmatprep.mubr.msk.bf16.mxu1 %vm975_vm1, %v1766_v50 }
 0x457   : > { %5891 = vmatmul.mubr.msk.bf16.gmra.mxu1 %vm975_vm1, %v1767_v29  ;;  %5859 = vmatmul.mubr.msk.bf16.gmra.mxu0 %vm597_vm0, %v6940_v24 }
 0x458   : > { %5950 = vmatprep.mubr.msk.bf16.mxu1 %vm597_vm0, %v6925_v18  ;;  %5949 = vmatpush3.bf16.msra.mxu1 %v6418_v59 }
 0x45f   : > { %5951 = vmatmul.mubr.msk.bf16.vlgmr.msra.gmra.mxu1 %vm597_vm0, %v6932_v22 }
 0x460   : > { %5954 = vmatprep.mubr.msk.bf16.mxu1 %vm597_vm0, %v6934_v23 }
 0x467   : > { %5955 = vmatmul.mubr.msk.bf16.gmra.mxu1 %vm597_vm0, %v6950_v27 }
 0x468   : > { %5958 = vmatprep.mubr.msk.bf16.mxu1 %vm597_vm0, %v6904_v6 }
 0x46f   : > { %5959 = vmatmul.mubr.msk.bf16.gmra.mxu1 %vm597_vm0, %v6909_v10 }
 0x470   : > { %5962 = vmatprep.mubr.msk.bf16.mxu1 %vm597_vm0, %v6911_v11 }
 0x477   : > { %5963 = vmatmul.mubr.msk.bf16.gmra.mxu1 %vm597_vm0, %v6940_v24 }
 0x4ff   : > { %v5880_v51 = vpop.f32.mrf.mxu1  ;;  %v5848_v2 = vpop.f32.mrf.mxu0 }
 0x500   : > { %v7377_v45 = vmul.f32 0.35355338, %v5880_v51 }
 0x501   : > { %v1858_v37 = vpop.f32.mrf.mxu1  ;;  %v1697_v8 = vpop.f32.mrf.mxu0 }
 0x502   : > { %v7374_v42 = vmul.f32 0.35355338, %v1858_v37 }
 0x503   : > { %v5881_v43 = vpop.f32.mrf.mxu1  ;;  %v5849_v50 = vpop.f32.mrf.mxu0 }
 0x504   : > { %1937 = vmax.xlane.f32.xlu0 %v7374_v42  ;;  %v7383_v3 = vmul.f32 0.35355338, %v5881_v43 }
 0x505   : > { %v1861_v41 = vpop.f32.mrf.mxu1  ;;  %v1700_v29 = vpop.f32.mrf.mxu0 }
 0x506   : > { %v7379_v19 = vmul.f32 0.35355338, %v1861_v41 }
 0x507   : > { %v5884_v53 = vpop.f32.mrf.mxu1  ;;  %v5852_v32 = vpop.f32.mrf.mxu0 }
 0x508   : > { %1941 = vmax.xlane.f32.xlu0 %v7377_v45  ;;  %1939 = vmax.xlane.f32.xlu1 %v7379_v19  ;;  %v7389_v38 = vmul.f32 0.35355338, %v5884_v53 }
 0x509   : > { %v1874_v0 = vpop.f32.mrf.mxu1  ;;  %v1713_v34 = vpop.f32.mrf.mxu0 }
 0x50a   : > { %v7385_v48 = vmul.f32 0.35355338, %v1874_v0 }
 0x50b   : > { %v5885_v63 = vpop.f32.mrf.mxu1  ;;  %v5853_v51 = vpop.f32.mrf.mxu0 }
 0x50c   : > { %1943 = vmax.xlane.f32.xlu1 %v7383_v3  ;;  %1945 = vmax.xlane.f32.xlu0 %v7385_v48  ;;  %v7395_v15 = vmul.f32 0.35355338, %v5885_v63  ;;  %v5224_v63 = vld [vmem:[%s8902_s6 + $0x1] ss:$0 sm:$0xff] }
 0x50d   : > { %v1877_v26 = vpop.f32.mrf.mxu1  ;;  %v1716_v37 = vpop.f32.mrf.mxu0  ;;  %v1722_v56 = vadd.f32 %v5852_v32, %v5224_v63  ;;  %v1725_v1 = vadd.f32 %v5853_v51, %v5224_v63 }
 0x50e   : > { %v7391_v7 = vmul.f32 0.35355338, %v1877_v26 }
 0x50f   : > { %v5888_v13 = vpop.f32.mrf.mxu1  ;;  %v5856_v43 = vpop.f32.mrf.mxu0 }
 0x510   : > { %1949 = vmax.xlane.f32.xlu0 %v7389_v38  ;;  %1947 = vmax.xlane.f32.xlu1 %v7391_v7  ;;  %v7401_v44 = vmul.f32 0.35355338, %v5888_v13 }
 0x511   : > { %v1890_v14 = vpop.f32.mrf.mxu1  ;;  %v1729_v41 = vpop.f32.mrf.mxu0 }
 0x512   : > { %v7397_v35 = vmul.f32 0.35355338, %v1890_v14  ;;  %v1730_v33 = vadd.f32 %v5224_v63, %v1729_v41  ;;  %v1698_v41 = vadd.f32 %v5224_v63, %v1697_v8 }
 0x513   : > { %v5889_v16 = vpop.f32.mrf.mxu1  ;;  %v5857_v53 = vpop.f32.mrf.mxu0 }
 0x514   : > { %1951 = vmax.xlane.f32.xlu1 %v7395_v15  ;;  %1953 = vmax.xlane.f32.xlu0 %v7397_v35  ;;  %v7407_v54 = vmul.f32 0.35355338, %v5889_v16 }
 0x515   : > { %v1893_v39 = vpop.f32.mrf.mxu1  ;;  %v1732_v0 = vpop.f32.mrf.mxu0 }
 0x516   : > { %v7403_v52 = vmul.f32 0.35355338, %v1893_v39  ;;  %v1733_v31 = vadd.f32 %v5224_v63, %v1732_v0  ;;  %v1701_v0 = vadd.f32 %v5224_v63, %v1700_v29 }
 0x517   : > { %v5892_v5 = vpop.f32.mrf.mxu1  ;;  %v5860_v26 = vpop.f32.mrf.mxu0 }
 0x518   : > { %1957 = vmax.xlane.f32.xlu0 %v7401_v44  ;;  %1955 = vmax.xlane.f32.xlu1 %v7403_v52  ;;  %v7413_v60 = vmul.f32 0.35355338, %v5892_v5  ;;  %v1754_v14 = vadd.f32 %v5860_v26, %v5224_v63  ;;  %v2093_v57 = vpack.c.bf16 %v1733_v31, %v1730_v33  ;;  %v1714_v26 = vadd.f32 %v5224_v63, %v1713_v34 }
 0x519   : > { %v1906_v30 = vpop.f32.mrf.mxu1  ;;  %v1745_v13 = vpop.f32.mrf.mxu0 }
 0x51a   : > { %v7409_v17 = vmul.f32 0.35355338, %v1906_v30  ;;  %v1746_v39 = vadd.f32 %v5224_v63, %v1745_v13  ;;  %v2092_v13 = vpack.c.bf16 %v1725_v1, %v1722_v56 }
 0x51b   : > { %v5893_v36 = vpop.f32.mrf.mxu1  ;;  %v5861_v16 = vpop.f32.mrf.mxu0 }
 0x51c   : > { %1959 = vmax.xlane.f32.xlu1 %v7407_v54  ;;  %1961 = vmax.xlane.f32.xlu0 %v7409_v17  ;;  %v7419_v46 = vmul.f32 0.35355338, %v5893_v36  ;;  %v1757_v5 = vadd.f32 %v5861_v16, %v5224_v63  ;;  %v1738_v36 = vadd.f32 %v5856_v43, %v5224_v63  ;;  %v1717_v16 = vadd.f32 %v5224_v63, %v1716_v37 }
 0x51d   : > { %v1909_v47 = vpop.f32.mrf.mxu1  ;;  %v1748_v30 = vpop.f32.mrf.mxu0  ;;  %v1706_v43 = vadd.f32 %v5848_v2, %v5224_v63 }
 0x51e   : > { %v7415_v55 = vmul.f32 0.35355338, %v1909_v47  ;;  %v1741_v47 = vadd.f32 %v5857_v53, %v5224_v63  ;;  %v2096_v40 = vpack.c.bf16 %v1757_v5, %v1754_v14  ;;  %v1749_v59 = vadd.f32 %v5224_v63, %v1748_v30 }
 0x51f   : > { %v1709_v53 = vadd.f32 %v5849_v50, %v5224_v63  ;;  %v2091_v14 = vpack.c.bf16 %v1717_v16, %v1714_v26 }
 0x520   : > { %1965 = vmax.xlane.f32.xlu0 %v7413_v60  ;;  %1963 = vmax.xlane.f32.xlu1 %v7415_v55  ;;  %v2095_v28 = vpack.c.bf16 %v1749_v59, %v1746_v39  ;;  %v2094_v4 = vpack.c.bf16 %v1741_v47, %v1738_v36 }
 0x521   : > { %5894 = vmatprep.subr.bf16.mxu0 %v2096_v40  ;;  %v2090_v39 = vpack.c.bf16 %v1709_v53, %v1706_v43 }
 0x522   : > { %5895 = vmatpush3.bf16.msra.mxu0 %v2096_v40 }
 0x523   : > { %5896 = vmatprep.subr.bf16.mxu0 %v2095_v28 }
 0x524   : > { %1967 = vmax.xlane.f32.xlu1 %v7419_v46 }
 0x526   : > { %5897 = vmatpush3.bf16.msra.mxu0 %v2095_v28  ;;  %v2089_v28 = vpack.c.bf16 %v1701_v0, %v1698_v41 }
 0x527   : > { %5898 = vmatprep.subr.bf16.mxu0 %v2094_v4 }
 0x52a   : > { %5899 = vmatpush3.bf16.msra.mxu0 %v2094_v4 }
 0x52b   : > { %5900 = vmatprep.subr.bf16.mxu0 %v2093_v57 }
 0x52e   : > { %5901 = vmatpush3.bf16.msra.mxu0 %v2093_v57 }
 0x52f   : > { %5902 = vmatprep.subr.bf16.mxu0 %v2092_v13 }
 0x532   : > { %5903 = vmatpush3.bf16.msra.mxu0 %v2092_v13 }
 0x533   : > { %5904 = vmatprep.subr.bf16.mxu0 %v2091_v14 }
 0x536   : > { %5905 = vmatpush3.bf16.msra.mxu0 %v2091_v14 }
 0x537   : > { %5906 = vmatprep.subr.bf16.mxu0 %v2090_v39 }
 0x53a   : > { %5907 = vmatpush3.bf16.msra.mxu0 %v2090_v39 }
 0x53b   : > { %5908 = vmatprep.subr.bf16.mxu0 %v2089_v28 }
 0x53e   : > { %5909 = vmatpush3.bf16.msra.mxu0 %v2089_v28 }
 0x58d   : > { %v1938_v4 = vpop.xlane.xlu0 %1937 }
 0x58e   : > { %v1969_v56 = vsub.f32 %v7374_v42, %v1938_v4 }
 0x590   : > { %v1985_v1 = vmul.f32 1.442695, %v1969_v56 }
 0x591   : > { %v1942_v57 = vpop.xlane.xlu0 %1941  ;;  %v1940_v31 = vpop.xlane.xlu1 %1939 }
 0x592   : > { %6501 = vpow2.f32 %v1985_v1  ;;  %v1971_v33 = vsub.f32 %v7377_v45, %v1942_v57  ;;  %v1970_v2 = vsub.f32 %v7379_v19, %v1940_v31 }
 0x594   : > { %v1989_v8 = vmul.f32 1.442695, %v1971_v33  ;;  %v1987_v50 = vmul.f32 1.442695, %v1970_v2 }
 0x595   : > { %v1944_v29 = vpop.xlane.xlu1 %1943  ;;  %v1946_v32 = vpop.xlane.xlu0 %1945 }
 0x596   : > { %6503 = vpow2.f32 %v1989_v8  ;;  %v1972_v34 = vsub.f32 %v7383_v3, %v1944_v29  ;;  %v1973_v51 = vsub.f32 %v7385_v48, %v1946_v32 }
 0x597   : > { %6505 = vpow2.f32 %v1987_v50 }
 0x598   : > { %v1991_v37 = vmul.f32 1.442695, %v1972_v34  ;;  %v1993_v42 = vmul.f32 1.442695, %v1973_v51 }
 0x599   : > { %v1950_v63 = vpop.xlane.xlu0 %1949  ;;  %v1948_v5 = vpop.xlane.xlu1 %1947 }
 0x59a   : > { %6507 = vpow2.f32 %v1991_v37  ;;  %v1975_v30 = vsub.f32 %v7389_v38, %v1950_v63  ;;  %v1974_v45 = vsub.f32 %v7391_v7, %v1948_v5 }
 0x59b   : > { %6509 = vpow2.f32 %v1993_v42 }
 0x59c   : > { %v1997_v19 = vmul.f32 1.442695, %v1975_v30  ;;  %v1995_v36 = vmul.f32 1.442695, %v1974_v45  ;;  %v7512_v30 = vld [vmem:[%s8930_s28 + $0x28] sm:$0xff]   ;;  %v5952_v45 = vpop.f32.mrf.mxu1 }
 0x59d   : > { %v1952_v47 = vpop.xlane.xlu1 %1951  ;;  %v1954_v40 = vpop.xlane.xlu0 %1953  ;;  %5926 = vmatprep.subr.bf16.mxu0 %v7512_v30 }
 0x59e   : > { %6511 = vpow2.f32 %v1997_v19  ;;  %v1976_v3 = vsub.f32 %v7395_v15, %v1952_v47  ;;  %v1977_v48 = vsub.f32 %v7397_v35, %v1954_v40  ;;  %v7518_v19 = vld [vmem:[%s8900_s4 + $0x2] ss:$0 sm:$0xff] }
 0x59f   : > { %v7454_v59 = vpop.eup %6501  ;;  %6513 = vpow2.f32 %v1995_v36  ;;  %v2375_v36 = vpop.f32.mrf.mxu1  ;;  %v2384_v47 = vadd.f32 %v5952_v45, %v7518_v19 }
 0x5a0   : > { %v1999_v26 = vmul.f32 1.442695, %v1976_v3  ;;  %v2001_v13 = vmul.f32 1.442695, %v1977_v48  ;;  %2017 = vadd.xlane.f32.xlu0 %v7454_v59  ;;  %v2376_v3 = vadd.f32 %v7518_v19, %v2375_v36 }
 0x5a1   : > { %v1958_v38 = vpop.xlane.xlu0 %1957  ;;  %v1956_v16 = vpop.xlane.xlu1 %1955 }
 0x5a2   : > { %6515 = vpow2.f32 %v1999_v26  ;;  %v1979_v7 = vsub.f32 %v7401_v44, %v1958_v38  ;;  %v1978_v43 = vsub.f32 %v7403_v52, %v1956_v16  ;;  %v5953_v40 = vpop.f32.mrf.mxu1 }
 0x5a3   : > { %v7459_v53 = vpop.eup %6503  ;;  %6517 = vpow2.f32 %v2001_v13  ;;  %v2387_v48 = vadd.f32 %v5953_v40, %v7518_v19 }
 0x5a4   : > { %v7461_v15 = vpop.eup %6505  ;;  %v2005_v35 = vmul.f32 1.442695, %v1979_v7  ;;  %v2003_v14 = vmul.f32 1.442695, %v1978_v43  ;;  %2021 = vadd.xlane.f32.xlu0 %v7459_v53  ;;  %v2378_v26 = vpop.f32.mrf.mxu1 }
 0x5a5   : > { %2019 = vadd.xlane.f32.xlu1 %v7461_v15  ;;  %v1960_v41 = vpop.xlane.xlu1 %1959  ;;  %v1962_v39 = vpop.xlane.xlu0 %1961  ;;  %v7523_v13 = vpack.c.bf16 %v2387_v48, %v2384_v47  ;;  %v2379_v38 = vadd.f32 %v7518_v19, %v2378_v26 }
 0x5a6   : > { %6519 = vpow2.f32 %v2005_v35  ;;  %v1980_v0 = vsub.f32 %v7407_v54, %v1960_v41  ;;  %v1981_v44 = vsub.f32 %v7409_v17, %v1962_v39  ;;  %v5956_v16 = vpop.f32.mrf.mxu1 }
 0x5a7   : > { %v7467_v28 = vpop.eup %6507  ;;  %6521 = vpow2.f32 %v2003_v14  ;;  %v7526_v7 = vpack.c.bf16 %v2379_v38, %v2376_v3 }
 0x5a8   : > { %v7469_v52 = vpop.eup %6509  ;;  %v2007_v4 = vmul.f32 1.442695, %v1980_v0  ;;  %v2009_v56 = vmul.f32 1.442695, %v1981_v44  ;;  %v2391_v43 = vpop.f32.mrf.mxu1 }
 0x5a9   : > { %2025 = vadd.xlane.f32.xlu0 %v7469_v52  ;;  %2023 = vadd.xlane.f32.xlu1 %v7467_v28  ;;  %v1966_v1 = vpop.xlane.xlu0 %1965  ;;  %v1964_v57 = vpop.xlane.xlu1 %1963 }
 0x5aa   : > { %6523 = vpow2.f32 %v2007_v4  ;;  %v1983_v31 = vsub.f32 %v7413_v60, %v1966_v1  ;;  %v1982_v54 = vsub.f32 %v7415_v55, %v1964_v57  ;;  %v5957_v35 = vpop.f32.mrf.mxu1 }
 0x5ab   : > { %v7475_v33 = vpop.eup %6511  ;;  %6525 = vpow2.f32 %v2009_v56 }
 0x5ac   : > { %v7477_v17 = vpop.eup %6513  ;;  %v2013_v2 = vmul.f32 1.442695, %v1983_v31  ;;  %v2011_v8 = vmul.f32 1.442695, %v1982_v54  ;;  %v2394_v14 = vpop.f32.mrf.mxu1 }
 0x5ad   : > { %2029 = vadd.xlane.f32.xlu0 %v7475_v33  ;;  %2027 = vadd.xlane.f32.xlu1 %v7477_v17  ;;  %v1968_v50 = vpop.xlane.xlu1 %1967 }
 0x5ae   : > { %6527 = vpow2.f32 %v2013_v2  ;;  %v1984_v29 = vsub.f32 %v7419_v46, %v1968_v50  ;;  %v5960_v41 = vpop.f32.mrf.mxu1 }
 0x5af   : > { %v7482_v32 = vpop.eup %6515  ;;  %6529 = vpow2.f32 %v2011_v8  ;;  %v2416_v45 = vadd.f32 %v5960_v41, %v7518_v19 }
 0x5b0   : > { %v7484_v60 = vpop.eup %6517  ;;  %v2015_v55 = vmul.f32 1.442695, %v1984_v29  ;;  %v2407_v39 = vpop.f32.mrf.mxu1 }
 0x5b1   : > { %2033 = vadd.xlane.f32.xlu0 %v7484_v60  ;;  %2031 = vadd.xlane.f32.xlu1 %v7482_v32  ;;  %v2408_v3 = vadd.f32 %v7518_v19, %v2407_v39 }
 0x5b2   : > { %6531 = vpow2.f32 %v2015_v55  ;;  %v5961_v0 = vpop.f32.mrf.mxu1 }
 0x5b3   : > { %v7488_v34 = vpop.eup %6519  ;;  %v2419_v36 = vadd.f32 %v5961_v0, %v7518_v19  ;;  %v2400_v0 = vadd.f32 %v5956_v16, %v7518_v19  ;;  %v2395_v16 = vadd.f32 %v7518_v19, %v2394_v14 }
 0x5b4   : > { %v7490_v51 = vpop.eup %6521  ;;  %v2410_v44 = vpop.f32.mrf.mxu1 }
 0x5b5   : > { %2037 = vadd.xlane.f32.xlu0 %v7488_v34  ;;  %2035 = vadd.xlane.f32.xlu1 %v7490_v51  ;;  %v2573_v47 = vpack.c.bf16 %v2419_v36, %v2416_v45  ;;  %v2411_v48 = vadd.f32 %v7518_v19, %v2410_v44 }
 0x5b6   : > { %v5964_v4 = vpop.f32.mrf.mxu1 }
 0x5b7   : > { %v7494_v46 = vpop.eup %6523  ;;  %v2432_v1 = vadd.f32 %v5964_v4, %v7518_v19  ;;  %v2572_v38 = vpack.c.bf16 %v2411_v48, %v2408_v3  ;;  %v2616_v4 = vsel %vm975_vm1, %v2573_v47, 0 }
 0x5b8   : > { %v7496_v37 = vpop.eup %6525  ;;  %v2423_v56 = vpop.f32.mrf.mxu1 }
 0x5b9   : > { %2041 = vadd.xlane.f32.xlu0 %v7496_v37  ;;  %2039 = vadd.xlane.f32.xlu1 %v7494_v46  ;;  %v2424_v31 = vadd.f32 %v7518_v19, %v2423_v56 }
 0x5ba   : > { %v5965_v57 = vpop.f32.mrf.mxu1 }
 0x5bb   : > { %v7500_v42 = vpop.eup %6527  ;;  %v2435_v54 = vadd.f32 %v5965_v57, %v7518_v19 }
 0x5bc   : > { %v7502_v63 = vpop.eup %6529  ;;  %v2426_v2 = vpop.f32.mrf.mxu1 }
 0x5bd   : > { %2045 = vadd.xlane.f32.xlu0 %v7500_v42  ;;  %2043 = vadd.xlane.f32.xlu1 %v7502_v63  ;;  %v2575_v8 = vpack.c.bf16 %v2435_v54, %v2432_v1  ;;  %v2427_v50 = vadd.f32 %v7518_v19, %v2426_v2  ;;  %v2403_v1 = vadd.f32 %v5957_v35, %v7518_v19 }
 0x5bf   : > { %v7506_v5 = vpop.eup %6531  ;;  %6258 = vmatprep.subr.msk.bf16.mxu1 %vm975_vm1, %v2575_v8  ;;  %v2622_v29 = vsel %vm975_vm1, %v2575_v8, 0  ;;  %v2574_v55 = vpack.c.bf16 %v2427_v50, %v2424_v31  ;;  %v2571_v57 = vpack.c.bf16 %v2403_v1, %v2400_v0  ;;  %v2613_v31 = vsel %vm975_vm1, %v2572_v38, 0 }
 0x5c0   : > { %5987 = vmatpush3.bf16.xpose.msra.mxu1 %v2622_v29  ;;  %v2392_v8 = vadd.f32 %v7518_v19, %v2391_v43 }
 0x5c1   : > { %2047 = vadd.xlane.f32.xlu1 %v7506_v5  ;;  %6259 = vmatprep.subr.msk.bf16.mxu1 %vm975_vm1, %v2574_v55  ;;  %v2619_v40 = vsel %vm975_vm1, %v2574_v55, 0  ;;  %v2610_v36 = vsel %vm975_vm1, %v2571_v57, 0 }
 0x5c2   : > { %v2570_v45 = vpack.c.bf16 %v2395_v16, %v2392_v8 }
 0x5c4   : > { %v2607_v0 = vsel %vm975_vm1, %v2570_v45, 0 }
 0x5c8   : > { %5989 = vmatpush3.bf16.xpose.msra.mxu1 %v2619_v40 }
 0x5c9   : > { %6260 = vmatprep.subr.msk.bf16.mxu1 %vm975_vm1, %v2573_v47 }
 0x5d0   : > { %5991 = vmatpush3.bf16.xpose.msra.mxu1 %v2616_v4 }
 0x5d1   : > { %6261 = vmatprep.subr.msk.bf16.mxu1 %vm975_vm1, %v2572_v38 }
 0x5d8   : > { %5993 = vmatpush3.bf16.xpose.msra.mxu1 %v2613_v31 }
 0x5d9   : > { %6262 = vmatprep.subr.msk.bf16.mxu1 %vm975_vm1, %v2571_v57 }
 0x5e0   : > { %5995 = vmatpush3.bf16.xpose.msra.mxu1 %v2610_v36 }
 0x5e1   : > { %6263 = vmatprep.subr.msk.bf16.mxu1 %vm975_vm1, %v2570_v45 }
 0x5e8   : > { %5997 = vmatpush3.bf16.xpose.msra.mxu1 %v2607_v0 }
 0x5e9   : > { %6264 = vmatprep.subr.msk.bf16.mxu1 %vm975_vm1, %v7523_v13 }
 0x629   : > { %v2018_v26 = vpop.xlane.xlu0 %2017 }
 0x62a   : > { %6533 = vrcp.f32 %v2018_v26 }
 0x62d   : > { %v2022_v41 = vpop.xlane.xlu0 %2021 }
 0x62e   : > { %v2020_v56 = vpop.xlane.xlu1 %2019 }
 0x62f   : > { %6535 = vrcp.f32 %v2020_v56  ;;  %v6420_v56 = vld [vmem:[%s8930_s28 + $0x20] sm:$0xff]  }
 0x630   : > { %6537 = vrcp.f32 %v2022_v41 }
 0x632   : > { %v2026_v39 = vpop.xlane.xlu0 %2025  ;;  %v2024_v44 = vpop.xlane.xlu1 %2023 }
 0x633   : > { %6539 = vrcp.f32 %v2024_v44 }
 0x634   : > { %6541 = vrcp.f32 %v2026_v39 }
 0x636   : > { %v2030_v54 = vpop.xlane.xlu0 %2029  ;;  %v2028_v2 = vpop.xlane.xlu1 %2027 }
 0x637   : > { %6543 = vrcp.f32 %v2028_v2  ;;  %v6534_v35 = vpop.eup %6533 }
 0x638   : > { %6545 = vrcp.f32 %v2030_v54  ;;  %v2065_v47 = vmul.f32 %v6534_v35, %v7454_v59 }
 0x63a   : > { %v2034_v50 = vpop.xlane.xlu0 %2033  ;;  %v2032_v29 = vpop.xlane.xlu1 %2031 }
 0x63b   : > { %6547 = vrcp.f32 %v2032_v29 }
 0x63c   : > { %v6536_v55 = vpop.eup %6535  ;;  %6549 = vrcp.f32 %v2034_v50 }
 0x63d   : > { %v2066_v40 = vmul.f32 %v6536_v55, %v7461_v15  ;;  %v6538_v48 = vpop.eup %6537 }
 0x63e   : > { %v2038_v3 = vpop.xlane.xlu0 %2037  ;;  %v2036_v43 = vpop.xlane.xlu1 %2035  ;;  %v2067_v4 = vmul.f32 %v6538_v48, %v7459_v53 }
 0x63f   : > { %v2081_v19 = vpack.c.bf16 %v2066_v40, %v2065_v47  ;;  %6551 = vrcp.f32 %v2036_v43  ;;  %v2601_v40 = vsel %vm975_vm1, %v7526_v7, 0 }
 0x640   : > { %v6540_v14 = vpop.eup %6539  ;;  %6553 = vrcp.f32 %v2038_v3 }
 0x641   : > { %5910 = vmatprep.mubr.bf16.mxu0 %v2081_v19  ;;  %v2068_v59 = vmul.f32 %v6540_v14, %v7467_v28  ;;  %v6542_v41 = vpop.eup %6541 }
 0x642   : > { %v2042_v26 = vpop.xlane.xlu0 %2041  ;;  %v2040_v38 = vpop.xlane.xlu1 %2039  ;;  %v2069_v57 = vmul.f32 %v6542_v41, %v7469_v52 }
 0x643   : > { %6555 = vrcp.f32 %v2040_v38  ;;  %v2082_v15 = vpack.c.bf16 %v2068_v59, %v2067_v4 }
 0x644   : > { %v6544_v1 = vpop.eup %6543  ;;  %6557 = vrcp.f32 %v2042_v26 }
 0x645   : > { %5911 = vmatmul.mubr.bf16.vlgmr.msra.gmra.mxu0 %v2082_v15  ;;  %v2070_v53 = vmul.f32 %v6544_v1, %v7477_v17  ;;  %v6546_v31 = vpop.eup %6545  ;;  %v5280_v1 = vld [vmem:[%s8902_s6 + $0x2] ss:$0 sm:$0xff] }
 0x646   : > { %v2046_v39 = vpop.xlane.xlu0 %2045  ;;  %v2044_v44 = vpop.xlane.xlu1 %2043  ;;  %5927 = vmatpush3.bf16.msra.mxu0 %v7512_v30  ;;  %v2071_v8 = vmul.f32 %v6546_v31, %v7475_v33  ;;  %v2604_v30 = vsel %vm975_vm1, %v7523_v13, 0 }
 0x647   : > { %6559 = vrcp.f32 %v2044_v44  ;;  %v2083_v28 = vpack.c.bf16 %v2070_v53, %v2069_v57  ;;  %5928 = vmatprep.subr.bf16.mxu0 %v6420_v56  ;;  %5999 = vmatpush3.bf16.xpose.msra.mxu1 %v2604_v30 }
 0x648   : > { %v6548_v54 = vpop.eup %6547  ;;  %6561 = vrcp.f32 %v2046_v39  ;;  %6265 = vmatprep.subr.msk.bf16.mxu1 %vm975_vm1, %v7526_v7 }
 0x649   : > { %5914 = vmatprep.mubr.bf16.mxu0 %v2083_v28  ;;  %v2072_v52 = vmul.f32 %v6548_v54, %v7482_v32  ;;  %v6550_v16 = vpop.eup %6549 }
 0x64a   : > { %v2048_v2 = vpop.xlane.xlu1 %2047  ;;  %5929 = vmatpush3.bf16.msra.mxu0 %v6420_v56  ;;  %v2073_v50 = vmul.f32 %v6550_v16, %v7484_v60 }
 0x64b   : > { %6563 = vrcp.f32 %v2048_v2  ;;  %v2084_v17 = vpack.c.bf16 %v2072_v52, %v2071_v8  ;;  %v5248_v52 = vld [vmem:[%s8898_s2 + $0x2] ss:$0 sm:$0xff] }
 0x64c   : > { %v6552_v35 = vpop.eup %6551 }
 0x64d   : > { %5915 = vmatmul.mubr.bf16.gmra.mxu0 %v2084_v17  ;;  %v2074_v29 = vmul.f32 %v6552_v35, %v7490_v51  ;;  %v6554_v55 = vpop.eup %6553 }
 0x64e   : > { %v2075_v32 = vmul.f32 %v6554_v55, %v7488_v34 }
 0x64f   : > { %v2085_v45 = vpack.c.bf16 %v2074_v29, %v2073_v50  ;;  %6001 = vmatpush3.bf16.xpose.msra.mxu1 %v2601_v40 }
 0x650   : > { %v6556_v33 = vpop.eup %6555 }
 0x651   : > { %5918 = vmatprep.mubr.bf16.mxu0 %v2085_v45  ;;  %v2076_v36 = vmul.f32 %v6556_v33, %v7494_v46  ;;  %v6558_v47 = vpop.eup %6557 }
 0x652   : > { %v2077_v51 = vmul.f32 %v6558_v47, %v7496_v37 }
 0x653   : > { %v2086_v13 = vpack.c.bf16 %v2076_v36, %v2075_v32 }
 0x654   : > { %v6560_v60 = vpop.eup %6559 }
 0x655   : > { %v6562_v3 = vpop.eup %6561  ;;  %5919 = vmatmul.mubr.bf16.gmra.mxu0 %v2086_v13  ;;  %v2078_v43 = vmul.f32 %v6560_v60, %v7502_v63 }
 0x656   : > { %v2079_v14 = vmul.f32 %v6562_v3, %v7500_v42 }
 0x657   : > { %v2087_v19 = vpack.c.bf16 %v2078_v43, %v2077_v51 }
 0x658   : > { %v6564_v48 = vpop.eup %6563 }
 0x659   : > { %v2080_v34 = vmul.f32 %v6564_v48, %v7506_v5  ;;  %5922 = vmatprep.mubr.bf16.mxu0 %v2087_v19 }
 0x65b   : > { %v2088_v46 = vpack.c.bf16 %v2080_v34, %v2079_v14 }
 0x65d   : > { %5923 = vmatmul.mubr.bf16.gmra.mxu0 %v2088_v46 }
 0x65e   : > { %5930 = vmatprep.mubr.msk.bf16.mxu0 %vm597_vm0, %v6925_v18 }
 0x665   : > { %5931 = vmatmul.mubr.msk.bf16.vlgmr.msra.gmra.mxu0 %vm597_vm0, %v6932_v22 }
 0x666   : > { %5934 = vmatprep.mubr.msk.bf16.mxu0 %vm597_vm0, %v6934_v23 }
 0x66d   : > { %5935 = vmatmul.mubr.msk.bf16.gmra.mxu0 %vm597_vm0, %v6950_v27 }
 0x66e   : > { %5938 = vmatprep.mubr.msk.bf16.mxu0 %vm597_vm0, %v6904_v6 }
 0x675   : > { %5939 = vmatmul.mubr.msk.bf16.gmra.mxu0 %vm597_vm0, %v6909_v10 }
 0x676   : > { %5942 = vmatprep.mubr.msk.bf16.mxu0 %vm597_vm0, %v6911_v11 }
 0x67d   : > { %5943 = vmatmul.mubr.msk.bf16.gmra.mxu0 %vm597_vm0, %v6940_v24 }
 0x67e   : > { %5970 = vmatprep.mubr.msk.bf16.mxu0 %vm597_vm0, %v6925_v18 }
 0x705   : > { %v7598_v37 = vpop.f32.mrf.mxu0 }
 0x707   : > { %v7600_v42 = vpop.f32.mrf.mxu0 }
 0x709   : > { %v7602_v63 = vpop.f32.mrf.mxu0 }
 0x70b   : > { %v7606_v7 = vpop.f32.mrf.mxu0 }
 0x70d   : > { %v7608_v26 = vpop.f32.mrf.mxu0 }
 0x70e   : > { %8948 = vst [vmem:[#allocation18_spill] sm:$0xff] %v7608_v26 }
 0x70f   : > { %v7610_v38 = vpop.f32.mrf.mxu0 }
 0x711   : > { %v7612_v4 = vpop.f32.mrf.mxu0 }
 0x713   : > { %v7616_v41 = vpop.f32.mrf.mxu0 }
 0x715   : > { %v7618_v15 = vpop.f32.mrf.mxu0 }
 0x716   : > { %8949 = vst [vmem:[#allocation19_spill] sm:$0xff] %v7618_v15 }
 0x717   : > { %v7620_v56 = vpop.f32.mrf.mxu0 }
 0x719   : > { %v7622_v0 = vpop.f32.mrf.mxu0 }
 0x71a   : > { %8950 = vst [vmem:[#allocation20_spill] sm:$0xff] %v7622_v0 }
 0x71b   : > { %v7626_v39 = vpop.f32.mrf.mxu0 }
 0x71d   : > { %v7628_v44 = vpop.f32.mrf.mxu0 }
 0x71e   : > { %8951 = vst [vmem:[#allocation21_spill] sm:$0xff] %v7628_v44 }
 0x71f   : > { %v7630_v57 = vpop.f32.mrf.mxu0 }
 0x720   : > { %8952 = vst [vmem:[#allocation22_spill] sm:$0xff] %v7630_v57 }
 0x721   : > { %v7632_v53 = vpop.f32.mrf.mxu0 }
 0x722   : > { %8953 = vst [vmem:[#allocation23_spill] sm:$0xff] %v7632_v53 }
 0x723   : > { %v7636_v28 = vpop.f32.mrf.mxu0 }
 0x724   : > { %8954 = vst [vmem:[#allocation24_spill] sm:$0xff] %v7636_v28 }
 0x725   : > { %v5932_v54 = vpop.f32.mrf.mxu0 }
 0x726   : > { %v2262_v50 = vadd.f32 %v5932_v54, %v5248_v52 }
 0x727   : > { %v2253_v2 = vpop.f32.mrf.mxu0 }
 0x728   : > { %v2254_v30 = vadd.f32 %v5248_v52, %v2253_v2 }
 0x729   : > { %v5933_v8 = vpop.f32.mrf.mxu0 }
 0x72a   : > { %v2265_v16 = vadd.f32 %v5933_v8, %v5248_v52 }
 0x72b   : > { %v2256_v17 = vpop.f32.mrf.mxu0 }
 0x72c   : > { %v2257_v35 = vadd.f32 %v5248_v52, %v2256_v17  ;;  %v2561_v45 = vpack.c.bf16 %v2265_v16, %v2262_v50 }
 0x72d   : > { %v5936_v29 = vpop.f32.mrf.mxu0 }
 0x72e   : > { %v2560_v55 = vpack.c.bf16 %v2257_v35, %v2254_v30  ;;  %v2278_v60 = vadd.f32 %v5936_v29, %v5248_v52 }
 0x72f   : > { %v2269_v33 = vpop.f32.mrf.mxu0 }
 0x730   : > { %6002 = vmatprep.mubr.msk.bf16.mxu1 %vm975_vm1, %v2560_v55  ;;  %v2270_v13 = vadd.f32 %v5248_v52, %v2269_v33 }
 0x731   : > { %v5937_v32 = vpop.f32.mrf.mxu0  ;;  %6003 = vmatmul.mubr.msk.bf16.vlgmr.msra.gmra.mxu1 %vm975_vm1, %v2561_v45 }
 0x732   : > { %v2281_v36 = vadd.f32 %v5937_v32, %v5248_v52 }
 0x733   : > { %v2272_v47 = vpop.f32.mrf.mxu0 }
 0x734   : > { %v2273_v40 = vadd.f32 %v5248_v52, %v2272_v47  ;;  %v2563_v43 = vpack.c.bf16 %v2281_v36, %v2278_v60  ;;  %v6421_v47 = vld [vmem:[%s8901_s5 + $0x28] sm:$0xff]  }
 0x735   : > { %v5940_v3 = vpop.f32.mrf.mxu0  ;;  %5966 = vmatprep.subr.bf16.mxu0 %v6421_v47 }
 0x736   : > { %v2562_v51 = vpack.c.bf16 %v2273_v40, %v2270_v13  ;;  %v2294_v2 = vadd.f32 %v5940_v3, %v5248_v52  ;;  %5967 = vmatpush3.bf16.msra.mxu0 %v6421_v47  ;;  %v6422_v13 = vld [vmem:[%s8901_s5 + $0x20] sm:$0xff]  }
 0x737   : > { %v2285_v48 = vpop.f32.mrf.mxu0  ;;  %5968 = vmatprep.subr.bf16.mxu0 %v6422_v13 }
 0x738   : > { %6006 = vmatprep.mubr.msk.bf16.mxu1 %vm975_vm1, %v2562_v51  ;;  %v2286_v46 = vadd.f32 %v5248_v52, %v2285_v48 }
 0x739   : > { %v5941_v19 = vpop.f32.mrf.mxu0  ;;  %6007 = vmatmul.mubr.msk.bf16.gmra.mxu1 %vm975_vm1, %v2563_v43 }
 0x73a   : > { %v2297_v14 = vadd.f32 %v5941_v19, %v5248_v52  ;;  %5969 = vmatpush3.bf16.msra.mxu0 %v6422_v13 }
 0x73b   : > { %v2288_v34 = vpop.f32.mrf.mxu0 }
 0x73c   : > { %v2289_v54 = vadd.f32 %v5248_v52, %v2288_v34  ;;  %v2565_v17 = vpack.c.bf16 %v2297_v14, %v2294_v2 }
 0x73d   : > { %v5944_v8 = vpop.f32.mrf.mxu0  ;;  %5971 = vmatmul.mubr.msk.bf16.vlgmr.msra.gmra.mxu0 %vm597_vm0, %v6932_v22 }
 0x73e   : > { %v2564_v16 = vpack.c.bf16 %v2289_v54, %v2286_v46  ;;  %v2310_v33 = vadd.f32 %v5944_v8, %v5248_v52  ;;  %5974 = vmatprep.mubr.msk.bf16.mxu0 %vm597_vm0, %v6934_v23 }
 0x73f   : > { %v2301_v30 = vpop.f32.mrf.mxu0 }
 0x740   : > { %6010 = vmatprep.mubr.msk.bf16.mxu1 %vm975_vm1, %v2564_v16  ;;  %v2302_v55 = vadd.f32 %v5248_v52, %v2301_v30 }
 0x741   : > { %v5945_v35 = vpop.f32.mrf.mxu0  ;;  %6011 = vmatmul.mubr.msk.bf16.gmra.mxu1 %vm975_vm1, %v2565_v17 }
 0x742   : > { %v2313_v50 = vadd.f32 %v5945_v35, %v5248_v52 }
 0x743   : > { %v2304_v29 = vpop.f32.mrf.mxu0 }
 0x744   : > { %v2305_v45 = vadd.f32 %v5248_v52, %v2304_v29  ;;  %v2567_v36 = vpack.c.bf16 %v2313_v50, %v2310_v33 }
 0x745   : > { %5975 = vmatmul.mubr.msk.bf16.gmra.mxu0 %vm597_vm0, %v6950_v27 }
 0x746   : > { %v2566_v32 = vpack.c.bf16 %v2305_v45, %v2302_v55  ;;  %5978 = vmatprep.mubr.msk.bf16.mxu0 %vm597_vm0, %v6904_v6 }
 0x748   : > { %6014 = vmatprep.mubr.msk.bf16.mxu1 %vm975_vm1, %v2566_v32 }
 0x749   : > { %6015 = vmatmul.mubr.msk.bf16.gmra.mxu1 %vm975_vm1, %v2567_v36 }
 0x74a   : > { %6074 = vmatprep.mubr.msk.bf16.mxu1 %vm597_vm0, %v6925_v18 }
 0x74d   : > { %5979 = vmatmul.mubr.msk.bf16.gmra.mxu0 %vm597_vm0, %v6909_v10 }
 0x74e   : > { %5982 = vmatprep.mubr.msk.bf16.mxu0 %vm597_vm0, %v6911_v11 }
 0x755   : > { %5983 = vmatmul.mubr.msk.bf16.gmra.mxu0 %vm597_vm0, %v6940_v24 }
 0x7f1   : > { %v6004_v52 = vpop.f32.mrf.mxu1 }
 0x7f2   : > { %v7674_v43 = vmul.f32 0.35355338, %v6004_v52 }
 0x7f3   : > { %v2658_v40 = vpop.f32.mrf.mxu1 }
 0x7f4   : > { %v7671_v60 = vmul.f32 0.35355338, %v2658_v40 }
 0x7f5   : > { %v6005_v3 = vpop.f32.mrf.mxu1 }
 0x7f6   : > { %2737 = vmax.xlane.f32.xlu0 %v7671_v60  ;;  %v7680_v34 = vmul.f32 0.35355338, %v6005_v3 }
 0x7f7   : > { %v2661_v51 = vpop.f32.mrf.mxu1 }
 0x7f8   : > { %v7676_v48 = vmul.f32 0.35355338, %v2661_v51 }
 0x7f9   : > { %v6008_v19 = vpop.f32.mrf.mxu1 }
 0x7fa   : > { %2741 = vmax.xlane.f32.xlu0 %v7674_v43  ;;  %2739 = vmax.xlane.f32.xlu1 %v7676_v48  ;;  %v7686_v8 = vmul.f32 0.35355338, %v6008_v19 }
 0x7fb   : > { %v2674_v14 = vpop.f32.mrf.mxu1 }
 0x7fc   : > { %v7682_v46 = vmul.f32 0.35355338, %v2674_v14  ;;  %v6423_v14 = vld [vmem:[%s8899_s3 + $0x38] sm:$0xff]  }
 0x7fd   : > { %v6009_v54 = vpop.f32.mrf.mxu1  ;;  %6070 = vmatprep.subr.bf16.mxu1 %v6423_v14 }
 0x7fe   : > { %2743 = vmax.xlane.f32.xlu1 %v7680_v34  ;;  %2745 = vmax.xlane.f32.xlu0 %v7682_v46  ;;  %v7692_v35 = vmul.f32 0.35355338, %v6009_v54  ;;  %v6424_v54 = vld [vmem:[%s8899_s3 + $0x30] sm:$0xff]  }
 0x7ff   : > { %v2677_v2 = vpop.f32.mrf.mxu1  ;;  %6071 = vmatpush3.bf16.msra.mxu1 %v6423_v14 }
 0x800   : > { %v7688_v16 = vmul.f32 0.35355338, %v2677_v2  ;;  %6072 = vmatprep.subr.bf16.mxu1 %v6424_v54  ;;  %v5972_v2 = vpop.f32.mrf.mxu0 }
 0x801   : > { %v6012_v17 = vpop.f32.mrf.mxu1 }
 0x802   : > { %2749 = vmax.xlane.f32.xlu0 %v7686_v8  ;;  %2747 = vmax.xlane.f32.xlu1 %v7688_v16  ;;  %v7698_v45 = vmul.f32 0.35355338, %v6012_v17  ;;  %v2497_v17 = vpop.f32.mrf.mxu0 }
 0x803   : > { %v2690_v30 = vpop.f32.mrf.mxu1  ;;  %6073 = vmatpush3.bf16.msra.mxu1 %v6424_v54 }
 0x804   : > { %v7694_v50 = vmul.f32 0.35355338, %v2690_v30  ;;  %v5973_v30 = vpop.f32.mrf.mxu0 }
 0x805   : > { %v6013_v29 = vpop.f32.mrf.mxu1 }
 0x806   : > { %2751 = vmax.xlane.f32.xlu1 %v7692_v35  ;;  %2753 = vmax.xlane.f32.xlu0 %v7694_v50  ;;  %v7704_v47 = vmul.f32 0.35355338, %v6013_v29  ;;  %v2500_v29 = vpop.f32.mrf.mxu0 }
 0x807   : > { %v2693_v55 = vpop.f32.mrf.mxu1  ;;  %6075 = vmatmul.mubr.msk.bf16.vlgmr.msra.gmra.mxu1 %vm597_vm0, %v6932_v22 }
 0x808   : > { %v7700_v33 = vmul.f32 0.35355338, %v2693_v55  ;;  %6078 = vmatprep.mubr.msk.bf16.mxu1 %vm597_vm0, %v6934_v23  ;;  %v5976_v55 = vpop.f32.mrf.mxu0 }
 0x809   : > { %v6016_v32 = vpop.f32.mrf.mxu1  ;;  %v2522_v15 = vadd.f32 %v5976_v55, %v5280_v1 }
 0x80a   : > { %2757 = vmax.xlane.f32.xlu0 %v7698_v45  ;;  %2755 = vmax.xlane.f32.xlu1 %v7700_v33  ;;  %v7710_v3 = vmul.f32 0.35355338, %v6016_v32  ;;  %v2513_v32 = vpop.f32.mrf.mxu0 }
 0x80b   : > { %v2706_v36 = vpop.f32.mrf.mxu1 }
 0x80c   : > { %v7706_v13 = vmul.f32 0.35355338, %v2706_v36  ;;  %v5977_v36 = vpop.f32.mrf.mxu0 }
 0x80d   : > { %v6017_v52 = vpop.f32.mrf.mxu1  ;;  %v2525_v0 = vadd.f32 %v5977_v36, %v5280_v1 }
 0x80e   : > { %2759 = vmax.xlane.f32.xlu1 %v7704_v47  ;;  %2761 = vmax.xlane.f32.xlu0 %v7706_v13  ;;  %v7716_v19 = vmul.f32 0.35355338, %v6017_v52  ;;  %v2516_v52 = vpop.f32.mrf.mxu0 }
 0x80f   : > { %v2709_v40 = vpop.f32.mrf.mxu1  ;;  %6079 = vmatmul.mubr.msk.bf16.gmra.mxu1 %vm597_vm0, %v6950_v27 }
 0x810   : > { %v7712_v51 = vmul.f32 0.35355338, %v2709_v40  ;;  %6082 = vmatprep.mubr.msk.bf16.mxu1 %vm597_vm0, %v6904_v6  ;;  %v5980_v40 = vpop.f32.mrf.mxu0 }
 0x811   : > { %v2538_v62 = vadd.f32 %v5980_v40, %v5280_v1 }
 0x812   : > { %2765 = vmax.xlane.f32.xlu0 %v7710_v3  ;;  %2763 = vmax.xlane.f32.xlu1 %v7712_v51  ;;  %v2529_v14 = vpop.f32.mrf.mxu0 }
 0x813   : > { %v2530_v53 = vadd.f32 %v5280_v1, %v2529_v14 }
 0x814   : > { %v5981_v54 = vpop.f32.mrf.mxu0 }
 0x815   : > { %v2541_v12 = vadd.f32 %v5981_v54, %v5280_v1 }
 0x816   : > { %2767 = vmax.xlane.f32.xlu1 %v7716_v19  ;;  %v2532_v31 = vpop.f32.mrf.mxu0 }
 0x817   : > { %6083 = vmatmul.mubr.msk.bf16.gmra.mxu1 %vm597_vm0, %v6909_v10  ;;  %v2894_v28 = vpack.c.bf16 %v2541_v12, %v2538_v62  ;;  %v2533_v57 = vadd.f32 %v5280_v1, %v2532_v31  ;;  %v2501_v12 = vadd.f32 %v5280_v1, %v2500_v29 }
 0x818   : > { %6086 = vmatprep.mubr.msk.bf16.mxu1 %vm597_vm0, %v6911_v11  ;;  %v5984_v59 = vpop.f32.mrf.mxu0 }
 0x819   : > { %v2554_v20 = vadd.f32 %v5984_v59, %v5280_v1  ;;  %v2893_v26 = vpack.c.bf16 %v2533_v57, %v2530_v53  ;;  %v2517_v59 = vadd.f32 %v5280_v1, %v2516_v52 }
 0x81a   : > { %v2545_v5 = vpop.f32.mrf.mxu0 }
 0x81b   : > { %v2546_v21 = vadd.f32 %v5280_v1, %v2545_v5  ;;  %v2514_v5 = vadd.f32 %v5280_v1, %v2513_v32 }
 0x81c   : > { %v5985_v61 = vpop.f32.mrf.mxu0 }
 0x81d   : > { %v2557_v49 = vadd.f32 %v5985_v61, %v5280_v1  ;;  %v2892_v61 = vpack.c.bf16 %v2525_v0, %v2522_v15 }
 0x81e   : > { %v2548_v25 = vpop.f32.mrf.mxu0 }
 0x81f   : > { %6087 = vmatmul.mubr.msk.bf16.gmra.mxu1 %vm597_vm0, %v6940_v24  ;;  %v2896_v9 = vpack.c.bf16 %v2557_v49, %v2554_v20  ;;  %v2549_v58 = vadd.f32 %v5280_v1, %v2548_v25  ;;  %v2506_v49 = vadd.f32 %v5972_v2, %v5280_v1  ;;  %v2509_v25 = vadd.f32 %v5973_v30, %v5280_v1 }
 0x821   : > { %v2895_v44 = vpack.c.bf16 %v2549_v58, %v2546_v21  ;;  %6018 = vmatprep.subr.bf16.mxu0 %v2896_v9  ;;  %v2891_v58 = vpack.c.bf16 %v2517_v59, %v2514_v5  ;;  %v2890_v62 = vpack.c.bf16 %v2509_v25, %v2506_v49 }
 0x822   : > { %6019 = vmatpush3.bf16.msra.mxu0 %v2896_v9  ;;  %v2498_v9 = vadd.f32 %v5280_v1, %v2497_v17 }
 0x823   : > { %6020 = vmatprep.subr.bf16.mxu0 %v2895_v44 }
 0x824   : > { %v2889_v21 = vpack.c.bf16 %v2501_v12, %v2498_v9 }
 0x826   : > { %6021 = vmatpush3.bf16.msra.mxu0 %v2895_v44 }
 0x827   : > { %6022 = vmatprep.subr.bf16.mxu0 %v2894_v28 }
 0x82a   : > { %6023 = vmatpush3.bf16.msra.mxu0 %v2894_v28 }
 0x82b   : > { %6024 = vmatprep.subr.bf16.mxu0 %v2893_v26 }
 0x82e   : > { %6025 = vmatpush3.bf16.msra.mxu0 %v2893_v26 }
 0x82f   : > { %6026 = vmatprep.subr.bf16.mxu0 %v2892_v61 }
 0x832   : > { %6027 = vmatpush3.bf16.msra.mxu0 %v2892_v61 }
 0x833   : > { %6028 = vmatprep.subr.bf16.mxu0 %v2891_v58 }
 0x836   : > { %6029 = vmatpush3.bf16.msra.mxu0 %v2891_v58 }
 0x837   : > { %6030 = vmatprep.subr.bf16.mxu0 %v2890_v62 }
 0x83a   : > { %6031 = vmatpush3.bf16.msra.mxu0 %v2890_v62 }
 0x83b   : > { %6032 = vmatprep.subr.bf16.mxu0 %v2889_v21 }
 0x83e   : > { %6033 = vmatpush3.bf16.msra.mxu0 %v2889_v21 }
 0x87f   : > { %v2738_v20 = vpop.xlane.xlu0 %2737 }
 0x880   : > { %v2769_v15 = vsub.f32 %v7671_v60, %v2738_v20 }
 0x882   : > { %v2785_v0 = vmul.f32 1.442695, %v2769_v15 }
 0x883   : > { %v2742_v26 = vpop.xlane.xlu0 %2741  ;;  %v2740_v44 = vpop.xlane.xlu1 %2739 }
 0x884   : > { %6565 = vpow2.f32 %v2785_v0  ;;  %v2771_v57 = vsub.f32 %v7674_v43, %v2742_v26  ;;  %v2770_v53 = vsub.f32 %v7676_v48, %v2740_v44 }
 0x886   : > { %v2789_v31 = vmul.f32 1.442695, %v2771_v57  ;;  %v2787_v1 = vmul.f32 1.442695, %v2770_v53 }
 0x887   : > { %v2744_v28 = vpop.xlane.xlu1 %2743  ;;  %v2746_v2 = vpop.xlane.xlu0 %2745 }
 0x888   : > { %6567 = vpow2.f32 %v2789_v31  ;;  %v2772_v17 = vsub.f32 %v7680_v34, %v2744_v28  ;;  %v2773_v30 = vsub.f32 %v7682_v46, %v2746_v2 }
 0x889   : > { %6569 = vpow2.f32 %v2787_v1 }
 0x88a   : > { %v2791_v29 = vmul.f32 1.442695, %v2772_v17  ;;  %v2793_v60 = vmul.f32 1.442695, %v2773_v30 }
 0x88b   : > { %v2750_v55 = vpop.xlane.xlu0 %2749  ;;  %v2748_v32 = vpop.xlane.xlu1 %2747 }
 0x88c   : > { %6571 = vpow2.f32 %v2791_v29  ;;  %v2775_v36 = vsub.f32 %v7686_v8, %v2750_v55  ;;  %v2774_v43 = vsub.f32 %v7688_v16, %v2748_v32 }
 0x88d   : > { %6573 = vpow2.f32 %v2793_v60 }
 0x88e   : > { %v2797_v48 = vmul.f32 1.442695, %v2775_v36  ;;  %v2795_v52 = vmul.f32 1.442695, %v2774_v43  ;;  %v7809_v36 = vld [vmem:[%s8930_s28 + $0x38] sm:$0xff]  }
 0x88f   : > { %v2752_v40 = vpop.xlane.xlu1 %2751  ;;  %v2754_v14 = vpop.xlane.xlu0 %2753  ;;  %6050 = vmatprep.subr.bf16.mxu0 %v7809_v36 }
 0x890   : > { %6575 = vpow2.f32 %v2797_v48  ;;  %v2776_v34 = vsub.f32 %v7692_v35, %v2752_v40  ;;  %v2777_v46 = vsub.f32 %v7694_v50, %v2754_v14  ;;  %v7815_v48 = vld [vmem:[%s8900_s4 + $0x3] ss:$0 sm:$0xff] }
 0x891   : > { %v7751_v54 = vpop.eup %6565  ;;  %6577 = vpow2.f32 %v2795_v52 }
 0x892   : > { %v2799_v5 = vmul.f32 1.442695, %v2776_v34  ;;  %v2801_v61 = vmul.f32 1.442695, %v2777_v46  ;;  %2817 = vadd.xlane.f32.xlu0 %v7751_v54 }
 0x893   : > { %v2758_v8 = vpop.xlane.xlu0 %2757  ;;  %v2756_v59 = vpop.xlane.xlu1 %2755 }
 0x894   : > { %6579 = vpow2.f32 %v2799_v5  ;;  %v2779_v16 = vsub.f32 %v7698_v45, %v2758_v8  ;;  %v2778_v49 = vsub.f32 %v7700_v33, %v2756_v59 }
 0x895   : > { %v7756_v25 = vpop.eup %6567  ;;  %6581 = vpow2.f32 %v2801_v61 }
 0x896   : > { %v7758_v35 = vpop.eup %6569  ;;  %v2805_v50 = vmul.f32 1.442695, %v2779_v16  ;;  %v2803_v58 = vmul.f32 1.442695, %v2778_v49  ;;  %2821 = vadd.xlane.f32.xlu0 %v7756_v25 }
 0x897   : > { %2819 = vadd.xlane.f32.xlu1 %v7758_v35  ;;  %v2760_v9 = vpop.xlane.xlu1 %2759  ;;  %v2762_v62 = vpop.xlane.xlu0 %2761 }
 0x898   : > { %6583 = vpow2.f32 %v2805_v50  ;;  %v2780_v12 = vsub.f32 %v7704_v47, %v2760_v9  ;;  %v2781_v45 = vsub.f32 %v7706_v13, %v2762_v62 }
 0x899   : > { %v7764_v21 = vpop.eup %6571  ;;  %6585 = vpow2.f32 %v2803_v58 }
 0x89a   : > { %v7766_v33 = vpop.eup %6573  ;;  %v2807_v20 = vmul.f32 1.442695, %v2780_v12  ;;  %v2809_v15 = vmul.f32 1.442695, %v2781_v45 }
 0x89b   : > { %2825 = vadd.xlane.f32.xlu0 %v7766_v33  ;;  %2823 = vadd.xlane.f32.xlu1 %v7764_v21  ;;  %v2766_v0 = vpop.xlane.xlu0 %2765  ;;  %v2764_v26 = vpop.xlane.xlu1 %2763 }
 0x89c   : > { %6587 = vpow2.f32 %v2807_v20  ;;  %v2783_v44 = vsub.f32 %v7710_v3, %v2766_v0  ;;  %v2782_v47 = vsub.f32 %v7712_v51, %v2764_v26 }
 0x89d   : > { %v7772_v57 = vpop.eup %6575  ;;  %6589 = vpow2.f32 %v2809_v15 }
 0x89e   : > { %v7774_v13 = vpop.eup %6577  ;;  %v2813_v53 = vmul.f32 1.442695, %v2783_v44  ;;  %v2811_v31 = vmul.f32 1.442695, %v2782_v47 }
 0x89f   : > { %2829 = vadd.xlane.f32.xlu0 %v7772_v57  ;;  %2827 = vadd.xlane.f32.xlu1 %v7774_v13  ;;  %v2768_v1 = vpop.xlane.xlu1 %2767 }
 0x8a0   : > { %6591 = vpow2.f32 %v2813_v53  ;;  %v2784_v28 = vsub.f32 %v7716_v19, %v2768_v1 }
 0x8a1   : > { %v7779_v2 = vpop.eup %6579  ;;  %6593 = vpow2.f32 %v2811_v31 }
 0x8a2   : > { %v7781_v3 = vpop.eup %6581  ;;  %v2815_v51 = vmul.f32 1.442695, %v2784_v28 }
 0x8a3   : > { %2833 = vadd.xlane.f32.xlu0 %v7781_v3  ;;  %2831 = vadd.xlane.f32.xlu1 %v7779_v2 }
 0x8a4   : > { %6595 = vpow2.f32 %v2815_v51 }
 0x8a5   : > { %v7785_v17 = vpop.eup %6583 }
 0x8a6   : > { %v7787_v30 = vpop.eup %6585 }
 0x8a7   : > { %2837 = vadd.xlane.f32.xlu0 %v7785_v17  ;;  %2835 = vadd.xlane.f32.xlu1 %v7787_v30 }
 0x8a9   : > { %v7791_v19 = vpop.eup %6587 }
 0x8aa   : > { %v7793_v29 = vpop.eup %6589 }
 0x8ab   : > { %2841 = vadd.xlane.f32.xlu0 %v7793_v29  ;;  %2839 = vadd.xlane.f32.xlu1 %v7791_v19 }
 0x8ad   : > { %v7797_v60 = vpop.eup %6591 }
 0x8ae   : > { %v7799_v55 = vpop.eup %6593 }
 0x8af   : > { %2845 = vadd.xlane.f32.xlu0 %v7797_v60  ;;  %2843 = vadd.xlane.f32.xlu1 %v7799_v55 }
 0x8b1   : > { %v7803_v32 = vpop.eup %6595 }
 0x8b3   : > { %2847 = vadd.xlane.f32.xlu1 %v7803_v32 }
 0x8c7   : > { %v6076_v43 = vpop.f32.mrf.mxu1 }
 0x8c8   : > { %v3184_v40 = vadd.f32 %v6076_v43, %v7815_v48 }
 0x8c9   : > { %v3175_v52 = vpop.f32.mrf.mxu1 }
 0x8ca   : > { %v3176_v34 = vadd.f32 %v7815_v48, %v3175_v52 }
 0x8cb   : > { %v6077_v14 = vpop.f32.mrf.mxu1 }
 0x8cc   : > { %v3187_v46 = vadd.f32 %v6077_v14, %v7815_v48 }
 0x8cd   : > { %v3178_v5 = vpop.f32.mrf.mxu1 }
 0x8ce   : > { %v7820_v61 = vpack.c.bf16 %v3187_v46, %v3184_v40  ;;  %v3179_v8 = vadd.f32 %v7815_v48, %v3178_v5 }
 0x8cf   : > { %v6080_v59 = vpop.f32.mrf.mxu1 }
 0x8d0   : > { %v7823_v16 = vpack.c.bf16 %v3179_v8, %v3176_v34 }
 0x8d1   : > { %v3191_v49 = vpop.f32.mrf.mxu1 }
 0x8d3   : > { %v6081_v50 = vpop.f32.mrf.mxu1 }
 0x8d5   : > { %v3194_v58 = vpop.f32.mrf.mxu1 }
 0x8d7   : > { %v6084_v9 = vpop.f32.mrf.mxu1 }
 0x8d8   : > { %v3216_v43 = vadd.f32 %v6084_v9, %v7815_v48 }
 0x8d9   : > { %v3207_v62 = vpop.f32.mrf.mxu1 }
 0x8da   : > { %v3208_v34 = vadd.f32 %v7815_v48, %v3207_v62 }
 0x8db   : > { %v6085_v12 = vpop.f32.mrf.mxu1 }
 0x8dc   : > { %v3219_v52 = vadd.f32 %v6085_v12, %v7815_v48  ;;  %v3200_v12 = vadd.f32 %v6080_v59, %v7815_v48  ;;  %v3195_v59 = vadd.f32 %v7815_v48, %v3194_v58 }
 0x8dd   : > { %v3210_v45 = vpop.f32.mrf.mxu1 }
 0x8de   : > { %v3373_v40 = vpack.c.bf16 %v3219_v52, %v3216_v43  ;;  %v3211_v46 = vadd.f32 %v7815_v48, %v3210_v45 }
 0x8df   : > { %v6088_v20 = vpop.f32.mrf.mxu1 }
 0x8e0   : > { %v3232_v0 = vadd.f32 %v6088_v20, %v7815_v48  ;;  %v3372_v8 = vpack.c.bf16 %v3211_v46, %v3208_v34  ;;  %v3416_v20 = vsel %vm975_vm1, %v3373_v40, 0 }
 0x8e1   : > { %v3223_v15 = vpop.f32.mrf.mxu1 }
 0x8e2   : > { %v3224_v44 = vadd.f32 %v7815_v48, %v3223_v15 }
 0x8e3   : > { %v6089_v26 = vpop.f32.mrf.mxu1 }
 0x8e4   : > { %v3235_v47 = vadd.f32 %v6089_v26, %v7815_v48 }
 0x8e5   : > { %v3226_v53 = vpop.f32.mrf.mxu1 }
 0x8e6   : > { %v3375_v31 = vpack.c.bf16 %v3235_v47, %v3232_v0  ;;  %v3227_v1 = vadd.f32 %v7815_v48, %v3226_v53  ;;  %v3203_v0 = vadd.f32 %v6081_v50, %v7815_v48 }
 0x8e8   : > { %6266 = vmatprep.subr.msk.bf16.mxu1 %vm975_vm1, %v3375_v31  ;;  %v3422_v28 = vsel %vm975_vm1, %v3375_v31, 0  ;;  %v3374_v51 = vpack.c.bf16 %v3227_v1, %v3224_v44  ;;  %v3371_v26 = vpack.c.bf16 %v3203_v0, %v3200_v12  ;;  %v3413_v44 = vsel %vm975_vm1, %v3372_v8, 0 }
 0x8e9   : > { %6111 = vmatpush3.bf16.xpose.msra.mxu1 %v3422_v28  ;;  %v3192_v31 = vadd.f32 %v7815_v48, %v3191_v49 }
 0x8ea   : > { %6267 = vmatprep.subr.msk.bf16.mxu1 %vm975_vm1, %v3374_v51  ;;  %v3419_v14 = vsel %vm975_vm1, %v3374_v51, 0  ;;  %v3410_v52 = vsel %vm975_vm1, %v3371_v26, 0 }
 0x8eb   : > { %v3370_v43 = vpack.c.bf16 %v3195_v59, %v3192_v31 }
 0x8ed   : > { %v3407_v12 = vsel %vm975_vm1, %v3370_v43, 0 }
 0x8f1   : > { %6113 = vmatpush3.bf16.xpose.msra.mxu1 %v3419_v14 }
 0x8f2   : > { %6268 = vmatprep.subr.msk.bf16.mxu1 %vm975_vm1, %v3373_v40 }
 0x8f9   : > { %6115 = vmatpush3.bf16.xpose.msra.mxu1 %v3416_v20 }
 0x8fa   : > { %6269 = vmatprep.subr.msk.bf16.mxu1 %vm975_vm1, %v3372_v8 }
 0x901   : > { %6117 = vmatpush3.bf16.xpose.msra.mxu1 %v3413_v44 }
 0x902   : > { %6270 = vmatprep.subr.msk.bf16.mxu1 %vm975_vm1, %v3371_v26 }
 0x909   : > { %6119 = vmatpush3.bf16.xpose.msra.mxu1 %v3410_v52 }
 0x90a   : > { %6271 = vmatprep.subr.msk.bf16.mxu1 %vm975_vm1, %v3370_v43 }
 0x911   : > { %6121 = vmatpush3.bf16.xpose.msra.mxu1 %v3407_v12 }
 0x912   : > { %6272 = vmatprep.subr.msk.bf16.mxu1 %vm975_vm1, %v7820_v61 }
 0x91b   : > { %v2818_v5 = vpop.xlane.xlu0 %2817 }
 0x91c   : > { %6597 = vrcp.f32 %v2818_v5 }
 0x91f   : > { %v2822_v9 = vpop.xlane.xlu0 %2821 }
 0x920   : > { %v2820_v15 = vpop.xlane.xlu1 %2819 }
 0x921   : > { %6599 = vrcp.f32 %v2820_v15  ;;  %v6426_v15 = vld [vmem:[%s8930_s28 + $0x30] sm:$0xff]  }
 0x922   : > { %6601 = vrcp.f32 %v2822_v9 }
 0x924   : > { %v2826_v62 = vpop.xlane.xlu0 %2825  ;;  %v2824_v45 = vpop.xlane.xlu1 %2823 }
 0x925   : > { %6603 = vrcp.f32 %v2824_v45 }
 0x926   : > { %6605 = vrcp.f32 %v2826_v62 }
 0x928   : > { %v2830_v47 = vpop.xlane.xlu0 %2829  ;;  %v2828_v53 = vpop.xlane.xlu1 %2827 }
 0x929   : > { %6607 = vrcp.f32 %v2828_v53  ;;  %v6598_v50 = vpop.eup %6597 }
 0x92a   : > { %6609 = vrcp.f32 %v2830_v47  ;;  %v2865_v40 = vmul.f32 %v6598_v50, %v7751_v54 }
 0x92c   : > { %v2834_v1 = vpop.xlane.xlu0 %2833  ;;  %v2832_v28 = vpop.xlane.xlu1 %2831 }
 0x92d   : > { %6611 = vrcp.f32 %v2832_v28 }
 0x92e   : > { %v6600_v51 = vpop.eup %6599  ;;  %6613 = vrcp.f32 %v2834_v1 }
 0x92f   : > { %v2866_v14 = vmul.f32 %v6600_v51, %v7758_v35  ;;  %v6602_v46 = vpop.eup %6601 }
 0x930   : > { %v2838_v34 = vpop.xlane.xlu0 %2837  ;;  %v2836_v49 = vpop.xlane.xlu1 %2835  ;;  %v2867_v5 = vmul.f32 %v6602_v46, %v7756_v25 }
 0x931   : > { %v2881_v48 = vpack.c.bf16 %v2866_v14, %v2865_v40  ;;  %6615 = vrcp.f32 %v2836_v49  ;;  %v3401_v14 = vsel %vm975_vm1, %v7823_v16, 0 }
 0x932   : > { %v6604_v58 = vpop.eup %6603  ;;  %6617 = vrcp.f32 %v2838_v34 }
 0x933   : > { %6034 = vmatprep.mubr.bf16.mxu0 %v2881_v48  ;;  %v2868_v8 = vmul.f32 %v6604_v58, %v7764_v21  ;;  %v6606_v9 = vpop.eup %6605 }
 0x934   : > { %v2842_v20 = vpop.xlane.xlu0 %2841  ;;  %v2840_v54 = vpop.xlane.xlu1 %2839  ;;  %v2869_v25 = vmul.f32 %v6606_v9, %v7766_v33 }
 0x935   : > { %6619 = vrcp.f32 %v2840_v54  ;;  %v2882_v35 = vpack.c.bf16 %v2868_v8, %v2867_v5 }
 0x936   : > { %v6608_v0 = vpop.eup %6607  ;;  %6621 = vrcp.f32 %v2842_v20 }
 0x937   : > { %6035 = vmatmul.mubr.bf16.vlgmr.msra.gmra.mxu0 %v2882_v35  ;;  %v2870_v21 = vmul.f32 %v6608_v0, %v7774_v13  ;;  %v6610_v26 = vpop.eup %6609 }
 0x938   : > { %v2846_v62 = vpop.xlane.xlu0 %2845  ;;  %v2844_v45 = vpop.xlane.xlu1 %2843  ;;  %6051 = vmatpush3.bf16.msra.mxu0 %v7809_v36  ;;  %v2871_v31 = vmul.f32 %v6610_v26, %v7772_v57  ;;  %v3404_v36 = vsel %vm975_vm1, %v7820_v61, 0 }
 0x939   : > { %6623 = vrcp.f32 %v2844_v45  ;;  %v2883_v44 = vpack.c.bf16 %v2870_v21, %v2869_v25  ;;  %6052 = vmatprep.subr.bf16.mxu0 %v6426_v15  ;;  %6123 = vmatpush3.bf16.xpose.msra.mxu1 %v3404_v36  ;;  %v5304_v36 = vld [vmem:[%s8898_s2 + $0x3] ss:$0 sm:$0xff] }
 0x93a   : > { %v6612_v47 = vpop.eup %6611  ;;  %6625 = vrcp.f32 %v2846_v62  ;;  %6273 = vmatprep.subr.msk.bf16.mxu1 %vm975_vm1, %v7823_v16 }
 0x93b   : > { %6038 = vmatprep.mubr.bf16.mxu0 %v2883_v44  ;;  %v2872_v33 = vmul.f32 %v6612_v47, %v7779_v2  ;;  %v6614_v59 = vpop.eup %6613 }
 0x93c   : > { %v2848_v53 = vpop.xlane.xlu1 %2847  ;;  %6053 = vmatpush3.bf16.msra.mxu0 %v6426_v15  ;;  %v2873_v1 = vmul.f32 %v6614_v59, %v7781_v3 }
 0x93d   : > { %6627 = vrcp.f32 %v2848_v53  ;;  %v2884_v13 = vpack.c.bf16 %v2872_v33, %v2871_v31 }
 0x93e   : > { %v6616_v50 = vpop.eup %6615 }
 0x93f   : > { %6039 = vmatmul.mubr.bf16.gmra.mxu0 %v2884_v13  ;;  %v2874_v28 = vmul.f32 %v6616_v50, %v7787_v30  ;;  %v6618_v51 = vpop.eup %6617 }
 0x940   : > { %v2875_v2 = vmul.f32 %v6618_v51, %v7785_v17 }
 0x941   : > { %v2885_v43 = vpack.c.bf16 %v2874_v28, %v2873_v1  ;;  %6125 = vmatpush3.bf16.xpose.msra.mxu1 %v3401_v14 }
 0x942   : > { %v6620_v57 = vpop.eup %6619 }
 0x943   : > { %6042 = vmatprep.mubr.bf16.mxu0 %v2885_v43  ;;  %v2876_v52 = vmul.f32 %v6620_v57, %v7791_v19  ;;  %v6622_v40 = vpop.eup %6621 }
 0x944   : > { %v2877_v30 = vmul.f32 %v6622_v40, %v7793_v29 }
 0x945   : > { %v2886_v61 = vpack.c.bf16 %v2876_v52, %v2875_v2 }
 0x946   : > { %v6624_v3 = vpop.eup %6623 }
 0x947   : > { %v6626_v34 = vpop.eup %6625  ;;  %6043 = vmatmul.mubr.bf16.gmra.mxu0 %v2886_v61  ;;  %v2878_v49 = vmul.f32 %v6624_v3, %v7799_v55 }
 0x948   : > { %v2879_v58 = vmul.f32 %v6626_v34, %v7797_v60 }
 0x949   : > { %v2887_v48 = vpack.c.bf16 %v2878_v49, %v2877_v30 }
 0x94a   : > { %v6628_v46 = vpop.eup %6627 }
 0x94b   : > { %v2880_v17 = vmul.f32 %v6628_v46, %v7803_v32  ;;  %6046 = vmatprep.mubr.bf16.mxu0 %v2887_v48 }
 0x94d   : > { %v2888_v19 = vpack.c.bf16 %v2880_v17, %v2879_v58 }
 0x94f   : > { %6047 = vmatmul.mubr.bf16.gmra.mxu0 %v2888_v19 }
 0x950   : > { %6054 = vmatprep.mubr.msk.bf16.mxu0 %vm597_vm0, %v6925_v18 }
 0x957   : > { %6055 = vmatmul.mubr.msk.bf16.vlgmr.msra.gmra.mxu0 %vm597_vm0, %v6932_v22 }
 0x958   : > { %6058 = vmatprep.mubr.msk.bf16.mxu0 %vm597_vm0, %v6934_v23 }
 0x95f   : > { %6059 = vmatmul.mubr.msk.bf16.gmra.mxu0 %vm597_vm0, %v6950_v27 }
 0x960   : > { %6062 = vmatprep.mubr.msk.bf16.mxu0 %vm597_vm0, %v6904_v6 }
 0x967   : > { %6063 = vmatmul.mubr.msk.bf16.gmra.mxu0 %vm597_vm0, %v6909_v10 }
 0x968   : > { %6066 = vmatprep.mubr.msk.bf16.mxu0 %vm597_vm0, %v6911_v11 }
 0x96f   : > { %6067 = vmatmul.mubr.msk.bf16.gmra.mxu0 %vm597_vm0, %v6940_v24 }
 0x970   : > { %6094 = vmatprep.mubr.msk.bf16.mxu0 %vm597_vm0, %v6925_v18 }
 0x9f7   : > { %v7895_v29 = vpop.f32.mrf.mxu0 }
 0x9f9   : > { %v7897_v60 = vpop.f32.mrf.mxu0 }
 0x9fb   : > { %v7899_v55 = vpop.f32.mrf.mxu0 }
 0x9fd   : > { %v7903_v16 = vpop.f32.mrf.mxu0 }
 0x9ff   : > { %v7907_v8 = vpop.f32.mrf.mxu0 }
 0xa01   : > { %v7909_v20 = vpop.f32.mrf.mxu0 }
 0xa03   : > { %v7911_v54 = vpop.f32.mrf.mxu0 }
 0xa05   : > { %v7915_v9 = vpop.f32.mrf.mxu0 }
 0xa07   : > { %v7919_v15 = vpop.f32.mrf.mxu0 }
 0xa08   : > { %8955 = vst [vmem:[#allocation25_spill] sm:$0xff] %v7919_v15 }
 0xa09   : > { %v7921_v12 = vpop.f32.mrf.mxu0 }
 0xa0a   : > { %8956 = vst [vmem:[#allocation26_spill] sm:$0xff] %v7921_v12 }
 0xa0b   : > { %v7923_v0 = vpop.f32.mrf.mxu0 }
 0xa0c   : > { %8957 = vst [vmem:[#allocation27_spill] sm:$0xff] %v7923_v0 }
 0xa0d   : > { %v7927_v45 = vpop.f32.mrf.mxu0 }
 0xa0e   : > { %8958 = vst [vmem:[#allocation28_spill] sm:$0xff] %v7927_v45 }
 0xa0f   : > { %v7931_v21 = vpop.f32.mrf.mxu0 }
 0xa10   : > { %8959 = vst [vmem:[#allocation29_spill] sm:$0xff] %v7931_v21 }
 0xa11   : > { %v7933_v26 = vpop.f32.mrf.mxu0 }
 0xa12   : > { %8960 = vst [vmem:[#allocation30_spill] sm:$0xff] %v7933_v26 }
 0xa13   : > { %v7935_v44 = vpop.f32.mrf.mxu0 }
 0xa14   : > { %8961 = vst [vmem:[#allocation31_spill] sm:$0xff] %v7935_v44 }
 0xa15   : > { %v7939_v53 = vpop.f32.mrf.mxu0 }
 0xa16   : > { %8962 = vst [vmem:[#allocation32_spill] sm:$0xff] %v7939_v53 }
 0xa17   : > { %v6056_v33 = vpop.f32.mrf.mxu0 }
 0xa18   : > { %v3062_v43 = vadd.f32 %v6056_v33, %v5304_v36 }
 0xa19   : > { %v3053_v59 = vpop.f32.mrf.mxu0 }
 0xa1a   : > { %v3054_v28 = vadd.f32 %v5304_v36, %v3053_v59 }
 0xa1b   : > { %v6057_v13 = vpop.f32.mrf.mxu0 }
 0xa1c   : > { %v3065_v50 = vadd.f32 %v6057_v13, %v5304_v36 }
 0xa1d   : > { %v3056_v1 = vpop.f32.mrf.mxu0 }
 0xa1e   : > { %v3057_v51 = vadd.f32 %v5304_v36, %v3056_v1  ;;  %v3361_v52 = vpack.c.bf16 %v3065_v50, %v3062_v43 }
 0xa1f   : > { %v6060_v57 = vpop.f32.mrf.mxu0 }
 0xa20   : > { %v3360_v2 = vpack.c.bf16 %v3057_v51, %v3054_v28  ;;  %v3078_v49 = vadd.f32 %v6060_v57, %v5304_v36 }
 0xa21   : > { %v3069_v40 = vpop.f32.mrf.mxu0 }
 0xa22   : > { %6126 = vmatprep.mubr.msk.bf16.mxu1 %vm975_vm1, %v3360_v2  ;;  %v3070_v34 = vadd.f32 %v5304_v36, %v3069_v40 }
 0xa23   : > { %v6061_v61 = vpop.f32.mrf.mxu0  ;;  %6127 = vmatmul.mubr.msk.bf16.vlgmr.msra.gmra.mxu1 %vm975_vm1, %v3361_v52 }
 0xa24   : > { %v3081_v14 = vadd.f32 %v6061_v61, %v5304_v36 }
 0xa25   : > { %v3072_v3 = vpop.f32.mrf.mxu0 }
 0xa26   : > { %v3073_v30 = vadd.f32 %v5304_v36, %v3072_v3  ;;  %v3363_v58 = vpack.c.bf16 %v3081_v14, %v3078_v49  ;;  %v6427_v49 = vld [vmem:[%s8901_s5 + $0x38] sm:$0xff]  }
 0xa27   : > { %v6064_v46 = vpop.f32.mrf.mxu0  ;;  %6090 = vmatprep.subr.bf16.mxu0 %v6427_v49 }
 0xa28   : > { %v3362_v48 = vpack.c.bf16 %v3073_v30, %v3070_v34  ;;  %v3094_v1 = vadd.f32 %v6064_v46, %v5304_v36  ;;  %6091 = vmatpush3.bf16.msra.mxu0 %v6427_v49  ;;  %v6428_v46 = vld [vmem:[%s8901_s5 + $0x30] sm:$0xff]  }
 0xa29   : > { %v3085_v17 = vpop.f32.mrf.mxu0  ;;  %6092 = vmatprep.subr.bf16.mxu0 %v6428_v46 }
 0xa2a   : > { %6130 = vmatprep.mubr.msk.bf16.mxu1 %vm975_vm1, %v3362_v48  ;;  %v3086_v13 = vadd.f32 %v5304_v36, %v3085_v17 }
 0xa2b   : > { %v6065_v19 = vpop.f32.mrf.mxu0  ;;  %6131 = vmatmul.mubr.msk.bf16.gmra.mxu1 %vm975_vm1, %v3363_v58 }
 0xa2c   : > { %v3097_v33 = vadd.f32 %v6065_v19, %v5304_v36  ;;  %6093 = vmatpush3.bf16.msra.mxu0 %v6428_v46 }
 0xa2d   : > { %v3088_v59 = vpop.f32.mrf.mxu0 }
 0xa2e   : > { %v3089_v50 = vadd.f32 %v5304_v36, %v3088_v59  ;;  %v3365_v43 = vpack.c.bf16 %v3097_v33, %v3094_v1 }
 0xa2f   : > { %v6068_v28 = vpop.f32.mrf.mxu0  ;;  %6095 = vmatmul.mubr.msk.bf16.vlgmr.msra.gmra.mxu0 %vm597_vm0, %v6932_v22 }
 0xa30   : > { %v3364_v51 = vpack.c.bf16 %v3089_v50, %v3086_v13  ;;  %v3110_v3 = vadd.f32 %v6068_v28, %v5304_v36  ;;  %6098 = vmatprep.mubr.msk.bf16.mxu0 %vm597_vm0, %v6934_v23 }
 0xa31   : > { %v3101_v2 = vpop.f32.mrf.mxu0 }
 0xa32   : > { %6134 = vmatprep.mubr.msk.bf16.mxu1 %vm975_vm1, %v3364_v51  ;;  %v3102_v61 = vadd.f32 %v5304_v36, %v3101_v2 }
 0xa33   : > { %v6069_v57 = vpop.f32.mrf.mxu0  ;;  %6135 = vmatmul.mubr.msk.bf16.gmra.mxu1 %vm975_vm1, %v3365_v43 }
 0xa34   : > { %v3113_v52 = vadd.f32 %v6069_v57, %v5304_v36 }
 0xa35   : > { %v3104_v40 = vpop.f32.mrf.mxu0 }
 0xa36   : > { %v3105_v14 = vadd.f32 %v5304_v36, %v3104_v40  ;;  %v3367_v30 = vpack.c.bf16 %v3113_v52, %v3110_v3 }
 0xa37   : > { %6099 = vmatmul.mubr.msk.bf16.gmra.mxu0 %vm597_vm0, %v6950_v27 }
 0xa38   : > { %v3366_v34 = vpack.c.bf16 %v3105_v14, %v3102_v61  ;;  %6102 = vmatprep.mubr.msk.bf16.mxu0 %vm597_vm0, %v6904_v6 }
 0xa3a   : > { %6138 = vmatprep.mubr.msk.bf16.mxu1 %vm975_vm1, %v3366_v34 }
 0xa3b   : > { %6139 = vmatmul.mubr.msk.bf16.gmra.mxu1 %vm975_vm1, %v3367_v30 }
 0xa3f   : > { %6103 = vmatmul.mubr.msk.bf16.gmra.mxu0 %vm597_vm0, %v6909_v10 }
 0xa40   : > { %6106 = vmatprep.mubr.msk.bf16.mxu0 %vm597_vm0, %v6911_v11 }
 0xa47   : > { %6107 = vmatmul.mubr.msk.bf16.gmra.mxu0 %vm597_vm0, %v6940_v24 }
 0xae3   : > { %v6128_v36 = vpop.f32.mrf.mxu1 }
 0xae4   : > { %v7977_v58 = vmul.f32 0.35355338, %v6128_v36 }
 0xae5   : > { %v3458_v22 = vpop.f32.mrf.mxu1 }
 0xae6   : > { %v7974_v48 = vmul.f32 0.35355338, %v3458_v22 }
 0xae7   : > { %v6129_v23 = vpop.f32.mrf.mxu1 }
 0xae8   : > { %3537 = vmax.xlane.f32.xlu0 %v7974_v48  ;;  %v7983_v11 = vmul.f32 0.35355338, %v6129_v23 }
 0xae9   : > { %v3461_v27 = vpop.f32.mrf.mxu1 }
 0xaea   : > { %v7979_v6 = vmul.f32 0.35355338, %v3461_v27 }
 0xaeb   : > { %v6132_v17 = vpop.f32.mrf.mxu1 }
 0xaec   : > { %3541 = vmax.xlane.f32.xlu0 %v7977_v58  ;;  %3539 = vmax.xlane.f32.xlu1 %v7979_v6  ;;  %v7989_v59 = vmul.f32 0.35355338, %v6132_v17 }
 0xaed   : > { %v3474_v10 = vpop.f32.mrf.mxu1 }
 0xaee   : > { %v7985_v24 = vmul.f32 0.35355338, %v3474_v10 }
 0xaef   : > { %v6133_v19 = vpop.f32.mrf.mxu1  ;;  %v6096_v22 = vpop.f32.mrf.mxu0 }
 0xaf0   : > { %3543 = vmax.xlane.f32.xlu1 %v7983_v11  ;;  %3545 = vmax.xlane.f32.xlu0 %v7985_v24  ;;  %v7995_v28 = vmul.f32 0.35355338, %v6133_v19 }
 0xaf1   : > { %v3477_v33 = vpop.f32.mrf.mxu1  ;;  %v3297_v23 = vpop.f32.mrf.mxu0 }
 0xaf2   : > { %v7991_v13 = vmul.f32 0.35355338, %v3477_v33 }
 0xaf3   : > { %v6136_v50 = vpop.f32.mrf.mxu1  ;;  %v6097_v27 = vpop.f32.mrf.mxu0 }
 0xaf4   : > { %3549 = vmax.xlane.f32.xlu0 %v7989_v59  ;;  %3547 = vmax.xlane.f32.xlu1 %v7991_v13  ;;  %v8001_v57 = vmul.f32 0.35355338, %v6136_v50 }
 0xaf5   : > { %v3490_v1 = vpop.f32.mrf.mxu1  ;;  %v3300_v17 = vpop.f32.mrf.mxu0 }
 0xaf6   : > { %v7997_v51 = vmul.f32 0.35355338, %v3490_v1 }
 0xaf7   : > { %v6137_v43 = vpop.f32.mrf.mxu1  ;;  %v6100_v10 = vpop.f32.mrf.mxu0 }
 0xaf8   : > { %3551 = vmax.xlane.f32.xlu1 %v7995_v28  ;;  %3553 = vmax.xlane.f32.xlu0 %v7997_v51  ;;  %v8007_v14 = vmul.f32 0.35355338, %v6137_v43 }
 0xaf9   : > { %v3493_v2 = vpop.f32.mrf.mxu1  ;;  %v3313_v19 = vpop.f32.mrf.mxu0 }
 0xafa   : > { %v8003_v52 = vmul.f32 0.35355338, %v3493_v2 }
 0xafb   : > { %v6140_v40 = vpop.f32.mrf.mxu1  ;;  %v6101_v33 = vpop.f32.mrf.mxu0 }
 0xafc   : > { %3557 = vmax.xlane.f32.xlu0 %v8001_v57  ;;  %3555 = vmax.xlane.f32.xlu1 %v8003_v52  ;;  %v8013_v49 = vmul.f32 0.35355338, %v6140_v40 }
 0xafd   : > { %v3506_v61 = vpop.f32.mrf.mxu1  ;;  %v3316_v50 = vpop.f32.mrf.mxu0 }
 0xafe   : > { %v8009_v3 = vmul.f32 0.35355338, %v3506_v61  ;;  %v5336_v61 = vld [vmem:[%s8902_s6 + $0x3] ss:$0 sm:$0xff] }
 0xaff   : > { %v6141_v34 = vpop.f32.mrf.mxu1  ;;  %v6104_v1 = vpop.f32.mrf.mxu0  ;;  %v3322_v45 = vadd.f32 %v6100_v10, %v5336_v61  ;;  %v3325_v15 = vadd.f32 %v6101_v33, %v5336_v61 }
 0xb00   : > { %3559 = vmax.xlane.f32.xlu1 %v8007_v14  ;;  %3561 = vmax.xlane.f32.xlu0 %v8009_v3  ;;  %v8019_v36 = vmul.f32 0.35355338, %v6141_v34  ;;  %v3338_v35 = vadd.f32 %v6104_v1, %v5336_v61 }
 0xb01   : > { %v3509_v30 = vpop.f32.mrf.mxu1  ;;  %v3329_v43 = vpop.f32.mrf.mxu0 }
 0xb02   : > { %v8015_v46 = vmul.f32 0.35355338, %v3509_v30  ;;  %v3330_v21 = vadd.f32 %v5336_v61, %v3329_v43 }
 0xb03   : > { %v6105_v2 = vpop.f32.mrf.mxu0 }
 0xb04   : > { %3565 = vmax.xlane.f32.xlu0 %v8013_v49  ;;  %3563 = vmax.xlane.f32.xlu1 %v8015_v46  ;;  %v3341_v32 = vadd.f32 %v6105_v2, %v5336_v61 }
 0xb05   : > { %v3332_v40 = vpop.f32.mrf.mxu0 }
 0xb06   : > { %v3694_v44 = vpack.c.bf16 %v3341_v32, %v3338_v35  ;;  %v3333_v12 = vadd.f32 %v5336_v61, %v3332_v40  ;;  %v3301_v35 = vadd.f32 %v5336_v61, %v3300_v17 }
 0xb07   : > { %v6108_v34 = vpop.f32.mrf.mxu0 }
 0xb08   : > { %3567 = vmax.xlane.f32.xlu1 %v8019_v36  ;;  %v3354_v31 = vadd.f32 %v6108_v34, %v5336_v61  ;;  %v3693_v0 = vpack.c.bf16 %v3333_v12, %v3330_v21  ;;  %v3314_v34 = vadd.f32 %v5336_v61, %v3313_v19 }
 0xb09   : > { %v3345_v30 = vpop.f32.mrf.mxu0 }
 0xb0a   : > { %v3346_v25 = vadd.f32 %v5336_v61, %v3345_v30  ;;  %v3317_v30 = vadd.f32 %v5336_v61, %v3316_v50 }
 0xb0b   : > { %v6109_v47 = vpop.f32.mrf.mxu0 }
 0xb0c   : > { %v3357_v62 = vadd.f32 %v6109_v47, %v5336_v61  ;;  %v3692_v47 = vpack.c.bf16 %v3325_v15, %v3322_v45 }
 0xb0d   : > { %v3348_v18 = vpop.f32.mrf.mxu0 }
 0xb0e   : > { %v3696_v5 = vpack.c.bf16 %v3357_v62, %v3354_v31  ;;  %v3349_v26 = vadd.f32 %v5336_v61, %v3348_v18  ;;  %v3306_v62 = vadd.f32 %v6096_v22, %v5336_v61  ;;  %v3309_v18 = vadd.f32 %v6097_v27, %v5336_v61 }
 0xb10   : > { %v3695_v53 = vpack.c.bf16 %v3349_v26, %v3346_v25  ;;  %6142 = vmatprep.subr.bf16.mxu0 %v3696_v5  ;;  %v3691_v25 = vpack.c.bf16 %v3317_v30, %v3314_v34  ;;  %v3690_v32 = vpack.c.bf16 %v3309_v18, %v3306_v62 }
 0xb11   : > { %6143 = vmatpush3.bf16.msra.mxu0 %v3696_v5  ;;  %v3298_v5 = vadd.f32 %v5336_v61, %v3297_v23 }
 0xb12   : > { %6144 = vmatprep.subr.bf16.mxu0 %v3695_v53 }
 0xb13   : > { %v3689_v26 = vpack.c.bf16 %v3301_v35, %v3298_v5 }
 0xb15   : > { %6145 = vmatpush3.bf16.msra.mxu0 %v3695_v53 }
 0xb16   : > { %6146 = vmatprep.subr.bf16.mxu0 %v3694_v44 }
 0xb19   : > { %6147 = vmatpush3.bf16.msra.mxu0 %v3694_v44 }
 0xb1a   : > { %6148 = vmatprep.subr.bf16.mxu0 %v3693_v0 }
 0xb1d   : > { %6149 = vmatpush3.bf16.msra.mxu0 %v3693_v0 }
 0xb1e   : > { %6150 = vmatprep.subr.bf16.mxu0 %v3692_v47 }
 0xb21   : > { %6151 = vmatpush3.bf16.msra.mxu0 %v3692_v47 }
 0xb22   : > { %6152 = vmatprep.subr.bf16.mxu0 %v3691_v25 }
 0xb25   : > { %6153 = vmatpush3.bf16.msra.mxu0 %v3691_v25 }
 0xb26   : > { %6154 = vmatprep.subr.bf16.mxu0 %v3690_v32 }
 0xb29   : > { %6155 = vmatpush3.bf16.msra.mxu0 %v3690_v32 }
 0xb2a   : > { %6156 = vmatprep.subr.bf16.mxu0 %v3689_v26 }
 0xb2d   : > { %6157 = vmatpush3.bf16.msra.mxu0 %v3689_v26 }
 0xb71   : > { %v3538_v12 = vpop.xlane.xlu0 %3537 }
 0xb72   : > { %v3569_v15 = vsub.f32 %v7974_v48, %v3538_v12 }
 0xb74   : > { %v3585_v45 = vmul.f32 1.442695, %v3569_v15 }
 0xb75   : > { %v3542_v0 = vpop.xlane.xlu0 %3541  ;;  %v3540_v21 = vpop.xlane.xlu1 %3539 }
 0xb76   : > { %6629 = vpow2.f32 %v3585_v45  ;;  %v3571_v44 = vsub.f32 %v7977_v58, %v3542_v0  ;;  %v3570_v53 = vsub.f32 %v7979_v6, %v3540_v21 }
 0xb78   : > { %v3589_v31 = vmul.f32 1.442695, %v3571_v44  ;;  %v3587_v22 = vmul.f32 1.442695, %v3570_v53 }
 0xb79   : > { %v3544_v23 = vpop.xlane.xlu1 %3543  ;;  %v3546_v27 = vpop.xlane.xlu0 %3545 }
 0xb7a   : > { %6631 = vpow2.f32 %v3589_v31  ;;  %v3572_v17 = vsub.f32 %v7983_v11, %v3544_v23  ;;  %v3573_v10 = vsub.f32 %v7985_v24, %v3546_v27 }
 0xb7b   : > { %6633 = vpow2.f32 %v3587_v22 }
 0xb7c   : > { %v3591_v19 = vmul.f32 1.442695, %v3572_v17  ;;  %v3593_v48 = vmul.f32 1.442695, %v3573_v10 }
 0xb7d   : > { %v3550_v33 = vpop.xlane.xlu0 %3549  ;;  %v3548_v50 = vpop.xlane.xlu1 %3547 }
 0xb7e   : > { %6635 = vpow2.f32 %v3591_v19  ;;  %v3575_v1 = vsub.f32 %v7989_v59, %v3550_v33  ;;  %v3574_v58 = vsub.f32 %v7991_v13, %v3548_v50 }
 0xb7f   : > { %6637 = vpow2.f32 %v3593_v48 }
 0xb80   : > { %v3597_v6 = vmul.f32 1.442695, %v3575_v1  ;;  %v3595_v43 = vmul.f32 1.442695, %v3574_v58  ;;  %v6285_v1 = vpack.i.bf16 %v7606_v7, %v7600_v42  ;;  %v8963_v58 = vpack.i.bf16 %v7602_v63, %v7598_v37  ;;  %v8967_v7 = vld [vmem:[#allocation18_spill] sm:$0xff] }
 0xb81   : > { %v3552_v2 = vpop.xlane.xlu1 %3551  ;;  %v3554_v40 = vpop.xlane.xlu0 %3553  ;;  %v8965_v42 = vpack.i.bf16 %v7899_v55, %v7895_v29  ;;  %v8966_v37 = vpack.i.bf16 %v7915_v9, %v7909_v20  ;;  %v6325_v63 = vpack.i.bf16 %v7626_v39, %v7620_v56  ;;  %v8970_v29 = vld [vmem:[#allocation20_spill] sm:$0xff] }
 0xb82   : > { %6639 = vpow2.f32 %v3597_v6  ;;  %v3576_v11 = vsub.f32 %v7995_v28, %v3552_v2  ;;  %v3577_v24 = vsub.f32 %v7997_v51, %v3554_v40  ;;  %v6305_v6 = vpack.i.bf16 %v7616_v41, %v7610_v38 }
 0xb83   : > { %v8034_v61 = vpop.eup %6629  ;;  %6641 = vpow2.f32 %v3595_v43  ;;  %v8964_v43 = vpack.i.bf16 %v7903_v16, %v7897_v60  ;;  %v8968_v38 = vpack.i.bf16 %v7612_v4, %v8967_v7  ;;  %v8969_v41 = vpack.i.bf16 %v7911_v54, %v7907_v8  ;;  %v8971_v60 = vld [vmem:[#allocation19_spill] sm:$0xff] }
 0xb84   : > { %v3599_v34 = vmul.f32 1.442695, %v3576_v11  ;;  %v3601_v47 = vmul.f32 1.442695, %v3577_v24  ;;  %3617 = vadd.xlane.f32.xlu0 %v8034_v61  ;;  %v8972_v55 = vpack.i.bf16 %v8970_v29, %v8971_v60 }
 0xb85   : > { %v3558_v59 = vpop.xlane.xlu0 %3557  ;;  %v3556_v30 = vpop.xlane.xlu1 %3555 }
 0xb86   : > { %6643 = vpow2.f32 %v3599_v34  ;;  %v3579_v13 = vsub.f32 %v8001_v57, %v3558_v59  ;;  %v3578_v62 = vsub.f32 %v8003_v52, %v3556_v30 }
 0xb87   : > { %v8039_v18 = vpop.eup %6631  ;;  %6645 = vpow2.f32 %v3601_v47 }
 0xb88   : > { %v8041_v28 = vpop.eup %6633  ;;  %v3605_v51 = vmul.f32 1.442695, %v3579_v13  ;;  %v3603_v25 = vmul.f32 1.442695, %v3578_v62  ;;  %3621 = vadd.xlane.f32.xlu0 %v8039_v18 }
 0xb89   : > { %3619 = vadd.xlane.f32.xlu1 %v8041_v28  ;;  %v3560_v5 = vpop.xlane.xlu1 %3559  ;;  %v3562_v32 = vpop.xlane.xlu0 %3561 }
 0xb8a   : > { %6647 = vpow2.f32 %v3605_v51  ;;  %v3580_v35 = vsub.f32 %v8007_v14, %v3560_v5  ;;  %v3581_v57 = vsub.f32 %v8009_v3, %v3562_v32 }
 0xb8b   : > { %v8047_v26 = vpop.eup %6635  ;;  %6649 = vpow2.f32 %v3603_v25 }
 0xb8c   : > { %v8049_v52 = vpop.eup %6637  ;;  %v3607_v12 = vmul.f32 1.442695, %v3580_v35  ;;  %v3609_v15 = vmul.f32 1.442695, %v3581_v57 }
 0xb8d   : > { %3625 = vadd.xlane.f32.xlu0 %v8049_v52  ;;  %3623 = vadd.xlane.f32.xlu1 %v8047_v26  ;;  %v3566_v45 = vpop.xlane.xlu0 %3565  ;;  %v3564_v0 = vpop.xlane.xlu1 %3563 }
 0xb8e   : > { %6651 = vpow2.f32 %v3607_v12  ;;  %v3583_v21 = vsub.f32 %v8013_v49, %v3566_v45  ;;  %v3582_v14 = vsub.f32 %v8015_v46, %v3564_v0 }
 0xb8f   : > { %v8055_v44 = vpop.eup %6639  ;;  %6653 = vpow2.f32 %v3609_v15 }
 0xb90   : > { %v8057_v3 = vpop.eup %6641  ;;  %v3613_v53 = vmul.f32 1.442695, %v3583_v21  ;;  %v3611_v31 = vmul.f32 1.442695, %v3582_v14 }
 0xb91   : > { %3629 = vadd.xlane.f32.xlu0 %v8055_v44  ;;  %3627 = vadd.xlane.f32.xlu1 %v8057_v3  ;;  %v3568_v22 = vpop.xlane.xlu1 %3567 }
 0xb92   : > { %6655 = vpow2.f32 %v3613_v53  ;;  %v3584_v23 = vsub.f32 %v8019_v36, %v3568_v22 }
 0xb93   : > { %v8062_v27 = vpop.eup %6643  ;;  %6657 = vpow2.f32 %v3611_v31 }
 0xb94   : > { %v8064_v49 = vpop.eup %6645  ;;  %v3615_v46 = vmul.f32 1.442695, %v3584_v23 }
 0xb95   : > { %3633 = vadd.xlane.f32.xlu0 %v8064_v49  ;;  %3631 = vadd.xlane.f32.xlu1 %v8062_v27 }
 0xb96   : > { %6659 = vpow2.f32 %v3615_v46 }
 0xb97   : > { %v8068_v17 = vpop.eup %6647 }
 0xb98   : > { %v8070_v10 = vpop.eup %6649 }
 0xb99   : > { %3637 = vadd.xlane.f32.xlu0 %v8068_v17  ;;  %3635 = vadd.xlane.f32.xlu1 %v8070_v10 }
 0xb9b   : > { %v8074_v36 = vpop.eup %6651 }
 0xb9c   : > { %v8076_v19 = vpop.eup %6653 }
 0xb9d   : > { %3641 = vadd.xlane.f32.xlu0 %v8076_v19  ;;  %3639 = vadd.xlane.f32.xlu1 %v8074_v36 }
 0xb9f   : > { %v8080_v48 = vpop.eup %6655 }
 0xba0   : > { %v8082_v33 = vpop.eup %6657 }
 0xba1   : > { %3645 = vadd.xlane.f32.xlu0 %v8080_v48  ;;  %3643 = vadd.xlane.f32.xlu1 %v8082_v33 }
 0xba3   : > { %v8086_v50 = vpop.eup %6659 }
 0xba5   : > { %3647 = vadd.xlane.f32.xlu1 %v8086_v50 }
 0xbb6   : > { %6291 = vrot.lane.b32.xlu1 %v8963_v58, %s6781_s19 }
 0xbb7   : > { %6286 = vrot.lane.b32.xlu0 %v6285_v1, %s6781_s19 }
 0xbba   : > { %6296 = vrot.lane.b32.xlu1 %v8964_v43, %s6782_s1 }
 0xbbb   : > { %6306 = vrot.lane.b32.xlu0 %v6305_v6, %s6781_s19 }
 0xbbe   : > { %6301 = vrot.lane.b32.xlu1 %v8965_v42, %s6782_s1 }
 0xbbf   : > { %6316 = vrot.lane.b32.xlu0 %v8966_v37, %s6782_s1 }
 0xbc2   : > { %6311 = vrot.lane.b32.xlu1 %v8968_v38, %s6781_s19 }
 0xbc3   : > { %6326 = vrot.lane.b32.xlu0 %v6325_v63, %s6781_s19 }
 0xbc6   : > { %6321 = vrot.lane.b32.xlu1 %v8969_v41, %s6782_s1 }
 0xbca   : > { %6331 = vrot.lane.b32.xlu1 %v8972_v55, %s6781_s19 }
 0xc0d   : > { %v3618_v16 = vpop.xlane.xlu0 %3617 }
 0xc0e   : > { %6661 = vrcp.f32 %v3618_v16 }
 0xc11   : > { %v3622_v56 = vpop.xlane.xlu0 %3621 }
 0xc12   : > { %v3620_v39 = vpop.xlane.xlu1 %3619 }
 0xc13   : > { %6663 = vrcp.f32 %v3620_v39  ;;  %v8973_v39 = vld [vmem:[#allocation27_spill] sm:$0xff] }
 0xc14   : > { %6665 = vrcp.f32 %v3622_v56 }
 0xc16   : > { %v3626_v4 = vpop.xlane.xlu0 %3625  ;;  %v3624_v20 = vpop.xlane.xlu1 %3623 }
 0xc17   : > { %6667 = vrcp.f32 %v3624_v20 }
 0xc18   : > { %6669 = vrcp.f32 %v3626_v4  ;;  %v8974_v4 = vld [vmem:[#allocation25_spill] sm:$0xff] }
 0xc19   : > { %v8975_v20 = vpack.i.bf16 %v8973_v39, %v8974_v4 }
 0xc1a   : > { %v3630_v9 = vpop.xlane.xlu0 %3629  ;;  %v3628_v2 = vpop.xlane.xlu1 %3627 }
 0xc1b   : > { %6671 = vrcp.f32 %v3628_v2  ;;  %v6662_v8 = vpop.eup %6661 }
 0xc1c   : > { %6673 = vrcp.f32 %v3630_v9  ;;  %v3665_v24 = vmul.f32 %v6662_v8, %v8034_v61  ;;  %v8976_v8 = vld [vmem:[#allocation28_spill] sm:$0xff] }
 0xc1e   : > { %v3634_v54 = vpop.xlane.xlu0 %3633  ;;  %v3632_v40 = vpop.xlane.xlu1 %3631 }
 0xc1f   : > { %6675 = vrcp.f32 %v3632_v40 }
 0xc20   : > { %v6664_v11 = vpop.eup %6663  ;;  %6677 = vrcp.f32 %v3634_v54  ;;  %v8977_v54 = vld [vmem:[#allocation26_spill] sm:$0xff] }
 0xc21   : > { %v3666_v34 = vmul.f32 %v6664_v11, %v8041_v28  ;;  %v6666_v30 = vpop.eup %6665  ;;  %v8978_v40 = vpack.i.bf16 %v8976_v8, %v8977_v54 }
 0xc22   : > { %v3638_v47 = vpop.xlane.xlu0 %3637  ;;  %v3636_v59 = vpop.xlane.xlu1 %3635  ;;  %v3667_v51 = vmul.f32 %v6666_v30, %v8039_v18  ;;  %v8980_v30 = vld [vmem:[#allocation24_spill] sm:$0xff] }
 0xc23   : > { %v3681_v13 = vpack.c.bf16 %v3666_v34, %v3665_v24  ;;  %6679 = vrcp.f32 %v3636_v59  ;;  %v8979_v59 = vld [vmem:[#allocation22_spill] sm:$0xff] }
 0xc24   : > { %v6668_v62 = vpop.eup %6667  ;;  %6681 = vrcp.f32 %v3638_v47 }
 0xc25   : > { %6158 = vmatprep.mubr.bf16.mxu0 %v3681_v13  ;;  %v3668_v25 = vmul.f32 %v6668_v62, %v8047_v26  ;;  %v6670_v35 = vpop.eup %6669  ;;  %v6365_v13 = vpack.i.bf16 %v8980_v30, %v8979_v59  ;;  %v8981_v62 = vld [vmem:[#allocation23_spill] sm:$0xff] }
 0xc26   : > { %v3642_v5 = vpop.xlane.xlu0 %3641  ;;  %v3640_v32 = vpop.xlane.xlu1 %3639  ;;  %v3669_v12 = vmul.f32 %v6670_v35, %v8049_v52 }
 0xc27   : > { %6683 = vrcp.f32 %v3640_v32  ;;  %v3682_v61 = vpack.c.bf16 %v3668_v25, %v3667_v51  ;;  %v8982_v51 = vld [vmem:[#allocation21_spill] sm:$0xff] }
 0xc28   : > { %v6672_v57 = vpop.eup %6671  ;;  %6685 = vrcp.f32 %v3642_v5  ;;  %v8983_v25 = vpack.i.bf16 %v8981_v62, %v8982_v51 }
 0xc29   : > { %6159 = vmatmul.mubr.bf16.vlgmr.msra.gmra.mxu0 %v3682_v61  ;;  %v3670_v15 = vmul.f32 %v6672_v57, %v8057_v3  ;;  %v6674_v45 = vpop.eup %6673 }
 0xc2a   : > { %v3644_v28 = vpop.xlane.xlu1 %3643  ;;  %v3646_v0 = vpop.xlane.xlu0 %3645  ;;  %v3671_v14 = vmul.f32 %v6674_v45, %v8055_v44 }
 0xc2b   : > { %6687 = vrcp.f32 %v3644_v28  ;;  %v3683_v18 = vpack.c.bf16 %v3670_v15, %v3669_v12  ;;  %v8984_v12 = vld [vmem:[#allocation31_spill] sm:$0xff]  ;;  %v8985_v15 = vld [vmem:[#allocation29_spill] sm:$0xff] }
 0xc2c   : > { %v6676_v21 = vpop.eup %6675  ;;  %6689 = vrcp.f32 %v3646_v0  ;;  %v8986_v45 = vpack.i.bf16 %v8984_v12, %v8985_v15  ;;  %v8994_v15 = vld [vmem:[#allocation9_spill] sm:$0xff] }
 0xc2d   : > { %6162 = vmatprep.mubr.bf16.mxu0 %v3683_v18  ;;  %v3672_v53 = vmul.f32 %v6676_v21, %v8062_v27  ;;  %v6678_v31 = vpop.eup %6677  ;;  %v8987_v21 = vld [vmem:[#allocation32_spill] sm:$0xff] }
 0xc2e   : > { %v3648_v26 = vpop.xlane.xlu1 %3647  ;;  %v3673_v52 = vmul.f32 %v6678_v31, %v8064_v49 }
 0xc2f   : > { %6691 = vrcp.f32 %v3648_v26  ;;  %v3684_v22 = vpack.c.bf16 %v3672_v53, %v3671_v14  ;;  %v8988_v26 = vld [vmem:[#allocation30_spill] sm:$0xff] }
 0xc30   : > { %v6680_v23 = vpop.eup %6679  ;;  %v8989_v14 = vpack.i.bf16 %v8987_v21, %v8988_v26  ;;  %v8996_v21 = vld [vmem:[#allocation8_spill] sm:$0xff] }
 0xc31   : > { %6163 = vmatmul.mubr.bf16.gmra.mxu0 %v3684_v22  ;;  %v3674_v3 = vmul.f32 %v6680_v23, %v8070_v10  ;;  %v6682_v46 = vpop.eup %6681 }
 0xc32   : > { %v3675_v6 = vmul.f32 %v6682_v46, %v8068_v17  ;;  %v6429_v17 = vld [vmem:[%s8903_s7 + $0x8] sm:$0xff]   ;;  %v6292_v22 = vpop.permute.xlu1 %6291 }
 0xc33   : > { %v3685_v1 = vpack.c.bf16 %v3674_v3, %v3673_v52  ;;  %6174 = vmatprep.subr.bf16.mxu0 %v6429_v17  ;;  %v6287_v3 = vpop.permute.xlu0 %6286 }
 0xc34   : > { %v6684_v58 = vpop.eup %6683  ;;  %6175 = vmatpush3.bf16.msra.mxu0 %v6429_v17 }
 0xc35   : > { %6166 = vmatprep.mubr.bf16.mxu0 %v3685_v1  ;;  %v3676_v43 = vmul.f32 %v6684_v58, %v8074_v36  ;;  %v6686_v44 = vpop.eup %6685  ;;  %v6430_v36 = vld [vmem:[%s8903_s7] sm:$0xff]  }
 0xc36   : > { %v3677_v37 = vmul.f32 %v6686_v44, %v8076_v19  ;;  %6176 = vmatprep.subr.bf16.mxu0 %v6430_v36  ;;  %v6297_v23 = vpop.permute.xlu1 %6296  ;;  %v6289_v44 = vunpack.i.h.bf16 %v6287_v3 }
 0xc37   : > { %v3686_v42 = vpack.c.bf16 %v3676_v43, %v3675_v6  ;;  %v6307_v1 = vpop.permute.xlu0 %6306 }
 0xc38   : > { %v6688_v27 = vpop.eup %6687  ;;  %6177 = vmatpush3.bf16.msra.mxu0 %v6430_v36  ;;  %v8990_v36 = vld [vmem:[#allocation5_spill] sm:$0xff]  ;;  %v6308_v59 = vunpack.i.l.bf16 %v6307_v1 }
 0xc39   : > { %6167 = vmatmul.mubr.bf16.gmra.mxu0 %v3686_v42  ;;  %v3678_v63 = vmul.f32 %v6688_v27, %v8082_v33  ;;  %v6690_v7 = vpop.eup %6689  ;;  %v6288_v42 = vunpack.i.l.bf16 %v6287_v3  ;;  %v6294_v27 = vunpack.i.h.bf16 %v6292_v22 }
 0xc3a   : > { %v3679_v10 = vmul.f32 %v6690_v7, %v8080_v48  ;;  %v6302_v52 = vpop.permute.xlu1 %6301 }
 0xc3b   : > { %v3687_v38 = vpack.c.bf16 %v3678_v63, %v3677_v37  ;;  %v6317_v6 = vpop.permute.xlu0 %6316  ;;  %v6293_v37 = vunpack.i.l.bf16 %v6292_v22  ;;  %v6304_v7 = vunpack.i.h.bf16 %v6302_v52 }
 0xc3c   : > { %v6692_v49 = vpop.eup %6691 }
 0xc3d   : > { %6170 = vmatprep.mubr.bf16.mxu0 %v3687_v38  ;;  %v3680_v41 = vmul.f32 %v6692_v49, %v8086_v50  ;;  %v6303_v49 = vunpack.i.l.bf16 %v6302_v52  ;;  %v6299_v38 = vunpack.i.h.bf16 %v6297_v23 }
 0xc3e   : > { %v6312_v46 = vpop.permute.xlu1 %6311 }
 0xc3f   : > { %v3688_v29 = vpack.c.bf16 %v3680_v41, %v3679_v10  ;;  %v8181_v63 = vpop.permute.xlu0 %6326  ;;  %v6298_v10 = vunpack.i.l.bf16 %v6297_v23  ;;  %v6314_v30 = vunpack.i.h.bf16 %v6312_v46 }
 0xc41   : > { %6171 = vmatmul.mubr.bf16.gmra.mxu0 %v3688_v29  ;;  %v3993_v26 = vsel %vm975_vm1, %v8996_v21, %v6314_v30  ;;  %v9002_v21 = vld [vmem:[#allocation16_spill] sm:$0xff] }
 0xc42   : > { %v6322_v58 = vpop.permute.xlu1 %6321 }
 0xc46   : > { %v8179_v43 = vpop.permute.xlu1 %6331 }
 0xce9   : > { %v6160_v19 = vpop.f32.mrf.mxu0 }
 0xceb   : > { %v3731_v33 = vpop.f32.mrf.mxu0 }
 0xced   : > { %v6161_v60 = vpop.f32.mrf.mxu0 }
 0xcee   : > { %v6335_v48 = vpack.i.bf16 %v6161_v60, %v6160_v19  ;;  %v3987_v19 = vsel %vm975_vm1, %v8990_v36, %v6289_v44 }
 0xcef   : > { %v3734_v55 = vpop.f32.mrf.mxu0 }
 0xcf0   : > { %v6340_v50 = vpack.i.bf16 %v3734_v55, %v3731_v33  ;;  %6336 = vrot.lane.b32.xlu1 %v6335_v48, %s6783_s27  ;;  %v8991_v33 = vld [vmem:[#allocation3_spill] sm:$0xff]  ;;  %v8992_v48 = vld [vmem:[#allocation4_spill] sm:$0xff] }
 0xcf1   : > { %v6164_v16 = vpop.f32.mrf.mxu0  ;;  %v3986_v60 = vsel %vm975_vm1, %v8991_v33, %v6288_v42  ;;  %v3989_v55 = vsel %vm975_vm1, %v8992_v48, %v6294_v27  ;;  %v6329_v42 = vunpack.i.h.bf16 %v8181_v63 }
 0xcf2   : > { %6341 = vrot.lane.b32.xlu0 %v6340_v50, %s6783_s27  ;;  %v8993_v50 = vld [vmem:[#allocation2_spill] sm:$0xff]  ;;  %v4006_v4 = vsel %vm4002_vm2, %v3989_v55, %v6304_v7  ;;  %v4003_v8 = vsel %vm4002_vm2, %v3986_v60, %v6298_v10  ;;  %v6328_v7 = vunpack.i.l.bf16 %v8181_v63 }
 0xcf3   : > { %v3747_v56 = vpop.f32.mrf.mxu0 }
 0xcf4   : > { %6351 = vrot.lane.b32.xlu1 %v8975_v20, %s6782_s1 }
 0xcf5   : > { %v6165_v9 = vpop.f32.mrf.mxu0 }
 0xcf6   : > { %v6355_v2 = vpack.i.bf16 %v6165_v9, %v6164_v16  ;;  %6346 = vrot.lane.b32.xlu0 %v8978_v40, %s6782_s1  ;;  %v3988_v16 = vsel %vm975_vm1, %v8993_v50, %v6293_v37  ;;  %v8998_v50 = vld [vmem:[#allocation13_spill] sm:$0xff] }
 0xcf7   : > { %v3750_v11 = vpop.f32.mrf.mxu0  ;;  %v4005_v39 = vsel %vm4002_vm2, %v3988_v16, %v6303_v49  ;;  %v6334_v49 = vunpack.i.h.bf16 %v8179_v43  ;;  %v3995_v63 = vsel %vm975_vm1, %v8998_v50, %v6329_v42  ;;  %v8999_v16 = vld [vmem:[#allocation11_spill] sm:$0xff]  ;;  %v6758_v50 = vld [vmem:[%s6899_s22 + $0x10] sm:$0xff] }
 0xcf8   : > { %v6360_v24 = vpack.i.bf16 %v3750_v11, %v3747_v56  ;;  %6356 = vrot.lane.b32.xlu1 %v6355_v2, %s6783_s27  ;;  %v4004_v2 = vsel %vm4002_vm2, %v3987_v19, %v6299_v38  ;;  %v6333_v38 = vunpack.i.l.bf16 %v8179_v43  ;;  %v3994_v43 = vsel %vm975_vm1, %v8999_v16, %v6328_v7 }
 0xcf9   : > { %v6168_v34 = vpop.f32.mrf.mxu0 }
 0xcfa   : > { %6361 = vrot.lane.b32.xlu0 %v6360_v24, %s6783_s27  ;;  %v6309_v24 = vunpack.i.h.bf16 %v6307_v1 }
 0xcfb   : > { %v3763_v47 = vpop.f32.mrf.mxu0 }
 0xcfc   : > { %6371 = vrot.lane.b32.xlu1 %v8983_v25, %s6781_s19  ;;  %v6324_v25 = vunpack.i.h.bf16 %v6322_v58 }
 0xcfd   : > { %v6169_v5 = vpop.f32.mrf.mxu0 }
 0xcfe   : > { %v6375_v32 = vpack.i.bf16 %v6169_v5, %v6168_v34  ;;  %6366 = vrot.lane.b32.xlu0 %v6365_v13, %s6781_s19  ;;  %v6313_v13 = vunpack.i.l.bf16 %v6312_v46  ;;  %v6323_v5 = vunpack.i.l.bf16 %v6322_v58  ;;  %v4010_v23 = vsel %vm4002_vm2, %v3993_v26, %v6324_v25 }
 0xcff   : > { %v3766_v35 = vpop.f32.mrf.mxu0 }
 0xd00   : > { %v6380_v61 = vpack.i.bf16 %v3766_v35, %v3763_v47  ;;  %6376 = vrot.lane.b32.xlu1 %v6375_v32, %s6783_s27  ;;  %v6319_v35 = vunpack.i.h.bf16 %v6317_v6 }
 0xd01   : > { %v6172_v57 = vpop.f32.mrf.mxu0 }
 0xd02   : > { %6381 = vrot.lane.b32.xlu0 %v6380_v61, %s6783_s27  ;;  %v6318_v61 = vunpack.i.l.bf16 %v6317_v6 }
 0xd03   : > { %v3779_v28 = vpop.f32.mrf.mxu0 }
 0xd04   : > { %6391 = vrot.lane.b32.xlu1 %v8986_v45, %s6782_s1  ;;  %v3991_v45 = vsel %vm975_vm1, %v8994_v15, %v6309_v24 }
 0xd05   : > { %v6173_v0 = vpop.f32.mrf.mxu0  ;;  %v4008_v1 = vsel %vm4002_vm2, %v3991_v45, %v6319_v35 }
 0xd06   : > { %v6400_v18 = vpack.i.bf16 %v6173_v0, %v6172_v57  ;;  %6386 = vrot.lane.b32.xlu0 %v8989_v14, %s6782_s1  ;;  %v8995_v0 = vld [vmem:[#allocation7_spill] sm:$0xff]  ;;  %v8997_v14 = vld [vmem:[#allocation6_spill] sm:$0xff] }
 0xd07   : > { %v3782_v53 = vpop.f32.mrf.mxu0 }
 0xd08   : > { %v6395_v31 = vpack.i.bf16 %v3782_v53, %v3779_v28  ;;  %6401 = vrot.lane.b32.xlu1 %v6400_v18, %s6783_s27  ;;  %v3990_v18 = vsel %vm975_vm1, %v8995_v0, %v6308_v59  ;;  %v3992_v53 = vsel %vm975_vm1, %v8997_v14, %v6313_v13  ;;  %v9003_v14 = vld [vmem:[#allocation14_spill] sm:$0xff] }
 0xd09   : > { %v4009_v22 = vsel %vm4002_vm2, %v3992_v53, %v6323_v5  ;;  %v4007_v46 = vsel %vm4002_vm2, %v3990_v18, %v6318_v61 }
 0xd0a   : > { %6396 = vrot.lane.b32.xlu0 %v6395_v31, %s6783_s27 }
 0xd62   : > { %v6337_v41 = vpop.permute.xlu1 %6336 }
 0xd63   : > { %v6339_v29 = vunpack.i.h.bf16 %v6337_v41  ;;  %v6338_v17 = vunpack.i.l.bf16 %v6337_v41 }
 0xd64   : > { %v6342_v56 = vpop.permute.xlu0 %6341 }
 0xd65   : > { %v6344_v20 = vunpack.i.h.bf16 %v6342_v56  ;;  %v6343_v9 = vunpack.i.l.bf16 %v6342_v56  ;;  %v4022_v54 = vsel %vm4019_vm3, %v4005_v39, %v6338_v17  ;;  %v4023_v40 = vsel %vm4019_vm3, %v4006_v4, %v6339_v29  ;;  %v9000_v56 = vld [vmem:[#allocation12_spill] sm:$0xff]  ;;  %v9001_v4 = vld [vmem:[#allocation10_spill] sm:$0xff] }
 0xd66   : > { %v6352_v11 = vpop.permute.xlu1 %6351  ;;  %v4037_v32 = vpack.c.bf16 %v4023_v40, %v4022_v54  ;;  %v3997_v39 = vsel %vm975_vm1, %v9000_v56, %v6334_v49 }
 0xd67   : > { %v4020_v34 = vsel %vm4019_vm3, %v4003_v8, %v6343_v9  ;;  %v4021_v47 = vsel %vm4019_vm3, %v4004_v2, %v6344_v20  ;;  %v6354_v29 = vunpack.i.h.bf16 %v6352_v11  ;;  %v6353_v17 = vunpack.i.l.bf16 %v6352_v11 }
 0xd68   : > { %v4036_v62 = vpack.c.bf16 %v4021_v47, %v4020_v34  ;;  %v6347_v51 = vpop.permute.xlu0 %6346  ;;  %v3996_v20 = vsel %vm975_vm1, %v9001_v4, %v6333_v38  ;;  %v6759_v4 = vld [vmem:[%s6899_s22 + $0x8] sm:$0xff] }
 0xd69   : > { %v6349_v19 = vunpack.i.h.bf16 %v6347_v51  ;;  %v6348_v33 = vunpack.i.l.bf16 %v6347_v51  ;;  %v4013_v2 = vsel %vm4002_vm2, %v3996_v20, %v6353_v17  ;;  %v4014_v8 = vsel %vm4002_vm2, %v3997_v39, %v6354_v29  ;;  %v8262_v29 = vld [vmem:[%s8904_s8] ss:$0 sm:$0xff] }
 0xd6a   : > { %v6357_v57 = vpop.permute.xlu1 %6356  ;;  %6178 = vmatprep.mubr.msk.bf16.mxu0 %vm597_vm0, %v4036_v62 }
 0xd6b   : > { %v6359_v28 = vunpack.i.h.bf16 %v6357_v57  ;;  %v6358_v12 = vunpack.i.l.bf16 %v6357_v57  ;;  %6179 = vmatmul.mubr.msk.bf16.vlgmr.msra.gmra.mxu0 %vm597_vm0, %v4037_v32  ;;  %v4012_v11 = vsel %vm4002_vm2, %v3995_v63, %v6349_v19  ;;  %v4011_v24 = vsel %vm4002_vm2, %v3994_v43, %v6348_v33 }
 0xd6c   : > { %v6362_v31 = vpop.permute.xlu0 %6361 }
 0xd6d   : > { %v6364_v52 = vunpack.i.h.bf16 %v6362_v31  ;;  %v6363_v3 = vunpack.i.l.bf16 %v6362_v31  ;;  %v4026_v58 = vsel %vm4019_vm3, %v4009_v22, %v6358_v12  ;;  %v4027_v6 = vsel %vm4019_vm3, %v4010_v23, %v6359_v28  ;;  %v9004_v31 = vld [vmem:[#allocation17_spill] sm:$0xff]  ;;  %v9005_v23 = vld [vmem:[#allocation15_spill] sm:$0xff] }
 0xd6e   : > { %v6372_v44 = vpop.permute.xlu1 %6371  ;;  %v4039_v36 = vpack.c.bf16 %v4027_v6, %v4026_v58 }
 0xd6f   : > { %v4025_v27 = vsel %vm4019_vm3, %v4008_v1, %v6364_v52  ;;  %v4024_v37 = vsel %vm4019_vm3, %v4007_v46, %v6363_v3  ;;  %v6374_v30 = vunpack.i.h.bf16 %v6372_v44  ;;  %v6373_v51 = vunpack.i.l.bf16 %v6372_v44 }
 0xd70   : > { %v4038_v10 = vpack.c.bf16 %v4025_v27, %v4024_v37  ;;  %v6367_v41 = vpop.permute.xlu0 %6366 }
 0xd71   : > { %v6369_v25 = vunpack.i.h.bf16 %v6367_v41  ;;  %v6368_v5 = vunpack.i.l.bf16 %v6367_v41  ;;  %v4001_v26 = vsel %vm975_vm1, %v9002_v21, %v6374_v30  ;;  %v4000_v53 = vsel %vm975_vm1, %v9003_v14, %v6373_v51 }
 0xd72   : > { %v6377_v60 = vpop.permute.xlu1 %6376  ;;  %6182 = vmatprep.mubr.msk.bf16.mxu0 %vm597_vm0, %v4038_v10 }
 0xd73   : > { %v6379_v48 = vunpack.i.h.bf16 %v6377_v60  ;;  %v6378_v55 = vunpack.i.l.bf16 %v6377_v60  ;;  %6183 = vmatmul.mubr.msk.bf16.gmra.mxu0 %vm597_vm0, %v4039_v36  ;;  %v3999_v22 = vsel %vm975_vm1, %v9004_v31, %v6369_v25  ;;  %v3998_v52 = vsel %vm975_vm1, %v9005_v23, %v6368_v5  ;;  %v6757_v60 = vld [vmem:[%s6899_s22] sm:$0xff]  ;;  %v6762_v5 = vld [vmem:[%s6899_s22 + $0x28] sm:$0xff] }
 0xd74   : > { %v6382_v9 = vpop.permute.xlu0 %6381 }
 0xd75   : > { %v6384_v54 = vunpack.i.h.bf16 %v6382_v9  ;;  %v6383_v40 = vunpack.i.l.bf16 %v6382_v9  ;;  %v4030_v34 = vsel %vm4019_vm3, %v4013_v2, %v6378_v55  ;;  %v4031_v47 = vsel %vm4019_vm3, %v4014_v8, %v6379_v48  ;;  %v6760_v2 = vld [vmem:[%s6899_s22 + $0x18] sm:$0xff] }
 0xd76   : > { %v6392_v59 = vpop.permute.xlu1 %6391  ;;  %v4041_v61 = vpack.c.bf16 %v4031_v47, %v4030_v34 }
 0xd77   : > { %v4029_v13 = vsel %vm4019_vm3, %v4012_v11, %v6384_v54  ;;  %v4028_v62 = vsel %vm4019_vm3, %v4011_v24, %v6383_v40  ;;  %v6394_v57 = vunpack.i.h.bf16 %v6392_v59  ;;  %v6393_v28 = vunpack.i.l.bf16 %v6392_v59  ;;  %v6761_v59 = vld [vmem:[%s6899_s22 + $0x20] sm:$0xff] }
 0xd78   : > { %v4040_v32 = vpack.c.bf16 %v4029_v13, %v4028_v62  ;;  %v6387_v35 = vpop.permute.xlu0 %6386 }
 0xd79   : > { %v6389_v12 = vunpack.i.h.bf16 %v6387_v35  ;;  %v6388_v15 = vunpack.i.l.bf16 %v6387_v35  ;;  %v4017_v46 = vsel %vm4002_vm2, %v4000_v53, %v6393_v28  ;;  %v4018_v1 = vsel %vm4002_vm2, %v4001_v26, %v6394_v57  ;;  %v6763_v35 = vld [vmem:[%s6899_s22 + $0x30] sm:$0xff]  ;;  %v6764_v28 = vld [vmem:[%s6899_s22 + $0x38] sm:$0xff]  ;;  %v6765_v53 = vld [vmem:[%s6899_s22 + $0x40] sm:$0xff] }
 0xd7a   : > { %v6402_v45 = vpop.permute.xlu1 %6401  ;;  %6186 = vmatprep.mubr.msk.bf16.mxu0 %vm597_vm0, %v4040_v32 }
 0xd7b   : > { %v6404_v0 = vunpack.i.h.bf16 %v6402_v45  ;;  %v6403_v18 = vunpack.i.l.bf16 %v6402_v45  ;;  %6187 = vmatmul.mubr.msk.bf16.gmra.mxu0 %vm597_vm0, %v4041_v61  ;;  %v4016_v44 = vsel %vm4002_vm2, %v3999_v22, %v6389_v12  ;;  %v4015_v42 = vsel %vm4002_vm2, %v3998_v52, %v6388_v15 }
 0xd7c   : > { %v6397_v3 = vpop.permute.xlu0 %6396 }
 0xd7d   : > { %v6399_v58 = vunpack.i.h.bf16 %v6397_v3  ;;  %v6398_v6 = vunpack.i.l.bf16 %v6397_v3  ;;  %v4034_v27 = vsel %vm4019_vm3, %v4017_v46, %v6403_v18  ;;  %v4035_v37 = vsel %vm4019_vm3, %v4018_v1, %v6404_v0  ;;  %v6766_v46 = vld [vmem:[%s6899_s22 + $0x48] sm:$0xff] }
 0xd7e   : > { %v4043_v10 = vpack.c.bf16 %v4035_v37, %v4034_v27 }
 0xd7f   : > { %v4033_v7 = vsel %vm4019_vm3, %v4016_v44, %v6399_v58  ;;  %v4032_v49 = vsel %vm4019_vm3, %v4015_v42, %v6398_v6  ;;  %v6767_v58 = vld [vmem:[%s6899_s22 + $0x50] sm:$0xff]  ;;  %v6768_v42 = vld [vmem:[%s6899_s22 + $0x58] sm:$0xff] }
 0xd80   : > { %v4042_v38 = vpack.c.bf16 %v4033_v7, %v4032_v49 }
 0xd82   : > { %6190 = vmatprep.mubr.msk.bf16.mxu0 %vm597_vm0, %v4042_v38 }
 0xd83   : > { %6191 = vmatmul.mubr.msk.bf16.gmra.mxu0 %vm597_vm0, %v4043_v10 }
 0xe2b   : > { %v6180_v41 = vpop.f32.mrf.mxu0 }
 0xe2c   : > { %v4134_v36 = vadd.f32 %v6180_v41, %v8262_v29 }
 0xe2d   : > { %v4125_v17 = vpop.f32.mrf.mxu0 }
 0xe2e   : > { %v4126_v19 = vadd.f32 %v8262_v29, %v4125_v17  ;;  %v8270_v63 = vadd.f32 %v6758_v50, %v4134_v36  ;;  %v6769_v36 = vld [vmem:[%s6899_s22 + $0x60] sm:$0xff]  ;;  %v6770_v50 = vld [vmem:[%s6899_s22 + $0x68] sm:$0xff] }
 0xe2f   : > { %v6181_v33 = vpop.f32.mrf.mxu0 }
 0xe30   : > { %v8267_v48 = vadd.f32 %v6757_v60, %v4126_v19  ;;  %v4137_v16 = vadd.f32 %v6181_v33, %v8262_v29  ;;  %v4212_v11 = vsel %vm597_vm0, %v8270_v63, 0.0 }
 0xe31   : > { %v4128_v55 = vpop.f32.mrf.mxu0 }
 0xe32   : > { %v4129_v43 = vadd.f32 %v8262_v29, %v4128_v55  ;;  %v4206_v56 = vsel %vm597_vm0, %v8267_v48, 0.0  ;;  %v8280_v8 = vadd.f32 %v6760_v2, %v4137_v16 }
 0xe33   : > { %v6184_v39 = vpop.f32.mrf.mxu0  ;;  %4207 = vadd.xlane.f32.xlu0 %v4206_v56 }
 0xe34   : > { %v8277_v20 = vadd.f32 %v6759_v4, %v4129_v43  ;;  %v4150_v34 = vadd.f32 %v6184_v39, %v8262_v29  ;;  %v4215_v51 = vsel %vm597_vm0, %v8280_v8, 0.0  ;;  %v6771_v43 = vld [vmem:[%s6899_s22 + $0x70] sm:$0xff]  ;;  %v6772_v39 = vld [vmem:[%s6899_s22 + $0x78] sm:$0xff] }
 0xe35   : > { %v4141_v9 = vpop.f32.mrf.mxu0 }
 0xe36   : > { %v4142_v54 = vadd.f32 %v8262_v29, %v4141_v9  ;;  %v4209_v40 = vsel %vm597_vm0, %v8277_v20, 0.0  ;;  %v8299_v61 = vadd.f32 %v6763_v35, %v4150_v34 }
 0xe37   : > { %v6185_v24 = vpop.f32.mrf.mxu0  ;;  %4210 = vadd.xlane.f32.xlu1 %v4209_v40  ;;  %4213 = vadd.xlane.f32.xlu0 %v4212_v11 }
 0xe38   : > { %v8289_v30 = vadd.f32 %v6761_v59, %v4142_v54  ;;  %v4153_v13 = vadd.f32 %v6185_v24, %v8262_v29  ;;  %v4224_v14 = vsel %vm597_vm0, %v8299_v61, 0.0 }
 0xe39   : > { %v4144_v47 = vpop.f32.mrf.mxu0 }
 0xe3a   : > { %v4145_v62 = vadd.f32 %v8262_v29, %v4144_v47  ;;  %v8302_v12 = vadd.f32 %v6764_v28, %v4153_v13  ;;  %v4218_v0 = vsel %vm597_vm0, %v8289_v30, 0.0 }
 0xe3b   : > { %v6188_v25 = vpop.f32.mrf.mxu0  ;;  %4216 = vadd.xlane.f32.xlu0 %v4215_v51 }
 0xe3c   : > { %v8296_v32 = vadd.f32 %v6762_v5, %v4145_v62  ;;  %v4166_v21 = vadd.f32 %v6188_v25, %v8262_v29  ;;  %v4227_v52 = vsel %vm597_vm0, %v8302_v12, 0.0 }
 0xe3d   : > { %v4157_v57 = vpop.f32.mrf.mxu0 }
 0xe3e   : > { %v4158_v15 = vadd.f32 %v8262_v29, %v4157_v57  ;;  %v4221_v45 = vsel %vm597_vm0, %v8296_v32, 0.0  ;;  %v8323_v6 = vadd.f32 %v6767_v58, %v4166_v21 }
 0xe3f   : > { %v6189_v18 = vpop.f32.mrf.mxu0  ;;  %4222 = vadd.xlane.f32.xlu1 %v4221_v45  ;;  %4219 = vadd.xlane.f32.xlu0 %v4218_v0 }
 0xe40   : > { %v8313_v31 = vadd.f32 %v6765_v53, %v4158_v15  ;;  %v4169_v22 = vadd.f32 %v6189_v18, %v8262_v29  ;;  %v4236_v17 = vsel %vm597_vm0, %v8323_v6, 0.0 }
 0xe41   : > { %v4160_v26 = vpop.f32.mrf.mxu0 }
 0xe42   : > { %v4161_v23 = vadd.f32 %v8262_v29, %v4160_v26  ;;  %v8326_v27 = vadd.f32 %v6768_v42, %v4169_v22  ;;  %v4230_v49 = vsel %vm597_vm0, %v8313_v31, 0.0 }
 0xe43   : > { %v6192_v3 = vpop.f32.mrf.mxu0  ;;  %4228 = vadd.xlane.f32.xlu1 %v4227_v52  ;;  %4225 = vadd.xlane.f32.xlu0 %v4224_v14 }
 0xe44   : > { %v8320_v1 = vadd.f32 %v6766_v46, %v4161_v23  ;;  %v4182_v10 = vadd.f32 %v6192_v3, %v8262_v29  ;;  %v4239_v55 = vsel %vm597_vm0, %v8326_v27, 0.0 }
 0xe45   : > { %v4173_v44 = vpop.f32.mrf.mxu0 }
 0xe46   : > { %v4174_v37 = vadd.f32 %v8262_v29, %v4173_v44  ;;  %v4233_v7 = vsel %vm597_vm0, %v8320_v1, 0.0  ;;  %v8347_v56 = vadd.f32 %v6771_v43, %v4182_v10 }
 0xe47   : > { %v6193_v38 = vpop.f32.mrf.mxu0  ;;  %4234 = vadd.xlane.f32.xlu1 %v4233_v7  ;;  %4231 = vadd.xlane.f32.xlu0 %v4230_v49 }
 0xe48   : > { %v8337_v19 = vadd.f32 %v6769_v36, %v4174_v37  ;;  %v4185_v33 = vadd.f32 %v6193_v38, %v8262_v29  ;;  %v4248_v54 = vsel %vm597_vm0, %v8347_v56, 0.0 }
 0xe49   : > { %v4176_v41 = vpop.f32.mrf.mxu0 }
 0xe4a   : > { %v4177_v60 = vadd.f32 %v8262_v29, %v4176_v41  ;;  %v8350_v4 = vadd.f32 %v6772_v39, %v4185_v33  ;;  %v4242_v29 = vsel %vm597_vm0, %v8337_v19, 0.0 }
 0xe4b   : > { %4240 = vadd.xlane.f32.xlu1 %v4239_v55  ;;  %4237 = vadd.xlane.f32.xlu0 %v4236_v17 }
 0xe4c   : > { %v8344_v16 = vadd.f32 %v6770_v50, %v4177_v60  ;;  %v4251_v2 = vsel %vm597_vm0, %v8350_v4, 0.0 }
 0xe4e   : > { %v4245_v9 = vsel %vm597_vm0, %v8344_v16, 0.0 }
 0xe4f   : > { %4246 = vadd.xlane.f32.xlu1 %v4245_v9  ;;  %4243 = vadd.xlane.f32.xlu0 %v4242_v29 }
 0xe53   : > { %4252 = vadd.xlane.f32.xlu1 %v4251_v2  ;;  %4249 = vadd.xlane.f32.xlu0 %v4248_v54 }
 0xebc   : > { %v4208_v40 = vpop.xlane.xlu0 %4207 }
 0xebd   : > { %v4255_v11 = vmul.f32 0.03125, %v4208_v40 }
 0xebf   : > { %v8361_v24 = vsub.f32 %v8267_v48, %v4255_v11 }
 0xec0   : > { %v4211_v34 = vpop.xlane.xlu1 %4210  ;;  %v4214_v47 = vpop.xlane.xlu0 %4213 }
 0xec1   : > { %v4256_v59 = vmul.f32 0.03125, %v4211_v34  ;;  %v4257_v13 = vmul.f32 0.03125, %v4214_v47  ;;  %v4287_v62 = vmul.f32 %v8361_v24, %v8361_v24 }
 0xec3   : > { %v8366_v51 = vsub.f32 %v8277_v20, %v4256_v59  ;;  %v8369_v25 = vsub.f32 %v8270_v63, %v4257_v13  ;;  %v4303_v5 = vsel %vm597_vm0, %v4287_v62, 0.0 }
 0xec4   : > { %4304 = vadd.xlane.f32.xlu0 %v4303_v5  ;;  %v4217_v35 = vpop.xlane.xlu0 %4216 }
 0xec5   : > { %v4258_v57 = vmul.f32 0.03125, %v4217_v35  ;;  %v4288_v48 = vmul.f32 %v8366_v51, %v8366_v51  ;;  %v4289_v28 = vmul.f32 %v8369_v25, %v8369_v25 }
 0xec7   : > { %v8377_v15 = vsub.f32 %v8280_v8, %v4258_v57  ;;  %v4306_v20 = vsel %vm597_vm0, %v4288_v48, 0.0  ;;  %v4309_v45 = vsel %vm597_vm0, %v4289_v28, 0.0 }
 0xec8   : > { %4307 = vadd.xlane.f32.xlu1 %v4306_v20  ;;  %v4223_v63 = vpop.xlane.xlu1 %4222  ;;  %4310 = vadd.xlane.f32.xlu0 %v4309_v45  ;;  %v4220_v0 = vpop.xlane.xlu0 %4219 }
 0xec9   : > { %v4260_v18 = vmul.f32 0.03125, %v4223_v63  ;;  %v4259_v21 = vmul.f32 0.03125, %v4220_v0  ;;  %v4290_v26 = vmul.f32 %v8377_v15, %v8377_v15 }
 0xecb   : > { %v8384_v14 = vsub.f32 %v8296_v32, %v4260_v18  ;;  %v8387_v53 = vsub.f32 %v8289_v30, %v4259_v21  ;;  %v4312_v8 = vsel %vm597_vm0, %v4290_v26, 0.0  ;;  %v6433_v26 = vld [vmem:[%s8909_s13 + $0x18] sm:$0xff]  }
 0xecc   : > { %v4229_v22 = vpop.xlane.xlu1 %4228  ;;  %4313 = vadd.xlane.f32.xlu1 %v4312_v8  ;;  %v4226_v23 = vpop.xlane.xlu0 %4225  ;;  %v6434_v8 = vld [vmem:[%s8909_s13 + $0x10] sm:$0xff]   ;;  %6214 = vmatprep.subr.bf16.mxu0 %v6433_v26 }
 0xecd   : > { %v4262_v52 = vmul.f32 0.03125, %v4229_v22  ;;  %v4261_v3 = vmul.f32 0.03125, %v4226_v23  ;;  %v4292_v46 = vmul.f32 %v8384_v14, %v8384_v14  ;;  %v4291_v58 = vmul.f32 %v8387_v53, %v8387_v53  ;;  %6215 = vmatpush3.bf16.msra.mxu0 %v6433_v26  ;;  %v6435_v22 = vld [vmem:[%s8909_s13 + $0x8] sm:$0xff]  }
 0xece   : > { %6216 = vmatprep.subr.bf16.mxu0 %v6434_v8 }
 0xecf   : > { %v8395_v44 = vsub.f32 %v8302_v12, %v4262_v52  ;;  %v8398_v32 = vsub.f32 %v8299_v61, %v4261_v3  ;;  %v4318_v30 = vsel %vm597_vm0, %v4292_v46, 0.0  ;;  %v4315_v42 = vsel %vm597_vm0, %v4291_v58, 0.0  ;;  %v6431_v61 = vld [vmem:[%s8907_s11 + $0x8] sm:$0xff]  }
 0xed0   : > { %v4235_v37 = vpop.xlane.xlu1 %4234  ;;  %4319 = vadd.xlane.f32.xlu1 %v4318_v30  ;;  %4316 = vadd.xlane.f32.xlu0 %v4315_v42  ;;  %v4232_v7 = vpop.xlane.xlu0 %4231 }
 0xed1   : > { %v4264_v49 = vmul.f32 0.03125, %v4235_v37  ;;  %v4263_v38 = vmul.f32 0.03125, %v4232_v7  ;;  %v4294_v10 = vmul.f32 %v8395_v44, %v8395_v44  ;;  %v4293_v12 = vmul.f32 %v8398_v32, %v8398_v32  ;;  %6194 = vmatprep.subr.bf16.mxu1 %v6431_v61  ;;  %6217 = vmatpush3.bf16.msra.mxu0 %v6434_v8 }
 0xed2   : > { %6195 = vmatpush3.bf16.msra.mxu1 %v6431_v61  ;;  %6218 = vmatprep.subr.bf16.mxu0 %v6435_v22 }
 0xed3   : > { %v8410_v41 = vsub.f32 %v8320_v1, %v4264_v49  ;;  %v8413_v17 = vsub.f32 %v8313_v31, %v4263_v38  ;;  %v4324_v36 = vsel %vm597_vm0, %v4294_v10, 0.0  ;;  %v4321_v33 = vsel %vm597_vm0, %v4293_v12, 0.0 }
 0xed4   : > { %v4241_v60 = vpop.xlane.xlu1 %4240  ;;  %4325 = vadd.xlane.f32.xlu1 %v4324_v36  ;;  %4322 = vadd.xlane.f32.xlu0 %v4321_v33  ;;  %v4238_v55 = vpop.xlane.xlu0 %4237 }
 0xed5   : > { %v4266_v50 = vmul.f32 0.03125, %v4241_v60  ;;  %v4265_v43 = vmul.f32 0.03125, %v4238_v55  ;;  %v4296_v39 = vmul.f32 %v8410_v41, %v8410_v41  ;;  %v4295_v1 = vmul.f32 %v8413_v17, %v8413_v17  ;;  %6219 = vmatpush3.bf16.msra.mxu0 %v6435_v22 }
 0xed7   : > { %v8422_v31 = vsub.f32 %v8326_v27, %v4266_v50  ;;  %v8425_v9 = vsub.f32 %v8323_v6, %v4265_v43  ;;  %v4330_v29 = vsel %vm597_vm0, %v4296_v39, 0.0  ;;  %v4327_v2 = vsel %vm597_vm0, %v4295_v1, 0.0 }
 0xed8   : > { %v4247_v54 = vpop.xlane.xlu1 %4246  ;;  %4331 = vadd.xlane.f32.xlu1 %v4330_v29  ;;  %4328 = vadd.xlane.f32.xlu0 %v4327_v2  ;;  %v4244_v40 = vpop.xlane.xlu0 %4243 }
 0xed9   : > { %v4268_v11 = vmul.f32 0.03125, %v4247_v54  ;;  %v4267_v34 = vmul.f32 0.03125, %v4244_v40  ;;  %v4298_v47 = vmul.f32 %v8422_v31, %v8422_v31  ;;  %v4297_v27 = vmul.f32 %v8425_v9, %v8425_v9 }
 0xedb   : > { %v8434_v59 = vsub.f32 %v8344_v16, %v4268_v11  ;;  %v8437_v6 = vsub.f32 %v8337_v19, %v4267_v34  ;;  %v4336_v13 = vsel %vm597_vm0, %v4298_v47, 0.0  ;;  %v4333_v62 = vsel %vm597_vm0, %v4297_v27, 0.0  ;;  %v8475_v47 = vld [vmem:[%s8905_s9] ss:$0 sm:$0xff] }
 0xedc   : > { %v4253_v5 = vpop.xlane.xlu1 %4252  ;;  %4337 = vadd.xlane.f32.xlu1 %v4336_v13  ;;  %4334 = vadd.xlane.f32.xlu0 %v4333_v62  ;;  %v4250_v35 = vpop.xlane.xlu0 %4249 }
 0xedd   : > { %v4270_v57 = vmul.f32 0.03125, %v4253_v5  ;;  %v4269_v48 = vmul.f32 0.03125, %v4250_v35  ;;  %v4300_v28 = vmul.f32 %v8434_v59, %v8434_v59  ;;  %v4299_v16 = vmul.f32 %v8437_v6, %v8437_v6 }
 0xedf   : > { %v8446_v20 = vsub.f32 %v8350_v4, %v4270_v57  ;;  %v8449_v19 = vsub.f32 %v8347_v56, %v4269_v48  ;;  %v4342_v45 = vsel %vm597_vm0, %v4300_v28, 0.0  ;;  %v4339_v63 = vsel %vm597_vm0, %v4299_v16, 0.0  ;;  %v6432_v56 = vld [vmem:[%s8907_s11] sm:$0xff]  }
 0xee0   : > { %4343 = vadd.xlane.f32.xlu1 %v4342_v45  ;;  %4340 = vadd.xlane.f32.xlu0 %v4339_v63  ;;  %v8483_v63 = vld [vmem:[%s8906_s10] ss:$0 sm:$0xff] }
 0xee1   : > { %v4302_v0 = vmul.f32 %v8446_v20, %v8446_v20  ;;  %v4301_v18 = vmul.f32 %v8449_v19, %v8449_v19  ;;  %6196 = vmatprep.subr.bf16.mxu1 %v6432_v56 }
 0xee2   : > { %6197 = vmatpush3.bf16.msra.mxu1 %v6432_v56 }
 0xee3   : > { %v4348_v21 = vsel %vm597_vm0, %v4302_v0, 0.0  ;;  %v4345_v4 = vsel %vm597_vm0, %v4301_v18, 0.0 }
 0xee4   : > { %4349 = vadd.xlane.f32.xlu1 %v4348_v21  ;;  %4346 = vadd.xlane.f32.xlu0 %v4345_v4 }
 0xf4d   : > { %v4305_v23 = vpop.xlane.xlu0 %4304 }
 0xf4e   : > { %v4351_v52 = vmul.f32 0.03125, %v4305_v23 }
 0xf50   : > { %v4367_v3 = vadd.f32 1e-05, %v4351_v52 }
 0xf51   : > { %v4308_v46 = vpop.xlane.xlu1 %4307  ;;  %v4311_v58 = vpop.xlane.xlu0 %4310 }
 0xf52   : > { %6693 = vrsqrt.f32 %v4367_v3  ;;  %v4352_v30 = vmul.f32 0.03125, %v4308_v46  ;;  %v4353_v42 = vmul.f32 0.03125, %v4311_v58 }
 0xf54   : > { %v4368_v37 = vadd.f32 1e-05, %v4352_v30  ;;  %v4369_v7 = vadd.f32 1e-05, %v4353_v42 }
 0xf55   : > { %v4314_v49 = vpop.xlane.xlu1 %4313 }
 0xf56   : > { %6695 = vrsqrt.f32 %v4368_v37  ;;  %v4354_v38 = vmul.f32 0.03125, %v4314_v49 }
 0xf57   : > { %6697 = vrsqrt.f32 %v4369_v7 }
 0xf58   : > { %v4370_v10 = vadd.f32 1e-05, %v4354_v38 }
 0xf59   : > { %v4320_v12 = vpop.xlane.xlu1 %4319  ;;  %v4317_v61 = vpop.xlane.xlu0 %4316 }
 0xf5a   : > { %6699 = vrsqrt.f32 %v4370_v10  ;;  %v4356_v36 = vmul.f32 0.03125, %v4320_v12  ;;  %v4355_v33 = vmul.f32 0.03125, %v4317_v61 }
 0xf5c   : > { %v4372_v60 = vadd.f32 1e-05, %v4356_v36  ;;  %v4371_v55 = vadd.f32 1e-05, %v4355_v33 }
 0xf5d   : > { %v4326_v50 = vpop.xlane.xlu1 %4325  ;;  %v4323_v43 = vpop.xlane.xlu0 %4322 }
 0xf5e   : > { %6701 = vrsqrt.f32 %v4372_v60  ;;  %v4358_v39 = vmul.f32 0.03125, %v4326_v50  ;;  %v4357_v1 = vmul.f32 0.03125, %v4323_v43 }
 0xf5f   : > { %v6694_v29 = vpop.eup %6693  ;;  %6703 = vrsqrt.f32 %v4371_v55 }
 0xf60   : > { %v4374_v2 = vadd.f32 1e-05, %v4358_v39  ;;  %v4373_v54 = vadd.f32 1e-05, %v4357_v1  ;;  %v4399_v34 = vmul.f32 %v6694_v29, %v8361_v24 }
 0xf61   : > { %v4332_v40 = vpop.xlane.xlu1 %4331  ;;  %v4329_v11 = vpop.xlane.xlu0 %4328 }
 0xf62   : > { %6705 = vrsqrt.f32 %v4374_v2  ;;  %v4360_v27 = vmul.f32 0.03125, %v4332_v40  ;;  %v4359_v13 = vmul.f32 0.03125, %v4329_v11  ;;  %v4421_v24 = vmul.f32 %v8475_v47, %v4399_v34 }
 0xf63   : > { %v6696_v62 = vpop.eup %6695  ;;  %6707 = vrsqrt.f32 %v4373_v54 }
 0xf64   : > { %v6698_v5 = vpop.eup %6697  ;;  %v4376_v35 = vadd.f32 1e-05, %v4360_v27  ;;  %v4375_v57 = vadd.f32 1e-05, %v4359_v13  ;;  %v4400_v48 = vmul.f32 %v6696_v62, %v8366_v51  ;;  %v8492_v52 = vadd.f32 %v8483_v63, %v4421_v24 }
 0xf65   : > { %v4401_v28 = vmul.f32 %v6698_v5, %v8369_v25  ;;  %v4338_v16 = vpop.xlane.xlu1 %4337  ;;  %v4335_v45 = vpop.xlane.xlu0 %4334 }
 0xf66   : > { %6709 = vrsqrt.f32 %v4376_v35  ;;  %v4362_v0 = vmul.f32 0.03125, %v4338_v16  ;;  %v4361_v18 = vmul.f32 0.03125, %v4335_v45  ;;  %v4422_v21 = vmul.f32 %v8475_v47, %v4400_v48 }
 0xf67   : > { %v6700_v4 = vpop.eup %6699  ;;  %v4423_v56 = vmul.f32 %v8475_v47, %v4401_v28  ;;  %6711 = vrsqrt.f32 %v4375_v57 }
 0xf68   : > { %v4402_v51 = vmul.f32 %v6700_v4, %v8377_v15  ;;  %v4378_v25 = vadd.f32 1e-05, %v4362_v0  ;;  %v4377_v26 = vadd.f32 1e-05, %v4361_v18  ;;  %v8489_v8 = vadd.f32 %v8483_v63, %v4422_v21 }
 0xf69   : > { %v4344_v22 = vpop.xlane.xlu1 %4343  ;;  %v4341_v23 = vpop.xlane.xlu0 %4340  ;;  %v8496_v42 = vadd.f32 %v8483_v63, %v4423_v56 }
 0xf6a   : > { %v4424_v3 = vmul.f32 %v8475_v47, %v4402_v51  ;;  %6713 = vrsqrt.f32 %v4378_v25  ;;  %v4364_v46 = vmul.f32 0.03125, %v4344_v22  ;;  %v4363_v58 = vmul.f32 0.03125, %v4341_v23 }
 0xf6b   : > { %v6702_v30 = vpop.eup %6701  ;;  %6715 = vrsqrt.f32 %v4377_v26  ;;  %v4459_v15 = vpack.c.bf16 %v8489_v8, %v8492_v52 }
 0xf6c   : > { %v6704_v37 = vpop.eup %6703  ;;  %v8501_v7 = vadd.f32 %v8483_v63, %v4424_v3  ;;  %v4380_v49 = vadd.f32 1e-05, %v4364_v46  ;;  %v4379_v38 = vadd.f32 1e-05, %v4363_v58  ;;  %v4404_v10 = vmul.f32 %v6702_v30, %v8384_v14 }
 0xf6d   : > { %6198 = vmatprep.mubr.msk.bf16.mxu1 %vm597_vm0, %v4459_v15  ;;  %v4350_v12 = vpop.xlane.xlu1 %4349  ;;  %v4347_v61 = vpop.xlane.xlu0 %4346  ;;  %v4403_v36 = vmul.f32 %v6704_v37, %v8387_v53 }
 0xf6e   : > { %v4460_v33 = vpack.c.bf16 %v8501_v7, %v8496_v42  ;;  %6717 = vrsqrt.f32 %v4380_v49  ;;  %v4366_v60 = vmul.f32 0.03125, %v4350_v12  ;;  %v4365_v55 = vmul.f32 0.03125, %v4347_v61  ;;  %v6436_v12 = vld [vmem:[%s8909_s13] sm:$0xff]  }
 0xf6f   : > { %v6706_v50 = vpop.eup %6705  ;;  %6719 = vrsqrt.f32 %v4379_v38  ;;  %v4425_v43 = vmul.f32 %v8475_v47, %v4403_v36  ;;  %v4426_v39 = vmul.f32 %v8475_v47, %v4404_v10  ;;  %6220 = vmatprep.subr.bf16.mxu0 %v6436_v12  ;;  %v5368_v36 = vld [vmem:[%s8908_s12] ss:$0 sm:$0xff] }
 0xf70   : > { %v6708_v1 = vpop.eup %6707  ;;  %v4406_v14 = vmul.f32 %v6706_v50, %v8395_v44  ;;  %v4382_v29 = vadd.f32 1e-05, %v4366_v60  ;;  %v4381_v2 = vadd.f32 1e-05, %v4365_v55  ;;  %6199 = vmatmul.mubr.msk.bf16.vlgmr.msra.gmra.mxu1 %vm597_vm0, %v4460_v33  ;;  %6221 = vmatpush3.bf16.msra.mxu0 %v6436_v12 }
 0xf71   : > { %v4405_v53 = vmul.f32 %v6708_v1, %v8398_v32  ;;  %v8514_v54 = vadd.f32 %v8483_v63, %v4425_v43  ;;  %v8517_v40 = vadd.f32 %v8483_v63, %v4426_v39 }
 0xf72   : > { %6721 = vrsqrt.f32 %v4382_v29  ;;  %v4428_v11 = vmul.f32 %v8475_v47, %v4406_v14 }
 0xf73   : > { %v6710_v34 = vpop.eup %6709  ;;  %6723 = vrsqrt.f32 %v4381_v2  ;;  %v4461_v44 = vpack.c.bf16 %v8517_v40, %v8514_v54  ;;  %v4427_v27 = vmul.f32 %v8475_v47, %v4405_v53 }
 0xf74   : > { %v6712_v13 = vpop.eup %6711  ;;  %v8524_v62 = vadd.f32 %v8483_v63, %v4428_v11  ;;  %v4408_v32 = vmul.f32 %v6710_v34, %v8410_v41 }
 0xf75   : > { %6202 = vmatprep.mubr.msk.bf16.mxu1 %vm597_vm0, %v4461_v44  ;;  %v8529_v5 = vadd.f32 %v8483_v63, %v4427_v27  ;;  %v4407_v35 = vmul.f32 %v6712_v13, %v8413_v17 }
 0xf76   : > { %v4430_v57 = vmul.f32 %v8475_v47, %v4408_v32 }
 0xf77   : > { %v6714_v48 = vpop.eup %6713  ;;  %v4462_v28 = vpack.c.bf16 %v8524_v62, %v8529_v5  ;;  %v4429_v16 = vmul.f32 %v8475_v47, %v4407_v35 }
 0xf78   : > { %v6716_v45 = vpop.eup %6715  ;;  %v4410_v24 = vmul.f32 %v6714_v48, %v8422_v31  ;;  %v8538_v41 = vadd.f32 %v8483_v63, %v4430_v57 }
 0xf79   : > { %v4409_v0 = vmul.f32 %v6716_v45, %v8425_v9  ;;  %6203 = vmatmul.mubr.msk.bf16.gmra.mxu1 %vm597_vm0, %v4462_v28  ;;  %v8543_v17 = vadd.f32 %v8483_v63, %v4429_v16 }
 0xf7a   : > { %v4432_v18 = vmul.f32 %v8475_v47, %v4410_v24 }
 0xf7b   : > { %v6718_v21 = vpop.eup %6717  ;;  %v4463_v4 = vpack.c.bf16 %v8538_v41, %v8543_v17  ;;  %v4431_v56 = vmul.f32 %v8475_v47, %v4409_v0 }
 0xf7c   : > { %v6720_v51 = vpop.eup %6719  ;;  %v8550_v31 = vadd.f32 %v8483_v63, %v4432_v18  ;;  %v4412_v25 = vmul.f32 %v6718_v21, %v8434_v59 }
 0xf7d   : > { %6206 = vmatprep.mubr.msk.bf16.mxu1 %vm597_vm0, %v4463_v4  ;;  %v8555_v9 = vadd.f32 %v8483_v63, %v4431_v56  ;;  %v4411_v26 = vmul.f32 %v6720_v51, %v8437_v6 }
 0xf7e   : > { %v4434_v22 = vmul.f32 %v8475_v47, %v4412_v25 }
 0xf7f   : > { %v6722_v23 = vpop.eup %6721  ;;  %v4464_v3 = vpack.c.bf16 %v8550_v31, %v8555_v9  ;;  %v4433_v46 = vmul.f32 %v8475_v47, %v4411_v26 }
 0xf80   : > { %v6724_v58 = vpop.eup %6723  ;;  %v4414_v30 = vmul.f32 %v6722_v23, %v8446_v20  ;;  %v8564_v59 = vadd.f32 %v8483_v63, %v4434_v22 }
 0xf81   : > { %v4413_v15 = vmul.f32 %v6724_v58, %v8449_v19  ;;  %6207 = vmatmul.mubr.msk.bf16.gmra.mxu1 %vm597_vm0, %v4464_v3  ;;  %v8569_v6 = vadd.f32 %v8483_v63, %v4433_v46 }
 0xf82   : > { %v4436_v37 = vmul.f32 %v8475_v47, %v4414_v30 }
 0xf83   : > { %v4465_v49 = vpack.c.bf16 %v8564_v59, %v8569_v6  ;;  %v4435_v38 = vmul.f32 %v8475_v47, %v4413_v15 }
 0xf84   : > { %v8576_v10 = vadd.f32 %v8483_v63, %v4436_v37 }
 0xf85   : > { %6210 = vmatprep.mubr.msk.bf16.mxu1 %vm597_vm0, %v4465_v49  ;;  %v8580_v20 = vadd.f32 %v8483_v63, %v4435_v38 }
 0xf87   : > { %v4466_v19 = vpack.c.bf16 %v8576_v10, %v8580_v20 }
 0xf89   : > { %6211 = vmatmul.mubr.msk.bf16.gmra.mxu1 %vm597_vm0, %v4466_v19 }
0x1030   : > { %v6200_v47 = vpop.f32.mrf.mxu1 }
0x1031   : > { %v4557_v55 = vadd.f32 %v6200_v47, %v5368_v36 }
0x1032   : > { %v4548_v61 = vpop.f32.mrf.mxu1 }
0x1033   : > { %v4549_v63 = vadd.f32 %v5368_v36, %v4548_v61  ;;  %v4613_v2 = vmax.f32 %v4557_v55, 0.0 }
0x1034   : > { %v6201_v33 = vpop.f32.mrf.mxu1 }
0x1035   : > { %v4560_v60 = vadd.f32 %v6201_v33, %v5368_v36  ;;  %v4611_v1 = vmax.f32 %v4549_v63, 0.0 }
0x1036   : > { %v4551_v50 = vpop.f32.mrf.mxu1 }
0x1037   : > { %v4552_v43 = vadd.f32 %v5368_v36, %v4551_v50  ;;  %v4614_v39 = vmax.f32 %v4560_v60, 0.0 }
0x1039   : > { %v4612_v14 = vmax.f32 %v4552_v43, 0.0  ;;  %v6204_v29 = vpop.f32.mrf.mxu1  ;;  %v4628_v34 = vpack.c.bf16 %v4614_v39, %v4613_v2 }
0x103a   : > { %v4573_v32 = vadd.f32 %v6204_v29, %v5368_v36 }
0x103b   : > { %v4627_v53 = vpack.c.bf16 %v4612_v14, %v4611_v1  ;;  %v4564_v11 = vpop.f32.mrf.mxu1  ;;  %v8602_v1 = vld [vmem:[%s8910_s14] ss:$0 sm:$0xff] }
0x103c   : > { %v4565_v27 = vadd.f32 %v5368_v36, %v4564_v11  ;;  %v4617_v24 = vmax.f32 %v4573_v32, 0.0 }
0x103d   : > { %v6205_v44 = vpop.f32.mrf.mxu1  ;;  %6222 = vmatprep.mubr.msk.bf16.mxu0 %vm4674_vm4, %v4627_v53 }
0x103e   : > { %v4576_v13 = vadd.f32 %v6205_v44, %v5368_v36  ;;  %6223 = vmatmul.mubr.msk.bf16.vlgmr.msra.gmra.mxu0 %vm4674_vm4, %v4628_v34  ;;  %v4615_v16 = vmax.f32 %v4565_v27, 0.0 }
0x103f   : > { %v4567_v35 = vpop.f32.mrf.mxu1 }
0x1040   : > { %v4568_v57 = vadd.f32 %v5368_v36, %v4567_v35  ;;  %v4618_v48 = vmax.f32 %v4576_v13, 0.0 }
0x1041   : > { %v6208_v28 = vpop.f32.mrf.mxu1 }
0x1042   : > { %v4616_v45 = vmax.f32 %v4568_v57, 0.0  ;;  %v4630_v21 = vpack.c.bf16 %v4618_v48, %v4617_v24  ;;  %v4589_v25 = vadd.f32 %v6208_v28, %v5368_v36 }
0x1043   : > { %v4580_v0 = vpop.f32.mrf.mxu1 }
0x1044   : > { %v4629_v18 = vpack.c.bf16 %v4616_v45, %v4615_v16  ;;  %v4581_v56 = vadd.f32 %v5368_v36, %v4580_v0  ;;  %v4621_v30 = vmax.f32 %v4589_v25, 0.0 }
0x1045   : > { %v6209_v4 = vpop.f32.mrf.mxu1 }
0x1046   : > { %v4592_v51 = vadd.f32 %v6209_v4, %v5368_v36  ;;  %6226 = vmatprep.mubr.msk.bf16.mxu0 %vm4674_vm4, %v4629_v18  ;;  %v4619_v46 = vmax.f32 %v4581_v56, 0.0 }
0x1047   : > { %v4583_v26 = vpop.f32.mrf.mxu1  ;;  %6227 = vmatmul.mubr.msk.bf16.gmra.mxu0 %vm4674_vm4, %v4630_v21 }
0x1048   : > { %v4584_v22 = vadd.f32 %v5368_v36, %v4583_v26  ;;  %v4622_v23 = vmax.f32 %v4592_v51, 0.0 }
0x1049   : > { %v6212_v3 = vpop.f32.mrf.mxu1 }
0x104a   : > { %v4620_v58 = vmax.f32 %v4584_v22, 0.0  ;;  %v4632_v49 = vpack.c.bf16 %v4622_v23, %v4621_v30  ;;  %v4605_v47 = vadd.f32 %v6212_v3, %v5368_v36 }
0x104b   : > { %v4596_v15 = vpop.f32.mrf.mxu1 }
0x104c   : > { %v4631_v37 = vpack.c.bf16 %v4620_v58, %v4619_v46  ;;  %v4597_v19 = vadd.f32 %v5368_v36, %v4596_v15  ;;  %v4625_v50 = vmax.f32 %v4605_v47, 0.0 }
0x104d   : > { %v6213_v38 = vpop.f32.mrf.mxu1 }
0x104e   : > { %v4608_v12 = vadd.f32 %v6213_v38, %v5368_v36  ;;  %6230 = vmatprep.mubr.msk.bf16.mxu0 %vm4674_vm4, %v4631_v37  ;;  %v4623_v60 = vmax.f32 %v4597_v19, 0.0 }
0x104f   : > { %v4599_v61 = vpop.f32.mrf.mxu1  ;;  %6231 = vmatmul.mubr.msk.bf16.gmra.mxu0 %vm4674_vm4, %v4632_v49 }
0x1050   : > { %v4600_v33 = vadd.f32 %v5368_v36, %v4599_v61  ;;  %v4626_v63 = vmax.f32 %v4608_v12, 0.0 }
0x1052   : > { %v4624_v55 = vmax.f32 %v4600_v33, 0.0  ;;  %v4634_v39 = vpack.c.bf16 %v4626_v63, %v4625_v50 }
0x1054   : > { %v4633_v43 = vpack.c.bf16 %v4624_v55, %v4623_v60 }
0x1056   : > { %6234 = vmatprep.mubr.msk.bf16.mxu0 %vm4674_vm4, %v4633_v43 }
0x1057   : > { %6235 = vmatmul.mubr.msk.bf16.gmra.mxu0 %vm4674_vm4, %v4634_v39 }
0x10fe   : > { %v6224_v14 = vpop.f32.mrf.mxu0 }
0x10ff   : > { %v4742_v29 = vadd.f32 %v6224_v14, %v8602_v1 }
0x1100   : > { %v4733_v2 = vpop.f32.mrf.mxu0 }
0x1101   : > { %v8606_v36 = vadd.f32 %v4742_v29, %v8496_v42  ;;  %v4734_v53 = vadd.f32 %v8602_v1, %v4733_v2 }
0x1102   : > { %v6225_v11 = vpop.f32.mrf.mxu0 }
0x1103   : > { %v8610_v34 = vadd.f32 %v4734_v53, %v8492_v52  ;;  %v4745_v44 = vadd.f32 %v6225_v11, %v8602_v1  ;;  %v4820_v27 = vsel %vm597_vm0, %v8606_v36, 0.0 }
0x1104   : > { %4821 = vadd.xlane.f32.xlu0 %v4820_v27  ;;  %v4736_v13 = vpop.f32.mrf.mxu0 }
0x1105   : > { %v8616_v32 = vadd.f32 %v4745_v44, %v8501_v7  ;;  %v4737_v35 = vadd.f32 %v8602_v1, %v4736_v13  ;;  %v4814_v48 = vsel %vm597_vm0, %v8610_v34, 0.0 }
0x1107   : > { %v8620_v42 = vadd.f32 %v4737_v35, %v8489_v8  ;;  %v6228_v57 = vpop.f32.mrf.mxu0  ;;  %v4823_v52 = vsel %vm597_vm0, %v8616_v32, 0.0 }
0x1108   : > { %v4758_v28 = vadd.f32 %v6228_v57, %v8602_v1  ;;  %4824 = vadd.xlane.f32.xlu1 %v4823_v52  ;;  %4815 = vadd.xlane.f32.xlu0 %v4814_v48 }
0x1109   : > { %v4749_v16 = vpop.f32.mrf.mxu0  ;;  %v4817_v8 = vsel %vm597_vm0, %v8620_v42, 0.0 }
0x110a   : > { %v8628_v7 = vadd.f32 %v4758_v28, %v8529_v5  ;;  %v4750_v45 = vadd.f32 %v8602_v1, %v4749_v16 }
0x110b   : > { %v6229_v24 = vpop.f32.mrf.mxu0 }
0x110c   : > { %v8634_v0 = vadd.f32 %v4750_v45, %v8514_v54  ;;  %v4761_v18 = vadd.f32 %v6229_v24, %v8602_v1  ;;  %4818 = vadd.xlane.f32.xlu1 %v4817_v8  ;;  %v4832_v21 = vsel %vm597_vm0, %v8628_v7, 0.0 }
0x110d   : > { %4833 = vadd.xlane.f32.xlu0 %v4832_v21  ;;  %v4752_v4 = vpop.f32.mrf.mxu0 }
0x110e   : > { %v8640_v5 = vadd.f32 %v4761_v18, %v8524_v62  ;;  %v4753_v56 = vadd.f32 %v8602_v1, %v4752_v4  ;;  %v4826_v22 = vsel %vm597_vm0, %v8634_v0, 0.0 }
0x110f   : > { %v6232_v51 = vpop.f32.mrf.mxu0 }
0x1110   : > { %v8644_v25 = vadd.f32 %v4753_v56, %v8517_v40  ;;  %v4774_v54 = vadd.f32 %v6232_v51, %v8602_v1  ;;  %v4835_v26 = vsel %vm597_vm0, %v8640_v5, 0.0 }
0x1111   : > { %4836 = vadd.xlane.f32.xlu1 %v4835_v26  ;;  %4827 = vadd.xlane.f32.xlu0 %v4826_v22  ;;  %v4765_v23 = vpop.f32.mrf.mxu0 }
0x1112   : > { %v8652_v62 = vadd.f32 %v4774_v54, %v8555_v9  ;;  %v4766_v3 = vadd.f32 %v8602_v1, %v4765_v23  ;;  %v4829_v30 = vsel %vm597_vm0, %v8644_v25, 0.0 }
0x1113   : > { %v6233_v46 = vpop.f32.mrf.mxu0 }
0x1114   : > { %v8656_v40 = vadd.f32 %v4766_v3, %v8543_v17  ;;  %v4777_v58 = vadd.f32 %v6233_v46, %v8602_v1  ;;  %v4844_v15 = vsel %vm597_vm0, %v8652_v62, 0.0 }
0x1115   : > { %4830 = vadd.xlane.f32.xlu1 %v4829_v30  ;;  %4845 = vadd.xlane.f32.xlu0 %v4844_v15  ;;  %v4768_v37 = vpop.f32.mrf.mxu0 }
0x1116   : > { %v8664_v9 = vadd.f32 %v4777_v58, %v8550_v31  ;;  %v4769_v49 = vadd.f32 %v8602_v1, %v4768_v37  ;;  %v4838_v12 = vsel %vm597_vm0, %v8656_v40, 0.0 }
0x1117   : > { %v6236_v38 = vpop.f32.mrf.mxu0 }
0x1118   : > { %v8668_v17 = vadd.f32 %v4769_v49, %v8538_v41  ;;  %v4847_v19 = vsel %vm597_vm0, %v8664_v9, 0.0  ;;  %v4790_v61 = vadd.f32 %v6236_v38, %v8602_v1 }
0x1119   : > { %4848 = vadd.xlane.f32.xlu1 %v4847_v19  ;;  %4839 = vadd.xlane.f32.xlu0 %v4838_v12  ;;  %v4781_v47 = vpop.f32.mrf.mxu0 }
0x111a   : > { %v4782_v31 = vadd.f32 %v8602_v1, %v4781_v47  ;;  %v4841_v41 = vsel %vm597_vm0, %v8668_v17, 0.0  ;;  %v8682_v55 = vadd.f32 %v4790_v61, %v8580_v20 }
0x111b   : > { %v6237_v33 = vpop.f32.mrf.mxu0 }
0x111c   : > { %v8677_v63 = vadd.f32 %v4782_v31, %v8569_v6  ;;  %v4793_v50 = vadd.f32 %v6237_v33, %v8602_v1  ;;  %v4856_v20 = vsel %vm597_vm0, %v8682_v55, 0.0 }
0x111d   : > { %4842 = vadd.xlane.f32.xlu1 %v4841_v41  ;;  %v4784_v60 = vpop.f32.mrf.mxu0 }
0x111e   : > { %v4785_v43 = vadd.f32 %v8602_v1, %v4784_v60  ;;  %v4850_v39 = vsel %vm597_vm0, %v8677_v63, 0.0  ;;  %v8692_v6 = vadd.f32 %v4793_v50, %v8576_v10 }
0x111f   : > { %4851 = vadd.xlane.f32.xlu0 %v4850_v39 }
0x1120   : > { %v8689_v14 = vadd.f32 %v4785_v43, %v8564_v59  ;;  %v4859_v1 = vsel %vm597_vm0, %v8692_v6, 0.0 }
0x1122   : > { %v4853_v29 = vsel %vm597_vm0, %v8689_v14, 0.0 }
0x1123   : > { %4854 = vadd.xlane.f32.xlu1 %v4853_v29  ;;  %4857 = vadd.xlane.f32.xlu0 %v4856_v20 }
0x1127   : > { %4860 = vadd.xlane.f32.xlu1 %v4859_v1 }
0x118d   : > { %v4822_v2 = vpop.xlane.xlu0 %4821 }
0x118e   : > { %v4864_v53 = vmul.f32 0.03125, %v4822_v2 }
0x1190   : > { %v8701_v59 = vsub.f32 %v8606_v36, %v4864_v53 }
0x1191   : > { %v4825_v11 = vpop.xlane.xlu1 %4824  ;;  %v4816_v10 = vpop.xlane.xlu0 %4815 }
0x1192   : > { %v4865_v44 = vmul.f32 0.03125, %v4825_v11  ;;  %v4862_v27 = vmul.f32 0.03125, %v4816_v10  ;;  %v4896_v13 = vmul.f32 %v8701_v59, %v8701_v59 }
0x1194   : > { %v8706_v35 = vsub.f32 %v8616_v32, %v4865_v44  ;;  %v8709_v57 = vsub.f32 %v8610_v34, %v4862_v27  ;;  %v4916_v52 = vsel %vm597_vm0, %v4896_v13, 0.0 }
0x1195   : > { %v4819_v48 = vpop.xlane.xlu1 %4818  ;;  %4917 = vadd.xlane.f32.xlu0 %v4916_v52 }
0x1196   : > { %v4863_v28 = vmul.f32 0.03125, %v4819_v48  ;;  %v4834_v36 = vpop.xlane.xlu0 %4833  ;;  %v4897_v16 = vmul.f32 %v8706_v35, %v8706_v35  ;;  %v4894_v45 = vmul.f32 %v8709_v57, %v8709_v57 }
0x1197   : > { %v4868_v24 = vmul.f32 0.03125, %v4834_v36 }
0x1198   : > { %v8717_v8 = vsub.f32 %v8620_v42, %v4863_v28  ;;  %v4919_v32 = vsel %vm597_vm0, %v4897_v16, 0.0  ;;  %v4910_v34 = vsel %vm597_vm0, %v4894_v45, 0.0 }
0x1199   : > { %v8722_v18 = vsub.f32 %v8628_v7, %v4868_v24  ;;  %4920 = vadd.xlane.f32.xlu1 %v4919_v32  ;;  %4911 = vadd.xlane.f32.xlu0 %v4910_v34 }
0x119a   : > { %v4837_v21 = vpop.xlane.xlu1 %4836  ;;  %v4828_v4 = vpop.xlane.xlu0 %4827  ;;  %v4895_v56 = vmul.f32 %v8717_v8, %v8717_v8 }
0x119b   : > { %v4869_v51 = vmul.f32 0.03125, %v4837_v21  ;;  %v4866_v54 = vmul.f32 0.03125, %v4828_v4  ;;  %v4900_v42 = vmul.f32 %v8722_v18, %v8722_v18 }
0x119c   : > { %v4913_v26 = vsel %vm597_vm0, %v4895_v56, 0.0 }
0x119d   : > { %v8730_v22 = vsub.f32 %v8640_v5, %v4869_v51  ;;  %v8733_v7 = vsub.f32 %v8634_v0, %v4866_v54  ;;  %4914 = vadd.xlane.f32.xlu1 %v4913_v26  ;;  %v4928_v23 = vsel %vm597_vm0, %v4900_v42, 0.0 }
0x119e   : > { %v4831_v3 = vpop.xlane.xlu1 %4830  ;;  %4929 = vadd.xlane.f32.xlu0 %v4928_v23  ;;  %v4846_v46 = vpop.xlane.xlu0 %4845 }
0x119f   : > { %v4867_v58 = vmul.f32 0.03125, %v4831_v3  ;;  %v4872_v30 = vmul.f32 0.03125, %v4846_v46  ;;  %v4901_v15 = vmul.f32 %v8730_v22, %v8730_v22  ;;  %v4898_v37 = vmul.f32 %v8733_v7, %v8733_v7 }
0x11a1   : > { %v8741_v5 = vsub.f32 %v8644_v25, %v4867_v58  ;;  %v8744_v0 = vsub.f32 %v8652_v62, %v4872_v30  ;;  %v4931_v49 = vsel %vm597_vm0, %v4901_v15, 0.0  ;;  %v4922_v38 = vsel %vm597_vm0, %v4898_v37, 0.0 }
0x11a2   : > { %v4849_v19 = vpop.xlane.xlu1 %4848  ;;  %4932 = vadd.xlane.f32.xlu1 %v4931_v49  ;;  %4923 = vadd.xlane.f32.xlu0 %v4922_v38  ;;  %v4840_v12 = vpop.xlane.xlu0 %4839 }
0x11a3   : > { %v4873_v47 = vmul.f32 0.03125, %v4849_v19  ;;  %v4870_v61 = vmul.f32 0.03125, %v4840_v12  ;;  %v4899_v31 = vmul.f32 %v8741_v5, %v8741_v5  ;;  %v4904_v25 = vmul.f32 %v8744_v0, %v8744_v0 }
0x11a5   : > { %v8753_v33 = vsub.f32 %v8664_v9, %v4873_v47  ;;  %v8756_v62 = vsub.f32 %v8656_v40, %v4870_v61  ;;  %v4925_v41 = vsel %vm597_vm0, %v4899_v31, 0.0  ;;  %v4940_v60 = vsel %vm597_vm0, %v4904_v25, 0.0 }
0x11a6   : > { %v4843_v50 = vpop.xlane.xlu1 %4842  ;;  %4926 = vadd.xlane.f32.xlu1 %v4925_v41  ;;  %4941 = vadd.xlane.f32.xlu0 %v4940_v60 }
0x11a7   : > { %v4871_v43 = vmul.f32 0.03125, %v4843_v50  ;;  %v4905_v39 = vmul.f32 %v8753_v33, %v8753_v33  ;;  %v4902_v29 = vmul.f32 %v8756_v62, %v8756_v62  ;;  %v8799_v50 = vld [vmem:[%s8911_s15] ss:$0 sm:$0xff] }
0x11a8   : > { %v4852_v20 = vpop.xlane.xlu0 %4851 }
0x11a9   : > { %v8765_v9 = vsub.f32 %v8668_v17, %v4871_v43  ;;  %v4874_v40 = vmul.f32 0.03125, %v4852_v20  ;;  %v4943_v1 = vsel %vm597_vm0, %v4905_v39, 0.0  ;;  %v4934_v2 = vsel %vm597_vm0, %v4902_v29, 0.0  ;;  %v8805_v20 = vld [vmem:[%s8912_s16] ss:$0 sm:$0xff] }
0x11aa   : > { %4944 = vadd.xlane.f32.xlu1 %v4943_v1  ;;  %4935 = vadd.xlane.f32.xlu0 %v4934_v2 }
0x11ab   : > { %v8770_v53 = vsub.f32 %v8677_v63, %v4874_v40  ;;  %v4903_v11 = vmul.f32 %v8765_v9, %v8765_v9 }
0x11ac   : > { %v4855_v10 = vpop.xlane.xlu1 %4854  ;;  %v4858_v44 = vpop.xlane.xlu0 %4857 }
0x11ad   : > { %v4875_v27 = vmul.f32 0.03125, %v4855_v10  ;;  %v4876_v13 = vmul.f32 0.03125, %v4858_v44  ;;  %v4937_v17 = vsel %vm597_vm0, %v4903_v11, 0.0  ;;  %v4906_v52 = vmul.f32 %v8770_v53, %v8770_v53 }
0x11ae   : > { %4938 = vadd.xlane.f32.xlu1 %v4937_v17 }
0x11af   : > { %v8778_v48 = vsub.f32 %v8689_v14, %v4875_v27  ;;  %v8781_v28 = vsub.f32 %v8682_v55, %v4876_v13  ;;  %v4946_v63 = vsel %vm597_vm0, %v4906_v52, 0.0 }
0x11b0   : > { %v4861_v36 = vpop.xlane.xlu1 %4860  ;;  %4947 = vadd.xlane.f32.xlu0 %v4946_v63 }
0x11b1   : > { %v4877_v16 = vmul.f32 0.03125, %v4861_v36  ;;  %v4907_v45 = vmul.f32 %v8778_v48, %v8778_v48  ;;  %v4908_v24 = vmul.f32 %v8781_v28, %v8781_v28 }
0x11b3   : > { %v8789_v32 = vsub.f32 %v8692_v6, %v4877_v16  ;;  %v4949_v14 = vsel %vm597_vm0, %v4907_v45, 0.0  ;;  %v4952_v34 = vsel %vm597_vm0, %v4908_v24, 0.0 }
0x11b4   : > { %4950 = vadd.xlane.f32.xlu1 %v4949_v14  ;;  %4953 = vadd.xlane.f32.xlu0 %v4952_v34 }
0x11b5   : > { %v4909_v55 = vmul.f32 %v8789_v32, %v8789_v32 }
0x11b7   : > { %v4955_v21 = vsel %vm597_vm0, %v4909_v55, 0.0 }
0x11b8   : > { %4956 = vadd.xlane.f32.xlu1 %v4955_v21 }
0x121e   : > { %v4918_v4 = vpop.xlane.xlu0 %4917 }
0x121f   : > { %v4960_v56 = vmul.f32 0.03125, %v4918_v4 }
0x1221   : > { %v4976_v51 = vadd.f32 1e-05, %v4960_v56 }
0x1222   : > { %v4921_v54 = vpop.xlane.xlu1 %4920  ;;  %v4912_v42 = vpop.xlane.xlu0 %4911 }
0x1223   : > { %6725 = vrsqrt.f32 %v4976_v51  ;;  %v4961_v6 = vmul.f32 0.03125, %v4921_v54  ;;  %v4958_v26 = vmul.f32 0.03125, %v4912_v42 }
0x1225   : > { %v4977_v23 = vadd.f32 1e-05, %v4961_v6  ;;  %v4974_v3 = vadd.f32 1e-05, %v4958_v26 }
0x1226   : > { %v4915_v46 = vpop.xlane.xlu1 %4914 }
0x1227   : > { %6727 = vrsqrt.f32 %v4977_v23  ;;  %v4959_v58 = vmul.f32 0.03125, %v4915_v46  ;;  %v4930_v30 = vpop.xlane.xlu0 %4929 }
0x1228   : > { %6729 = vrsqrt.f32 %v4974_v3  ;;  %v4964_v15 = vmul.f32 0.03125, %v4930_v30 }
0x1229   : > { %v4975_v37 = vadd.f32 1e-05, %v4959_v58 }
0x122a   : > { %v4980_v49 = vadd.f32 1e-05, %v4964_v15 }
0x122b   : > { %6731 = vrsqrt.f32 %v4975_v37  ;;  %v4933_v38 = vpop.xlane.xlu1 %4932  ;;  %v4924_v19 = vpop.xlane.xlu0 %4923 }
0x122c   : > { %6733 = vrsqrt.f32 %v4980_v49  ;;  %v4965_v12 = vmul.f32 0.03125, %v4933_v38  ;;  %v4962_v47 = vmul.f32 0.03125, %v4924_v19 }
0x122e   : > { %v4981_v61 = vadd.f32 1e-05, %v4965_v12  ;;  %v4978_v31 = vadd.f32 1e-05, %v4962_v47 }
0x122f   : > { %v4927_v25 = vpop.xlane.xlu1 %4926  ;;  %v4942_v41 = vpop.xlane.xlu0 %4941 }
0x1230   : > { %v6726_v60 = vpop.eup %6725  ;;  %6735 = vrsqrt.f32 %v4981_v61  ;;  %v4963_v43 = vmul.f32 0.03125, %v4927_v25  ;;  %v4968_v39 = vmul.f32 0.03125, %v4942_v41 }
0x1231   : > { %v5008_v29 = vmul.f32 %v6726_v60, %v8701_v59  ;;  %6737 = vrsqrt.f32 %v4978_v31 }
0x1232   : > { %v4979_v40 = vadd.f32 1e-05, %v4963_v43  ;;  %v4984_v1 = vadd.f32 1e-05, %v4968_v39 }
0x1233   : > { %v5030_v2 = vmul.f32 %v8799_v50, %v5008_v29  ;;  %v4945_v11 = vpop.xlane.xlu1 %4944  ;;  %v4936_v10 = vpop.xlane.xlu0 %4935 }
0x1234   : > { %v6728_v44 = vpop.eup %6727  ;;  %6739 = vrsqrt.f32 %v4979_v40  ;;  %v4969_v59 = vmul.f32 0.03125, %v4945_v11  ;;  %v4966_v27 = vmul.f32 0.03125, %v4936_v10 }
0x1235   : > { %v6730_v13 = vpop.eup %6729  ;;  %v5052_v17 = vadd.f32 %v8805_v20, %v5030_v2  ;;  %v5009_v52 = vmul.f32 %v6728_v44, %v8706_v35  ;;  %6741 = vrsqrt.f32 %v4984_v1 }
0x1236   : > { %v5006_v63 = vmul.f32 %v6730_v13, %v8709_v57  ;;  %v4985_v36 = vadd.f32 1e-05, %v4969_v59  ;;  %v4982_v16 = vadd.f32 1e-05, %v4966_v27 }
0x1237   : > { %5068 = vst.msk [vmem:[%s8813_s20 + $0x10] sm:$0xff] %vm597_vm0, %v5052_v17  ;;  %v5031_v45 = vmul.f32 %v8799_v50, %v5009_v52  ;;  %v4939_v24 = vpop.xlane.xlu1 %4938 }
0x1238   : > { %v6732_v14 = vpop.eup %6731  ;;  %v5028_v34 = vmul.f32 %v8799_v50, %v5006_v63  ;;  %6743 = vrsqrt.f32 %v4985_v36  ;;  %v4967_v55 = vmul.f32 0.03125, %v4939_v24 }
0x1239   : > { %v6734_v21 = vpop.eup %6733  ;;  %v5053_v35 = vadd.f32 %v8805_v20, %v5031_v45  ;;  %v5007_v4 = vmul.f32 %v6732_v14, %v8717_v8  ;;  %6745 = vrsqrt.f32 %v4982_v16  ;;  %v4948_v57 = vpop.xlane.xlu0 %4947 }
0x123a   : > { %v5050_v56 = vadd.f32 %v8805_v20, %v5028_v34  ;;  %v5012_v51 = vmul.f32 %v6734_v21, %v8722_v18  ;;  %v4983_v54 = vadd.f32 1e-05, %v4967_v55  ;;  %v4970_v42 = vmul.f32 0.03125, %v4948_v57 }
0x123b   : > { %5069 = vst.msk [vmem:[%s8813_s20 + $0x18] sm:$0xff] %vm597_vm0, %v5053_v35  ;;  %v5029_v6 = vmul.f32 %v8799_v50, %v5007_v4 }
0x123c   : > { %5066 = vst.msk [vmem:[%s8813_s20] sm:$0xff] %vm597_vm0, %v5050_v56  ;;  %v5034_v26 = vmul.f32 %v8799_v50, %v5012_v51  ;;  %6747 = vrsqrt.f32 %v4983_v54  ;;  %v4986_v8 = vadd.f32 1e-05, %v4970_v42 }
0x123d   : > { %v6736_v23 = vpop.eup %6735  ;;  %v5051_v3 = vadd.f32 %v8805_v20, %v5029_v6  ;;  %v4951_v46 = vpop.xlane.xlu1 %4950 }
0x123e   : > { %v4954_v58 = vpop.xlane.xlu0 %4953  ;;  %v6738_v18 = vpop.eup %6737  ;;  %v5056_v30 = vadd.f32 %v8805_v20, %v5034_v26  ;;  %v5013_v15 = vmul.f32 %v6736_v23, %v8730_v22  ;;  %6749 = vrsqrt.f32 %v4986_v8  ;;  %v4971_v37 = vmul.f32 0.03125, %v4951_v46 }
0x123f   : > { %5067 = vst.msk [vmem:[%s8813_s20 + $0x8] sm:$0xff] %vm597_vm0, %v5051_v3  ;;  %v5010_v49 = vmul.f32 %v6738_v18, %v8733_v7  ;;  %v4972_v38 = vmul.f32 0.03125, %v4954_v58 }
0x1240   : > { %5072 = vst.msk [vmem:[%s8813_s20 + $0x30] sm:$0xff] %vm597_vm0, %v5056_v30  ;;  %v5035_v19 = vmul.f32 %v8799_v50, %v5013_v15  ;;  %v4987_v12 = vadd.f32 1e-05, %v4971_v37 }
0x1241   : > { %v6740_v47 = vpop.eup %6739  ;;  %v5032_v61 = vmul.f32 %v8799_v50, %v5010_v49  ;;  %v4988_v31 = vadd.f32 1e-05, %v4972_v38  ;;  %v4957_v25 = vpop.xlane.xlu1 %4956 }
0x1242   : > { %v6742_v22 = vpop.eup %6741  ;;  %v5057_v41 = vadd.f32 %v8805_v20, %v5035_v19  ;;  %v5011_v60 = vmul.f32 %v6740_v47, %v8741_v5  ;;  %6751 = vrsqrt.f32 %v4987_v12  ;;  %v4973_v7 = vmul.f32 0.03125, %v4957_v25 }
0x1243   : > { %v5054_v43 = vadd.f32 %v8805_v20, %v5032_v61  ;;  %v5016_v39 = vmul.f32 %v6742_v22, %v8744_v0  ;;  %6753 = vrsqrt.f32 %v4988_v31 }
0x1244   : > { %5073 = vst.msk [vmem:[%s8813_s20 + $0x38] sm:$0xff] %vm597_vm0, %v5057_v41  ;;  %v5033_v29 = vmul.f32 %v8799_v50, %v5011_v60  ;;  %v4989_v40 = vadd.f32 1e-05, %v4973_v7 }
0x1245   : > { %v6744_v1 = vpop.eup %6743  ;;  %5070 = vst.msk [vmem:[%s8813_s20 + $0x20] sm:$0xff] %vm597_vm0, %v5054_v43  ;;  %v5038_v2 = vmul.f32 %v8799_v50, %v5016_v39 }
0x1246   : > { %v6746_v5 = vpop.eup %6745  ;;  %v5055_v11 = vadd.f32 %v8805_v20, %v5033_v29  ;;  %v5017_v10 = vmul.f32 %v6744_v1, %v8753_v33  ;;  %6755 = vrsqrt.f32 %v4989_v40 }
0x1247   : > { %v5060_v0 = vadd.f32 %v8805_v20, %v5038_v2  ;;  %v5014_v44 = vmul.f32 %v6746_v5, %v8756_v62 }
0x1248   : > { %5071 = vst.msk [vmem:[%s8813_s20 + $0x28] sm:$0xff] %vm597_vm0, %v5055_v11  ;;  %v5039_v59 = vmul.f32 %v8799_v50, %v5017_v10 }
0x1249   : > { %v6748_v27 = vpop.eup %6747  ;;  %5076 = vst.msk [vmem:[%s8813_s20 + $0x50] sm:$0xff] %vm597_vm0, %v5060_v0  ;;  %v5036_v13 = vmul.f32 %v8799_v50, %v5014_v44 }
0x124a   : > { %v5061_v17 = vadd.f32 %v8805_v20, %v5039_v59  ;;  %v5015_v33 = vmul.f32 %v6748_v27, %v8765_v9 }
0x124b   : > { %v6750_v52 = vpop.eup %6749  ;;  %v5058_v63 = vadd.f32 %v8805_v20, %v5036_v13 }
0x124c   : > { %5077 = vst.msk [vmem:[%s8813_s20 + $0x58] sm:$0xff] %vm597_vm0, %v5061_v17  ;;  %v5037_v62 = vmul.f32 %v8799_v50, %v5015_v33  ;;  %v5018_v36 = vmul.f32 %v6750_v52, %v8770_v53 }
0x124d   : > { %5074 = vst.msk [vmem:[%s8813_s20 + $0x40] sm:$0xff] %vm597_vm0, %v5058_v63 }
0x124e   : > { %v5059_v16 = vadd.f32 %v8805_v20, %v5037_v62  ;;  %v5040_v45 = vmul.f32 %v8799_v50, %v5018_v36 }
0x124f   : > { %v6752_v24 = vpop.eup %6751 }
0x1250   : > { %v6754_v14 = vpop.eup %6753  ;;  %5075 = vst.msk [vmem:[%s8813_s20 + $0x48] sm:$0xff] %vm597_vm0, %v5059_v16  ;;  %v5062_v9 = vadd.f32 %v8805_v20, %v5040_v45  ;;  %v5019_v34 = vmul.f32 %v6752_v24, %v8778_v48 }
0x1251   : > { %v5020_v55 = vmul.f32 %v6754_v14, %v8781_v28 }
0x1252   : > { %5078 = vst.msk [vmem:[%s8813_s20 + $0x60] sm:$0xff] %vm597_vm0, %v5062_v9  ;;  %v5041_v53 = vmul.f32 %v8799_v50, %v5019_v34 }
0x1253   : > { %v6756_v21 = vpop.eup %6755  ;;  %v5042_v35 = vmul.f32 %v8799_v50, %v5020_v55 }
0x1254   : > { %v5063_v4 = vadd.f32 %v8805_v20, %v5041_v53  ;;  %v5021_v57 = vmul.f32 %v6756_v21, %v8789_v32 }
0x1255   : > { %v5064_v56 = vadd.f32 %v8805_v20, %v5042_v35 }
0x1256   : > { %5079 = vst.msk [vmem:[%s8813_s20 + $0x68] sm:$0xff] %vm597_vm0, %v5063_v4  ;;  %v5043_v51 = vmul.f32 %v8799_v50, %v5021_v57 }
0x1257   : > { %5080 = vst.msk [vmem:[%s8813_s20 + $0x70] sm:$0xff] %vm597_vm0, %v5064_v56 }
0x1258   : > { %v5065_v48 = vadd.f32 %v8805_v20, %v5043_v51 }
0x125a   : > { %5081 = vst.msk [vmem:[%s8813_s20 + $0x78] sm:$0xff] %vm597_vm0, %v5065_v48 }
0x125b PF: > { %s27_s24 = sadd.s32 1, %s6779_s24  }
0x125c   : > { %p24_p4 = scmp.ge.s32.totalorder %s27_s24, 4  }
0x125e   :  { %26 = sbr.rel (!%p24_p4) target bundleno = 3 (0x3), region = 136 }

// kernel: abinet_forward.17
= control target key start
LH: loop header
LB: loop body
LE: loop exit
PB: predicated region body
PF: predicated region fallthrough
CT: control target
= control target key end

     0   :  { %s3089_s0 = inlined_call_operand.vmem [shape: f32[1,8,32], index: 0, kind: input, shape index: {}]   ;;  %s3090_s1 = inlined_call_operand.vmem [shape: f32[2,8,32], index: 1, kind: input, shape index: {}]   ;;  %s3091_s2 = inlined_call_operand.vmem [shape: f32[2,8,8], index: 2, kind: input, shape index: {}]   ;;  %s3092_s3 = inlined_call_operand.vmem [shape: bf16[4,32,8], index: 3, kind: input, shape index: {}]   ;;  %s3093_s4 = inlined_call_operand.vmem [shape: f32[4,1,8], index: 4, kind: input, shape index: {}]   ;;  %s3094_s5 = inlined_call_operand.vmem [shape: bf16[4,32,8], index: 5, kind: input, shape index: {}]   ;;  %s3095_s6 = inlined_call_operand.vmem [shape: f32[4,1,8], index: 6, kind: input, shape index: {}]   ;;  %s3096_s7 = inlined_call_operand.vmem [shape: bf16[4,32,8], index: 7, kind: input, shape index: {}]   ;;  %s3097_s8 = inlined_call_operand.vmem [shape: f32[4,1,8], index: 8, kind: input, shape index: {}]   ;;  %s3098_s9 = inlined_call_operand.vmem [shape: bf16[32,32], index: 9, kind: input, shape index: {}]   ;;  %s3099_s10 = inlined_call_operand.vmem [shape: f32[1,32], index: 10, kind: input, shape index: {}]   ;;  %s3100_s11 = inlined_call_operand.vmem [shape: f32[1,32], index: 11, kind: input, shape index: {}]   ;;  %s3101_s12 = inlined_call_operand.vmem [shape: f32[1,32], index: 12, kind: input, shape index: {}]   ;;  %s3102_s13 = inlined_call_operand.vmem [shape: bf16[32,64], index: 13, kind: input, shape index: {}]   ;;  %s3103_s14 = inlined_call_operand.vmem [shape: f32[1,64], index: 14, kind: input, shape index: {}]   ;;  %s3104_s15 = inlined_call_operand.vmem [shape: bf16[64,32], index: 15, kind: input, shape index: {}]   ;;  %s3105_s16 = inlined_call_operand.vmem [shape: f32[1,32], index: 16, kind: input, shape index: {}]   ;;  %s3106_s17 = inlined_call_operand.vmem [shape: f32[1,32], index: 17, kind: input, shape index: {}]   ;;  %s3107_s18 = inlined_call_operand.vmem [shape: f32[1,32], index: 18, kind: input, shape index: {}]   ;;  %s3108_s19 = inlined_call_operand.vmem [shape: f32[2,8,32], index: 19, kind: output, shape index: {}]  }
   0x1   :  { %3110 = sst [smem:[#allocation2_spill]] %s3089_s0  ;;  %s2745_s0 = smov 0  }
   0x2   :  { %3111 = sst [smem:[#allocation3_spill]] %s3090_s1 }
   0x3   :  { %3112 = sst [smem:[#allocation4_spill]] %s3091_s2 }
   0x4   :  { %3113 = sst [smem:[#allocation5_spill]] %s3092_s3 }
   0x5 LB: > { %s2203_s30 = sadd.s32 4294967295, %s2638_s0   ;;  %p2207_p0 = scmp.ge.s32.totalorder %s2638_s0, 1  ;;  %s2638_s0 = sphi %s2745_s0, %s29_s0  }
   0x6   : > { %p545_p1 = scmp.lt.s32.totalorder %s2638_s0, 3 }
   0x8   : > { %p546_p2 = pnand %p2207_p0, %p545_p1 }
   0x9   : > { %s3114_s1 = sld [smem:[#allocation5_spill]] (!%p546_p2)  ;;  %p603_p3 = scmp.lt.s32.totalorder (!%p546_p2), %s2203_s30, 1 }
   0xa   : > { %549 = sbr.rel (%p546_p2) target bundleno = 4443 (0x115b), region = 96  ;;  %s3115_s25 = sld [smem:[#allocation2_spill]] (!%p546_p2) }
   0xb   : > { %s3116_s22 = sld [smem:[#allocation3_spill]] (!%p546_p2)  ;;  %s2642_s28 = smov (!%p546_p2), 8  }
   0xc   : > { %s2643_s21 = smov (!%p546_p2), 16   ;;  %s2644_s24 = smov (!%p546_p2), 24  }
   0xf   : > { %v2580_v0 = vld [vmem:[%s3114_s1 + $0x8] sm:$0xff]   ;;  %v2640_v1 = vmov 0.0   ;;  %v2581_v2 = vld [vmem:[%s3114_s1] sm:$0xff]   ;;  %vm2641_vm0 = vmmov 0   ;;  %vm644_vm1 = vcmask 261120   ;;  %s3119_s30 = smov (!%p603_p3, %s2203_s30), 1 }
  0x10   : > { %2395 = vmatprep.subr.bf16.mxu1 %v2640_v1  ;;  %2411 = vmatprep.subr.bf16.mxu0 %v2640_v1  ;;  %v2766_v3 = vld [vmem:[%s3115_s25] sm:$0xff]  ;;  %v2582_v5 = vld [vmem:[%s3094_s5 + $0x8] sm:$0xff]   ;;  %s2779_s27 = sshll.u32 %s3119_s30, 3  ;;  %vm819_vm2 = vcmask 64512   ;;  %vm884_vm3 = vcmask 1043456   ;;  %v2587_v47 = vld [vmem:[%s3114_s1 + $0x18] sm:$0xff]  }
  0x11   : > { %2396 = vmatpush3.bf16.msra.mxu1 %v2580_v0  ;;  %2399 = vmatprep.mubr.msk.bf16.mxu1 %vm2641_vm0, %v2640_v1  ;;  %v2773_v4 = vpack.c.bf16 %v2766_v3, %v2766_v3  ;;  %v2583_v6 = vld [vmem:[%s3094_s5] sm:$0xff]   ;;  %s606_s2 = scalar_lea.vmem %s3116_s22, %s2779_s27  ;;  %v2584_v24 = vld [vmem:[%s3096_s7 + $0x8] sm:$0xff]   ;;  %s3117_s22 = sld [smem:[#allocation4_spill]]  ;;  %v2589_v48 = vld [vmem:[%s3114_s1 + $0x10] sm:$0xff]   ;;  %vm1853_vm4 = vcmask 130048   ;;  %vm1855_vm5 = vcmask 195584  }
  0x12   : > { %2397 = vmatprep.subr.bf16.mxu1 %v2640_v1  ;;  %2415 = vmatprep.mubr.msk.bf16.mxu0 %vm2641_vm0, %v2640_v1  ;;  %v617_v7 = vld [vmem:[%s606_s2] sm:$0xff]  ;;  %v2586_v52 = vld [vmem:[%s3094_s5 + $0x18] sm:$0xff]   ;;  %v2588_v54 = vld [vmem:[%s3094_s5 + $0x10] sm:$0xff]   ;;  %vm2063_vm6 = vcmask 523264   ;;  %s614_s29 = scalar_lea.vmem %s3108_s19, %s2779_s27 }
  0x13   : > { %v2793_v8 = vpack.c.bf16 %v617_v7, %v617_v7  ;;  %v2215_v13 = vld [vmem:[%s3095_s6] ss:$0 sm:$0xff]  ;;  %2412 = vmatpush3.bf16.msra.mxu0 %v2584_v24  ;;  %v2239_v63 = vld [vmem:[%s3095_s6 + $0x1] ss:$0 sm:$0xff] }
  0x14   : > { %v2211_v18 = vld [vmem:[%s3093_s4] ss:$0 sm:$0xff]  ;;  %2413 = vmatprep.subr.bf16.mxu0 %v2640_v1 }
  0x15   : > { %2398 = vmatpush3.bf16.msra.mxu1 %v2581_v2  ;;  %v2585_v25 = vld [vmem:[%s3096_s7] sm:$0xff]  }
  0x16   : > { %2403 = vmatprep.subr.bf16.mxu1 %v2640_v1  ;;  %v2219_v34 = vld [vmem:[%s3097_s8] ss:$0 sm:$0xff] }
  0x17   : > { %2414 = vmatpush3.bf16.msra.mxu0 %v2585_v25  ;;  %s610_s2 = scalar_lea.vmem %s3117_s22, %s2779_s27 }
  0x18   : > { %2400 = vmatmul.mubr.msk.bf16.vlgmr.msra.gmra.mxu1 %vm644_vm1, %v2773_v4  ;;  %2425 = vmatprep.subr.bf16.mxu0 %v2640_v1  ;;  %v2827_v27 = vld [vmem:[%s610_s2] sm:$0xff] }
  0x19   : > { %2404 = vmatpush3.bf16.msra.mxu1 %v2582_v5  ;;  %2407 = vmatprep.mubr.msk.bf16.mxu1 %vm2641_vm0, %v2640_v1  ;;  %v2230_v5 = vld [vmem:[%s3093_s4 + $0x1] ss:$0 sm:$0xff] }
  0x1a   : > { %2405 = vmatprep.subr.bf16.mxu1 %v2640_v1  ;;  %2416 = vmatmul.mubr.msk.bf16.vlgmr.msra.gmra.mxu0 %vm644_vm1, %v2793_v8 }
  0x1b   : > { %2427 = vmatprep.mubr.msk.bf16.mxu0 %vm2641_vm0, %v2640_v1 }
  0x1d   : > { %2406 = vmatpush3.bf16.msra.mxu1 %v2583_v6 }
  0x1e   : > { %2419 = vmatprep.subr.bf16.mxu1 %v2640_v1 }
  0x20   : > { %2408 = vmatmul.mubr.msk.bf16.vlgmr.msra.gmra.mxu1 %vm644_vm1, %v2793_v8 }
  0x21   : > { %2421 = vmatprep.mubr.msk.bf16.mxu1 %vm2641_vm0, %v2640_v1 }
  0xd8   : > { %v682_v9 = vpop.f32.mrf.mxu1 }
  0xd9   : > { %v683_v22 = vadd.f32 %v2211_v18, %v682_v9 }
  0xda   : > { %v2401_v10 = vpop.f32.mrf.mxu1  ;;  %v811_v35 = vpop.f32.mrf.mxu0 }
  0xdb   : > { %v817_v23 = vpack.c.bf16 %v683_v22, %v683_v22  ;;  %v812_v36 = vadd.f32 %v2219_v34, %v811_v35 }
  0xdc   : > { %v685_v11 = vpop.f32.mrf.mxu1  ;;  %v2417_v37 = vpop.f32.mrf.mxu0 }
  0xdd   : > { %v880_v38 = vpack.c.bf16 %v812_v36, %v812_v36  ;;  %v2593_v37 = vld [vmem:[%s3114_s1 + $0x28] sm:$0xff]  }
  0xde   : > { %v2402_v12 = vpop.f32.mrf.mxu1  ;;  %v814_v39 = vpop.f32.mrf.mxu0 }
  0xdf   : > { %v886_v40 = vsel %vm884_vm3, %v880_v38, 0  ;;  %v2595_v38 = vld [vmem:[%s3114_s1 + $0x20] sm:$0xff]  }
  0xe0   : > { %v748_v14 = vpop.f32.mrf.mxu1  ;;  %v2418_v41 = vpop.f32.mrf.mxu0  ;;  %2426 = vmatpush3.bf16.msra.mxu0 %v886_v40 }
  0xe1   : > { %v749_v15 = vadd.f32 %v2215_v13, %v748_v14  ;;  %2439 = vmatprep.subr.bf16.mxu0 %v2640_v1  ;;  %v2590_v14 = vld [vmem:[%s3096_s7 + $0x18] sm:$0xff]  }
  0xe2   : > { %v2409_v16 = vpop.f32.mrf.mxu1 }
  0xe3   : > { %v818_v17 = vpack.c.bf16 %v749_v15, %v749_v15  ;;  %v2591_v15 = vld [vmem:[%s3096_s7 + $0x10] sm:$0xff]  }
  0xe4   : > { %v751_v19 = vpop.f32.mrf.mxu1 }
  0xe5   : > { %v824_v20 = vsel %vm819_vm2, %v818_v17, 0 }
  0xe6   : > { %v2410_v21 = vpop.f32.mrf.mxu1  ;;  %2420 = vmatpush3.bf16.xpose.msra.mxu1 %v824_v20 }
  0xe7   : > { %2431 = vmatprep.subr.bf16.mxu1 %v2640_v1 }
  0xed   : > { %2422 = vmatmul.mubr.msk.bf16.vlgmr.msra.gmra.mxu1 %vm819_vm2, %v817_v23 }
  0xee   : > { %2435 = vmatprep.mubr.msk.bf16.mxu1 %vm2641_vm0, %v2640_v1  ;;  %2432 = vmatpush3.bf16.msra.mxu1 %v2587_v47 }
  0xef   : > { %2433 = vmatprep.subr.bf16.mxu1 %v2640_v1 }
  0xf2   : > { %2434 = vmatpush3.bf16.msra.mxu1 %v2589_v48 }
  0xf3   : > { %2447 = vmatprep.subr.bf16.mxu1 %v2640_v1 }
  0xf5   : > { %2436 = vmatmul.mubr.msk.bf16.vlgmr.msra.gmra.mxu1 %vm644_vm1, %v2773_v4 }
  0xf6   : > { %2451 = vmatprep.mubr.msk.bf16.mxu1 %vm2641_vm0, %v2640_v1  ;;  %2448 = vmatpush3.bf16.msra.mxu1 %v2590_v14  ;;  %v2277_v14 = vld [vmem:[%s3097_s8 + $0x2] ss:$0 sm:$0xff] }
  0xf7   : > { %2449 = vmatprep.subr.bf16.mxu1 %v2640_v1 }
  0xfa   : > { %2450 = vmatpush3.bf16.msra.mxu1 %v2591_v15 }
  0xfb   : > { %2461 = vmatprep.subr.bf16.mxu1 %v2640_v1 }
  0xfd   : > { %2452 = vmatmul.mubr.msk.bf16.vlgmr.msra.gmra.mxu1 %vm644_vm1, %v2793_v8 }
  0xfe   : > { %2463 = vmatprep.mubr.msk.bf16.mxu1 %vm2641_vm0, %v2640_v1 }
 0x1ad   : > { %v860_v26 = vpop.f32.mrf.mxu1 }
 0x1ae   : > { %v866_v28 = vmul.f32 0.35355338, %v860_v26 }
 0x1af   : > { %v2423_v29 = vpop.f32.mrf.mxu1 }
 0x1b0   : > { %v867_v30 = vadd.f32 %v866_v28, %v2827_v27  ;;  %v2248_v29 = vld [vmem:[%s3097_s8 + $0x1] ss:$0 sm:$0xff] }
 0x1b1   : > { %v863_v31 = vpop.f32.mrf.mxu1 }
 0x1b2   : > { %v868_v32 = vsel %vm819_vm2, %v867_v30, -inf }
 0x1b3   : > { %869 = vmax.xlane.f32.xlu0 %v868_v32  ;;  %v2424_v33 = vpop.f32.mrf.mxu1 }
 0x1b5   : > { %v987_v55 = vpop.f32.mrf.mxu1 }
 0x1b6   : > { %v988_v11 = vadd.f32 %v2230_v5, %v987_v55  ;;  %v2597_v5 = vld [vmem:[%s3096_s7 + $0x20] sm:$0xff]  }
 0x1b7   : > { %v2437_v56 = vpop.f32.mrf.mxu1 }
 0x1b8   : > { %v1123_v13 = vpack.c.bf16 %v988_v11, %v988_v11  ;;  %v2259_v56 = vld [vmem:[%s3093_s4 + $0x2] ss:$0 sm:$0xff] }
 0x1b9   : > { %v990_v57 = vpop.f32.mrf.mxu1 }
 0x1bb   : > { %v2438_v58 = vpop.f32.mrf.mxu1 }
 0x23c   : > { %v870_v42 = vpop.xlane.xlu0 %869 }
 0x23d   : > { %v871_v43 = vsub.f32 %v867_v30, %v870_v42  ;;  %v1117_v30 = vpop.f32.mrf.mxu1  ;;  %v2592_v42 = vld [vmem:[%s3094_s5 + $0x28] sm:$0xff]  }
 0x23e   : > { %v1118_v31 = vadd.f32 %v2248_v29, %v1117_v30  ;;  %v2601_v29 = vld [vmem:[%s3114_s1 + $0x30] sm:$0xff]  }
 0x23f   : > { %v872_v44 = vmul.f32 1.442695, %v871_v43  ;;  %v2453_v32 = vpop.f32.mrf.mxu1 }
 0x240   : > { %v1185_v33 = vpack.c.bf16 %v1118_v31, %v1118_v31 }
 0x241   : > { %2612 = vpow2.f32 %v872_v44  ;;  %v1120_v34 = vpop.f32.mrf.mxu1  ;;  %v2594_v44 = vld [vmem:[%s3094_s5 + $0x20] sm:$0xff]  }
 0x242   : > { %v1190_v35 = vsel %vm884_vm3, %v1185_v33, 0  ;;  %v2598_v33 = vld [vmem:[%s3094_s5 + $0x38] sm:$0xff]  }
 0x243   : > { %v2454_v36 = vpop.f32.mrf.mxu1  ;;  %2462 = vmatpush3.bf16.msra.mxu1 %v1190_v35  ;;  %v2600_v35 = vld [vmem:[%s3094_s5 + $0x30] sm:$0xff]  }
 0x244   : > { %2475 = vmatprep.subr.bf16.mxu1 %v2640_v1 }
 0x24e   : > { %v2613_v45 = vpop.eup %2612 }
 0x24f   : > { %v874_v46 = vsel %vm819_vm2, %v2613_v45, 0.0 }
 0x250   : > { %875 = vadd.xlane.f32.xlu0 %v874_v46 }
 0x2d9   : > { %v876_v49 = vpop.xlane.xlu0 %875 }
 0x2da   : > { %2614 = vrcp.f32 %v876_v49 }
 0x2e7   : > { %v2615_v50 = vpop.eup %2614 }
 0x2e8   : > { %v878_v51 = vmul.f32 %v2615_v50, %v2613_v45 }
 0x2ea   : > { %v879_v53 = vpack.c.bf16 %v878_v51, %v878_v51 }
 0x2ec   : > { %2428 = vmatmul.mubr.msk.bf16.vlgmr.msra.gmra.mxu0 %vm819_vm2, %v879_v53  ;;  %v2268_v53 = vld [vmem:[%s3095_s6 + $0x2] ss:$0 sm:$0xff] }
 0x2ed   : > { %2440 = vmatpush3.bf16.msra.mxu0 %v2586_v52  ;;  %2443 = vmatprep.mubr.msk.bf16.mxu0 %vm2641_vm0, %v2640_v1 }
 0x2ee   : > { %2441 = vmatprep.subr.bf16.mxu0 %v2640_v1 }
 0x2f1   : > { %2442 = vmatpush3.bf16.msra.mxu0 %v2588_v54 }
 0x2f2   : > { %2455 = vmatprep.subr.bf16.mxu0 %v2640_v1 }
 0x2f4   : > { %2444 = vmatmul.mubr.msk.bf16.vlgmr.msra.gmra.mxu0 %vm644_vm1, %v2793_v8 }
 0x2f5   : > { %2457 = vmatprep.mubr.msk.bf16.mxu0 %vm2641_vm0, %v2640_v1 }
 0x3ac   : > { %v2864_v59 = vpop.f32.mrf.mxu0 }
 0x3ae   : > { %v2429_v60 = vpop.f32.mrf.mxu0 }
 0x3b0   : > { %v925_v61 = vpop.f32.mrf.mxu0 }
 0x3b2   : > { %v2430_v62 = vpop.f32.mrf.mxu0 }
 0x3b4   : > { %v1052_v0 = vpop.f32.mrf.mxu0 }
 0x3b5   : > { %v1053_v2 = vadd.f32 %v2239_v63, %v1052_v0 }
 0x3b6   : > { %v2445_v6 = vpop.f32.mrf.mxu0 }
 0x3b7   : > { %v1124_v7 = vpack.c.bf16 %v1053_v2, %v1053_v2  ;;  %v2596_v2 = vld [vmem:[%s3096_s7 + $0x28] sm:$0xff]  }
 0x3b8   : > { %v1055_v9 = vpop.f32.mrf.mxu0 }
 0x3b9   : > { %v1129_v10 = vsel %vm819_vm2, %v1124_v7, 0 }
 0x3ba   : > { %v2446_v12 = vpop.f32.mrf.mxu0  ;;  %2456 = vmatpush3.bf16.xpose.msra.mxu0 %v1129_v10 }
 0x3bb   : > { %2467 = vmatprep.subr.bf16.mxu0 %v2640_v1 }
 0x3c1   : > { %2458 = vmatmul.mubr.msk.bf16.vlgmr.msra.gmra.mxu0 %vm819_vm2, %v1123_v13 }
 0x3c2   : > { %2471 = vmatprep.mubr.msk.bf16.mxu0 %vm2641_vm0, %v2640_v1  ;;  %2468 = vmatpush3.bf16.msra.mxu0 %v2593_v37 }
 0x3c3   : > { %2469 = vmatprep.subr.bf16.mxu0 %v2640_v1 }
 0x3c6   : > { %2470 = vmatpush3.bf16.msra.mxu0 %v2595_v38 }
 0x3c7   : > { %2483 = vmatprep.subr.bf16.mxu0 %v2640_v1 }
 0x3c9   : > { %2472 = vmatmul.mubr.msk.bf16.vlgmr.msra.gmra.mxu0 %vm644_vm1, %v2773_v4 }
 0x3ca   : > { %2487 = vmatprep.mubr.msk.bf16.mxu0 %vm2641_vm0, %v2640_v1  ;;  %2484 = vmatpush3.bf16.msra.mxu0 %v2596_v2 }
 0x3cb   : > { %2485 = vmatprep.subr.bf16.mxu0 %v2640_v1 }
 0x3ce   : > { %2486 = vmatpush3.bf16.msra.mxu0 %v2597_v5 }
 0x3cf   : > { %2497 = vmatprep.subr.bf16.mxu0 %v2640_v1 }
 0x3d1   : > { %2488 = vmatmul.mubr.msk.bf16.vlgmr.msra.gmra.mxu0 %vm644_vm1, %v2793_v8 }
 0x3d2   : > { %2499 = vmatprep.mubr.msk.bf16.mxu0 %vm2641_vm0, %v2640_v1 }
 0x481   : > { %v1165_v16 = vpop.f32.mrf.mxu0 }
 0x482   : > { %v1171_v17 = vmul.f32 0.35355338, %v1165_v16 }
 0x483   : > { %v2459_v18 = vpop.f32.mrf.mxu0 }
 0x484   : > { %v1172_v19 = vadd.f32 %v1171_v17, %v2827_v27 }
 0x485   : > { %v1168_v20 = vpop.f32.mrf.mxu0 }
 0x486   : > { %v1173_v21 = vsel %vm819_vm2, %v1172_v19, -inf }
 0x487   : > { %1174 = vmax.xlane.f32.xlu1 %v1173_v21  ;;  %v2460_v22 = vpop.f32.mrf.mxu0 }
 0x489   : > { %v1291_v45 = vpop.f32.mrf.mxu0 }
 0x48a   : > { %v1292_v62 = vadd.f32 %v2259_v56, %v1291_v45  ;;  %v2603_v56 = vld [vmem:[%s3096_s7 + $0x30] sm:$0xff]  }
 0x48b   : > { %v2473_v46 = vpop.f32.mrf.mxu0 }
 0x48c   : > { %v1427_v0 = vpack.c.bf16 %v1292_v62, %v1292_v62 }
 0x48d   : > { %v1294_v47 = vpop.f32.mrf.mxu0 }
 0x48e   : > { %v2288_v47 = vld [vmem:[%s3093_s4 + $0x3] ss:$0 sm:$0xff] }
 0x48f   : > { %v2474_v48 = vpop.f32.mrf.mxu0 }
 0x491   : > { %v1421_v15 = vpop.f32.mrf.mxu0 }
 0x492   : > { %v1422_v16 = vadd.f32 %v2277_v14, %v1421_v15 }
 0x493   : > { %v2489_v17 = vpop.f32.mrf.mxu0 }
 0x494   : > { %v1489_v18 = vpack.c.bf16 %v1422_v16, %v1422_v16 }
 0x496   : > { %v1494_v20 = vsel %vm884_vm3, %v1489_v18, 0 }
 0x497   : > { %2498 = vmatpush3.bf16.msra.mxu0 %v1494_v20  ;;  %v2605_v20 = vld [vmem:[%s3098_s9] sm:$0xff]  }
 0x498   : > { %2511 = vmatprep.subr.bf16.mxu0 %v2640_v1 }
 0x510   : > { %v1175_v23 = vpop.xlane.xlu1 %1174 }
 0x511   : > { %v1176_v24 = vsub.f32 %v1172_v19, %v1175_v23  ;;  %v1424_v19 = vpop.f32.mrf.mxu0 }
 0x512   : > { %v2604_v19 = vld [vmem:[%s3098_s9 + $0x8] sm:$0xff]  }
 0x513   : > { %v1177_v25 = vmul.f32 1.442695, %v1176_v24  ;;  %v2490_v21 = vpop.f32.mrf.mxu0 }
 0x515   : > { %2616 = vpow2.f32 %v1177_v25 }
 0x522   : > { %v2617_v26 = vpop.eup %2616 }
 0x523   : > { %v1179_v28 = vsel %vm819_vm2, %v2617_v26, 0.0 }
 0x524   : > { %1180 = vadd.xlane.f32.xlu1 %v1179_v28  ;;  %v2599_v28 = vld [vmem:[%s3114_s1 + $0x38] sm:$0xff]  }
 0x5ad   : > { %v1181_v39 = vpop.xlane.xlu1 %1180 }
 0x5ae   : > { %2618 = vrcp.f32 %v1181_v39 }
 0x5bb   : > { %v2619_v40 = vpop.eup %2618 }
 0x5bc   : > { %v1183_v41 = vmul.f32 %v2619_v40, %v2617_v26 }
 0x5be   : > { %v1184_v43 = vpack.c.bf16 %v1183_v41, %v1183_v41 }
 0x5c0   : > { %2464 = vmatmul.mubr.msk.bf16.vlgmr.msra.gmra.mxu1 %vm819_vm2, %v1184_v43  ;;  %v2297_v43 = vld [vmem:[%s3095_s6 + $0x3] ss:$0 sm:$0xff] }
 0x5c1   : > { %2476 = vmatpush3.bf16.msra.mxu1 %v2592_v42  ;;  %2479 = vmatprep.mubr.msk.bf16.mxu1 %vm2641_vm0, %v2640_v1 }
 0x5c2   : > { %2477 = vmatprep.subr.bf16.mxu1 %v2640_v1 }
 0x5c5   : > { %2478 = vmatpush3.bf16.msra.mxu1 %v2594_v44 }
 0x5c6   : > { %2491 = vmatprep.subr.bf16.mxu1 %v2640_v1 }
 0x5c8   : > { %2480 = vmatmul.mubr.msk.bf16.vlgmr.msra.gmra.mxu1 %vm644_vm1, %v2793_v8 }
 0x5c9   : > { %2493 = vmatprep.mubr.msk.bf16.mxu1 %vm2641_vm0, %v2640_v1 }
 0x680   : > { %v2924_v49 = vpop.f32.mrf.mxu1 }
 0x682   : > { %v2465_v50 = vpop.f32.mrf.mxu1 }
 0x684   : > { %v1229_v51 = vpop.f32.mrf.mxu1 }
 0x686   : > { %v2466_v52 = vpop.f32.mrf.mxu1 }
 0x688   : > { %v1356_v54 = vpop.f32.mrf.mxu1 }
 0x689   : > { %v1357_v55 = vadd.f32 %v2268_v53, %v1356_v54 }
 0x68a   : > { %v2481_v57 = vpop.f32.mrf.mxu1 }
 0x68b   : > { %v1428_v58 = vpack.c.bf16 %v1357_v55, %v1357_v55  ;;  %v2602_v55 = vld [vmem:[%s3096_s7 + $0x38] sm:$0xff]  }
 0x68c   : > { %v1359_v60 = vpop.f32.mrf.mxu1 }
 0x68d   : > { %v1433_v61 = vsel %vm819_vm2, %v1428_v58, 0 }
 0x68e   : > { %v2482_v63 = vpop.f32.mrf.mxu1  ;;  %2492 = vmatpush3.bf16.xpose.msra.mxu1 %v1433_v61 }
 0x68f   : > { %2503 = vmatprep.subr.bf16.mxu1 %v2640_v1 }
 0x695   : > { %2494 = vmatmul.mubr.msk.bf16.vlgmr.msra.gmra.mxu1 %vm819_vm2, %v1427_v0 }
 0x696   : > { %2507 = vmatprep.mubr.msk.bf16.mxu1 %vm2641_vm0, %v2640_v1  ;;  %2504 = vmatpush3.bf16.msra.mxu1 %v2599_v28 }
 0x697   : > { %2505 = vmatprep.subr.bf16.mxu1 %v2640_v1 }
 0x69a   : > { %2506 = vmatpush3.bf16.msra.mxu1 %v2601_v29 }
 0x69b   : > { %2519 = vmatprep.subr.bf16.mxu1 %v2640_v1 }
 0x69d   : > { %2508 = vmatmul.mubr.msk.bf16.vlgmr.msra.gmra.mxu1 %vm644_vm1, %v2773_v4 }
 0x69e   : > { %2523 = vmatprep.mubr.msk.bf16.mxu1 %vm2641_vm0, %v2640_v1  ;;  %2520 = vmatpush3.bf16.msra.mxu1 %v2602_v55 }
 0x69f   : > { %2521 = vmatprep.subr.bf16.mxu1 %v2640_v1 }
 0x6a2   : > { %2522 = vmatpush3.bf16.msra.mxu1 %v2603_v56 }
 0x6a3   : > { %2533 = vmatprep.subr.bf16.mxu1 %v2640_v1 }
 0x6a5   : > { %2524 = vmatmul.mubr.msk.bf16.vlgmr.msra.gmra.mxu1 %vm644_vm1, %v2793_v8 }
 0x6a6   : > { %2535 = vmatprep.mubr.msk.bf16.mxu1 %vm2641_vm0, %v2640_v1 }
 0x755   : > { %v1469_v6 = vpop.f32.mrf.mxu1 }
 0x756   : > { %v1475_v7 = vmul.f32 0.35355338, %v1469_v6 }
 0x757   : > { %v2495_v9 = vpop.f32.mrf.mxu1 }
 0x758   : > { %v1476_v10 = vadd.f32 %v1475_v7, %v2827_v27 }
 0x759   : > { %v1472_v11 = vpop.f32.mrf.mxu1 }
 0x75a   : > { %v1477_v12 = vsel %vm819_vm2, %v1476_v10, -inf }
 0x75b   : > { %1478 = vmax.xlane.f32.xlu0 %v1477_v12  ;;  %v2496_v13 = vpop.f32.mrf.mxu1 }
 0x75d   : > { %v1595_v4 = vpop.f32.mrf.mxu1 }
 0x75e   : > { %v1596_v52 = vadd.f32 %v2288_v47, %v1595_v4 }
 0x75f   : > { %v2509_v36 = vpop.f32.mrf.mxu1 }
 0x760   : > { %v1731_v54 = vpack.c.bf16 %v1596_v52, %v1596_v52  ;;  %v2316_v52 = vld [vmem:[%s3100_s11] ss:$0 sm:$0xff] }
 0x761   : > { %v1598_v37 = vpop.f32.mrf.mxu1 }
 0x763   : > { %v2510_v38 = vpop.f32.mrf.mxu1 }
 0x765   : > { %v1725_v9 = vpop.f32.mrf.mxu1 }
 0x767   : > { %v2525_v11 = vpop.f32.mrf.mxu1 }
 0x769   : > { %v1728_v13 = vpop.f32.mrf.mxu1 }
 0x7e4   : > { %v1479_v22 = vpop.xlane.xlu0 %1478 }
 0x7e5   : > { %v1480_v23 = vsub.f32 %v1476_v10, %v1479_v22 }
 0x7e7   : > { %v1481_v24 = vmul.f32 1.442695, %v1480_v23 }
 0x7e9   : > { %2620 = vpow2.f32 %v1481_v24 }
 0x7f6   : > { %v2621_v25 = vpop.eup %2620 }
 0x7f7   : > { %v1483_v26 = vsel %vm819_vm2, %v2621_v25, 0.0 }
 0x7f8   : > { %1484 = vadd.xlane.f32.xlu1 %v1483_v26 }
 0x881   : > { %v1485_v30 = vpop.xlane.xlu1 %1484 }
 0x882   : > { %2622 = vrcp.f32 %v1485_v30 }
 0x88f   : > { %v2623_v31 = vpop.eup %2622 }
 0x890   : > { %v1487_v32 = vmul.f32 %v2623_v31, %v2621_v25 }
 0x892   : > { %v1488_v34 = vpack.c.bf16 %v1487_v32, %v1487_v32 }
 0x894   : > { %2500 = vmatmul.mubr.msk.bf16.vlgmr.msra.gmra.mxu0 %vm819_vm2, %v1488_v34 }
 0x895   : > { %2512 = vmatpush3.bf16.msra.mxu0 %v2598_v33  ;;  %2515 = vmatprep.mubr.msk.bf16.mxu0 %vm2641_vm0, %v2640_v1  ;;  %v2312_v33 = vld [vmem:[%s3099_s10] ss:$0 sm:$0xff] }
 0x896   : > { %2513 = vmatprep.subr.bf16.mxu0 %v2640_v1 }
 0x899   : > { %2514 = vmatpush3.bf16.msra.mxu0 %v2600_v35 }
 0x89a   : > { %2527 = vmatprep.subr.bf16.mxu0 %v2640_v1 }
 0x89c   : > { %2516 = vmatmul.mubr.msk.bf16.vlgmr.msra.gmra.mxu0 %vm644_vm1, %v2793_v8 }
 0x89d   : > { %2529 = vmatprep.mubr.msk.bf16.mxu0 %vm2641_vm0, %v2640_v1 }
 0x954   : > { %v1530_v39 = vpop.f32.mrf.mxu0 }
 0x956   : > { %v2501_v40 = vpop.f32.mrf.mxu0 }
 0x958   : > { %v1533_v41 = vpop.f32.mrf.mxu0 }
 0x95a   : > { %v2502_v42 = vpop.f32.mrf.mxu0 }
 0x95c   : > { %v1660_v44 = vpop.f32.mrf.mxu0 }
 0x95d   : > { %v1661_v45 = vadd.f32 %v2297_v43, %v1660_v44  ;;  %v2606_v44 = vld [vmem:[%s3102_s13 + $0x8] sm:$0xff]  }
 0x95e   : > { %v2517_v46 = vpop.f32.mrf.mxu0 }
 0x95f   : > { %v1732_v48 = vpack.c.bf16 %v1661_v45, %v1661_v45  ;;  %v2608_v45 = vld [vmem:[%s3104_s15 + $0x18] sm:$0xff]   ;;  %v2609_v46 = vld [vmem:[%s3104_s15 + $0x10] sm:$0xff]  }
 0x960   : > { %v1663_v50 = vpop.f32.mrf.mxu0 }
 0x961   : > { %v1737_v51 = vsel %vm819_vm2, %v1732_v48, 0 }
 0x962   : > { %v2518_v53 = vpop.f32.mrf.mxu0  ;;  %2528 = vmatpush3.bf16.xpose.msra.mxu0 %v1737_v51 }
 0x963   : > { %2539 = vmatprep.subr.bf16.mxu0 %v2640_v1 }
 0x969   : > { %2530 = vmatmul.mubr.msk.bf16.vlgmr.msra.gmra.mxu0 %vm819_vm2, %v1731_v54  ;;  %v2317_v54 = vld [vmem:[%s3101_s12] ss:$0 sm:$0xff] }
 0x96a   : > { %2543 = vmatprep.mubr.msk.bf16.mxu0 %vm2641_vm0, %v2640_v1  ;;  %2540 = vmatpush3.bf16.msra.mxu0 %v2604_v19 }
 0x96b   : > { %2541 = vmatprep.subr.bf16.mxu0 %v2640_v1 }
 0x96e   : > { %2542 = vmatpush3.bf16.msra.mxu0 %v2605_v20 }
 0x96f   : > { %2555 = vmatprep.subr.bf16.mxu0 %v2640_v1 }
 0xa29   : > { %v1773_v57 = vpop.f32.mrf.mxu0 }
 0xa2a   : > { %v1779_v58 = vmul.f32 0.35355338, %v1773_v57 }
 0xa2b   : > { %v2531_v60 = vpop.f32.mrf.mxu0 }
 0xa2c   : > { %v1780_v61 = vadd.f32 %v1779_v58, %v2827_v27  ;;  %v2306_v27 = vld [vmem:[%s3097_s8 + $0x3] ss:$0 sm:$0xff]  ;;  %v2610_v58 = vld [vmem:[%s3104_s15 + $0x8] sm:$0xff]  }
 0xa2d   : > { %v1776_v62 = vpop.f32.mrf.mxu0  ;;  %v1726_v10 = vadd.f32 %v2306_v27, %v1725_v9  ;;  %v2611_v60 = vld [vmem:[%s3104_s15] sm:$0xff]  }
 0xa2e   : > { %v1781_v63 = vsel %vm819_vm2, %v1780_v61, -inf }
 0xa2f   : > { %1782 = vmax.xlane.f32.xlu0 %v1781_v63  ;;  %v2532_v0 = vpop.f32.mrf.mxu0  ;;  %v1793_v12 = vpack.c.bf16 %v1726_v10, %v1726_v10 }
 0xa31   : > { %v1798_v14 = vsel %vm884_vm3, %v1793_v12, 0 }
 0xa32   : > { %2534 = vmatpush3.bf16.msra.mxu1 %v1798_v14 }
 0xa33   : > { %2547 = vmatprep.subr.bf16.mxu1 %v2640_v1 }
 0xa45   : > { %1841 = vrot.lane.b32.xlu0 %v2924_v49, %s2642_s28  ;;  %v2526_v49 = vpop.f32.mrf.mxu1 }
 0xab8   : > { %v1783_v2 = vpop.xlane.xlu0 %1782 }
 0xab9   : > { %v1784_v5 = vsub.f32 %v1780_v61, %v1783_v2  ;;  %v2318_v61 = vld [vmem:[%s3103_s14] ss:$0 sm:$0xff] }
 0xabb   : > { %v1785_v6 = vmul.f32 1.442695, %v1784_v5 }
 0xabc   : > { %v1842_v25 = vpop.permute.xlu0 %1841 }
 0xabd   : > { %2624 = vpow2.f32 %v1785_v6  ;;  %v1852_v28 = vsel %vm819_vm2, %v2864_v59, %v1842_v25 }
 0xaca   : > { %v2625_v8 = vpop.eup %2624 }
 0xacb   : > { %v1787_v7 = vsel %vm819_vm2, %v2625_v8, 0.0 }
 0xacc   : > { %1788 = vadd.xlane.f32.xlu1 %v1787_v7 }
 0xadd   : > { %1845 = vrot.lane.b32.xlu1 %v1530_v39, %s2643_s21 }
 0xb55   : > { %v1789_v15 = vpop.xlane.xlu1 %1788 }
 0xb56   : > { %2626 = vrcp.f32 %v1789_v15 }
 0xb59   : > { %v1846_v26 = vpop.permute.xlu1 %1845 }
 0xb5a   : > { %v1854_v29 = vsel %vm1853_vm4, %v1852_v28, %v1846_v26 }
 0xb63   : > { %v2627_v16 = vpop.eup %2626 }
 0xb64   : > { %v1791_v17 = vmul.f32 %v2627_v16, %v2625_v8 }
 0xb66   : > { %v1792_v18 = vpack.c.bf16 %v1791_v17, %v1791_v17 }
 0xb68   : > { %2536 = vmatmul.mubr.msk.bf16.vlgmr.msra.gmra.mxu1 %vm819_vm2, %v1792_v18 }
 0xb69   : > { %2551 = vmatprep.mubr.msk.bf16.mxu1 %vm2641_vm0, %v2640_v1  ;;  %2548 = vmatpush3.bf16.msra.mxu1 %v2606_v44 }
 0xb6a   : > { %2549 = vmatprep.subr.bf16.mxu1 %v2640_v1 }
 0xc28   : > { %v1834_v21 = vpop.f32.mrf.mxu1 }
 0xc29   : > { %1849 = vrot.lane.b32.xlu1 %v1834_v21, %s2644_s24 }
 0xc2a   : > { %v2537_v22 = vpop.f32.mrf.mxu1 }
 0xc2b   : > { %v2328_v22 = vld [vmem:[%s3106_s17] ss:$0 sm:$0xff] }
 0xc2c   : > { %v1837_v23 = vpop.f32.mrf.mxu1 }
 0xc2e   : > { %v2538_v24 = vpop.f32.mrf.mxu1 }
 0xc2f   : > { %v2329_v24 = vld [vmem:[%s3107_s18] ss:$0 sm:$0xff] }
 0xc9b   : > { %v1850_v30 = vpop.permute.xlu1 %1849 }
 0xc9c   : > { %v1856_v31 = vsel %vm1855_vm5, %v1854_v29, %v1850_v30 }
 0xc9d   : > { %v1857_v32 = vpack.c.bf16 %v1856_v31, %v1856_v31 }
 0xc9f   : > { %2544 = vmatmul.mubr.msk.bf16.vlgmr.msra.gmra.mxu0 %vm644_vm1, %v1857_v32 }
 0xca0   : > { %2563 = vmatprep.mubr.msk.bf16.mxu0 %vm2641_vm0, %v2640_v1  ;;  %2556 = vmatpush3.bf16.msra.mxu0 %v2608_v45 }
 0xca1   : > { %2557 = vmatprep.subr.bf16.mxu0 %v2640_v1 }
 0xca4   : > { %2558 = vmatpush3.bf16.msra.mxu0 %v2609_v46 }
 0xca5   : > { %2559 = vmatprep.subr.bf16.mxu0 %v2640_v1 }
 0xca8   : > { %2560 = vmatpush3.bf16.msra.mxu0 %v2610_v58 }
 0xca9   : > { %2561 = vmatprep.subr.bf16.mxu0 %v2640_v1  ;;  %v2322_v1 = vld [vmem:[%s3105_s16] ss:$0 sm:$0xff] }
 0xcac   : > { %2562 = vmatpush3.bf16.msra.mxu0 %v2611_v60 }
 0xd5f   : > { %v1918_v34 = vpop.f32.mrf.mxu0 }
 0xd60   : > { %v1919_v35 = vadd.f32 %v2312_v33, %v1918_v34 }
 0xd61   : > { %v2545_v4 = vpop.f32.mrf.mxu0 }
 0xd62   : > { %v1924_v36 = vadd.f32 %v1919_v35, %v2766_v3  ;;  %v2607_v3 = vld [vmem:[%s3102_s13] sm:$0xff]  }
 0xd63   : > { %v1921_v37 = vpop.f32.mrf.mxu0  ;;  %2550 = vmatpush3.bf16.msra.mxu1 %v2607_v3 }
 0xd64   : > { %v1927_v59 = vsel %vm644_vm1, %v1924_v36, 0.0 }
 0xd65   : > { %1928 = vadd.xlane.f32.xlu1 %v1927_v59  ;;  %v2546_v38 = vpop.f32.mrf.mxu0 }
 0xdee   : > { %v1929_v39 = vpop.xlane.xlu1 %1928 }
 0xdef   : > { %v1931_v40 = vmul.f32 0.03125, %v1929_v39 }
 0xdf1   : > { %v1932_v41 = vsub.f32 %v1924_v36, %v1931_v40 }
 0xdf3   : > { %v1933_v42 = vmul.f32 %v1932_v41, %v1932_v41 }
 0xdf5   : > { %v1934_v43 = vsel %vm644_vm1, %v1933_v42, 0.0 }
 0xdf6   : > { %1935 = vadd.xlane.f32.xlu0 %v1934_v43 }
 0xe7f   : > { %v1936_v47 = vpop.xlane.xlu0 %1935 }
 0xe80   : > { %v1937_v48 = vmul.f32 0.03125, %v1936_v47 }
 0xe82   : > { %v1938_v50 = vadd.f32 1e-05, %v1937_v48 }
 0xe84   : > { %2628 = vrsqrt.f32 %v1938_v50 }
 0xe91   : > { %v2629_v51 = vpop.eup %2628 }
 0xe92   : > { %v1940_v53 = vmul.f32 %v2629_v51, %v1932_v41 }
 0xe94   : > { %v1947_v55 = vmul.f32 %v2316_v52, %v1940_v53 }
 0xe96   : > { %v1954_v56 = vadd.f32 %v2317_v54, %v1947_v55 }
 0xe98   : > { %v1955_v57 = vpack.c.bf16 %v1954_v56, %v1954_v56 }
 0xe9a   : > { %2552 = vmatmul.mubr.msk.bf16.vlgmr.msra.gmra.mxu1 %vm644_vm1, %v1955_v57 }
 0xf5a   : > { %v2016_v62 = vpop.f32.mrf.mxu1 }
 0xf5b   : > { %v2017_v63 = vadd.f32 %v2318_v61, %v2016_v62 }
 0xf5c   : > { %v2553_v0 = vpop.f32.mrf.mxu1 }
 0xf5d   : > { %v2022_v2 = vmax.f32 %v2017_v63, 0.0 }
 0xf5e   : > { %v2019_v5 = vpop.f32.mrf.mxu1 }
 0xf5f   : > { %v2023_v6 = vpack.c.bf16 %v2022_v2, %v2022_v2 }
 0xf60   : > { %v2554_v8 = vpop.f32.mrf.mxu1 }
 0xf61   : > { %2564 = vmatmul.mubr.msk.bf16.vlgmr.msra.gmra.mxu0 %vm2063_vm6, %v2023_v6 }
0x1021   : > { %v2101_v7 = vpop.f32.mrf.mxu0 }
0x1022   : > { %v2102_v27 = vadd.f32 %v2322_v1, %v2101_v7 }
0x1023   : > { %v2565_v9 = vpop.f32.mrf.mxu0 }
0x1024   : > { %v2107_v10 = vadd.f32 %v2102_v27, %v1954_v56 }
0x1025   : > { %v2104_v11 = vpop.f32.mrf.mxu0 }
0x1026   : > { %v2110_v12 = vsel %vm644_vm1, %v2107_v10, 0.0 }
0x1027   : > { %2111 = vadd.xlane.f32.xlu0 %v2110_v12  ;;  %v2566_v13 = vpop.f32.mrf.mxu0 }
0x10b0   : > { %v2112_v14 = vpop.xlane.xlu0 %2111 }
0x10b1   : > { %v2113_v49 = vmul.f32 0.03125, %v2112_v14 }
0x10b3   : > { %v2114_v15 = vsub.f32 %v2107_v10, %v2113_v49 }
0x10b5   : > { %v2115_v16 = vmul.f32 %v2114_v15, %v2114_v15 }
0x10b7   : > { %v2116_v17 = vsel %vm644_vm1, %v2115_v16, 0.0 }
0x10b8   : > { %2117 = vadd.xlane.f32.xlu0 %v2116_v17 }
0x1141   : > { %v2118_v18 = vpop.xlane.xlu0 %2117 }
0x1142   : > { %v2119_v19 = vmul.f32 0.03125, %v2118_v18 }
0x1144   : > { %v2120_v20 = vadd.f32 1e-05, %v2119_v19 }
0x1146   : > { %2630 = vrsqrt.f32 %v2120_v20 }
0x1153   : > { %v2631_v21 = vpop.eup %2630 }
0x1154   : > { %v2122_v23 = vmul.f32 %v2631_v21, %v2114_v15 }
0x1156   : > { %v2129_v25 = vmul.f32 %v2328_v22, %v2122_v23 }
0x1158   : > { %v2136_v26 = vadd.f32 %v2329_v24, %v2129_v25 }
0x115a   : > { %2137 = vst.msk [vmem:[%s614_s29] sm:$0xff] %vm644_vm1, %v2136_v26 }
0x115b PF: > { %s29_s0 = sadd.s32 1, %s2638_s0  }
0x115c   : > { %p26_p4 = scmp.ge.s32.totalorder %s29_s0, 4  }
0x115e   :  { %28 = sbr.rel (!%p26_p4) target bundleno = 5 (0x5), region = 147 }

// kernel: abinet_forward.18
= control target key start
LH: loop header
LB: loop body
LE: loop exit
PB: predicated region body
PF: predicated region fallthrough
CT: control target
= control target key end

     0   :  { %s3120_s0 = inlined_call_operand.vmem [shape: f32[2,8,32], index: 0, kind: input, shape index: {}]   ;;  %s3121_s1 = inlined_call_operand.vmem [shape: f32[2,8,32], index: 1, kind: input, shape index: {}]   ;;  %s3122_s2 = inlined_call_operand.vmem [shape: f32[2,8,8], index: 2, kind: input, shape index: {}]   ;;  %s3123_s3 = inlined_call_operand.vmem [shape: bf16[4,32,8], index: 3, kind: input, shape index: {}]   ;;  %s3124_s4 = inlined_call_operand.vmem [shape: f32[4,1,8], index: 4, kind: input, shape index: {}]   ;;  %s3125_s5 = inlined_call_operand.vmem [shape: bf16[4,32,8], index: 5, kind: input, shape index: {}]   ;;  %s3126_s6 = inlined_call_operand.vmem [shape: f32[4,1,8], index: 6, kind: input, shape index: {}]   ;;  %s3127_s7 = inlined_call_operand.vmem [shape: bf16[4,32,8], index: 7, kind: input, shape index: {}]   ;;  %s3128_s8 = inlined_call_operand.vmem [shape: f32[4,1,8], index: 8, kind: input, shape index: {}]   ;;  %s3129_s9 = inlined_call_operand.vmem [shape: bf16[32,32], index: 9, kind: input, shape index: {}]   ;;  %s3130_s10 = inlined_call_operand.vmem [shape: f32[1,32], index: 10, kind: input, shape index: {}]   ;;  %s3131_s11 = inlined_call_operand.vmem [shape: f32[1,32], index: 11, kind: input, shape index: {}]   ;;  %s3132_s12 = inlined_call_operand.vmem [shape: f32[1,32], index: 12, kind: input, shape index: {}]   ;;  %s3133_s13 = inlined_call_operand.vmem [shape: bf16[32,64], index: 13, kind: input, shape index: {}]   ;;  %s3134_s14 = inlined_call_operand.vmem [shape: f32[1,64], index: 14, kind: input, shape index: {}]   ;;  %s3135_s15 = inlined_call_operand.vmem [shape: bf16[64,32], index: 15, kind: input, shape index: {}]   ;;  %s3136_s16 = inlined_call_operand.vmem [shape: f32[1,32], index: 16, kind: input, shape index: {}]   ;;  %s3137_s17 = inlined_call_operand.vmem [shape: f32[1,32], index: 17, kind: input, shape index: {}]   ;;  %s3138_s18 = inlined_call_operand.vmem [shape: f32[1,32], index: 18, kind: input, shape index: {}]   ;;  %s3139_s19 = inlined_call_operand.vmem [shape: f32[2,8,32], index: 19, kind: output, shape index: {}]  }
   0x1   :  { %3141 = sst [smem:[#allocation2_spill]] %s3120_s0  ;;  %s2775_s0 = smov 0  }
   0x2   :  { %3142 = sst [smem:[#allocation3_spill]] %s3121_s1 }
   0x3   :  { %3143 = sst [smem:[#allocation4_spill]] %s3122_s2 }
   0x4   :  { %3144 = sst [smem:[#allocation5_spill]] %s3123_s3 }
   0x5 LB: > { %s2232_s30 = sadd.s32 4294967295, %s2668_s0   ;;  %p2236_p0 = scmp.ge.s32.totalorder %s2668_s0, 1  ;;  %s2668_s0 = sphi %s2775_s0, %s29_s0  }
   0x6   : > { %p554_p1 = scmp.lt.s32.totalorder %s2668_s0, 3 }
   0x8   : > { %p555_p2 = pnand %p2236_p0, %p554_p1 }
   0x9   : > { %s3145_s1 = sld [smem:[#allocation5_spill]] (!%p555_p2)  ;;  %p616_p3 = scmp.lt.s32.totalorder (!%p555_p2), %s2232_s30, 1 }
   0xa   : > { %558 = sbr.rel (%p555_p2) target bundleno = 4443 (0x115b), region = 96  ;;  %s3146_s3 = sld [smem:[#allocation2_spill]] (!%p555_p2) }
   0xb   : > { %s3147_s29 = sld [smem:[#allocation3_spill]] (!%p555_p2)  ;;  %s2673_s22 = smov (!%p555_p2), 16  }
   0xf   : > { %v2610_v0 = vld [vmem:[%s3145_s1 + $0x8] sm:$0xff]   ;;  %v2670_v1 = vmov 0.0   ;;  %v2611_v2 = vld [vmem:[%s3145_s1] sm:$0xff]   ;;  %vm2671_vm0 = vmmov 0   ;;  %s3150_s30 = smov (!%p616_p3, %s2232_s30), 1  ;;  %vm661_vm1 = vcmask 261120  }
  0x10   : > { %2425 = vmatprep.subr.bf16.mxu1 %v2670_v1  ;;  %2441 = vmatprep.subr.bf16.mxu0 %v2670_v1  ;;  %s2796_s23 = sshll.u32 %s3150_s30, 3  ;;  %v2612_v4 = vld [vmem:[%s3125_s5 + $0x8] sm:$0xff]   ;;  %v2613_v7 = vld [vmem:[%s3125_s5] sm:$0xff]   ;;  %vm836_vm2 = vcmask 64512   ;;  %s3148_s30 = sld [smem:[#allocation4_spill]]  ;;  %vm901_vm3 = vcmask 1043456  }
  0x11   : > { %2426 = vmatpush3.bf16.msra.mxu1 %v2610_v0  ;;  %2429 = vmatprep.mubr.msk.bf16.mxu1 %vm2671_vm0, %v2670_v1  ;;  %s619_s26 = scalar_lea.vmem %s3146_s3, %s2796_s23  ;;  %s623_s20 = scalar_lea.vmem %s3147_s29, %s2796_s23  ;;  %v2245_v13 = vld [vmem:[%s3126_s6] ss:$0 sm:$0xff]  ;;  %v2614_v24 = vld [vmem:[%s3127_s7 + $0x8] sm:$0xff]   ;;  %v2617_v47 = vld [vmem:[%s3145_s1 + $0x18] sm:$0xff]   ;;  %vm1870_vm4 = vcmask 130048   ;;  %vm1872_vm5 = vcmask 195584  }
  0x12   : > { %2427 = vmatprep.subr.bf16.mxu1 %v2670_v1  ;;  %2445 = vmatprep.mubr.msk.bf16.mxu0 %vm2671_vm0, %v2670_v1  ;;  %v2807_v3 = vld [vmem:[%s619_s26] sm:$0xff]  ;;  %v2619_v48 = vld [vmem:[%s3145_s1 + $0x10] sm:$0xff]   ;;  %v2616_v52 = vld [vmem:[%s3125_s5 + $0x18] sm:$0xff]   ;;  %s2672_s29 = smov 8   ;;  %s2674_s3 = smov 24   ;;  %vm2080_vm6 = vcmask 523264  }
  0x13   : > { %v2814_v5 = vpack.c.bf16 %v2807_v3, %v2807_v3  ;;  %v634_v6 = vld [vmem:[%s623_s20] sm:$0xff]  ;;  %2442 = vmatpush3.bf16.msra.mxu0 %v2614_v24  ;;  %v2618_v54 = vld [vmem:[%s3125_s5 + $0x10] sm:$0xff]   ;;  %s631_s20 = scalar_lea.vmem %s3139_s19, %s2796_s23 }
  0x14   : > { %v2824_v8 = vpack.c.bf16 %v634_v6, %v634_v6  ;;  %v2241_v18 = vld [vmem:[%s3124_s4] ss:$0 sm:$0xff]  ;;  %2443 = vmatprep.subr.bf16.mxu0 %v2670_v1  ;;  %v2269_v63 = vld [vmem:[%s3126_s6 + $0x1] ss:$0 sm:$0xff] }
  0x15   : > { %2428 = vmatpush3.bf16.msra.mxu1 %v2611_v2  ;;  %v2615_v25 = vld [vmem:[%s3127_s7] sm:$0xff]  }
  0x16   : > { %2433 = vmatprep.subr.bf16.mxu1 %v2670_v1  ;;  %s627_s2 = scalar_lea.vmem %s3148_s30, %s2796_s23  ;;  %v2249_v34 = vld [vmem:[%s3128_s8] ss:$0 sm:$0xff] }
  0x17   : > { %2444 = vmatpush3.bf16.msra.mxu0 %v2615_v25  ;;  %v2858_v27 = vld [vmem:[%s627_s2] sm:$0xff] }
  0x18   : > { %2430 = vmatmul.mubr.msk.bf16.vlgmr.msra.gmra.mxu1 %vm661_vm1, %v2814_v5  ;;  %2455 = vmatprep.subr.bf16.mxu0 %v2670_v1 }
  0x19   : > { %2434 = vmatpush3.bf16.msra.mxu1 %v2612_v4  ;;  %2437 = vmatprep.mubr.msk.bf16.mxu1 %vm2671_vm0, %v2670_v1  ;;  %v2260_v4 = vld [vmem:[%s3124_s4 + $0x1] ss:$0 sm:$0xff] }
  0x1a   : > { %2435 = vmatprep.subr.bf16.mxu1 %v2670_v1  ;;  %2446 = vmatmul.mubr.msk.bf16.vlgmr.msra.gmra.mxu0 %vm661_vm1, %v2824_v8 }
  0x1b   : > { %2457 = vmatprep.mubr.msk.bf16.mxu0 %vm2671_vm0, %v2670_v1 }
  0x1d   : > { %2436 = vmatpush3.bf16.msra.mxu1 %v2613_v7 }
  0x1e   : > { %2449 = vmatprep.subr.bf16.mxu1 %v2670_v1 }
  0x20   : > { %2438 = vmatmul.mubr.msk.bf16.vlgmr.msra.gmra.mxu1 %vm661_vm1, %v2824_v8 }
  0x21   : > { %2451 = vmatprep.mubr.msk.bf16.mxu1 %vm2671_vm0, %v2670_v1 }
  0xd8   : > { %v699_v9 = vpop.f32.mrf.mxu1 }
  0xd9   : > { %v700_v22 = vadd.f32 %v2241_v18, %v699_v9 }
  0xda   : > { %v2431_v10 = vpop.f32.mrf.mxu1  ;;  %v828_v35 = vpop.f32.mrf.mxu0 }
  0xdb   : > { %v834_v23 = vpack.c.bf16 %v700_v22, %v700_v22  ;;  %v829_v36 = vadd.f32 %v2249_v34, %v828_v35 }
  0xdc   : > { %v702_v11 = vpop.f32.mrf.mxu1  ;;  %v2447_v37 = vpop.f32.mrf.mxu0 }
  0xdd   : > { %v897_v38 = vpack.c.bf16 %v829_v36, %v829_v36  ;;  %v2623_v37 = vld [vmem:[%s3145_s1 + $0x28] sm:$0xff]  }
  0xde   : > { %v2432_v12 = vpop.f32.mrf.mxu1  ;;  %v831_v39 = vpop.f32.mrf.mxu0 }
  0xdf   : > { %v903_v40 = vsel %vm901_vm3, %v897_v38, 0  ;;  %v2625_v38 = vld [vmem:[%s3145_s1 + $0x20] sm:$0xff]  }
  0xe0   : > { %v765_v14 = vpop.f32.mrf.mxu1  ;;  %v2448_v41 = vpop.f32.mrf.mxu0  ;;  %2456 = vmatpush3.bf16.msra.mxu0 %v903_v40 }
  0xe1   : > { %v766_v15 = vadd.f32 %v2245_v13, %v765_v14  ;;  %2469 = vmatprep.subr.bf16.mxu0 %v2670_v1  ;;  %v2620_v14 = vld [vmem:[%s3127_s7 + $0x18] sm:$0xff]  }
  0xe2   : > { %v2439_v16 = vpop.f32.mrf.mxu1 }
  0xe3   : > { %v835_v17 = vpack.c.bf16 %v766_v15, %v766_v15  ;;  %v2621_v15 = vld [vmem:[%s3127_s7 + $0x10] sm:$0xff]  }
  0xe4   : > { %v768_v19 = vpop.f32.mrf.mxu1 }
  0xe5   : > { %v841_v20 = vsel %vm836_vm2, %v835_v17, 0 }
  0xe6   : > { %v2440_v21 = vpop.f32.mrf.mxu1  ;;  %2450 = vmatpush3.bf16.xpose.msra.mxu1 %v841_v20 }
  0xe7   : > { %2461 = vmatprep.subr.bf16.mxu1 %v2670_v1 }
  0xed   : > { %2452 = vmatmul.mubr.msk.bf16.vlgmr.msra.gmra.mxu1 %vm836_vm2, %v834_v23 }
  0xee   : > { %2465 = vmatprep.mubr.msk.bf16.mxu1 %vm2671_vm0, %v2670_v1  ;;  %2462 = vmatpush3.bf16.msra.mxu1 %v2617_v47 }
  0xef   : > { %2463 = vmatprep.subr.bf16.mxu1 %v2670_v1 }
  0xf2   : > { %2464 = vmatpush3.bf16.msra.mxu1 %v2619_v48 }
  0xf3   : > { %2477 = vmatprep.subr.bf16.mxu1 %v2670_v1 }
  0xf5   : > { %2466 = vmatmul.mubr.msk.bf16.vlgmr.msra.gmra.mxu1 %vm661_vm1, %v2814_v5 }
  0xf6   : > { %2481 = vmatprep.mubr.msk.bf16.mxu1 %vm2671_vm0, %v2670_v1  ;;  %2478 = vmatpush3.bf16.msra.mxu1 %v2620_v14  ;;  %v2307_v14 = vld [vmem:[%s3128_s8 + $0x2] ss:$0 sm:$0xff] }
  0xf7   : > { %2479 = vmatprep.subr.bf16.mxu1 %v2670_v1 }
  0xfa   : > { %2480 = vmatpush3.bf16.msra.mxu1 %v2621_v15 }
  0xfb   : > { %2491 = vmatprep.subr.bf16.mxu1 %v2670_v1 }
  0xfd   : > { %2482 = vmatmul.mubr.msk.bf16.vlgmr.msra.gmra.mxu1 %vm661_vm1, %v2824_v8 }
  0xfe   : > { %2493 = vmatprep.mubr.msk.bf16.mxu1 %vm2671_vm0, %v2670_v1 }
 0x1ad   : > { %v877_v26 = vpop.f32.mrf.mxu1 }
 0x1ae   : > { %v883_v28 = vmul.f32 0.35355338, %v877_v26 }
 0x1af   : > { %v2453_v29 = vpop.f32.mrf.mxu1 }
 0x1b0   : > { %v884_v30 = vadd.f32 %v883_v28, %v2858_v27  ;;  %v2278_v29 = vld [vmem:[%s3128_s8 + $0x1] ss:$0 sm:$0xff] }
 0x1b1   : > { %v880_v31 = vpop.f32.mrf.mxu1 }
 0x1b2   : > { %v885_v32 = vsel %vm836_vm2, %v884_v30, -inf }
 0x1b3   : > { %886 = vmax.xlane.f32.xlu0 %v885_v32  ;;  %v2454_v33 = vpop.f32.mrf.mxu1 }
 0x1b5   : > { %v1004_v55 = vpop.f32.mrf.mxu1 }
 0x1b6   : > { %v1005_v11 = vadd.f32 %v2260_v4, %v1004_v55  ;;  %v2627_v4 = vld [vmem:[%s3127_s7 + $0x20] sm:$0xff]  }
 0x1b7   : > { %v2467_v56 = vpop.f32.mrf.mxu1 }
 0x1b8   : > { %v1140_v13 = vpack.c.bf16 %v1005_v11, %v1005_v11  ;;  %v2289_v56 = vld [vmem:[%s3124_s4 + $0x2] ss:$0 sm:$0xff] }
 0x1b9   : > { %v1007_v57 = vpop.f32.mrf.mxu1 }
 0x1bb   : > { %v2468_v58 = vpop.f32.mrf.mxu1 }
 0x23c   : > { %v887_v42 = vpop.xlane.xlu0 %886 }
 0x23d   : > { %v888_v43 = vsub.f32 %v884_v30, %v887_v42  ;;  %v1134_v30 = vpop.f32.mrf.mxu1  ;;  %v2622_v42 = vld [vmem:[%s3125_s5 + $0x28] sm:$0xff]  }
 0x23e   : > { %v1135_v31 = vadd.f32 %v2278_v29, %v1134_v30  ;;  %v2631_v29 = vld [vmem:[%s3145_s1 + $0x30] sm:$0xff]  }
 0x23f   : > { %v889_v44 = vmul.f32 1.442695, %v888_v43  ;;  %v2483_v32 = vpop.f32.mrf.mxu1 }
 0x240   : > { %v1202_v33 = vpack.c.bf16 %v1135_v31, %v1135_v31 }
 0x241   : > { %2642 = vpow2.f32 %v889_v44  ;;  %v1137_v34 = vpop.f32.mrf.mxu1  ;;  %v2624_v44 = vld [vmem:[%s3125_s5 + $0x20] sm:$0xff]  }
 0x242   : > { %v1207_v35 = vsel %vm901_vm3, %v1202_v33, 0  ;;  %v2628_v33 = vld [vmem:[%s3125_s5 + $0x38] sm:$0xff]  }
 0x243   : > { %v2484_v36 = vpop.f32.mrf.mxu1  ;;  %2492 = vmatpush3.bf16.msra.mxu1 %v1207_v35  ;;  %v2630_v35 = vld [vmem:[%s3125_s5 + $0x30] sm:$0xff]  }
 0x244   : > { %2505 = vmatprep.subr.bf16.mxu1 %v2670_v1 }
 0x24e   : > { %v2643_v45 = vpop.eup %2642 }
 0x24f   : > { %v891_v46 = vsel %vm836_vm2, %v2643_v45, 0.0 }
 0x250   : > { %892 = vadd.xlane.f32.xlu0 %v891_v46 }
 0x2d9   : > { %v893_v49 = vpop.xlane.xlu0 %892 }
 0x2da   : > { %2644 = vrcp.f32 %v893_v49 }
 0x2e7   : > { %v2645_v50 = vpop.eup %2644 }
 0x2e8   : > { %v895_v51 = vmul.f32 %v2645_v50, %v2643_v45 }
 0x2ea   : > { %v896_v53 = vpack.c.bf16 %v895_v51, %v895_v51 }
 0x2ec   : > { %2458 = vmatmul.mubr.msk.bf16.vlgmr.msra.gmra.mxu0 %vm836_vm2, %v896_v53  ;;  %v2298_v53 = vld [vmem:[%s3126_s6 + $0x2] ss:$0 sm:$0xff] }
 0x2ed   : > { %2470 = vmatpush3.bf16.msra.mxu0 %v2616_v52  ;;  %2473 = vmatprep.mubr.msk.bf16.mxu0 %vm2671_vm0, %v2670_v1 }
 0x2ee   : > { %2471 = vmatprep.subr.bf16.mxu0 %v2670_v1 }
 0x2f1   : > { %2472 = vmatpush3.bf16.msra.mxu0 %v2618_v54 }
 0x2f2   : > { %2485 = vmatprep.subr.bf16.mxu0 %v2670_v1 }
 0x2f4   : > { %2474 = vmatmul.mubr.msk.bf16.vlgmr.msra.gmra.mxu0 %vm661_vm1, %v2824_v8 }
 0x2f5   : > { %2487 = vmatprep.mubr.msk.bf16.mxu0 %vm2671_vm0, %v2670_v1 }
 0x3ac   : > { %v2895_v59 = vpop.f32.mrf.mxu0 }
 0x3ae   : > { %v2459_v60 = vpop.f32.mrf.mxu0 }
 0x3b0   : > { %v942_v61 = vpop.f32.mrf.mxu0 }
 0x3b2   : > { %v2460_v62 = vpop.f32.mrf.mxu0 }
 0x3b4   : > { %v1069_v0 = vpop.f32.mrf.mxu0 }
 0x3b5   : > { %v1070_v2 = vadd.f32 %v2269_v63, %v1069_v0 }
 0x3b6   : > { %v2475_v6 = vpop.f32.mrf.mxu0 }
 0x3b7   : > { %v1141_v7 = vpack.c.bf16 %v1070_v2, %v1070_v2  ;;  %v2626_v2 = vld [vmem:[%s3127_s7 + $0x28] sm:$0xff]  }
 0x3b8   : > { %v1072_v9 = vpop.f32.mrf.mxu0 }
 0x3b9   : > { %v1146_v10 = vsel %vm836_vm2, %v1141_v7, 0 }
 0x3ba   : > { %v2476_v12 = vpop.f32.mrf.mxu0  ;;  %2486 = vmatpush3.bf16.xpose.msra.mxu0 %v1146_v10 }
 0x3bb   : > { %2497 = vmatprep.subr.bf16.mxu0 %v2670_v1 }
 0x3c1   : > { %2488 = vmatmul.mubr.msk.bf16.vlgmr.msra.gmra.mxu0 %vm836_vm2, %v1140_v13 }
 0x3c2   : > { %2501 = vmatprep.mubr.msk.bf16.mxu0 %vm2671_vm0, %v2670_v1  ;;  %2498 = vmatpush3.bf16.msra.mxu0 %v2623_v37 }
 0x3c3   : > { %2499 = vmatprep.subr.bf16.mxu0 %v2670_v1 }
 0x3c6   : > { %2500 = vmatpush3.bf16.msra.mxu0 %v2625_v38 }
 0x3c7   : > { %2513 = vmatprep.subr.bf16.mxu0 %v2670_v1 }
 0x3c9   : > { %2502 = vmatmul.mubr.msk.bf16.vlgmr.msra.gmra.mxu0 %vm661_vm1, %v2814_v5 }
 0x3ca   : > { %2517 = vmatprep.mubr.msk.bf16.mxu0 %vm2671_vm0, %v2670_v1  ;;  %2514 = vmatpush3.bf16.msra.mxu0 %v2626_v2 }
 0x3cb   : > { %2515 = vmatprep.subr.bf16.mxu0 %v2670_v1 }
 0x3ce   : > { %2516 = vmatpush3.bf16.msra.mxu0 %v2627_v4 }
 0x3cf   : > { %2527 = vmatprep.subr.bf16.mxu0 %v2670_v1 }
 0x3d1   : > { %2518 = vmatmul.mubr.msk.bf16.vlgmr.msra.gmra.mxu0 %vm661_vm1, %v2824_v8 }
 0x3d2   : > { %2529 = vmatprep.mubr.msk.bf16.mxu0 %vm2671_vm0, %v2670_v1 }
 0x481   : > { %v1182_v16 = vpop.f32.mrf.mxu0 }
 0x482   : > { %v1188_v17 = vmul.f32 0.35355338, %v1182_v16 }
 0x483   : > { %v2489_v18 = vpop.f32.mrf.mxu0 }
 0x484   : > { %v1189_v19 = vadd.f32 %v1188_v17, %v2858_v27 }
 0x485   : > { %v1185_v20 = vpop.f32.mrf.mxu0 }
 0x486   : > { %v1190_v21 = vsel %vm836_vm2, %v1189_v19, -inf }
 0x487   : > { %1191 = vmax.xlane.f32.xlu1 %v1190_v21  ;;  %v2490_v22 = vpop.f32.mrf.mxu0 }
 0x489   : > { %v1308_v45 = vpop.f32.mrf.mxu0 }
 0x48a   : > { %v1309_v62 = vadd.f32 %v2289_v56, %v1308_v45  ;;  %v2633_v56 = vld [vmem:[%s3127_s7 + $0x30] sm:$0xff]  }
 0x48b   : > { %v2503_v46 = vpop.f32.mrf.mxu0 }
 0x48c   : > { %v1444_v0 = vpack.c.bf16 %v1309_v62, %v1309_v62 }
 0x48d   : > { %v1311_v47 = vpop.f32.mrf.mxu0 }
 0x48e   : > { %v2318_v47 = vld [vmem:[%s3124_s4 + $0x3] ss:$0 sm:$0xff] }
 0x48f   : > { %v2504_v48 = vpop.f32.mrf.mxu0 }
 0x491   : > { %v1438_v15 = vpop.f32.mrf.mxu0 }
 0x492   : > { %v1439_v16 = vadd.f32 %v2307_v14, %v1438_v15 }
 0x493   : > { %v2519_v17 = vpop.f32.mrf.mxu0 }
 0x494   : > { %v1506_v18 = vpack.c.bf16 %v1439_v16, %v1439_v16 }
 0x496   : > { %v1511_v20 = vsel %vm901_vm3, %v1506_v18, 0 }
 0x497   : > { %2528 = vmatpush3.bf16.msra.mxu0 %v1511_v20  ;;  %v2635_v20 = vld [vmem:[%s3129_s9] sm:$0xff]  }
 0x498   : > { %2541 = vmatprep.subr.bf16.mxu0 %v2670_v1 }
 0x510   : > { %v1192_v23 = vpop.xlane.xlu1 %1191 }
 0x511   : > { %v1193_v24 = vsub.f32 %v1189_v19, %v1192_v23  ;;  %v1441_v19 = vpop.f32.mrf.mxu0 }
 0x512   : > { %v2634_v19 = vld [vmem:[%s3129_s9 + $0x8] sm:$0xff]  }
 0x513   : > { %v1194_v25 = vmul.f32 1.442695, %v1193_v24  ;;  %v2520_v21 = vpop.f32.mrf.mxu0 }
 0x515   : > { %2646 = vpow2.f32 %v1194_v25 }
 0x522   : > { %v2647_v26 = vpop.eup %2646 }
 0x523   : > { %v1196_v28 = vsel %vm836_vm2, %v2647_v26, 0.0 }
 0x524   : > { %1197 = vadd.xlane.f32.xlu1 %v1196_v28  ;;  %v2629_v28 = vld [vmem:[%s3145_s1 + $0x38] sm:$0xff]  }
 0x5ad   : > { %v1198_v39 = vpop.xlane.xlu1 %1197 }
 0x5ae   : > { %2648 = vrcp.f32 %v1198_v39 }
 0x5bb   : > { %v2649_v40 = vpop.eup %2648 }
 0x5bc   : > { %v1200_v41 = vmul.f32 %v2649_v40, %v2647_v26 }
 0x5be   : > { %v1201_v43 = vpack.c.bf16 %v1200_v41, %v1200_v41 }
 0x5c0   : > { %2494 = vmatmul.mubr.msk.bf16.vlgmr.msra.gmra.mxu1 %vm836_vm2, %v1201_v43  ;;  %v2327_v43 = vld [vmem:[%s3126_s6 + $0x3] ss:$0 sm:$0xff] }
 0x5c1   : > { %2506 = vmatpush3.bf16.msra.mxu1 %v2622_v42  ;;  %2509 = vmatprep.mubr.msk.bf16.mxu1 %vm2671_vm0, %v2670_v1 }
 0x5c2   : > { %2507 = vmatprep.subr.bf16.mxu1 %v2670_v1 }
 0x5c5   : > { %2508 = vmatpush3.bf16.msra.mxu1 %v2624_v44 }
 0x5c6   : > { %2521 = vmatprep.subr.bf16.mxu1 %v2670_v1 }
 0x5c8   : > { %2510 = vmatmul.mubr.msk.bf16.vlgmr.msra.gmra.mxu1 %vm661_vm1, %v2824_v8 }
 0x5c9   : > { %2523 = vmatprep.mubr.msk.bf16.mxu1 %vm2671_vm0, %v2670_v1 }
 0x680   : > { %v2955_v49 = vpop.f32.mrf.mxu1 }
 0x682   : > { %v2495_v50 = vpop.f32.mrf.mxu1 }
 0x684   : > { %v1246_v51 = vpop.f32.mrf.mxu1 }
 0x686   : > { %v2496_v52 = vpop.f32.mrf.mxu1 }
 0x688   : > { %v1373_v54 = vpop.f32.mrf.mxu1 }
 0x689   : > { %v1374_v55 = vadd.f32 %v2298_v53, %v1373_v54 }
 0x68a   : > { %v2511_v57 = vpop.f32.mrf.mxu1 }
 0x68b   : > { %v1445_v58 = vpack.c.bf16 %v1374_v55, %v1374_v55  ;;  %v2632_v55 = vld [vmem:[%s3127_s7 + $0x38] sm:$0xff]  }
 0x68c   : > { %v1376_v60 = vpop.f32.mrf.mxu1 }
 0x68d   : > { %v1450_v61 = vsel %vm836_vm2, %v1445_v58, 0 }
 0x68e   : > { %v2512_v63 = vpop.f32.mrf.mxu1  ;;  %2522 = vmatpush3.bf16.xpose.msra.mxu1 %v1450_v61 }
 0x68f   : > { %2533 = vmatprep.subr.bf16.mxu1 %v2670_v1 }
 0x695   : > { %2524 = vmatmul.mubr.msk.bf16.vlgmr.msra.gmra.mxu1 %vm836_vm2, %v1444_v0 }
 0x696   : > { %2537 = vmatprep.mubr.msk.bf16.mxu1 %vm2671_vm0, %v2670_v1  ;;  %2534 = vmatpush3.bf16.msra.mxu1 %v2629_v28 }
 0x697   : > { %2535 = vmatprep.subr.bf16.mxu1 %v2670_v1 }
 0x69a   : > { %2536 = vmatpush3.bf16.msra.mxu1 %v2631_v29 }
 0x69b   : > { %2549 = vmatprep.subr.bf16.mxu1 %v2670_v1 }
 0x69d   : > { %2538 = vmatmul.mubr.msk.bf16.vlgmr.msra.gmra.mxu1 %vm661_vm1, %v2814_v5 }
 0x69e   : > { %2553 = vmatprep.mubr.msk.bf16.mxu1 %vm2671_vm0, %v2670_v1  ;;  %2550 = vmatpush3.bf16.msra.mxu1 %v2632_v55 }
 0x69f   : > { %2551 = vmatprep.subr.bf16.mxu1 %v2670_v1 }
 0x6a2   : > { %2552 = vmatpush3.bf16.msra.mxu1 %v2633_v56 }
 0x6a3   : > { %2563 = vmatprep.subr.bf16.mxu1 %v2670_v1 }
 0x6a5   : > { %2554 = vmatmul.mubr.msk.bf16.vlgmr.msra.gmra.mxu1 %vm661_vm1, %v2824_v8 }
 0x6a6   : > { %2565 = vmatprep.mubr.msk.bf16.mxu1 %vm2671_vm0, %v2670_v1 }
 0x755   : > { %v1486_v6 = vpop.f32.mrf.mxu1 }
 0x756   : > { %v1492_v7 = vmul.f32 0.35355338, %v1486_v6 }
 0x757   : > { %v2525_v9 = vpop.f32.mrf.mxu1 }
 0x758   : > { %v1493_v10 = vadd.f32 %v1492_v7, %v2858_v27 }
 0x759   : > { %v1489_v11 = vpop.f32.mrf.mxu1 }
 0x75a   : > { %v1494_v12 = vsel %vm836_vm2, %v1493_v10, -inf }
 0x75b   : > { %1495 = vmax.xlane.f32.xlu0 %v1494_v12  ;;  %v2526_v13 = vpop.f32.mrf.mxu1 }
 0x75d   : > { %v1612_v5 = vpop.f32.mrf.mxu1 }
 0x75e   : > { %v1613_v52 = vadd.f32 %v2318_v47, %v1612_v5 }
 0x75f   : > { %v2539_v36 = vpop.f32.mrf.mxu1 }
 0x760   : > { %v1748_v54 = vpack.c.bf16 %v1613_v52, %v1613_v52  ;;  %v2346_v52 = vld [vmem:[%s3131_s11] ss:$0 sm:$0xff] }
 0x761   : > { %v1615_v37 = vpop.f32.mrf.mxu1 }
 0x763   : > { %v2540_v38 = vpop.f32.mrf.mxu1 }
 0x765   : > { %v1742_v9 = vpop.f32.mrf.mxu1 }
 0x767   : > { %v2555_v11 = vpop.f32.mrf.mxu1 }
 0x769   : > { %v1745_v13 = vpop.f32.mrf.mxu1 }
 0x7e4   : > { %v1496_v22 = vpop.xlane.xlu0 %1495 }
 0x7e5   : > { %v1497_v23 = vsub.f32 %v1493_v10, %v1496_v22 }
 0x7e7   : > { %v1498_v24 = vmul.f32 1.442695, %v1497_v23 }
 0x7e9   : > { %2650 = vpow2.f32 %v1498_v24 }
 0x7f6   : > { %v2651_v25 = vpop.eup %2650 }
 0x7f7   : > { %v1500_v26 = vsel %vm836_vm2, %v2651_v25, 0.0 }
 0x7f8   : > { %1501 = vadd.xlane.f32.xlu1 %v1500_v26 }
 0x881   : > { %v1502_v30 = vpop.xlane.xlu1 %1501 }
 0x882   : > { %2652 = vrcp.f32 %v1502_v30 }
 0x88f   : > { %v2653_v31 = vpop.eup %2652 }
 0x890   : > { %v1504_v32 = vmul.f32 %v2653_v31, %v2651_v25 }
 0x892   : > { %v1505_v34 = vpack.c.bf16 %v1504_v32, %v1504_v32 }
 0x894   : > { %2530 = vmatmul.mubr.msk.bf16.vlgmr.msra.gmra.mxu0 %vm836_vm2, %v1505_v34 }
 0x895   : > { %2542 = vmatpush3.bf16.msra.mxu0 %v2628_v33  ;;  %2545 = vmatprep.mubr.msk.bf16.mxu0 %vm2671_vm0, %v2670_v1  ;;  %v2342_v33 = vld [vmem:[%s3130_s10] ss:$0 sm:$0xff] }
 0x896   : > { %2543 = vmatprep.subr.bf16.mxu0 %v2670_v1 }
 0x899   : > { %2544 = vmatpush3.bf16.msra.mxu0 %v2630_v35 }
 0x89a   : > { %2557 = vmatprep.subr.bf16.mxu0 %v2670_v1 }
 0x89c   : > { %2546 = vmatmul.mubr.msk.bf16.vlgmr.msra.gmra.mxu0 %vm661_vm1, %v2824_v8 }
 0x89d   : > { %2559 = vmatprep.mubr.msk.bf16.mxu0 %vm2671_vm0, %v2670_v1 }
 0x954   : > { %v1547_v39 = vpop.f32.mrf.mxu0 }
 0x956   : > { %v2531_v40 = vpop.f32.mrf.mxu0 }
 0x958   : > { %v1550_v41 = vpop.f32.mrf.mxu0 }
 0x95a   : > { %v2532_v42 = vpop.f32.mrf.mxu0 }
 0x95c   : > { %v1677_v44 = vpop.f32.mrf.mxu0 }
 0x95d   : > { %v1678_v45 = vadd.f32 %v2327_v43, %v1677_v44  ;;  %v2636_v44 = vld [vmem:[%s3133_s13 + $0x8] sm:$0xff]  }
 0x95e   : > { %v2547_v46 = vpop.f32.mrf.mxu0 }
 0x95f   : > { %v1749_v48 = vpack.c.bf16 %v1678_v45, %v1678_v45  ;;  %v2638_v45 = vld [vmem:[%s3135_s15 + $0x18] sm:$0xff]   ;;  %v2639_v46 = vld [vmem:[%s3135_s15 + $0x10] sm:$0xff]  }
 0x960   : > { %v1680_v50 = vpop.f32.mrf.mxu0 }
 0x961   : > { %v1754_v51 = vsel %vm836_vm2, %v1749_v48, 0 }
 0x962   : > { %v2548_v53 = vpop.f32.mrf.mxu0  ;;  %2558 = vmatpush3.bf16.xpose.msra.mxu0 %v1754_v51 }
 0x963   : > { %2569 = vmatprep.subr.bf16.mxu0 %v2670_v1 }
 0x969   : > { %2560 = vmatmul.mubr.msk.bf16.vlgmr.msra.gmra.mxu0 %vm836_vm2, %v1748_v54  ;;  %v2347_v54 = vld [vmem:[%s3132_s12] ss:$0 sm:$0xff] }
 0x96a   : > { %2573 = vmatprep.mubr.msk.bf16.mxu0 %vm2671_vm0, %v2670_v1  ;;  %2570 = vmatpush3.bf16.msra.mxu0 %v2634_v19 }
 0x96b   : > { %2571 = vmatprep.subr.bf16.mxu0 %v2670_v1 }
 0x96e   : > { %2572 = vmatpush3.bf16.msra.mxu0 %v2635_v20 }
 0x96f   : > { %2585 = vmatprep.subr.bf16.mxu0 %v2670_v1 }
 0xa29   : > { %v1790_v57 = vpop.f32.mrf.mxu0 }
 0xa2a   : > { %v1796_v58 = vmul.f32 0.35355338, %v1790_v57 }
 0xa2b   : > { %v2561_v60 = vpop.f32.mrf.mxu0 }
 0xa2c   : > { %v1797_v61 = vadd.f32 %v1796_v58, %v2858_v27  ;;  %v2336_v27 = vld [vmem:[%s3128_s8 + $0x3] ss:$0 sm:$0xff]  ;;  %v2640_v58 = vld [vmem:[%s3135_s15 + $0x8] sm:$0xff]  }
 0xa2d   : > { %v1793_v62 = vpop.f32.mrf.mxu0  ;;  %v1743_v10 = vadd.f32 %v2336_v27, %v1742_v9  ;;  %v2641_v60 = vld [vmem:[%s3135_s15] sm:$0xff]  }
 0xa2e   : > { %v1798_v63 = vsel %vm836_vm2, %v1797_v61, -inf }
 0xa2f   : > { %1799 = vmax.xlane.f32.xlu0 %v1798_v63  ;;  %v2562_v0 = vpop.f32.mrf.mxu0  ;;  %v1810_v12 = vpack.c.bf16 %v1743_v10, %v1743_v10 }
 0xa31   : > { %v1815_v14 = vsel %vm901_vm3, %v1810_v12, 0 }
 0xa32   : > { %2564 = vmatpush3.bf16.msra.mxu1 %v1815_v14 }
 0xa33   : > { %2577 = vmatprep.subr.bf16.mxu1 %v2670_v1 }
 0xa45   : > { %1858 = vrot.lane.b32.xlu0 %v2955_v49, %s2672_s29  ;;  %v2556_v49 = vpop.f32.mrf.mxu1 }
 0xab8   : > { %v1800_v2 = vpop.xlane.xlu0 %1799 }
 0xab9   : > { %v1801_v4 = vsub.f32 %v1797_v61, %v1800_v2  ;;  %v2348_v61 = vld [vmem:[%s3134_s14] ss:$0 sm:$0xff] }
 0xabb   : > { %v1802_v6 = vmul.f32 1.442695, %v1801_v4 }
 0xabc   : > { %v1859_v25 = vpop.permute.xlu0 %1858 }
 0xabd   : > { %2654 = vpow2.f32 %v1802_v6  ;;  %v1869_v28 = vsel %vm836_vm2, %v2895_v59, %v1859_v25 }
 0xaca   : > { %v2655_v8 = vpop.eup %2654 }
 0xacb   : > { %v1804_v7 = vsel %vm836_vm2, %v2655_v8, 0.0 }
 0xacc   : > { %1805 = vadd.xlane.f32.xlu1 %v1804_v7 }
 0xadd   : > { %1862 = vrot.lane.b32.xlu1 %v1547_v39, %s2673_s22 }
 0xb55   : > { %v1806_v15 = vpop.xlane.xlu1 %1805 }
 0xb56   : > { %2656 = vrcp.f32 %v1806_v15 }
 0xb59   : > { %v1863_v26 = vpop.permute.xlu1 %1862 }
 0xb5a   : > { %v1871_v29 = vsel %vm1870_vm4, %v1869_v28, %v1863_v26 }
 0xb63   : > { %v2657_v16 = vpop.eup %2656 }
 0xb64   : > { %v1808_v17 = vmul.f32 %v2657_v16, %v2655_v8 }
 0xb66   : > { %v1809_v18 = vpack.c.bf16 %v1808_v17, %v1808_v17 }
 0xb68   : > { %2566 = vmatmul.mubr.msk.bf16.vlgmr.msra.gmra.mxu1 %vm836_vm2, %v1809_v18 }
 0xb69   : > { %2581 = vmatprep.mubr.msk.bf16.mxu1 %vm2671_vm0, %v2670_v1  ;;  %2578 = vmatpush3.bf16.msra.mxu1 %v2636_v44 }
 0xb6a   : > { %2579 = vmatprep.subr.bf16.mxu1 %v2670_v1 }
 0xc28   : > { %v1851_v21 = vpop.f32.mrf.mxu1 }
 0xc29   : > { %1866 = vrot.lane.b32.xlu1 %v1851_v21, %s2674_s3 }
 0xc2a   : > { %v2567_v22 = vpop.f32.mrf.mxu1 }
 0xc2b   : > { %v2358_v22 = vld [vmem:[%s3137_s17] ss:$0 sm:$0xff] }
 0xc2c   : > { %v1854_v23 = vpop.f32.mrf.mxu1 }
 0xc2e   : > { %v2568_v24 = vpop.f32.mrf.mxu1 }
 0xc2f   : > { %v2359_v24 = vld [vmem:[%s3138_s18] ss:$0 sm:$0xff] }
 0xc9b   : > { %v1867_v30 = vpop.permute.xlu1 %1866 }
 0xc9c   : > { %v1873_v31 = vsel %vm1872_vm5, %v1871_v29, %v1867_v30 }
 0xc9d   : > { %v1874_v32 = vpack.c.bf16 %v1873_v31, %v1873_v31 }
 0xc9f   : > { %2574 = vmatmul.mubr.msk.bf16.vlgmr.msra.gmra.mxu0 %vm661_vm1, %v1874_v32 }
 0xca0   : > { %2593 = vmatprep.mubr.msk.bf16.mxu0 %vm2671_vm0, %v2670_v1  ;;  %2586 = vmatpush3.bf16.msra.mxu0 %v2638_v45 }
 0xca1   : > { %2587 = vmatprep.subr.bf16.mxu0 %v2670_v1 }
 0xca4   : > { %2588 = vmatpush3.bf16.msra.mxu0 %v2639_v46 }
 0xca5   : > { %2589 = vmatprep.subr.bf16.mxu0 %v2670_v1 }
 0xca8   : > { %2590 = vmatpush3.bf16.msra.mxu0 %v2640_v58 }
 0xca9   : > { %2591 = vmatprep.subr.bf16.mxu0 %v2670_v1  ;;  %v2352_v1 = vld [vmem:[%s3136_s16] ss:$0 sm:$0xff] }
 0xcac   : > { %2592 = vmatpush3.bf16.msra.mxu0 %v2641_v60 }
 0xd5f   : > { %v1935_v34 = vpop.f32.mrf.mxu0 }
 0xd60   : > { %v1936_v35 = vadd.f32 %v2342_v33, %v1935_v34 }
 0xd61   : > { %v2575_v5 = vpop.f32.mrf.mxu0 }
 0xd62   : > { %v1941_v36 = vadd.f32 %v1936_v35, %v2807_v3  ;;  %v2637_v3 = vld [vmem:[%s3133_s13] sm:$0xff]  }
 0xd63   : > { %v1938_v37 = vpop.f32.mrf.mxu0  ;;  %2580 = vmatpush3.bf16.msra.mxu1 %v2637_v3 }
 0xd64   : > { %v1944_v59 = vsel %vm661_vm1, %v1941_v36, 0.0 }
 0xd65   : > { %1945 = vadd.xlane.f32.xlu1 %v1944_v59  ;;  %v2576_v38 = vpop.f32.mrf.mxu0 }
 0xdee   : > { %v1946_v39 = vpop.xlane.xlu1 %1945 }
 0xdef   : > { %v1948_v40 = vmul.f32 0.03125, %v1946_v39 }
 0xdf1   : > { %v1949_v41 = vsub.f32 %v1941_v36, %v1948_v40 }
 0xdf3   : > { %v1950_v42 = vmul.f32 %v1949_v41, %v1949_v41 }
 0xdf5   : > { %v1951_v43 = vsel %vm661_vm1, %v1950_v42, 0.0 }
 0xdf6   : > { %1952 = vadd.xlane.f32.xlu0 %v1951_v43 }
 0xe7f   : > { %v1953_v47 = vpop.xlane.xlu0 %1952 }
 0xe80   : > { %v1954_v48 = vmul.f32 0.03125, %v1953_v47 }
 0xe82   : > { %v1955_v50 = vadd.f32 1e-05, %v1954_v48 }
 0xe84   : > { %2658 = vrsqrt.f32 %v1955_v50 }
 0xe91   : > { %v2659_v51 = vpop.eup %2658 }
 0xe92   : > { %v1957_v53 = vmul.f32 %v2659_v51, %v1949_v41 }
 0xe94   : > { %v1964_v55 = vmul.f32 %v2346_v52, %v1957_v53 }
 0xe96   : > { %v1971_v56 = vadd.f32 %v2347_v54, %v1964_v55 }
 0xe98   : > { %v1972_v57 = vpack.c.bf16 %v1971_v56, %v1971_v56 }
 0xe9a   : > { %2582 = vmatmul.mubr.msk.bf16.vlgmr.msra.gmra.mxu1 %vm661_vm1, %v1972_v57 }
 0xf5a   : > { %v2033_v62 = vpop.f32.mrf.mxu1 }
 0xf5b   : > { %v2034_v63 = vadd.f32 %v2348_v61, %v2033_v62 }
 0xf5c   : > { %v2583_v0 = vpop.f32.mrf.mxu1 }
 0xf5d   : > { %v2039_v2 = vmax.f32 %v2034_v63, 0.0 }
 0xf5e   : > { %v2036_v4 = vpop.f32.mrf.mxu1 }
 0xf5f   : > { %v2040_v6 = vpack.c.bf16 %v2039_v2, %v2039_v2 }
 0xf60   : > { %v2584_v8 = vpop.f32.mrf.mxu1 }
 0xf61   : > { %2594 = vmatmul.mubr.msk.bf16.vlgmr.msra.gmra.mxu0 %vm2080_vm6, %v2040_v6 }
0x1021   : > { %v2118_v7 = vpop.f32.mrf.mxu0 }
0x1022   : > { %v2119_v27 = vadd.f32 %v2352_v1, %v2118_v7 }
0x1023   : > { %v2595_v9 = vpop.f32.mrf.mxu0 }
0x1024   : > { %v2124_v10 = vadd.f32 %v2119_v27, %v1971_v56 }
0x1025   : > { %v2121_v11 = vpop.f32.mrf.mxu0 }
0x1026   : > { %v2127_v12 = vsel %vm661_vm1, %v2124_v10, 0.0 }
0x1027   : > { %2128 = vadd.xlane.f32.xlu0 %v2127_v12  ;;  %v2596_v13 = vpop.f32.mrf.mxu0 }
0x10b0   : > { %v2129_v14 = vpop.xlane.xlu0 %2128 }
0x10b1   : > { %v2130_v49 = vmul.f32 0.03125, %v2129_v14 }
0x10b3   : > { %v2131_v15 = vsub.f32 %v2124_v10, %v2130_v49 }
0x10b5   : > { %v2132_v16 = vmul.f32 %v2131_v15, %v2131_v15 }
0x10b7   : > { %v2133_v17 = vsel %vm661_vm1, %v2132_v16, 0.0 }
0x10b8   : > { %2134 = vadd.xlane.f32.xlu0 %v2133_v17 }
0x1141   : > { %v2135_v18 = vpop.xlane.xlu0 %2134 }
0x1142   : > { %v2136_v19 = vmul.f32 0.03125, %v2135_v18 }
0x1144   : > { %v2137_v20 = vadd.f32 1e-05, %v2136_v19 }
0x1146   : > { %2660 = vrsqrt.f32 %v2137_v20 }
0x1153   : > { %v2661_v21 = vpop.eup %2660 }
0x1154   : > { %v2139_v23 = vmul.f32 %v2661_v21, %v2131_v15 }
0x1156   : > { %v2146_v25 = vmul.f32 %v2358_v22, %v2139_v23 }
0x1158   : > { %v2153_v26 = vadd.f32 %v2359_v24, %v2146_v25 }
0x115a   : > { %2154 = vst.msk [vmem:[%s631_s20] sm:$0xff] %vm661_vm1, %v2153_v26 }
0x115b PF: > { %s29_s0 = sadd.s32 1, %s2668_s0  }
0x115c   : > { %p26_p4 = scmp.ge.s32.totalorder %s29_s0, 4  }
0x115e   :  { %28 = sbr.rel (!%p26_p4) target bundleno = 5 (0x5), region = 150 }

// kernel: abinet_forward.23
= control target key start
LH: loop header
LB: loop body
LE: loop exit
PB: predicated region body
PF: predicated region fallthrough
CT: control target
= control target key end

     0   :  { %s1092_s0 = inlined_call_operand.vmem [shape: f32[2,8,32], index: 0, kind: input, shape index: {}]   ;;  %s1093_s1 = inlined_call_operand.vmem [shape: f32[2,8,32], index: 1, kind: input, shape index: {}]   ;;  %s1094_s2 = inlined_call_operand.vmem [shape: bf16[32,32], index: 2, kind: input, shape index: {}]   ;;  %s1095_s3 = inlined_call_operand.vmem [shape: bf16[32,32], index: 3, kind: input, shape index: {}]   ;;  %s1096_s4 = inlined_call_operand.vmem [shape: f32[1,32], index: 4, kind: input, shape index: {}]   ;;  %s1097_s5 = inlined_call_operand.vmem [shape: bf16[32,128], index: 5, kind: input, shape index: {}]   ;;  %s1098_s6 = inlined_call_operand.vmem [shape: f32[1,128], index: 6, kind: input, shape index: {}]   ;;  %s1099_s7 = inlined_call_operand.hbm [shape: f32[2,8,128], index: 7, kind: output, shape index: {0}]   ;;  %s1100_s8 = inlined_call_operand.hbm [shape: f32[2,8,128], index: 8, kind: output, shape index: {1}]  }
   0x1   :  { %1103 = sst [smem:[#allocation8_spill]] %s1092_s0 }
   0x2   :  { %14 = vsyncpa [#allocation3], 0 }
   0x3   :  { %16 = vsyncpa [#allocation3 + $0x1], 0 }
   0x4   :  { %17 = vsyncpa [#allocation5], 0 }
   0x5   :  { %19 = vsyncpa [#allocation5 + $0x1], 0  ;;  %s944_s27 = smov 0   ;;  %s946_s28 = smov 0  }
   0x6   :  { %s948_s29 = smov 0   ;;  %s950_s30 = smov 0  }
   0x7 LB: > { %s965_s9 = sadd.s32 4294967295, %s893_s30   ;;  %s684_s10 = sadd.s32 4294967294, %s893_s30   ;;  %s893_s30 = sphi %s950_s30, %s1112_s30   ;;  %s889_s29 = sphi %s948_s29, %s1111_s29   ;;  %s885_s28 = sphi %s946_s28, %s1110_s28   ;;  %s881_s27 = sphi %s944_s27, %s1109_s27  }
   0x8   : > { %s969_s11 = sadd.s32 1, %s893_s30   ;;  %s189_s12 = sadd.s32 1, %s889_s29 }
   0x9   : > { %s186_s13 = ssub.s32 %s893_s30, %s969_s11  ;;  %p199_p0 = scmp.ne.s32.totalorder %s889_s29, %s885_s28 }
   0xa   : > { %p187_p1 = scmp.eq.s32.totalorder %s186_s13, 0  ;;  %p200_p2 = scmp.eq.s32.totalorder %s965_s9, 1 }
   0xb   : > { %p205_p3 = scmp.ne.s32.totalorder %s885_s28, %s881_s27  ;;  %p206_p4 = scmp.eq.s32.totalorder %s684_s10, 1 }
   0xc   : > { %s980_s14 = scalar_select %p187_p1, %s889_s29, %s189_s12  }
   0xd   : > { %p982_p5 = por %p200_p2, %p199_p0  ;;  %p986_p6 = por %p206_p4, %p205_p3 }
   0xe   : > { %p687_p7 = scmp.ge.s32.totalorder %s893_s30, 1  ;;  %p279_p8 = scmp.lt.s32.totalorder %s893_s30, 3 }
  0x10   : > { %p280_p9 = pnand %p687_p7, %p279_p8 }
  0x11   : > { %p321_p10 = scmp.lt.s32.totalorder (!%p280_p9), %s965_s9, 1  ;;  %s1106_s0 = sld [smem:[#allocation8_spill]] (!%p280_p9) }
  0x12   : > { %283 = sbr.rel (%p280_p9) target bundleno = 788 (0x314), region = 48  ;;  %s1102_s18 = sshll.u32 (!%p280_p9), %s965_s9, 7 }
  0x13   : > { %s566_s21 = scalar_lea.hbm (!%p280_p9), %s1099_s7, %s1102_s18 }
  0x17   : > { %v789_v0 = vld [vmem:[%s1095_s3 + $0x8] sm:$0xff]   ;;  %v895_v1 = vmov 0.0   ;;  %v791_v3 = vld [vmem:[%s1095_s3] sm:$0xff]   ;;  %vm896_vm0 = vmmov 0   ;;  %s322_s25 = scalar_select %p321_p10, %s965_s9, 1  ;;  %vm354_vm1 = vcmask 261120  }
  0x18   : > { %719 = vmatprep.subr.bf16.mxu0 %v895_v1  ;;  %727 = vmatprep.subr.bf16.mxu1 %v895_v1  ;;  %v790_v2 = vld [vmem:[%s1094_s2 + $0x8] sm:$0xff]   ;;  %v792_v4 = vld [vmem:[%s1094_s2] sm:$0xff]  }
  0x19   : > { %720 = vmatpush3.bf16.msra.mxu0 %v789_v0  ;;  %723 = vmatprep.mubr.msk.bf16.mxu0 %vm896_vm0, %v895_v1  ;;  %s690_s26 = sshll.u32 %s322_s25, 3  ;;  %v793_v9 = vld [vmem:[%s1097_s5 + $0x8] sm:$0xff]   ;;  %v794_v10 = vld [vmem:[%s1097_s5] sm:$0xff]   ;;  %s897_s25 = smov [#allocation2]  }
  0x1a   : > { %728 = vmatpush3.bf16.msra.mxu1 %v790_v2  ;;  %721 = vmatprep.subr.bf16.mxu0 %v895_v1  ;;  %s328_s13 = scalar_lea.vmem %s1093_s1, %s690_s26  ;;  %s324_s19 = scalar_lea.vmem %s1106_s0, %s690_s26  ;;  %v698_v13 = vld [vmem:[%s1096_s4] ss:$0 sm:$0xff] }
  0x1b   : > { %729 = vmatprep.subr.bf16.mxu1 %v895_v1  ;;  %731 = vmatprep.mubr.msk.bf16.mxu1 %vm896_vm0, %v895_v1  ;;  %v331_v5 = vld [vmem:[%s328_s13] sm:$0xff]  ;;  %s1028_s26 = sand.u32 1, %s885_s28   ;;  %s807_s12 = sshll.u32 %s897_s25, 4  ;;  %s808_s12 = int_to_ptr.vmem [resolvable:$false] %s807_s12 }
  0x1c   : > { %v330_v6 = vld [vmem:[%s324_s19] sm:$0xff]  ;;  %v337_v7 = vpack.c.bf16 %v331_v5, %v331_v5  ;;  %s1101_s10 = sshll.u32 %s1028_s26, 3  ;;  %s550_s23 = scalar_lea.sflag [#allocation3], %s1028_s26 }
  0x1d   : > { %722 = vmatpush3.bf16.msra.mxu0 %v791_v3  ;;  %v332_v8 = vpack.c.bf16 %v330_v6, %v330_v6  ;;  %v700_v31 = vld [vmem:[%s1098_s6] ss:$0 sm:$0xff]  ;;  %s313_s17 = scalar_lea.vmem [#allocation2], %s1101_s10  ;;  %s809_s13 = scalar_lea.vmem %s808_s12, 256 }
  0x1e   : > { %730 = vmatpush3.bf16.msra.mxu1 %v792_v4  ;;  %735 = vmatprep.subr.bf16.mxu0 %v895_v1  ;;  %s568_s22 = sshll.u32 %s313_s17, 4  ;;  %s569_s22 = int_to_ptr.vmem [resolvable:$true] %s568_s22 }
  0x1f   : > { %s803_s24 = scalar_lea.vmem %s569_s22, 128  ;;  %p810_p0 = scmp.lt.s32.totalorder %s569_s22, %s808_s12 }
  0x20   : > { %724 = vmatmul.mubr.msk.bf16.vlgmr.msra.gmra.mxu0 %vm354_vm1, %v337_v7  ;;  %p804_p11 = scmp.ne.s32.totalorder %s569_s22, %s803_s24  ;;  %p811_p1 = scmp.lt.s32.totalorder %s809_s13, %s803_s24 }
  0x21   : > { %732 = vmatmul.mubr.msk.bf16.vlgmr.msra.gmra.mxu1 %vm354_vm1, %v332_v8  ;;  %739 = vmatprep.mubr.msk.bf16.mxu0 %vm896_vm0, %v895_v1 }
  0x22   : > { %736 = vmatpush3.bf16.msra.mxu0 %v793_v9  ;;  %p805_p12 = pnand %p804_p11, %p982_p5  ;;  %p812_p2 = por %p811_p1, %p810_p0 }
  0x23   : > { %737 = vmatprep.subr.bf16.mxu0 %v895_v1 }
  0x24   : > { %p806_p13 = pneg %p805_p12 }
  0x26   : > { %738 = vmatpush3.bf16.msra.mxu0 %v794_v10  ;;  %p813_p3 = pnand %p812_p2, %p806_p13 }
  0xe0   : > { %v392_v11 = vpop.f32.mrf.mxu0 }
  0xe1   : > { %v447_v12 = vpop.f32.mrf.mxu1 }
  0xe2   : > { %v448_v14 = vadd.f32 %v447_v12, %v392_v11  ;;  %v725_v15 = vpop.f32.mrf.mxu0 }
  0xe3   : > { %v733_v16 = vpop.f32.mrf.mxu1 }
  0xe4   : > { %v460_v17 = vadd.f32 %v698_v13, %v448_v14  ;;  %v395_v18 = vpop.f32.mrf.mxu0 }
  0xe5   : > { %v450_v19 = vpop.f32.mrf.mxu1 }
  0xe6   : > { %v699_v20 = vmul.f32 -1.442695, %v460_v17  ;;  %v726_v21 = vpop.f32.mrf.mxu0 }
  0xe7   : > { %v734_v22 = vpop.f32.mrf.mxu1 }
  0xe8   : > { %795 = vpow2.f32 %v699_v20 }
  0xf5   : > { %v796_v23 = vpop.eup %795 }
  0xf6   : > { %v464_v24 = vadd.f32 1.0, %v796_v23 }
  0xf8   : > { %797 = vrcp.f32 %v464_v24 }
 0x105   : > { %v798_v25 = vpop.eup %797 }
 0x106   : > { %v468_v26 = vsub.f32 1.0, %v798_v25  ;;  %v467_v27 = vmul.f32 %v798_v25, %v331_v5 }
 0x108   : > { %v469_v28 = vmul.f32 %v468_v26, %v330_v6 }
 0x10a   : > { %v470_v29 = vadd.f32 %v469_v28, %v467_v27 }
 0x10c   : > { %v471_v30 = vpack.c.bf16 %v470_v29, %v470_v29 }
 0x10e   : > { %740 = vmatmul.mubr.msk.bf16.vlgmr.msra.gmra.mxu0 %vm354_vm1, %v471_v30 }
 0x1ce   : > { %v532_v32 = vpop.f32.mrf.mxu0 }
 0x1cf   : > { %v533_v33 = vadd.f32 %v700_v31, %v532_v32 }
 0x1d0   : > { %v741_v34 = vpop.f32.mrf.mxu0 }
 0x1d1   : > { %539 = vmax.xlane.f32.xlu0 %v533_v33  ;;  %538 = vst [vmem:[%s313_s17] sm:$0xff] %v533_v33 }
 0x1d2   : > { %v535_v35 = vpop.f32.mrf.mxu0 }
 0x1d4   : > { %v742_v36 = vpop.f32.mrf.mxu0 }
 0x25a   : > { %v540_v37 = vpop.xlane.xlu0 %539 }
 0x25b   : > { %v541_v38 = vsub.f32 %v533_v33, %v540_v37 }
 0x25d   : > { %v542_v39 = vmul.f32 1.442695, %v541_v38 }
 0x25f   : > { %799 = vpow2.f32 %v542_v39 }
 0x26c   : > { %v800_v40 = vpop.eup %799 }
 0x26d   : > { %544 = vadd.xlane.f32.xlu0 %v800_v40 }
 0x26e   : > { %816 = shalt.err (!%p813_p3)
}
 0x26f   : > { %s817_s10 = scalar_lea.hbm %s566_s21, 128  ;;  %s821_s20 = scalar_lea.hbm %s1099_s7, 256 }
 0x270   : > { %p818_p4 = scmp.ne.s32.totalorder %s566_s21, %s817_s10  ;;  %p822_p9 = scmp.lt.s32.totalorder %s566_s21, %s1099_s7 }
 0x271   : > { %p823_p10 = scmp.lt.s32.totalorder %s821_s20, %s817_s10 }
 0x272   : > { %p819_p7 = pnand %p818_p4, %p982_p5 }
 0x273   : > { %p824_p11 = por %p823_p10, %p822_p9 }
 0x274   : > { %p820_p8 = pneg %p819_p7 }
 0x276   : > { %p825_p12 = pnand %p824_p11, %p820_p8 }
 0x278   : > { %828 = shalt.err (!%p825_p12)
}
 0x279   : > { %743 = dma.vmem_to_hbm [thread:$0]  (%p982_p5), %s569_s22, 128, %s566_s21, %s550_s23  }
 0x27a   : > { %s1107_s24 = sshll.u32 %s1028_s26, 3  ;;  %s1108_s0 = sshll.u32 %s965_s9, 7 }
 0x27b   : > { %s320_s25 = scalar_lea.vmem [#allocation4], %s1107_s24  ;;  %s579_s13 = scalar_lea.hbm %s1100_s8, %s1108_s0 }
 0x27c   : > { %s581_s12 = sshll.u32 %s320_s25, 4  ;;  %s555_s17 = scalar_lea.sflag [#allocation5], %s1028_s26  ;;  %s582_s12 = int_to_ptr.vmem [resolvable:$true] %s581_s12 }
 0x27d   : > { %s829_s19 = scalar_lea.vmem %s582_s12, 128  ;;  %s898_s21 = smov [#allocation4]  }
 0x27e   : > { %p830_p13 = scmp.ne.s32.totalorder %s582_s12, %s829_s19  ;;  %s833_s22 = sshll.u32 %s898_s21, 4  ;;  %s834_s22 = int_to_ptr.vmem [resolvable:$false] %s833_s22 }
 0x27f   : > { %s835_s23 = scalar_lea.vmem %s834_s22, 256  ;;  %p836_p2 = scmp.lt.s32.totalorder %s582_s12, %s834_s22 }
 0x280   : > { %p831_p0 = pnand %p830_p13, %p982_p5  ;;  %p837_p3 = scmp.lt.s32.totalorder %s835_s23, %s829_s19 }
 0x282   : > { %p832_p1 = pneg %p831_p0  ;;  %p838_p4 = por %p837_p3, %p836_p2 }
 0x284   : > { %p839_p7 = pnand %p838_p4, %p832_p1 }
 0x2f6   : > { %v545_v41 = vpop.xlane.xlu0 %544 }
 0x2f7   : > { %801 = vrcp.f32 %v545_v41 }
 0x304   : > { %v802_v42 = vpop.eup %801 }
 0x305   : > { %v547_v43 = vmul.f32 %v802_v42, %v800_v40 }
 0x307   : > { %548 = vst [vmem:[%s320_s25] sm:$0xff] %v547_v43 }
 0x308   : > { %842 = shalt.err (!%p839_p7)
}
 0x309   : > { %s843_s9 = scalar_lea.hbm %s579_s13, 128  ;;  %s847_s24 = scalar_lea.hbm %s1100_s8, 256 }
 0x30a   : > { %p844_p8 = scmp.ne.s32.totalorder %s579_s13, %s843_s9  ;;  %p848_p11 = scmp.lt.s32.totalorder %s579_s13, %s1100_s8 }
 0x30b   : > { %p849_p12 = scmp.lt.s32.totalorder %s847_s24, %s843_s9 }
 0x30c   : > { %p845_p9 = pnand %p844_p8, %p982_p5 }
 0x30d   : > { %p850_p13 = por %p849_p12, %p848_p11 }
 0x30e   : > { %p846_p10 = pneg %p845_p9 }
 0x310   : > { %p851_p0 = pnand %p850_p13, %p846_p10 }
 0x312   : > { %854 = shalt.err (!%p851_p0)
}
 0x313   : > { %744 = dma.vmem_to_hbm [thread:$0]  (%p982_p5), %s582_s12, 128, %s579_s13, %s555_s17  }
 0x314 PF: > { %p754_p1 = scmp.ge.s32.totalorder %s893_s30, 2  ;;  %s593_s18 = sand.u32 1, %s881_s27  }
 0x315   : > { %s594_s10 = scalar_lea.sflag [#allocation3], %s593_s18 }
 0x316   : > { %p748_p2 = pnand %p754_p1, %p986_p6 }
 0x318   : > { %p749_p3 = pneg %p748_p2 }
 0x31a   : > { %872 = dma.done.wait (%p749_p3), %s594_s10, 128  }
 0x31b   : > { %874 = vsyncadd (%p749_p3), %s594_s10, 4294967168  ;;  %s603_s19 = scalar_lea.sflag [#allocation5], %s593_s18 }
 0x31c   : > { %876 = dma.done.wait (%p749_p3), %s603_s19, 128  }
 0x31d   : > { %878 = vsyncadd (%p749_p3), %s603_s19, 4294967168  ;;  %p22_p5 = scmp.ge.s32.totalorder %s969_s11, 4   ;;  %s1109_s27 = smov %s885_s28 }
 0x31e   : > { %s1110_s28 = smov %s889_s29  ;;  %s1111_s29 = smov %s980_s14 }
 0x31f   : > { %s1112_s30 = smov %s969_s11  ;;  %24 = sbr.rel (!%p22_p5) target bundleno = 7 (0x7), region = 103 }
 0x324   :  { %608 = vsyncpa [#allocation3], 1 }
 0x325   :  { %610 = vsyncpa [#allocation3 + $0x1], 1 }
 0x326   :  { %611 = vsyncpa [#allocation5], 1 }
 0x327   :  { %613 = vsyncpa [#allocation5 + $0x1], 1 }

</bundles_post_ra>
